<compile_context>
chip_gen: v6e
topology: v6e:2x2x1
jax: 0.10.0
libtpu: 0.0.40
codegen_flags: <defaults>
</compile_context>

<pallas_src>
import numpy as np
import jax
import jax.numpy as jnp
from jax import lax
from jax.experimental import pallas as pl
from jax.experimental.pallas import tpu as pltpu


# ---------------------------------------------------------------------------
# Deterministic 1-D Gaussian (same math as the PyTorch gaussian()).
# ---------------------------------------------------------------------------
def gaussian_1d(window_size: int, sigma: float = 1.5) -> np.ndarray:
    xs = np.arange(window_size, dtype=np.float64)
    g = np.exp(-((xs - window_size // 2) ** 2) / (2.0 * sigma ** 2))
    return (g / g.sum()).astype(np.float32)


def gaussian_window_2d(window_size: int, sigma: float = 1.5) -> jnp.ndarray:
    g = gaussian_1d(window_size, sigma)
    return jnp.asarray(np.outer(g, g).astype(np.float32))


# ---------------------------------------------------------------------------
# Trace-time-constant banded matrices implementing the separable "valid" conv.
#   horizontal:  out[..., j] = sum_k g[k] * q[..., j + k]      ->  q @ Bh
#   vertical:    out[i, ...] = sum_k g[k] * q[i + k, ...]      ->  BvP @ q
# BvP is block-diagonal (P copies of Bv) so P planes stacked along the sublane
# dimension are convolved independently in a single matmul.
# ---------------------------------------------------------------------------
def _banded_matrices(g: np.ndarray, h: int, w: int, p: int):
    k = g.shape[0]
    oh, ow = h - k + 1, w - k + 1
    bh = np.zeros((w, ow), np.float32)
    for j in range(ow):
        bh[j:j + k, j] = g
    bv = np.zeros((oh, h), np.float32)
    for i in range(oh):
        bv[i, i:i + k] = g
    bvp = np.kron(np.eye(p, dtype=np.float32), bv)  # (p*oh, p*h)
    return jnp.asarray(bh), jnp.asarray(bvp)


def _choose_planes_per_step(num_planes: int, h: int, w: int) -> int:
    """Largest divisor of num_planes keeping the per-step VMEM footprint small."""
    best = 1
    for p in range(1, num_planes + 1):
        if num_planes % p:
            continue
        if p * h > 512:                       # keep block-diag BvP <= ~1 MiB
            continue
        if p * h * w * 4 > (2 << 20):         # <= ~2 MiB per plane-batch quantity
            continue
        best = p
    return best


# ---------------------------------------------------------------------------
# Pallas kernel: one batch of P planes per grid step.
# ---------------------------------------------------------------------------
def _ssim_kernel(c_ref, x_ref, y_ref, bh_ref, bvp_ref, o_ref):
    x = x_ref[0]          # (P*H, W) f32
    y = y_ref[0]
    bh = bh_ref[...]      # (W, OW)      horizontal banded Gaussian
    bvp = bvp_ref[...]    # (P*OH, P*H)  block-diag vertical banded Gaussian

    def sep_conv(q):
        # Horizontal (lane) pass then vertical (sublane) pass, both on the MXU.
        t = jnp.dot(q, bh, preferred_element_type=jnp.float32,
                    precision=lax.Precision.HIGHEST)           # (P*H, OW)
        return jnp.dot(bvp, t, preferred_element_type=jnp.float32,
                       precision=lax.Precision.HIGHEST)        # (P*OH, OW)

    mu1 = sep_conv(x)
    mu2 = sep_conv(y)
    e_xx = sep_conv(x * x)
    e_yy = sep_conv(y * y)
    e_xy = sep_conv(x * y)

    c1 = c_ref[0]
    c2 = c_ref[1]

    mu1_sq = mu1 * mu1
    mu2_sq = mu2 * mu2
    mu1_mu2 = mu1 * mu2
    sigma1_sq = e_xx - mu1_sq
    sigma2_sq = e_yy - mu2_sq
    sigma12 = e_xy - mu1_mu2

    v1 = 2.0 * sigma12 + c2
    v2 = sigma1_sq + sigma2_sq + c2
    ssim_map = (2.0 * mu1_mu2 + c1) * v1 / ((mu1_sq + mu2_sq + c1) * v2)

    # Per-step partial sum (independent output block per grid step -> "parallel").
    o_ref[...] = jnp.broadcast_to(jnp.sum(ssim_map), (1, 1, 1))


# ---------------------------------------------------------------------------
# Wrapper: layout plumbing, val_range -> (C1, C2), final mean.
# ---------------------------------------------------------------------------
def ssim_pallas(img1, img2, window_size: int = 11):
    B, C, H, W = img1.shape
    assert H >= window_size and W >= window_size
    OH = H - window_size + 1
    OW = W - window_size + 1
    num_planes = B * C

    P = _choose_planes_per_step(num_planes, H, W)
    nsteps = num_planes // P

    g = gaussian_1d(window_size)
    bh, bvp = _banded_matrices(g, H, W, P)

    # val_range=None path of the PyTorch reference.
    max_val = jnp.where(jnp.max(img1) > 128.0, 255.0, 1.0)
    min_val = jnp.where(jnp.min(img1) < -0.5, -1.0, 0.0)
    L = max_val - min_val
    C1 = (0.01 * L) ** 2
    C2 = (0.03 * L) ** 2
    consts = jnp.stack([C1, C2]).astype(jnp.float32)  # (2,) -> SMEM

    # Stack P planes along the sublane dimension per grid step.
    x = img1.astype(jnp.float32).reshape(nsteps, P * H, W)
    y = img2.astype(jnp.float32).reshape(nsteps, P * H, W)

    part = pl.pallas_call(
        _ssim_kernel,
        out_shape=jax.ShapeDtypeStruct((nsteps, 1, 1), jnp.float32),
        grid=(nsteps,),
        in_specs=[
            pl.BlockSpec(memory_space=pltpu.MemorySpace.SMEM),      # (2,) C1, C2
            pl.BlockSpec((1, P * H, W), lambda i: (i, 0, 0)),       # img1 plane batch
            pl.BlockSpec((1, P * H, W), lambda i: (i, 0, 0)),       # img2 plane batch
            pl.BlockSpec((W, OW), lambda i: (0, 0)),                # Bh (resident)
            pl.BlockSpec((P * OH, P * H), lambda i: (0, 0)),        # BvP (resident)
        ],
        out_specs=pl.BlockSpec((1, 1, 1), lambda i: (i, 0, 0)),
        compiler_params=pltpu.CompilerParams(
            dimension_semantics=("parallel",),
        ),
    )(consts, x, y, bh, bvp)

    # size_average=True -> global mean over all SSIM-map elements.
    return jnp.sum(part) / jnp.float32(num_planes * OH * OW)


# ---------------------------------------------------------------------------
# Pure-JAX reference (non-separable 2-D window, like the PyTorch module).
# ---------------------------------------------------------------------------
def ssim_ref(img1, img2, window2d, window_size=11):
    B, C, H, W = img1.shape
    w = jnp.broadcast_to(window2d, (C, 1, window_size, window_size)).astype(jnp.float32)

    def conv(z):
        return lax.conv_general_dilated(
            z, w, window_strides=(1, 1), padding="VALID",
            dimension_numbers=("NCHW", "OIHW", "NCHW"),
            feature_group_count=C,
            precision=lax.Precision.HIGHEST,
        )

    max_val = jnp.where(jnp.max(img1) > 128.0, 255.0, 1.0)
    min_val = jnp.where(jnp.min(img1) < -0.5, -1.0, 0.0)
    L = max_val - min_val
    C1 = (0.01 * L) ** 2
    C2 = (0.03 * L) ** 2

    mu1 = conv(img1)
    mu2 = conv(img2)
    mu1_sq, mu2_sq, mu1_mu2 = mu1 * mu1, mu2 * mu2, mu1 * mu2
    sigma1_sq = conv(img1 * img1) - mu1_sq
    sigma2_sq = conv(img2 * img2) - mu2_sq
    sigma12 = conv(img1 * img2) - mu1_mu2
    v1 = 2.0 * sigma12 + C2
    v2 = sigma1_sq + sigma2_sq + C2
    ssim_map = (2.0 * mu1_mu2 + C1) * v1 / ((mu1_sq + mu2_sq + C1) * v2)
    return jnp.mean(ssim_map)


if __name__ == "__main__":
    key = jax.random.PRNGKey(0)
    k1, k2 = jax.random.split(key)
    B, C, H, W = 2, 4, 16, 16
    window_size = 11

    img1 = jax.random.normal(k1, (B, C, H, W), dtype=jnp.float32)
    img2 = jax.random.normal(k2, (B, C, H, W), dtype=jnp.float32)

    out = ssim_pallas(img1, img2, window_size=window_size)
    out = jax.block_until_ready(out)

    window2d = gaussian_window_2d(window_size)
    ref = jax.block_until_ready(ssim_ref(img1, img2, window2d, window_size=window_size))
    assert abs(float(out) - float(ref)) < 1e-4, (float(out), float(ref))

    print("KERNEL_OK")
</pallas_src>

<mosaic_0001>
module attributes {stable_mosaic.version = 11 : i64} {
  func.func @_ssim_kernel(%arg0: i32, %arg1: memref<2xf32, #tpu.memory_space<smem>>, %arg2: memref<1x128x16xf32, #tpu.memory_space<vmem>>, %arg3: memref<1x128x16xf32, #tpu.memory_space<vmem>>, %arg4: memref<16x6xf32, #tpu.memory_space<vmem>>, %arg5: memref<48x128xf32, #tpu.memory_space<vmem>>, %arg6: memref<1x1x1xf32, #tpu.memory_space<vmem>>) attributes {dimension_semantics = [#tpu.dimension_semantics<parallel>], iteration_bounds = array<i64: 1>, scalar_prefetch = 0 : i64, scratch_operands = 0 : i64, tpu.core_type = #tpu.core_type<tc>, window_params = [{transform_indices = @transform_0, window_bounds = array<i64: 2>}, {transform_indices = @transform_1, window_bounds = array<i64: 1, 128, 16>}, {transform_indices = @transform_2, window_bounds = array<i64: 1, 128, 16>}, {pipeline_mode = #tpu.pipeline_mode<synchronous>, transform_indices = @transform_3, window_bounds = array<i64: 16, 6>}, {pipeline_mode = #tpu.pipeline_mode<synchronous>, transform_indices = @transform_4, window_bounds = array<i64: 48, 128>}, {transform_indices = @transform_5, window_bounds = array<i64: 1, 1, 1>}]} {
    %c0 = arith.constant 0 : index
    %c0_0 = arith.constant 0 : index
    %c0_1 = arith.constant 0 : index
    %0 = vector.load %arg2[%c0, %c0_0, %c0_1] : memref<1x128x16xf32, #tpu.memory_space<vmem>>, vector<1x128x16xf32>
    %1 = vector.shape_cast %0 : vector<1x128x16xf32> to vector<128x16xf32>
    %c0_2 = arith.constant 0 : index
    %c0_3 = arith.constant 0 : index
    %c0_4 = arith.constant 0 : index
    %2 = vector.load %arg3[%c0_2, %c0_3, %c0_4] : memref<1x128x16xf32, #tpu.memory_space<vmem>>, vector<1x128x16xf32>
    %3 = vector.shape_cast %2 : vector<1x128x16xf32> to vector<128x16xf32>
    %c0_5 = arith.constant 0 : index
    %c0_6 = arith.constant 0 : index
    %4 = vector.load %arg4[%c0_5, %c0_6] : memref<16x6xf32, #tpu.memory_space<vmem>>, vector<16x6xf32>
    %c0_7 = arith.constant 0 : index
    %c0_8 = arith.constant 0 : index
    %5 = vector.load %arg5[%c0_7, %c0_8] : memref<48x128xf32, #tpu.memory_space<vmem>>, vector<48x128xf32>
    %cst = arith.constant dense<0.000000e+00> : vector<128x6xf32>
    %6 = tpu.matmul %1, %4, %cst {dimension_numbers = #tpu.dot_dimension_numbers<[1], [0], [0], [1], [0, 0, 1, 1], [], []>, precision = #tpu.contract_precision<fp32>} : vector<128x16xf32>, vector<16x6xf32>, vector<128x6xf32> -> vector<128x6xf32>
    %cst_9 = arith.constant dense<0.000000e+00> : vector<48x6xf32>
    %7 = tpu.matmul %5, %6, %cst_9 {dimension_numbers = #tpu.dot_dimension_numbers<[1], [0], [0], [1], [0, 0, 1, 1], [], []>, precision = #tpu.contract_precision<fp32>} : vector<48x128xf32>, vector<128x6xf32>, vector<48x6xf32> -> vector<48x6xf32>
    %cst_10 = arith.constant dense<0.000000e+00> : vector<128x6xf32>
    %8 = tpu.matmul %3, %4, %cst_10 {dimension_numbers = #tpu.dot_dimension_numbers<[1], [0], [0], [1], [0, 0, 1, 1], [], []>, precision = #tpu.contract_precision<fp32>} : vector<128x16xf32>, vector<16x6xf32>, vector<128x6xf32> -> vector<128x6xf32>
    %cst_11 = arith.constant dense<0.000000e+00> : vector<48x6xf32>
    %9 = tpu.matmul %5, %8, %cst_11 {dimension_numbers = #tpu.dot_dimension_numbers<[1], [0], [0], [1], [0, 0, 1, 1], [], []>, precision = #tpu.contract_precision<fp32>} : vector<48x128xf32>, vector<128x6xf32>, vector<48x6xf32> -> vector<48x6xf32>
    %10 = arith.mulf %1, %1 : vector<128x16xf32>
    %cst_12 = arith.constant dense<0.000000e+00> : vector<128x6xf32>
    %11 = tpu.matmul %10, %4, %cst_12 {dimension_numbers = #tpu.dot_dimension_numbers<[1], [0], [0], [1], [0, 0, 1, 1], [], []>, precision = #tpu.contract_precision<fp32>} : vector<128x16xf32>, vector<16x6xf32>, vector<128x6xf32> -> vector<128x6xf32>
    %cst_13 = arith.constant dense<0.000000e+00> : vector<48x6xf32>
    %12 = tpu.matmul %5, %11, %cst_13 {dimension_numbers = #tpu.dot_dimension_numbers<[1], [0], [0], [1], [0, 0, 1, 1], [], []>, precision = #tpu.contract_precision<fp32>} : vector<48x128xf32>, vector<128x6xf32>, vector<48x6xf32> -> vector<48x6xf32>
    %13 = arith.mulf %3, %3 : vector<128x16xf32>
    %cst_14 = arith.constant dense<0.000000e+00> : vector<128x6xf32>
    %14 = tpu.matmul %13, %4, %cst_14 {dimension_numbers = #tpu.dot_dimension_numbers<[1], [0], [0], [1], [0, 0, 1, 1], [], []>, precision = #tpu.contract_precision<fp32>} : vector<128x16xf32>, vector<16x6xf32>, vector<128x6xf32> -> vector<128x6xf32>
    %cst_15 = arith.constant dense<0.000000e+00> : vector<48x6xf32>
    %15 = tpu.matmul %5, %14, %cst_15 {dimension_numbers = #tpu.dot_dimension_numbers<[1], [0], [0], [1], [0, 0, 1, 1], [], []>, precision = #tpu.contract_precision<fp32>} : vector<48x128xf32>, vector<128x6xf32>, vector<48x6xf32> -> vector<48x6xf32>
    %16 = arith.mulf %1, %3 : vector<128x16xf32>
    %cst_16 = arith.constant dense<0.000000e+00> : vector<128x6xf32>
    %17 = tpu.matmul %16, %4, %cst_16 {dimension_numbers = #tpu.dot_dimension_numbers<[1], [0], [0], [1], [0, 0, 1, 1], [], []>, precision = #tpu.contract_precision<fp32>} : vector<128x16xf32>, vector<16x6xf32>, vector<128x6xf32> -> vector<128x6xf32>
    %cst_17 = arith.constant dense<0.000000e+00> : vector<48x6xf32>
    %18 = tpu.matmul %5, %17, %cst_17 {dimension_numbers = #tpu.dot_dimension_numbers<[1], [0], [0], [1], [0, 0, 1, 1], [], []>, precision = #tpu.contract_precision<fp32>} : vector<48x128xf32>, vector<128x6xf32>, vector<48x6xf32> -> vector<48x6xf32>
    %c0_18 = arith.constant 0 : index
    %19 = memref.load %arg1[%c0_18] : memref<2xf32, #tpu.memory_space<smem>>
    %c1 = arith.constant 1 : index
    %20 = memref.load %arg1[%c1] : memref<2xf32, #tpu.memory_space<smem>>
    %21 = arith.mulf %7, %7 : vector<48x6xf32>
    %22 = arith.mulf %9, %9 : vector<48x6xf32>
    %23 = arith.mulf %7, %9 : vector<48x6xf32>
    %24 = arith.subf %12, %21 : vector<48x6xf32>
    %25 = arith.subf %15, %22 : vector<48x6xf32>
    %26 = arith.subf %18, %23 : vector<48x6xf32>
    %cst_19 = arith.constant 2.000000e+00 : f32
    %27 = vector.broadcast %cst_19 : f32 to vector<48x6xf32>
    %28 = arith.mulf %27, %26 : vector<48x6xf32>
    %29 = vector.broadcast %20 : f32 to vector<48x6xf32>
    %30 = arith.addf %28, %29 : vector<48x6xf32>
    %31 = arith.addf %24, %25 : vector<48x6xf32>
    %32 = vector.broadcast %20 : f32 to vector<48x6xf32>
    %33 = arith.addf %31, %32 : vector<48x6xf32>
    %cst_20 = arith.constant 2.000000e+00 : f32
    %34 = vector.broadcast %cst_20 : f32 to vector<48x6xf32>
    %35 = arith.mulf %34, %23 : vector<48x6xf32>
    %36 = vector.broadcast %19 : f32 to vector<48x6xf32>
    %37 = arith.addf %35, %36 : vector<48x6xf32>
    %38 = arith.mulf %37, %30 : vector<48x6xf32>
    %39 = arith.addf %21, %22 : vector<48x6xf32>
    %40 = vector.broadcast %19 : f32 to vector<48x6xf32>
    %41 = arith.addf %39, %40 : vector<48x6xf32>
    %42 = arith.mulf %41, %33 : vector<48x6xf32>
    %43 = arith.divf %38, %42 : vector<48x6xf32>
    %44 = vector.shape_cast %43 : vector<48x6xf32> to vector<1x48x6xf32>
    %cst_21 = arith.constant dense<0.000000e+00> : vector<1xf32>
    %45 = vector.multi_reduction <add>, %44, %cst_21 [1, 2] : vector<1x48x6xf32> to vector<1xf32>
    %46 = vector.shape_cast %45 : vector<1xf32> to vector<1x1x1xf32>
    %47 = vector.extract %46[0, 0, 0] : f32 from vector<1x1x1xf32>
    %48 = vector.broadcast %47 : f32 to vector<1x1x1xf32>
    %c0_22 = arith.constant 0 : index
    %c0_23 = arith.constant 0 : index
    %c0_24 = arith.constant 0 : index
    %49 = vector.load %arg6[%c0_22, %c0_23, %c0_24] : memref<1x1x1xf32, #tpu.memory_space<vmem>>, vector<1x1x1xf32>
    tpu.vector_store %arg6[%c0_22, %c0_23, %c0_24], %48 {strides = array<i32>} : memref<1x1x1xf32, #tpu.memory_space<vmem>>, vector<1x1x1xf32>,
    return
  }
  func.func @transform_0(%arg0: i32) -> i32 {
    %c0_i32 = arith.constant 0 : i32
    %c0_i32_0 = arith.constant 0 : i32
    return %c0_i32 : i32
  }
  func.func @transform_1(%arg0: i32) -> (i32, i32, i32) {
    %c0_i32 = arith.constant 0 : i32
    %c0_i32_0 = arith.constant 0 : i32
    %c0_i32_1 = arith.constant 0 : i32
    return %arg0, %c0_i32, %c0_i32_0 : i32, i32, i32
  }
  func.func @transform_2(%arg0: i32) -> (i32, i32, i32) {
    %c0_i32 = arith.constant 0 : i32
    %c0_i32_0 = arith.constant 0 : i32
    %c0_i32_1 = arith.constant 0 : i32
    return %arg0, %c0_i32, %c0_i32_0 : i32, i32, i32
  }
  func.func @transform_3(%arg0: i32) -> (i32, i32) {
    %c0_i32 = arith.constant 0 : i32
    %c0_i32_0 = arith.constant 0 : i32
    %c0_i32_1 = arith.constant 0 : i32
    return %c0_i32, %c0_i32_0 : i32, i32
  }
  func.func @transform_4(%arg0: i32) -> (i32, i32) {
    %c0_i32 = arith.constant 0 : i32
    %c0_i32_0 = arith.constant 0 : i32
    %c0_i32_1 = arith.constant 0 : i32
    return %c0_i32, %c0_i32_0 : i32, i32
  }
  func.func @transform_5(%arg0: i32) -> (i32, i32, i32) {
    %c0_i32 = arith.constant 0 : i32
    %c0_i32_0 = arith.constant 0 : i32
    %c0_i32_1 = arith.constant 0 : i32
    return %arg0, %c0_i32, %c0_i32_0 : i32, i32, i32
  }
}

</mosaic_0001>

<bundles_post_ra>
// kernel: tpu_custom_call.1
= control target key start
LH: loop header
LB: loop body
LE: loop exit
PB: predicated region body
PF: predicated region fallthrough
CT: control target
= control target key end

     0   :  { %10 = vsyncpa [#allocation4], 0  ;;  %s18432_s0 = inlined_call_operand.vmem [shape: f32[2], index: 0, kind: input, shape index: {}]   ;;  %s18433_s1 = inlined_call_operand.vmem [shape: f32[1,128,16], index: 1, kind: input, shape index: {}]   ;;  %s18434_s2 = inlined_call_operand.vmem [shape: f32[1,128,16], index: 2, kind: input, shape index: {}]   ;;  %s18435_s3 = inlined_call_operand.vmem [shape: f32[16,6], index: 3, kind: input, shape index: {}]   ;;  %s18436_s4 = inlined_call_operand.vmem [shape: f32[48,128], index: 4, kind: input, shape index: {}]   ;;  %s18437_s5 = inlined_call_operand.hbm [shape: f32[1,1,1], index: 5, kind: output, shape index: {}]  }
   0x1   :  { %11 = vsyncpa [#allocation3], 0  ;;  %s18_s20 = sshll.u32 %s18432_s0, 4  ;;  %s19_s20 = int_to_ptr.vmem [resolvable:$true] %s18_s20 }
   0x2   :  { %s13665_s21 = scalar_lea.vmem %s19_s20, 16  ;;  %p13670_p1 = scmp.lt.s32.totalorder %s19_s20, %s19_s20 }
   0x3   :  { %p13666_p0 = scmp.ne.s32.totalorder %s19_s20, %s13665_s21  ;;  %p13671_p2 = scmp.lt.s32.totalorder %s13665_s21, %s13665_s21 }
   0x5   :  { %p13672_p3 = por %p13671_p2, %p13670_p1 }
   0x7   :  { %p13673_p4 = pnand %p13672_p3, %p13666_p0 }
   0x9   :  { %13676 = shalt.err (!%p13673_p4)
}
   0xa   :  { %s13701_s22 = smov [#allocation2]  }
   0xb   :  { %21 = dma.vmem_to_smem %s19_s20, 16, %s13701_s22, [#allocation4]  }
   0xc   :  { %13697 = dma.done.wait [#allocation4], 16  }
   0xd   :  { %13698 = vsyncadd [#allocation4], 4294967280 }
   0xe   :  { %33 = sfence }
   0xf   :  { %v67_v0 = vld [vmem:[%s18435_s3 + $0x8] sm:$0xff]  ;;  %v66_v1 = vld [vmem:[%s18435_s3] sm:$0xff]  ;;  %vm74_vm0 = vcmask 130048   ;;  %v36_v9 = vld [vmem:[%s18433_s1 + $0x10] sm:$0xff]  ;;  %vm10275_vm1 = vcmask 48128   ;;  %s13702_s9 = smov [#allocation5]  }
  0x10   :  { %v34_v2 = vld [vmem:[%s18433_s1] sm:$0xff]  ;;  %v13745_v3 = vand.u32 4294901760, %v67_v0  ;;  %v13747_v4 = vand.u32 4294901760, %v66_v1  ;;  %v35_v6 = vld [vmem:[%s18433_s1 + $0x8] sm:$0xff]  ;;  %v82_v16 = vsel %vm74_vm0, %v36_v9, 0  ;;  %v37_v19 = vld [vmem:[%s18433_s1 + $0x18] sm:$0xff] }
  0x11   :  { %v76_v5 = vsel %vm74_vm0, %v34_v2, 0  ;;  %v79_v8 = vsel %vm74_vm0, %v35_v6, 0  ;;  %v13798_v24 = vand.u32 4294901760, %v82_v16  ;;  %v38_v25 = vld [vmem:[%s18433_s1 + $0x20] sm:$0xff]  ;;  %v39_v26 = vld [vmem:[%s18433_s1 + $0x28] sm:$0xff]  ;;  %v85_v29 = vsel %vm74_vm0, %v37_v19, 0 }
  0x12   :  { %18604 = vst [vmem:[#allocation8_spill] sm:$0xff] %v13745_v3  ;;  %18605 = vst [vmem:[#allocation9_spill] sm:$0xff] %v13747_v4  ;;  %v13753_v7 = vand.u32 4294901760, %v76_v5  ;;  %11515 = vmatprep.subr.mxu0 %v13745_v3  ;;  %v13761_v10 = vsub.f32 %v67_v0, %v13745_v3  ;;  %v13763_v11 = vand.u32 4294901760, %v79_v8  ;;  %v13770_v13 = vsub.f32 %v66_v1, %v13747_v4  ;;  %v40_v34 = vld [vmem:[%s18433_s1 + $0x30] sm:$0xff]  ;;  %v41_v35 = vld [vmem:[%s18433_s1 + $0x38] sm:$0xff] }
  0x13   :  { %11516 = vmatpush3.msra.mxu0 %v13745_v3  ;;  %v13815_v32 = vsub.f32 %v82_v16, %v13798_v24  ;;  %v13817_v33 = vand.u32 4294901760, %v85_v29  ;;  %v88_v37 = vsel %vm74_vm0, %v38_v25, 0  ;;  %v91_v38 = vsel %vm74_vm0, %v39_v26, 0  ;;  %v42_v43 = vld [vmem:[%s18433_s1 + $0x40] sm:$0xff]  ;;  %v43_v44 = vld [vmem:[%s18433_s1 + $0x48] sm:$0xff]  ;;  %v44_v63 = vld [vmem:[%s18433_s1 + $0x50] sm:$0xff] }
  0x14   :  { %18606 = vst [vmem:[#allocation10_spill] sm:$0xff] %v13761_v10  ;;  %v13767_v12 = vsub.f32 %v76_v5, %v13753_v7  ;;  %18607 = vst [vmem:[#allocation11_spill] sm:$0xff] %v13770_v13  ;;  %11547 = vmatprep.mubr.f32.mxu1 %v13753_v7  ;;  %11517 = vmatprep.subr.mxu0 %v13747_v4  ;;  %v13775_v14 = vand.u32 4294901760, %v13761_v10  ;;  %v13778_v15 = vsub.f32 %v79_v8, %v13763_v11  ;;  %v45_v0 = vld [vmem:[%s18433_s1 + $0x58] sm:$0xff]  ;;  %v46_v19 = vld [vmem:[%s18433_s1 + $0x60] sm:$0xff]  ;;  %s10305_s10 = sshll.u32 %s13702_s9, 4  ;;  %s10306_s10 = int_to_ptr.vmem [resolvable:$true] %s10305_s10 }
  0x15   :  { %11518 = vmatpush3.msra.mxu0 %v13747_v4  ;;  %v13784_v18 = vand.u32 4294901760, %v13770_v13  ;;  %v212_v39 = vand.u32 4294901760, %v13815_v32  ;;  %v13831_v40 = vsub.f32 %v85_v29, %v13817_v33  ;;  %v13833_v41 = vand.u32 4294901760, %v88_v37  ;;  %s13677_s12 = scalar_lea.vmem %s10306_s10, 16  ;;  %s13681_s13 = scalar_lea.vmem %s10306_s10, 32 }
  0x16   :  { %18608 = vst [vmem:[#allocation12_spill] sm:$0xff] %v13775_v14  ;;  %v192_v17 = vand.u32 4294901760, %v13767_v12  ;;  %v382_v20 = vsub.f32 %v13761_v10, %v13775_v14  ;;  %v202_v21 = vand.u32 4294901760, %v13778_v15  ;;  %11571 = vmatprep.subr.mxu0 %v13761_v10  ;;  %v13835_v42 = vand.u32 4294901760, %v91_v38  ;;  %p13678_p5 = scmp.ne.s32.totalorder %s10306_s10, %s13677_s12  ;;  %p13682_p6 = scmp.lt.s32.totalorder %s10306_s10, %s10306_s10 }
  0x17   :  { %18609 = vst [vmem:[#allocation13_spill] sm:$0xff] %v13784_v18  ;;  %v389_v23 = vsub.f32 %v13770_v13, %v13784_v18  ;;  %v94_v45 = vsel %vm74_vm0, %v40_v34, 0  ;;  %v97_v46 = vsel %vm74_vm0, %v41_v35, 0  ;;  %v213_v47 = vsub.f32 %v13815_v32, %v212_v39  ;;  %v47_v34 = vld [vmem:[%s18433_s1 + $0x68] sm:$0xff]  ;;  %p13683_p7 = scmp.lt.s32.totalorder %s13681_s13, %s13677_s12 }
  0x18   :  { %v193_v22 = vsub.f32 %v13767_v12, %v192_v17  ;;  %v13806_v27 = vand.u32 4294901760, %v382_v20  ;;  %v203_v28 = vsub.f32 %v13778_v15, %v202_v21  ;;  %v222_v48 = vand.u32 4294901760, %v13831_v40 }
  0x19   :  { %v13812_v31 = vand.u32 4294901760, %v389_v23  ;;  %v13853_v49 = vsub.f32 %v88_v37, %v13833_v41  ;;  %v13856_v50 = vsub.f32 %v91_v38, %v13835_v42  ;;  %v13860_v51 = vand.u32 4294901760, %v94_v45  ;;  %p13684_p8 = por %p13683_p7, %p13682_p6 }
  0x1a   :  { %18610 = vst [vmem:[#allocation14_spill] sm:$0xff] %v13806_v27  ;;  %v194_v30 = vand.u32 4294901760, %v193_v22  ;;  %11543 = vmatprep.subr.mxu1 %v13806_v27  ;;  %v204_v36 = vand.u32 4294901760, %v203_v28  ;;  %v13862_v52 = vand.u32 4294901760, %v97_v46  ;;  %v100_v53 = vsel %vm74_vm0, %v42_v43, 0 }
  0x1b   :  { %18611 = vst [vmem:[#allocation15_spill] sm:$0xff] %v13812_v31  ;;  %11544 = vmatpush3.msra.mxu1 %v13806_v27  ;;  %v103_v54 = vsel %vm74_vm0, %v43_v44, 0  ;;  %v214_v55 = vand.u32 4294901760, %v213_v47  ;;  %v223_v56 = vsub.f32 %v13831_v40, %v222_v48  ;;  %v232_v57 = vand.u32 4294901760, %v13853_v49  ;;  %p13685_p9 = pnand %p13684_p8, %p13678_p5 }
  0x1c   :  { %11519 = vmatprep.mubr.f32.mxu0 %v194_v30  ;;  %11545 = vmatprep.subr.mxu1 %v13812_v31  ;;  %v242_v58 = vand.u32 4294901760, %v13856_v50  ;;  %v13874_v59 = vsub.f32 %v94_v45, %v13860_v51  ;;  %v13877_v60 = vsub.f32 %v97_v46, %v13862_v52  ;;  %v13879_v61 = vand.u32 4294901760, %v100_v53  ;;  %v48_v46 = vld [vmem:[%s18433_s1 + $0x70] sm:$0xff] }
  0x1d   :  { %11520 = vmatmul.mubr.f32.vlgmr.msra.gmra.mxu0 %v204_v36  ;;  %11546 = vmatpush3.msra.mxu1 %v13812_v31  ;;  %v13881_v62 = vand.u32 4294901760, %v103_v54  ;;  %v224_v1 = vand.u32 4294901760, %v223_v56  ;;  %v233_v2 = vsub.f32 %v13853_v49, %v232_v57  ;;  %v106_v23 = vsel %vm74_vm0, %v44_v63, 0  ;;  %v49_v56 = vld [vmem:[%s18433_s1 + $0x78] sm:$0xff] }
  0x1e   :  { %11572 = vmatpush3.msra.mxu0 %v13761_v10  ;;  %11548 = vmatmul.mubr.f32.vlgmr.msra.gmra.mxu1 %v13763_v11  ;;  %v243_v5 = vsub.f32 %v13856_v50, %v242_v58  ;;  %v252_v6 = vand.u32 4294901760, %v13874_v59  ;;  %v262_v8 = vand.u32 4294901760, %v13877_v60  ;;  %v13902_v9 = vsub.f32 %v100_v53, %v13879_v61 }
  0x1f   :  { %11599 = vmatprep.subr.mxu1 %v13745_v3  ;;  %11550 = vmatprep.mubr.f32.mxu1 %v13798_v24  ;;  %v13905_v16 = vsub.f32 %v103_v54, %v13881_v62  ;;  %v234_v20 = vand.u32 4294901760, %v233_v2  ;;  %v109_v25 = vsel %vm74_vm0, %v45_v0, 0  ;;  %v13926_v35 = vand.u32 4294901760, %v106_v23 }
  0x20   :  { %11600 = vmatpush3.msra.mxu1 %v13745_v3  ;;  %11573 = vmatprep.subr.mxu0 %v13770_v13  ;;  %v244_v22 = vand.u32 4294901760, %v243_v5  ;;  %v253_v26 = vsub.f32 %v13874_v59, %v252_v6  ;;  %v263_v28 = vsub.f32 %v13877_v60, %v262_v8  ;;  %v272_v29 = vand.u32 4294901760, %v13902_v9 }
  0x21   :  { %11601 = vmatprep.subr.mxu1 %v13747_v4  ;;  %11522 = vmatprep.mubr.f32.mxu0 %v214_v55  ;;  %v18440_v30 = vand.u32 4294901760, %v13905_v16  ;;  %v13928_v36 = vand.u32 4294901760, %v109_v25  ;;  %v112_v37 = vsel %vm74_vm0, %v46_v19, 0  ;;  %v13944_v47 = vsub.f32 %v106_v23, %v13926_v35 }
  0x22   :  { %11574 = vmatpush3.msra.mxu0 %v13770_v13  ;;  %11551 = vmatmul.mubr.f32.gmra.mxu1 %v13817_v33  ;;  %v254_v38 = vand.u32 4294901760, %v253_v26  ;;  %v264_v43 = vand.u32 4294901760, %v263_v28  ;;  %v273_v44 = vsub.f32 %v13902_v9, %v272_v29  ;;  %v13949_v54 = vand.u32 4294901760, %v112_v37 }
  0x23   :  { %11627 = vmatprep.subr.mxu0 %v13775_v14  ;;  %11523 = vmatmul.mubr.f32.gmra.mxu0 %v224_v1  ;;  %v283_v45 = vsub.f32 %v13905_v16, %v18440_v30  ;;  %v13947_v53 = vsub.f32 %v109_v25, %v13928_v36  ;;  %v115_v55 = vsel %vm74_vm0, %v47_v34, 0  ;;  %v18439_v1 = vand.u32 4294901760, %v13944_v47 }
  0x24   :  { %11553 = vmatprep.mubr.f32.mxu1 %v13833_v41  ;;  %11602 = vmatpush3.msra.mxu1 %v13747_v4  ;;  %v274_v63 = vand.u32 4294901760, %v273_v44  ;;  %v13955_v0 = vand.u32 4294901760, %v115_v55  ;;  %v13960_v5 = vsub.f32 %v112_v37, %v13949_v54  ;;  %v118_v19 = vsel %vm74_vm0, %v48_v46, 0 }
  0x25   :  { %11525 = vmatprep.mubr.f32.mxu0 %v234_v20  ;;  %11655 = vmatprep.subr.mxu1 %v13745_v3  ;;  %v18438_v2 = vand.u32 4294901760, %v13947_v53  ;;  %v284_v20 = vand.u32 4294901760, %v283_v45  ;;  %v13967_v23 = vand.u32 4294901760, %v118_v19  ;;  %v121_v25 = vsel %vm74_vm0, %v49_v56, 0 }
  0x26   :  { %11554 = vmatmul.mubr.f32.gmra.mxu1 %v13835_v42  ;;  %v293_v26 = vsub.f32 %v13944_v47, %v18439_v1  ;;  %v312_v34 = vand.u32 4294901760, %v13960_v5  ;;  %v13978_v37 = vand.u32 4294901760, %v121_v25  ;;  %vm10297_vm2 = vcmask 0  }
  0x27   :  { %11526 = vmatmul.mubr.f32.gmra.mxu0 %v244_v22  ;;  %11556 = vmatprep.mubr.f32.mxu1 %v13860_v51  ;;  %v13965_v22 = vsub.f32 %v115_v55, %v13955_v0  ;;  %v303_v28 = vsub.f32 %v13947_v53, %v18438_v2  ;;  %v331_v44 = vsub.f32 %v118_v19, %v13967_v23 }
  0x28   :  { %11528 = vmatprep.mubr.f32.mxu0 %v254_v38  ;;  %v313_v45 = vsub.f32 %v13960_v5, %v312_v34  ;;  %v341_v46 = vsub.f32 %v121_v25, %v13978_v37 }
  0x29   :  { %v322_v38 = vand.u32 4294901760, %v13965_v22  ;;  %v332_v55 = vand.u32 4294901760, %v331_v44  ;;  %v304_v56 = vand.u32 4294901760, %v303_v28 }
  0x2a   :  { %11557 = vmatmul.mubr.f32.gmra.mxu1 %v13862_v52  ;;  %v342_v1 = vand.u32 4294901760, %v341_v46 }
  0x2b   :  { %11529 = vmatmul.mubr.f32.gmra.mxu0 %v264_v43  ;;  %11559 = vmatprep.mubr.f32.mxu1 %v13879_v61  ;;  %v294_v43 = vand.u32 4294901760, %v293_v26  ;;  %v323_v2 = vsub.f32 %v13965_v22, %v322_v38  ;;  %v333_v30 = vsub.f32 %v331_v44, %v332_v55 }
  0x2c   :  { %11531 = vmatprep.mubr.f32.mxu0 %v274_v63  ;;  %v314_v63 = vand.u32 4294901760, %v313_v45  ;;  %v343_v25 = vsub.f32 %v341_v46, %v342_v1 }
  0x2d   :  { %v324_v19 = vand.u32 4294901760, %v323_v2  ;;  %v334_v26 = vand.u32 4294901760, %v333_v30 }
  0x2e   :  { %11560 = vmatmul.mubr.f32.gmra.mxu1 %v13881_v62 }
  0x2f   :  { %11532 = vmatmul.mubr.f32.gmra.mxu0 %v284_v20  ;;  %11562 = vmatprep.mubr.f32.mxu1 %v13926_v35  ;;  %v344_v20 = vand.u32 4294901760, %v343_v25 }
  0x30   :  { %11534 = vmatprep.mubr.f32.mxu0 %v294_v43 }
  0x32   :  { %11563 = vmatmul.mubr.f32.gmra.mxu1 %v13928_v36 }
  0x33   :  { %11535 = vmatmul.mubr.f32.gmra.mxu0 %v304_v56  ;;  %11565 = vmatprep.mubr.f32.mxu1 %v13949_v54 }
  0x34   :  { %11537 = vmatprep.mubr.f32.mxu0 %v314_v63 }
  0x36   :  { %11566 = vmatmul.mubr.f32.gmra.mxu1 %v13955_v0 }
  0x37   :  { %11538 = vmatmul.mubr.f32.gmra.mxu0 %v324_v19  ;;  %11568 = vmatprep.mubr.f32.mxu1 %v13967_v23 }
  0x38   :  { %11540 = vmatprep.mubr.f32.mxu0 %v334_v26 }
  0x3a   :  { %11569 = vmatmul.mubr.f32.gmra.mxu1 %v13978_v37 }
  0x3b   :  { %11541 = vmatmul.mubr.f32.gmra.mxu0 %v344_v20  ;;  %11603 = vmatprep.mubr.f32.mxu1 %v192_v17  ;;  %v18614_v17 = vand.u32 4294901760, %v13947_v53 }
  0x3c   :  { %11575 = vmatprep.mubr.f32.mxu0 %v13767_v12  ;;  %v18612_v12 = vand.u32 4294901760, %v13905_v16 }
  0x3e   :  { %11604 = vmatmul.mubr.f32.vlgmr.msra.gmra.mxu1 %v202_v21 }
  0x3f   :  { %11576 = vmatmul.mubr.f32.vlgmr.msra.gmra.mxu0 %v13778_v15  ;;  %11656 = vmatpush3.msra.mxu1 %v13745_v3  ;;  %v18613_v15 = vand.u32 4294901760, %v13944_v47 }
  0x40   :  { %11628 = vmatpush3.msra.mxu0 %v13775_v14  ;;  %11578 = vmatprep.mubr.f32.mxu0 %v13815_v32 }
  0x41   :  { %11606 = vmatprep.mubr.f32.mxu1 %v212_v39  ;;  %11629 = vmatprep.subr.mxu0 %v13784_v18 }
  0x42   :  { %11607 = vmatmul.mubr.f32.gmra.mxu1 %v222_v48  ;;  %11630 = vmatpush3.msra.mxu0 %v13784_v18 }
  0x43   :  { %11579 = vmatmul.mubr.f32.gmra.mxu0 %v13831_v40  ;;  %11609 = vmatprep.mubr.f32.mxu1 %v232_v57 }
  0x44   :  { %11581 = vmatprep.mubr.f32.mxu0 %v13853_v49  ;;  %11657 = vmatprep.subr.mxu1 %v13747_v4 }
  0x45   :  { %11658 = vmatpush3.msra.mxu1 %v13747_v4 }
  0x46   :  { %11610 = vmatmul.mubr.f32.gmra.mxu1 %v242_v58 }
  0x47   :  { %11582 = vmatmul.mubr.f32.gmra.mxu0 %v13856_v50  ;;  %11612 = vmatprep.mubr.f32.mxu1 %v252_v6 }
  0x48   :  { %11584 = vmatprep.mubr.f32.mxu0 %v13874_v59 }
  0x4a   :  { %11613 = vmatmul.mubr.f32.gmra.mxu1 %v262_v8 }
  0x4b   :  { %11585 = vmatmul.mubr.f32.gmra.mxu0 %v13877_v60  ;;  %11615 = vmatprep.mubr.f32.mxu1 %v272_v29 }
  0x4c   :  { %11587 = vmatprep.mubr.f32.mxu0 %v13902_v9 }
  0x4e   :  { %11616 = vmatmul.mubr.f32.gmra.mxu1 %v18612_v12 }
  0x4f   :  { %11588 = vmatmul.mubr.f32.gmra.mxu0 %v13905_v16  ;;  %11618 = vmatprep.mubr.f32.mxu1 %v18613_v15 }
  0x50   :  { %11590 = vmatprep.mubr.f32.mxu0 %v13944_v47 }
  0x52   :  { %11619 = vmatmul.mubr.f32.gmra.mxu1 %v18614_v17 }
  0x53   :  { %11591 = vmatmul.mubr.f32.gmra.mxu0 %v13947_v53  ;;  %11621 = vmatprep.mubr.f32.mxu1 %v312_v34 }
  0x54   :  { %11593 = vmatprep.mubr.f32.mxu0 %v13960_v5 }
  0x56   :  { %11622 = vmatmul.mubr.f32.gmra.mxu1 %v322_v38 }
  0x57   :  { %11594 = vmatmul.mubr.f32.gmra.mxu0 %v13965_v22  ;;  %11624 = vmatprep.mubr.f32.mxu1 %v332_v55 }
  0x58   :  { %11596 = vmatprep.mubr.f32.mxu0 %v331_v44 }
  0x5a   :  { %11625 = vmatmul.mubr.f32.gmra.mxu1 %v342_v1 }
  0x5b   :  { %11597 = vmatmul.mubr.f32.gmra.mxu0 %v341_v46  ;;  %11659 = vmatprep.mubr.f32.mxu1 %v13753_v7 }
  0x5c   :  { %11631 = vmatprep.mubr.f32.mxu0 %v13753_v7  ;;  %v68_v7 = vld [vmem:[%s18436_s4] sm:$0xff] }
  0x5e   :  { %11660 = vmatmul.mubr.f32.vlgmr.msra.gmra.mxu1 %v13763_v11 }
  0x5f   :  { %11632 = vmatmul.mubr.f32.vlgmr.msra.gmra.mxu0 %v13763_v11  ;;  %11662 = vmatprep.mubr.f32.mxu1 %v13798_v24  ;;  %v14071_v11 = vand.u32 4294901760, %v68_v7 }
  0x60   :  { %11634 = vmatprep.mubr.f32.mxu0 %v13798_v24 }
  0x61   :  { %18615 = vst [vmem:[#allocation16_spill] sm:$0xff] %v14071_v11  ;;  %v14074_v21 = vsub.f32 %v68_v7, %v14071_v11 }
  0x62   :  { %11663 = vmatmul.mubr.f32.gmra.mxu1 %v13817_v33 }
  0x63   :  { %11635 = vmatmul.mubr.f32.gmra.mxu0 %v13817_v33  ;;  %11665 = vmatprep.mubr.f32.mxu1 %v13833_v41  ;;  %18616 = vst [vmem:[#allocation17_spill] sm:$0xff] %v14074_v21  ;;  %v14078_v32 = vand.u32 4294901760, %v14074_v21 }
  0x64   :  { %11637 = vmatprep.mubr.f32.mxu0 %v13833_v41 }
  0x65   :  { %18617 = vst [vmem:[#allocation18_spill] sm:$0xff] %v14078_v32  ;;  %v1311_v41 = vsub.f32 %v14074_v21, %v14078_v32 }
  0x66   :  { %11666 = vmatmul.mubr.f32.gmra.mxu1 %v13835_v42 }
  0x67   :  { %11638 = vmatmul.mubr.f32.gmra.mxu0 %v13835_v42  ;;  %11668 = vmatprep.mubr.f32.mxu1 %v13860_v51  ;;  %v14086_v48 = vand.u32 4294901760, %v1311_v41 }
  0x68   :  { %11640 = vmatprep.mubr.f32.mxu0 %v13860_v51 }
  0x69   :  { %18618 = vst [vmem:[#allocation19_spill] sm:$0xff] %v14086_v48 }
  0x6a   :  { %11669 = vmatmul.mubr.f32.gmra.mxu1 %v13862_v52 }
  0x6b   :  { %11641 = vmatmul.mubr.f32.gmra.mxu0 %v13862_v52  ;;  %11671 = vmatprep.mubr.f32.mxu1 %v13879_v61 }
  0x6c   :  { %11643 = vmatprep.mubr.f32.mxu0 %v13879_v61 }
  0x6e   :  { %11672 = vmatmul.mubr.f32.gmra.mxu1 %v13881_v62 }
  0x6f   :  { %11644 = vmatmul.mubr.f32.gmra.mxu0 %v13881_v62  ;;  %11674 = vmatprep.mubr.f32.mxu1 %v13926_v35 }
  0x70   :  { %11646 = vmatprep.mubr.f32.mxu0 %v13926_v35 }
  0x72   :  { %11675 = vmatmul.mubr.f32.gmra.mxu1 %v13928_v36 }
  0x73   :  { %11647 = vmatmul.mubr.f32.gmra.mxu0 %v13928_v36  ;;  %11677 = vmatprep.mubr.f32.mxu1 %v13949_v54 }
  0x74   :  { %11649 = vmatprep.mubr.f32.mxu0 %v13949_v54 }
  0x76   :  { %11678 = vmatmul.mubr.f32.gmra.mxu1 %v13955_v0 }
  0x77   :  { %11650 = vmatmul.mubr.f32.gmra.mxu0 %v13955_v0  ;;  %11680 = vmatprep.mubr.f32.mxu1 %v13967_v23 }
  0x78   :  { %11652 = vmatprep.mubr.f32.mxu0 %v13967_v23 }
  0x7a   :  { %11681 = vmatmul.mubr.f32.gmra.mxu1 %v13978_v37 }
  0x7b   :  { %11653 = vmatmul.mubr.f32.gmra.mxu0 %v13978_v37  ;;  %11756 = vmatprep.mubr.f32.mxu1 %v14071_v11 }
  0x7c   :  { %11715 = vmatprep.mubr.f32.mxu0 %v14086_v48 }
  0xdd   :  { %v11521_v24 = vpop.f32.mrf.mxu0 }
  0xde   :  { %v11549_v33 = vpop.f32.mrf.mxu1 }
  0xdf   :  { %v14080_v39 = vpop.f32.mrf.mxu0  ;;  %v434_v40 = vadd.f32 %v11549_v33, %v11521_v24 }
  0xe0   :  { %v14084_v42 = vpop.f32.mrf.mxu1 }
  0xe2   :  { %v11552_v49 = vpop.f32.mrf.mxu1 }
  0xe3   :  { %v11524_v50 = vpop.f32.mrf.mxu0 }
  0xe4   :  { %v446_v51 = vadd.f32 %v11552_v49, %v11524_v50  ;;  %v14089_v52 = vpop.f32.mrf.mxu1 }
  0xe5   :  { %v14091_v57 = vpop.f32.mrf.mxu0 }
  0xe6   :  { %v11555_v58 = vpop.f32.mrf.mxu1 }
  0xe7   :  { %v11527_v59 = vpop.f32.mrf.mxu0 }
  0xe8   :  { %v458_v60 = vadd.f32 %v11555_v58, %v11527_v59  ;;  %v14093_v61 = vpop.f32.mrf.mxu1 }
  0xe9   :  { %v14095_v62 = vpop.f32.mrf.mxu0 }
  0xea   :  { %v11558_v6 = vpop.f32.mrf.mxu1 }
  0xeb   :  { %v11530_v8 = vpop.f32.mrf.mxu0 }
  0xec   :  { %v14097_v9 = vadd.f32 %v11558_v6, %v11530_v8  ;;  %v14099_v16 = vpop.f32.mrf.mxu1 }
  0xed   :  { %v14101_v29 = vpop.f32.mrf.mxu0 }
  0xee   :  { %v11561_v30 = vpop.f32.mrf.mxu1 }
  0xef   :  { %v11533_v35 = vpop.f32.mrf.mxu0 }
  0xf0   :  { %v14103_v36 = vadd.f32 %v11561_v30, %v11533_v35  ;;  %v14105_v47 = vpop.f32.mrf.mxu1 }
  0xf1   :  { %v14107_v53 = vpop.f32.mrf.mxu0 }
  0xf2   :  { %v11564_v54 = vpop.f32.mrf.mxu1 }
  0xf3   :  { %v11536_v0 = vpop.f32.mrf.mxu0 }
  0xf4   :  { %v14109_v1 = vadd.f32 %v11564_v54, %v11536_v0  ;;  %v14111_v2 = vpop.f32.mrf.mxu1 }
  0xf5   :  { %v14113_v5 = vpop.f32.mrf.mxu0 }
  0xf6   :  { %v11567_v22 = vpop.f32.mrf.mxu1 }
  0xf7   :  { %v11539_v23 = vpop.f32.mrf.mxu0 }
  0xf8   :  { %v14115_v28 = vadd.f32 %v11567_v22, %v11539_v23  ;;  %v14117_v34 = vpop.f32.mrf.mxu1 }
  0xf9   :  { %v14119_v37 = vpop.f32.mrf.mxu0 }
  0xfa   :  { %v14121_v38 = vpop.f32.mrf.mxu1 }
  0xfb   :  { %v14123_v44 = vpop.f32.mrf.mxu0 }
  0xfc   :  { %v14125_v43 = vpop.f32.mrf.mxu1 }
  0xfd   :  { %v14127_v45 = vpop.f32.mrf.mxu0 }
  0xfe   :  { %v11605_v46 = vpop.f32.mrf.mxu1 }
  0xff   :  { %v11577_v55 = vpop.f32.mrf.mxu0 }
 0x100   :  { %v601_v56 = vadd.f32 %v11577_v55, %v434_v40  ;;  %v14129_v63 = vpop.f32.mrf.mxu1 }
 0x101   :  { %18619 = vst [vmem:[#allocation20_spill] sm:$0xff] %v14129_v63  ;;  %v14131_v19 = vpop.f32.mrf.mxu0  ;;  %v488_v63 = vadd.f32 %v14111_v2, %v14113_v5  ;;  %v512_v2 = vadd.f32 %v14125_v43, %v14127_v45 }
 0x102   :  { %v14133_v25 = vadd.f32 %v11605_v46, %v601_v56  ;;  %v11608_v26 = vpop.f32.mrf.mxu1 }
 0x103   :  { %v11580_v20 = vpop.f32.mrf.mxu0 }
 0x104   :  { %18620 = vst [vmem:[#allocation21_spill] sm:$0xff] %v14133_v25  ;;  %v615_v12 = vadd.f32 %v11580_v20, %v446_v51  ;;  %v14135_v15 = vpop.f32.mrf.mxu1 }
 0x105   :  { %18621 = vst [vmem:[#allocation22_spill] sm:$0xff] %v14135_v15  ;;  %v14137_v17 = vpop.f32.mrf.mxu0 }
 0x106   :  { %v14139_v7 = vadd.f32 %v11608_v26, %v615_v12  ;;  %v11611_v24 = vpop.f32.mrf.mxu1 }
 0x107   :  { %v11583_v33 = vpop.f32.mrf.mxu0 }
 0x108   :  { %18622 = vst [vmem:[#allocation23_spill] sm:$0xff] %v14139_v7  ;;  %v629_v41 = vadd.f32 %v11583_v33, %v458_v60  ;;  %v14141_v49 = vpop.f32.mrf.mxu1 }
 0x109   :  { %18623 = vst [vmem:[#allocation24_spill] sm:$0xff] %v14141_v49  ;;  %v14143_v40 = vpop.f32.mrf.mxu0 }
 0x10a   :  { %v14145_v50 = vadd.f32 %v11611_v24, %v629_v41  ;;  %v14147_v58 = vpop.f32.mrf.mxu1 }
 0x10b   :  { %v14149_v59 = vpop.f32.mrf.mxu0 }
 0x10c   :  { %18624 = vst [vmem:[#allocation25_spill] sm:$0xff] %v14145_v50  ;;  %v14151_v51 = vpop.f32.mrf.mxu1 }
 0x10d   :  { %v14153_v6 = vpop.f32.mrf.mxu0 }
 0x10e   :  { %v14155_v8 = vpop.f32.mrf.mxu1 }
 0x10f   :  { %v11589_v30 = vpop.f32.mrf.mxu0 }
 0x110   :  { %v14157_v35 = vpop.f32.mrf.mxu1  ;;  %v657_v5 = vadd.f32 %v11589_v30, %v14103_v36 }
 0x111   :  { %v649_v60 = vpop.f32.mrf.mxu0 }
 0x112   :  { %v11620_v54 = vpop.f32.mrf.mxu1 }
 0x113   :  { %v11592_v0 = vpop.f32.mrf.mxu0 }
 0x114   :  { %v853_v22 = vpop.f32.mrf.mxu1 }
 0x115   :  { %v663_v23 = vpop.f32.mrf.mxu0 }
 0x116   :  { %v11623_v46 = vpop.f32.mrf.mxu1 }
 0x117   :  { %v11595_v55 = vpop.f32.mrf.mxu0 }
 0x118   :  { %v869_v56 = vpop.f32.mrf.mxu1 }
 0x119   :  { %v677_v26 = vpop.f32.mrf.mxu0 }
 0x11a   :  { %v11626_v20 = vpop.f32.mrf.mxu1 }
 0x11b   :  { %v11598_v12 = vpop.f32.mrf.mxu0 }
 0x11c   :  { %v885_v24 = vpop.f32.mrf.mxu1 }
 0x11d   :  { %v691_v33 = vpop.f32.mrf.mxu0 }
 0x11e   :  { %v14159_v41 = vpop.f32.mrf.mxu1  ;;  %v692_v50 = vadd.f32 %v691_v33, %v512_v2  ;;  %v18639_v33 = vld [vmem:[#allocation24_spill] sm:$0xff] }
 0x11f   :  { %18625 = vst [vmem:[#allocation26_spill] sm:$0xff] %v14159_v41  ;;  %v14161_v48 = vpop.f32.mrf.mxu0 }
 0x120   :  { %18626 = vst [vmem:[#allocation27_spill] sm:$0xff] %v14161_v48  ;;  %v14163_v18 = vpop.f32.mrf.mxu1  ;;  %v886_v30 = vadd.f32 %v885_v24, %v692_v50 }
 0x121   :  { %18627 = vst [vmem:[#allocation28_spill] sm:$0xff] %v14163_v18  ;;  %v14165_v14 = vpop.f32.mrf.mxu0 }
 0x122   :  { %18628 = vst [vmem:[#allocation29_spill] sm:$0xff] %v14165_v14  ;;  %v14167_v13 = vpop.f32.mrf.mxu1 }
 0x123   :  { %18629 = vst [vmem:[#allocation30_spill] sm:$0xff] %v14167_v13  ;;  %v14169_v10 = vpop.f32.mrf.mxu0 }
 0x124   :  { %18630 = vst [vmem:[#allocation31_spill] sm:$0xff] %v14169_v10  ;;  %v14171_v31 = vpop.f32.mrf.mxu1 }
 0x125   :  { %18631 = vst [vmem:[#allocation32_spill] sm:$0xff] %v14171_v31  ;;  %v14173_v27 = vpop.f32.mrf.mxu0 }
 0x126   :  { %18632 = vst [vmem:[#allocation33_spill] sm:$0xff] %v14173_v27  ;;  %v14175_v4 = vpop.f32.mrf.mxu1  ;;  %v671_v27 = vadd.f32 %v11592_v0, %v14109_v1 }
 0x127   :  { %18633 = vst [vmem:[#allocation34_spill] sm:$0xff] %v14175_v4  ;;  %v14177_v3 = vpop.f32.mrf.mxu0  ;;  %v685_v4 = vadd.f32 %v11595_v55, %v14115_v28 }
 0x128   :  { %18634 = vst [vmem:[#allocation35_spill] sm:$0xff] %v14177_v3  ;;  %v14179_v11 = vpop.f32.mrf.mxu1  ;;  %v476_v3 = vadd.f32 %v14105_v47, %v14107_v53  ;;  %v862_v1 = vadd.f32 %v11620_v54, %v671_v27  ;;  %v428_v47 = vadd.f32 %v14084_v42, %v14080_v39  ;;  %v464_v53 = vadd.f32 %v14099_v16, %v14101_v29 }
 0x129   :  { %18635 = vst [vmem:[#allocation36_spill] sm:$0xff] %v14179_v11  ;;  %v14181_v32 = vpop.f32.mrf.mxu0  ;;  %v500_v11 = vadd.f32 %v14117_v34, %v14119_v37  ;;  %v878_v37 = vadd.f32 %v11623_v46, %v685_v4  ;;  %v643_v27 = vadd.f32 %v14149_v59, %v14097_v9  ;;  %v846_v4 = vadd.f32 %v14155_v8, %v657_v5 }
 0x12a   :  { %18636 = vst [vmem:[#allocation37_spill] sm:$0xff] %v14181_v32  ;;  %v14183_v21 = vpop.f32.mrf.mxu1  ;;  %v664_v32 = vadd.f32 %v663_v23, %v488_v63  ;;  %v650_v55 = vadd.f32 %v649_v60, %v476_v3  ;;  %v440_v59 = vadd.f32 %v14089_v52, %v14091_v57  ;;  %v452_v8 = vadd.f32 %v14093_v61, %v14095_v62 }
 0x12b   :  { %18637 = vst [vmem:[#allocation38_spill] sm:$0xff] %v14183_v21  ;;  %v14185_v18 = vpop.f32.mrf.mxu0  ;;  %v678_v15 = vadd.f32 %v677_v26, %v500_v11  ;;  %v830_v54 = vadd.f32 %v14147_v58, %v643_v27 }
 0x12c   :  { %v14187_v41 = vpop.f32.mrf.mxu1  ;;  %v608_v58 = vadd.f32 %v14137_v17, %v440_v59 }
 0x12d   :  { %18638 = vst [vmem:[#allocation39_spill] sm:$0xff] %v14187_v41  ;;  %v14189_v14 = vpop.f32.mrf.mxu0  ;;  %v518_v41 = vadd.f32 %v14121_v38, %v14123_v44  ;;  %v854_v38 = vadd.f32 %v853_v22, %v664_v32  ;;  %v870_v44 = vadd.f32 %v869_v56, %v678_v15  ;;  %v622_v56 = vadd.f32 %v14143_v40, %v452_v8 }
 0x12e   :  { %v11673_v13 = vpop.f32.mrf.mxu1 }
 0x12f   :  { %v11645_v31 = vpop.f32.mrf.mxu0  ;;  %v699_v28 = vadd.f32 %v11598_v12, %v518_v41  ;;  %v18640_v41 = vld [vmem:[#allocation25_spill] sm:$0xff]  ;;  %v18641_v17 = vld [vmem:[#allocation35_spill] sm:$0xff] }
 0x130   :  { %v14191_v48 = vpop.f32.mrf.mxu1  ;;  %v1025_v39 = vadd.f32 %v11645_v31, %v846_v4  ;;  %v1001_v2 = vadd.f32 %v18641_v17, %v18640_v41  ;;  %v18656_v17 = vld [vmem:[#allocation32_spill] sm:$0xff] }
 0x131   :  { %v1018_v25 = vpop.f32.mrf.mxu0  ;;  %v894_v3 = vadd.f32 %v11626_v20, %v699_v28  ;;  %v1013_v20 = vadd.f32 %v14185_v18, %v830_v54 }
 0x132   :  { %v11676_v10 = vpop.f32.mrf.mxu1  ;;  %v1188_v52 = vadd.f32 %v11673_v13, %v1025_v39 }
 0x133   :  { %v11648_v7 = vpop.f32.mrf.mxu0 }
 0x134   :  { %v1193_v21 = vpop.f32.mrf.mxu1  ;;  %v1037_v11 = vadd.f32 %v11648_v7, %v862_v1  ;;  %v636_v7 = vadd.f32 %v14153_v6, %v464_v53 }
 0x135   :  { %v1030_v34 = vpop.f32.mrf.mxu0 }
 0x136   :  { %v11679_v0 = vpop.f32.mrf.mxu1  ;;  %v1031_v43 = vadd.f32 %v1030_v34, %v854_v38  ;;  %v1200_v60 = vadd.f32 %v11676_v10, %v1037_v11  ;;  %v822_v26 = vadd.f32 %v14151_v51, %v636_v7  ;;  %v18644_v38 = vld [vmem:[#allocation37_spill] sm:$0xff]  ;;  %v18645_v11 = vld [vmem:[#allocation39_spill] sm:$0xff] }
 0x137   :  { %v11651_v49 = vpop.f32.mrf.mxu0 }
 0x138   :  { %v1049_v63 = vadd.f32 %v11651_v49, %v878_v37  ;;  %v1205_v23 = vpop.f32.mrf.mxu1  ;;  %v838_v49 = vadd.f32 %v14157_v35, %v650_v55  ;;  %v1194_v35 = vadd.f32 %v1193_v21, %v1031_v43  ;;  %v14227_v57 = vand.u32 4294901760, %v1200_v60 }
 0x139   :  { %v1042_v36 = vpop.f32.mrf.mxu0  ;;  %v594_v21 = vadd.f32 %v14131_v19, %v428_v47  ;;  %v1007_v12 = vadd.f32 %v14189_v14, %v822_v26  ;;  %v806_v19 = vadd.f32 %v18639_v33, %v622_v56  ;;  %v18642_v14 = vld [vmem:[#allocation38_spill] sm:$0xff]  ;;  %v18653_v56 = vld [vmem:[#allocation27_spill] sm:$0xff]  ;;  %v69_v33 = vld [vmem:[%s18436_s4 + $0x8] sm:$0xff] }
 0x13a   :  { %v1043_v45 = vadd.f32 %v1042_v36, %v870_v44  ;;  %v1212_v32 = vadd.f32 %v11679_v0, %v1049_v63  ;;  %v11682_v15 = vpop.f32.mrf.mxu1  ;;  %v1019_v22 = vadd.f32 %v1018_v25, %v838_v49  ;;  %v14238_v51 = vand.u32 4294901760, %v1194_v35  ;;  %v18643_v0 = vld [vmem:[#allocation22_spill] sm:$0xff]  ;;  %v18646_v36 = vld [vmem:[#allocation23_spill] sm:$0xff] }
 0x13b   :  { %v11654_v42 = vpop.f32.mrf.mxu0  ;;  %v1176_v5 = vadd.f32 %v18642_v14, %v1013_v20  ;;  %v14257_v34 = vsub.f32 %v1200_v60, %v14227_v57  ;;  %v790_v55 = vadd.f32 %v18643_v0, %v608_v58  ;;  %v995_v44 = vadd.f32 %v18644_v38, %v806_v19  ;;  %v18649_v60 = vld [vmem:[#allocation33_spill] sm:$0xff]  ;;  %v18654_v20 = vld [vmem:[#allocation30_spill] sm:$0xff] }
 0x13c   :  { %v14215_v16 = vand.u32 4294901760, %v1212_v32  ;;  %v1061_v29 = vadd.f32 %v11654_v42, %v894_v3  ;;  %v1206_v9 = vadd.f32 %v1205_v23, %v1043_v45  ;;  %v1217_v46 = vpop.f32.mrf.mxu1  ;;  %v1182_v40 = vadd.f32 %v14191_v48, %v1019_v22  ;;  %v18647_v3 = vld [vmem:[#allocation31_spill] sm:$0xff]  ;;  %v18648_v45 = vld [vmem:[#allocation34_spill] sm:$0xff]  ;;  %v18655_v19 = vld [vmem:[#allocation29_spill] sm:$0xff] }
 0x13d   :  { %v1054_v6 = vpop.f32.mrf.mxu0  ;;  %v14253_v48 = vand.u32 4294901760, %v1188_v52  ;;  %v1170_v63 = vadd.f32 %v18645_v11, %v1007_v12  ;;  %v14276_v47 = vsub.f32 %v1194_v35, %v14238_v51  ;;  %v989_v43 = vadd.f32 %v18647_v3, %v18646_v36  ;;  %v18651_v35 = vld [vmem:[#allocation20_spill] sm:$0xff] }
 0x13e   :  { %v14222_v50 = vand.u32 4294901760, %v1206_v9  ;;  %v1055_v31 = vadd.f32 %v1054_v6, %v886_v30  ;;  %v1224_v10 = vadd.f32 %v11682_v15, %v1061_v29  ;;  %v14230_v61 = vsub.f32 %v1212_v32, %v14215_v16 }
 0x13f   :  { %v14272_v23 = vand.u32 4294901760, %v1182_v40  ;;  %v1164_v32 = vadd.f32 %v18648_v45, %v1001_v2  ;;  %v14290_v15 = vand.u32 4294901760, %v1176_v5  ;;  %v14293_v7 = vsub.f32 %v1188_v52, %v14253_v48 }
 0x140   :  { %v14232_v62 = vand.u32 4294901760, %v1224_v10  ;;  %v1218_v25 = vadd.f32 %v1217_v46, %v1055_v31  ;;  %v14241_v13 = vsub.f32 %v1206_v9, %v14222_v50  ;;  %v14267_v28 = vand.u32 4294901760, %v14230_v61  ;;  %v18650_v9 = vld [vmem:[#allocation36_spill] sm:$0xff] }
 0x141   :  { %v14302_v42 = vand.u32 4294901760, %v14257_v34  ;;  %v983_v29 = vadd.f32 %v18649_v60, %v790_v55  ;;  %v1158_v59 = vadd.f32 %v18650_v9, %v995_v44  ;;  %v14306_v8 = vand.u32 4294901760, %v1170_v63  ;;  %v18657_v44 = vld [vmem:[#allocation26_spill] sm:$0xff] }
 0x142   :  { %v14244_v18 = vsub.f32 %v1224_v10, %v14232_v62  ;;  %v14246_v24 = vand.u32 4294901760, %v1218_v25  ;;  %11683 = vmatprep.subr.mxu0 %v14232_v62  ;;  %v14285_v4 = vand.u32 4294901760, %v14241_v13  ;;  %v1386_v39 = vsub.f32 %v14230_v61, %v14267_v28  ;;  %v18652_v10 = vld [vmem:[#allocation21_spill] sm:$0xff] }
 0x143   :  { %11684 = vmatpush3.msra.mxu0 %v14232_v62  ;;  %v14310_v54 = vsub.f32 %v1182_v40, %v14272_v23  ;;  %v14316_v46 = vand.u32 4294901760, %v14276_v47  ;;  %v774_v31 = vadd.f32 %v18651_v35, %v594_v21  ;;  %v977_v26 = vadd.f32 %v18653_v56, %v18652_v10 }
 0x144   :  { %v14260_v1 = vsub.f32 %v1218_v25, %v14246_v24  ;;  %11685 = vmatprep.subr.mxu0 %v14246_v24  ;;  %v14264_v37 = vand.u32 4294901760, %v14244_v18  ;;  %v1393_v6 = vsub.f32 %v14241_v13, %v14285_v4  ;;  %v1152_v52 = vadd.f32 %v18654_v20, %v989_v43 }
 0x145   :  { %11686 = vmatpush3.msra.mxu0 %v14246_v24  ;;  %v14322_v25 = vand.u32 4294901760, %v1164_v32  ;;  %v14326_v58 = vsub.f32 %v1176_v5, %v14290_v15  ;;  %v1387_v12 = vand.u32 4294901760, %v1386_v39  ;;  %v1400_v21 = vsub.f32 %v14257_v34, %v14302_v42 }
 0x146   :  { %11687 = vmatprep.subr.mxu0 %v14215_v16  ;;  %v1372_v53 = vsub.f32 %v14244_v18, %v14264_v37  ;;  %v14282_v27 = vand.u32 4294901760, %v14260_v1  ;;  %v14332_v40 = vand.u32 4294901760, %v14293_v7  ;;  %v971_v41 = vadd.f32 %v18655_v19, %v774_v31 }
 0x147   :  { %11688 = vmatpush3.msra.mxu0 %v14215_v16  ;;  %v1146_v2 = vadd.f32 %v18656_v17, %v983_v29  ;;  %v14339_v14 = vand.u32 4294901760, %v1158_v59  ;;  %v14343_v5 = vsub.f32 %v1170_v63, %v14306_v8  ;;  %v1394_v0 = vand.u32 4294901760, %v1393_v6 }
 0x148   :  { %11689 = vmatprep.subr.mxu0 %v14222_v50  ;;  %v1373_v49 = vand.u32 4294901760, %v1372_v53  ;;  %v1379_v30 = vsub.f32 %v14260_v1, %v14282_v27  ;;  %v1407_v55 = vsub.f32 %v14276_v47, %v14316_v46  ;;  %v14349_v38 = vand.u32 4294901760, %v14310_v54 }
 0x149   :  { %11690 = vmatpush3.msra.mxu0 %v14222_v50  ;;  %v1140_v11 = vadd.f32 %v18657_v44, %v977_v26  ;;  %v14352_v53 = vand.u32 4294901760, %v1152_v52  ;;  %v14355_v36 = vand.u32 4294901760, %v69_v33  ;;  %v14358_v63 = vsub.f32 %v1164_v32, %v14322_v25 }
 0x14a   :  { %11691 = vmatprep.subr.mxu0 %v14227_v57  ;;  %11724 = vmatprep.subr.mxu1 %v1373_v49  ;;  %v1380_v22 = vand.u32 4294901760, %v1379_v30  ;;  %v1401_v3 = vand.u32 4294901760, %v1400_v21  ;;  %v1414_v43 = vsub.f32 %v14293_v7, %v14332_v40  ;;  %v14364_v45 = vand.u32 4294901760, %v14326_v58 }
 0x14b   :  { %11692 = vmatpush3.msra.mxu0 %v14227_v57  ;;  %11725 = vmatpush3.msra.mxu1 %v1373_v49  ;;  %18658 = vst [vmem:[#allocation24_spill] sm:$0xff] %v14355_v36  ;;  %v18659_v49 = vld [vmem:[#allocation28_spill] sm:$0xff]  ;;  %v14367_v39 = vand.u32 4294901760, %v1146_v2  ;;  %v14371_v32 = vsub.f32 %v1158_v59, %v14339_v14  ;;  %v1408_v60 = vand.u32 4294901760, %v1407_v55  ;;  %v1421_v29 = vsub.f32 %v14310_v54, %v14349_v38 }
 0x14c   :  { %11693 = vmatprep.subr.mxu0 %v14238_v51  ;;  %11726 = vmatprep.subr.mxu1 %v1380_v22  ;;  %v1134_v30 = vadd.f32 %v18659_v49, %v971_v41  ;;  %v14377_v9 = vand.u32 4294901760, %v14343_v5  ;;  %v14383_v6 = vsub.f32 %v69_v33, %v14355_v36  ;;  %v14386_v59 = vsub.f32 %v1152_v52, %v14352_v53 }
 0x14d   :  { %11694 = vmatpush3.msra.mxu0 %v14238_v51  ;;  %11727 = vmatpush3.msra.mxu1 %v1380_v22  ;;  %v14379_v22 = vand.u32 4294901760, %v1140_v11  ;;  %v1415_v35 = vand.u32 4294901760, %v1414_v43  ;;  %v1428_v31 = vsub.f32 %v14326_v58, %v14364_v45  ;;  %v14392_v10 = vand.u32 4294901760, %v14358_v63 }
 0x14e   :  { %11695 = vmatprep.subr.mxu0 %v14253_v48  ;;  %11728 = vmatprep.subr.mxu1 %v1387_v12  ;;  %18660 = vst [vmem:[#allocation25_spill] sm:$0xff] %v14383_v6  ;;  %v14394_v56 = vand.u32 4294901760, %v1134_v30  ;;  %v14398_v26 = vsub.f32 %v1146_v2, %v14367_v39  ;;  %v1422_v20 = vand.u32 4294901760, %v1421_v29  ;;  %v1435_v52 = vsub.f32 %v14343_v5, %v14377_v9 }
 0x14f   :  { %11696 = vmatpush3.msra.mxu0 %v14253_v48  ;;  %11729 = vmatpush3.msra.mxu1 %v1387_v12  ;;  %v14404_v12 = vand.u32 4294901760, %v14371_v32  ;;  %v14408_v21 = vand.u32 4294901760, %v14383_v6  ;;  %v14411_v33 = vsub.f32 %v1140_v11, %v14379_v22  ;;  %v1429_v19 = vand.u32 4294901760, %v1428_v31 }
 0x150   :  { %11697 = vmatprep.subr.mxu0 %v14272_v23  ;;  %11730 = vmatprep.subr.mxu1 %v1394_v0  ;;  %v1442_v41 = vsub.f32 %v14358_v63, %v14392_v10  ;;  %v14417_v17 = vand.u32 4294901760, %v14386_v59  ;;  %v14421_v2 = vsub.f32 %v1134_v30, %v14394_v56  ;;  %v14427_v44 = vand.u32 4294901760, %v14398_v26 }
 0x151   :  { %11698 = vmatpush3.msra.mxu0 %v14272_v23  ;;  %11731 = vmatpush3.msra.mxu1 %v1394_v0  ;;  %18661 = vst [vmem:[#allocation35_spill] sm:$0xff] %v14408_v21  ;;  %v1436_v0 = vand.u32 4294901760, %v1435_v52  ;;  %v1449_v55 = vsub.f32 %v14371_v32, %v14404_v12  ;;  %v1321_v11 = vsub.f32 %v14383_v6, %v14408_v21  ;;  %v14436_v49 = vand.u32 4294901760, %v14411_v33 }
 0x152   :  { %11699 = vmatprep.subr.mxu0 %v14290_v15  ;;  %11732 = vmatprep.subr.mxu1 %v1401_v3  ;;  %v1456_v43 = vsub.f32 %v14386_v59, %v14417_v17  ;;  %v14443_v29 = vand.u32 4294901760, %v14421_v2 }
 0x153   :  { %11700 = vmatpush3.msra.mxu0 %v14290_v15  ;;  %11733 = vmatpush3.msra.mxu1 %v1401_v3  ;;  %v1443_v3 = vand.u32 4294901760, %v1442_v41  ;;  %v1450_v30 = vand.u32 4294901760, %v1449_v55  ;;  %v70_v41 = vld [vmem:[%s18436_s4 + $0x10] sm:$0xff]  ;;  %v71_v55 = vld [vmem:[%s18436_s4 + $0x18] sm:$0xff] }
 0x154   :  { %11701 = vmatprep.subr.mxu0 %v14306_v8  ;;  %11734 = vmatprep.subr.mxu1 %v1408_v60  ;;  %v1457_v31 = vand.u32 4294901760, %v1456_v43  ;;  %v14468_v43 = vand.u32 4294901760, %v71_v55 }
 0x155   :  { %11702 = vmatpush3.msra.mxu0 %v14306_v8  ;;  %11735 = vmatpush3.msra.mxu1 %v1408_v60  ;;  %v1463_v60 = vsub.f32 %v14398_v26, %v14427_v44 }
 0x156   :  { %11703 = vmatprep.subr.mxu0 %v14322_v25  ;;  %11736 = vmatprep.subr.mxu1 %v1415_v35  ;;  %18664 = vst [vmem:[#allocation37_spill] sm:$0xff] %v14468_v43 }
 0x157   :  { %11704 = vmatpush3.msra.mxu0 %v14322_v25  ;;  %11737 = vmatpush3.msra.mxu1 %v1415_v35  ;;  %v14446_v35 = vand.u32 4294901760, %v1321_v11  ;;  %v1464_v52 = vand.u32 4294901760, %v1463_v60 }
 0x158   :  { %11705 = vmatprep.subr.mxu0 %v14339_v14  ;;  %11738 = vmatprep.subr.mxu1 %v1422_v20 }
 0x159   :  { %11706 = vmatpush3.msra.mxu0 %v14339_v14  ;;  %11739 = vmatpush3.msra.mxu1 %v1422_v20  ;;  %18662 = vst [vmem:[#allocation38_spill] sm:$0xff] %v14446_v35  ;;  %v1470_v20 = vsub.f32 %v14411_v33, %v14436_v49 }
 0x15a   :  { %11707 = vmatprep.subr.mxu0 %v14352_v53  ;;  %11740 = vmatprep.subr.mxu1 %v1429_v19 }
 0x15b   :  { %11708 = vmatpush3.msra.mxu0 %v14352_v53  ;;  %11741 = vmatpush3.msra.mxu1 %v1429_v19  ;;  %v1477_v19 = vsub.f32 %v14421_v2, %v14443_v29 }
 0x15c   :  { %11709 = vmatprep.subr.mxu0 %v14367_v39  ;;  %11742 = vmatprep.subr.mxu1 %v1436_v0 }
 0x15d   :  { %11710 = vmatpush3.msra.mxu0 %v14367_v39  ;;  %11743 = vmatpush3.msra.mxu1 %v1436_v0  ;;  %v1471_v0 = vand.u32 4294901760, %v1470_v20  ;;  %v1478_v11 = vand.u32 4294901760, %v1477_v19 }
 0x15e   :  { %11711 = vmatprep.subr.mxu0 %v14379_v22  ;;  %11744 = vmatprep.subr.mxu1 %v1443_v3 }
 0x15f   :  { %11712 = vmatpush3.msra.mxu0 %v14379_v22  ;;  %11745 = vmatpush3.msra.mxu1 %v1443_v3  ;;  %v14465_v3 = vand.u32 4294901760, %v70_v41 }
 0x160   :  { %11713 = vmatprep.subr.mxu0 %v14394_v56  ;;  %11746 = vmatprep.subr.mxu1 %v1450_v30 }
 0x161   :  { %11714 = vmatpush3.msra.mxu0 %v14394_v56  ;;  %11747 = vmatpush3.msra.mxu1 %v1450_v30  ;;  %18663 = vst [vmem:[#allocation22_spill] sm:$0xff] %v14465_v3  ;;  %v14481_v30 = vsub.f32 %v70_v41, %v14465_v3 }
 0x162   :  { %11748 = vmatprep.subr.mxu1 %v1457_v31  ;;  %11765 = vmatprep.subr.mxu0 %v14244_v18 }
 0x163   :  { %11716 = vmatmul.mubr.f32.vlgmr.msra.gmra.mxu0 %v14446_v35  ;;  %11749 = vmatpush3.msra.mxu1 %v1457_v31  ;;  %18665 = vst [vmem:[#allocation39_spill] sm:$0xff] %v14481_v30 }
 0x164   :  { %11766 = vmatpush3.msra.mxu0 %v14244_v18  ;;  %11750 = vmatprep.subr.mxu1 %v1464_v52  ;;  %v72_v18 = vld [vmem:[%s18436_s4 + $0x20] sm:$0xff] }
 0x165   :  { %11767 = vmatprep.subr.mxu0 %v14260_v1  ;;  %11751 = vmatpush3.msra.mxu1 %v1464_v52  ;;  %v14488_v60 = vand.u32 4294901760, %v72_v18 }
 0x166   :  { %11768 = vmatpush3.msra.mxu0 %v14260_v1  ;;  %11752 = vmatprep.subr.mxu1 %v1471_v0  ;;  %v73_v1 = vld [vmem:[%s18436_s4 + $0x28] sm:$0xff] }
 0x167   :  { %11769 = vmatprep.subr.mxu0 %v14230_v61  ;;  %11753 = vmatpush3.msra.mxu1 %v1471_v0  ;;  %18667 = vst [vmem:[#allocation31_spill] sm:$0xff] %v14488_v60  ;;  %v14492_v31 = vand.u32 4294901760, %v73_v1  ;;  %v14507_v20 = vsub.f32 %v72_v18, %v14488_v60 }
 0x168   :  { %11770 = vmatpush3.msra.mxu0 %v14230_v61  ;;  %11754 = vmatprep.subr.mxu1 %v1478_v11  ;;  %v14486_v61 = vsub.f32 %v71_v55, %v14468_v43 }
 0x169   :  { %11771 = vmatprep.subr.mxu0 %v14241_v13  ;;  %11755 = vmatpush3.msra.mxu1 %v1478_v11  ;;  %18668 = vst [vmem:[#allocation34_spill] sm:$0xff] %v14492_v31  ;;  %18671 = vst [vmem:[#allocation20_spill] sm:$0xff] %v14507_v20  ;;  %v14525_v19 = vand.u32 4294901760, %v14507_v20 }
 0x16a   :  { %11772 = vmatpush3.msra.mxu0 %v14241_v13  ;;  %11757 = vmatmul.mubr.f32.vlgmr.msra.gmra.mxu1 %v14355_v36  ;;  %18666 = vst [vmem:[#allocation23_spill] sm:$0xff] %v14486_v61  ;;  %v14499_v13 = vand.u32 4294901760, %v14481_v30 }
 0x16b   :  { %11773 = vmatprep.subr.mxu0 %v14257_v34  ;;  %11806 = vmatprep.subr.mxu1 %v14232_v62  ;;  %18673 = vst [vmem:[#allocation27_spill] sm:$0xff] %v14525_v19  ;;  %v1351_v0 = vsub.f32 %v14507_v20, %v14525_v19 }
 0x16c   :  { %11774 = vmatpush3.msra.mxu0 %v14257_v34  ;;  %11807 = vmatpush3.msra.mxu1 %v14232_v62  ;;  %18669 = vst [vmem:[#allocation33_spill] sm:$0xff] %v14499_v13  ;;  %v14504_v34 = vand.u32 4294901760, %v14486_v61  ;;  %v1331_v52 = vsub.f32 %v14481_v30, %v14499_v13 }
 0x16d   :  { %11775 = vmatprep.subr.mxu0 %v14276_v47  ;;  %11808 = vmatprep.subr.mxu1 %v14246_v24  ;;  %v14554_v55 = vand.u32 4294901760, %v1351_v0 }
 0x16e   :  { %11776 = vmatpush3.msra.mxu0 %v14276_v47  ;;  %11809 = vmatpush3.msra.mxu1 %v14246_v24  ;;  %18670 = vst [vmem:[#allocation36_spill] sm:$0xff] %v14504_v34  ;;  %v14512_v47 = vsub.f32 %v73_v1, %v14492_v31  ;;  %v14536_v41 = vand.u32 4294901760, %v1331_v52  ;;  %v18682_v52 = vld [vmem:[#allocation8_spill] sm:$0xff] }
 0x16f   :  { %11777 = vmatprep.subr.mxu0 %v14293_v7  ;;  %11810 = vmatprep.subr.mxu1 %v14215_v16  ;;  %18677 = vst [vmem:[#allocation26_spill] sm:$0xff] %v14554_v55 }
 0x170   :  { %11778 = vmatpush3.msra.mxu0 %v14293_v7  ;;  %11811 = vmatpush3.msra.mxu1 %v14215_v16  ;;  %18672 = vst [vmem:[#allocation21_spill] sm:$0xff] %v14512_v47  ;;  %v1341_v7 = vsub.f32 %v14486_v61, %v14504_v34  ;;  %18675 = vst [vmem:[#allocation29_spill] sm:$0xff] %v14536_v41 }
 0x171   :  { %11779 = vmatprep.subr.mxu0 %v14310_v54  ;;  %11812 = vmatprep.subr.mxu1 %v14222_v50 }
 0x172   :  { %11780 = vmatpush3.msra.mxu0 %v14310_v54  ;;  %11813 = vmatpush3.msra.mxu1 %v14222_v50  ;;  %v14530_v54 = vand.u32 4294901760, %v14512_v47 }
 0x173   :  { %11781 = vmatprep.subr.mxu0 %v14326_v58  ;;  %11814 = vmatprep.subr.mxu1 %v14227_v57 }
 0x174   :  { %11782 = vmatpush3.msra.mxu0 %v14326_v58  ;;  %11815 = vmatpush3.msra.mxu1 %v14227_v57  ;;  %18674 = vst [vmem:[#allocation30_spill] sm:$0xff] %v14530_v54  ;;  %v14540_v58 = vand.u32 4294901760, %v1341_v7  ;;  %v59_v7 = vld [vmem:[%s18434_s2 + $0x48] sm:$0xff] }
 0x175   :  { %11783 = vmatprep.subr.mxu0 %v14343_v5  ;;  %11816 = vmatprep.subr.mxu1 %v14238_v51 }
 0x176   :  { %11784 = vmatpush3.msra.mxu0 %v14343_v5  ;;  %11817 = vmatpush3.msra.mxu1 %v14238_v51  ;;  %18676 = vst [vmem:[#allocation32_spill] sm:$0xff] %v14540_v58  ;;  %v1361_v5 = vsub.f32 %v14512_v47, %v14530_v54 }
 0x177   :  { %11785 = vmatprep.subr.mxu0 %v14358_v63  ;;  %11818 = vmatprep.subr.mxu1 %v14253_v48 }
 0x178   :  { %11786 = vmatpush3.msra.mxu0 %v14358_v63  ;;  %11819 = vmatpush3.msra.mxu1 %v14253_v48  ;;  %v14558_v63 = vand.u32 4294901760, %v1361_v5 }
 0x179   :  { %11787 = vmatprep.subr.mxu0 %v14371_v32  ;;  %11820 = vmatprep.subr.mxu1 %v14272_v23 }
 0x17a   :  { %11718 = vmatprep.mubr.f32.mxu0 %v14536_v41  ;;  %11788 = vmatpush3.msra.mxu0 %v14371_v32  ;;  %18678 = vst [vmem:[#allocation28_spill] sm:$0xff] %v14558_v63  ;;  %v18679_v32 = vld [vmem:[#allocation17_spill] sm:$0xff] }
 0x17b   :  { %11821 = vmatpush3.msra.mxu1 %v14272_v23  ;;  %11719 = vmatmul.mubr.f32.gmra.mxu0 %v14540_v58 }
 0x17c   :  { %11789 = vmatprep.subr.mxu0 %v14386_v59  ;;  %11822 = vmatprep.subr.mxu1 %v14290_v15 }
 0x17d   :  { %11790 = vmatpush3.msra.mxu0 %v14386_v59  ;;  %11823 = vmatpush3.msra.mxu1 %v14290_v15 }
 0x17e   :  { %11791 = vmatprep.subr.mxu0 %v14398_v26  ;;  %11824 = vmatprep.subr.mxu1 %v14306_v8 }
 0x17f   :  { %11721 = vmatprep.mubr.f32.mxu0 %v14554_v55  ;;  %11792 = vmatpush3.msra.mxu0 %v14398_v26 }
 0x180   :  { %11825 = vmatpush3.msra.mxu1 %v14306_v8  ;;  %11722 = vmatmul.mubr.f32.gmra.mxu0 %v14558_v63 }
 0x181   :  { %11759 = vmatprep.mubr.f32.mxu1 %v14465_v3  ;;  %11793 = vmatprep.subr.mxu0 %v14411_v33 }
 0x182   :  { %11826 = vmatprep.subr.mxu1 %v14322_v25  ;;  %11760 = vmatmul.mubr.f32.gmra.mxu1 %v14468_v43 }
 0x183   :  { %11794 = vmatpush3.msra.mxu0 %v14411_v33  ;;  %11827 = vmatpush3.msra.mxu1 %v14322_v25  ;;  %v58_v33 = vld [vmem:[%s18434_s2 + $0x40] sm:$0xff] }
 0x184   :  { %11795 = vmatprep.subr.mxu0 %v14421_v2  ;;  %11828 = vmatprep.subr.mxu1 %v14339_v14 }
 0x185   :  { %11796 = vmatpush3.msra.mxu0 %v14421_v2  ;;  %11797 = vmatprep.mubr.f32.mxu0 %v18679_v32 }
 0x186   :  { %11829 = vmatpush3.msra.mxu1 %v14339_v14  ;;  %11762 = vmatprep.mubr.f32.mxu1 %v14488_v60 }
 0x187   :  { %11798 = vmatmul.mubr.f32.vlgmr.msra.gmra.mxu0 %v14383_v6  ;;  %11830 = vmatprep.subr.mxu1 %v14352_v53 }
 0x188   :  { %11847 = vmatprep.subr.mxu0 %v14264_v37  ;;  %11763 = vmatmul.mubr.f32.gmra.mxu1 %v14492_v31 }
 0x189   :  { %11831 = vmatpush3.msra.mxu1 %v14352_v53  ;;  %11848 = vmatpush3.msra.mxu0 %v14264_v37  ;;  %v18680_v37 = vld [vmem:[#allocation18_spill] sm:$0xff] }
 0x18a   :  { %11832 = vmatprep.subr.mxu1 %v14367_v39  ;;  %11849 = vmatprep.subr.mxu0 %v14282_v27 }
 0x18b   :  { %11800 = vmatprep.mubr.f32.mxu0 %v14481_v30  ;;  %11833 = vmatpush3.msra.mxu1 %v14367_v39 }
 0x18c   :  { %11850 = vmatpush3.msra.mxu0 %v14282_v27  ;;  %11834 = vmatprep.subr.mxu1 %v14379_v22 }
 0x18d   :  { %11801 = vmatmul.mubr.f32.gmra.mxu0 %v14486_v61  ;;  %11851 = vmatprep.subr.mxu0 %v14267_v28 }
 0x18e   :  { %11835 = vmatpush3.msra.mxu1 %v14379_v22  ;;  %11852 = vmatpush3.msra.mxu0 %v14267_v28  ;;  %v53_v28 = vld [vmem:[%s18434_s2 + $0x18] sm:$0xff] }
 0x18f   :  { %11836 = vmatprep.subr.mxu1 %v14394_v56  ;;  %11853 = vmatprep.subr.mxu0 %v14285_v4 }
 0x190   :  { %11803 = vmatprep.mubr.f32.mxu0 %v14507_v20  ;;  %11837 = vmatpush3.msra.mxu1 %v14394_v56 }
 0x191   :  { %11838 = vmatprep.mubr.f32.mxu1 %v18680_v37  ;;  %11854 = vmatpush3.msra.mxu0 %v14285_v4 }
 0x192   :  { %11804 = vmatmul.mubr.f32.gmra.mxu0 %v14512_v47  ;;  %11839 = vmatmul.mubr.f32.vlgmr.msra.gmra.mxu1 %v14408_v21 }
 0x193   :  { %11855 = vmatprep.subr.mxu0 %v14302_v42  ;;  %11888 = vmatprep.subr.mxu1 %v14232_v62 }
 0x194   :  { %11856 = vmatpush3.msra.mxu0 %v14302_v42  ;;  %11889 = vmatpush3.msra.mxu1 %v14232_v62  ;;  %v51_v62 = vld [vmem:[%s18434_s2 + $0x8] sm:$0xff] }
 0x195   :  { %11857 = vmatprep.subr.mxu0 %v14316_v46  ;;  %11890 = vmatprep.subr.mxu1 %v14246_v24 }
 0x196   :  { %11841 = vmatprep.mubr.f32.mxu1 %v14499_v13  ;;  %11858 = vmatpush3.msra.mxu0 %v14316_v46  ;;  %v55_v46 = vld [vmem:[%s18434_s2 + $0x28] sm:$0xff] }
 0x197   :  { %11891 = vmatpush3.msra.mxu1 %v14246_v24  ;;  %11859 = vmatprep.subr.mxu0 %v14332_v40  ;;  %v2087_v24 = vsel %vm74_vm0, %v51_v62, 0  ;;  %v2099_v59 = vsel %vm74_vm0, %v55_v46, 0  ;;  %v60_v62 = vld [vmem:[%s18434_s2 + $0x50] sm:$0xff] }
 0x198   :  { %11842 = vmatmul.mubr.f32.gmra.mxu1 %v14504_v34  ;;  %11892 = vmatprep.subr.mxu1 %v14215_v16  ;;  %v14662_v4 = vand.u32 4294901760, %v2087_v24  ;;  %v14710_v2 = vand.u32 4294901760, %v2099_v59  ;;  %v18683_v46 = vld [vmem:[#allocation9_spill] sm:$0xff] }
 0x199   :  { %11860 = vmatpush3.msra.mxu0 %v14332_v40  ;;  %11893 = vmatpush3.msra.mxu1 %v14215_v16  ;;  %v50_v16 = vld [vmem:[%s18434_s2] sm:$0xff]  ;;  %v56_v40 = vld [vmem:[%s18434_s2 + $0x30] sm:$0xff] }
 0x19a   :  { %11861 = vmatprep.subr.mxu0 %v14349_v38  ;;  %11894 = vmatprep.subr.mxu1 %v14222_v50  ;;  %v14739_v5 = vsub.f32 %v2099_v59, %v14710_v2 }
 0x19b   :  { %11844 = vmatprep.mubr.f32.mxu1 %v14525_v19  ;;  %11862 = vmatpush3.msra.mxu0 %v14349_v38 }
 0x19c   :  { %11895 = vmatpush3.msra.mxu1 %v14222_v50  ;;  %11863 = vmatprep.subr.mxu0 %v14364_v45  ;;  %v52_v50 = vld [vmem:[%s18434_s2 + $0x10] sm:$0xff] }
 0x19d   :  { %11845 = vmatmul.mubr.f32.gmra.mxu1 %v14530_v54  ;;  %11896 = vmatprep.subr.mxu1 %v14227_v57 }
 0x19e   :  { %11864 = vmatpush3.msra.mxu0 %v14364_v45  ;;  %11897 = vmatpush3.msra.mxu1 %v14227_v57  ;;  %v2084_v57 = vsel %vm74_vm0, %v50_v16, 0  ;;  %v14686_v45 = vsub.f32 %v2087_v24, %v14662_v4 }
 0x19f   :  { %11865 = vmatprep.subr.mxu0 %v14377_v9  ;;  %11898 = vmatprep.subr.mxu1 %v14238_v51  ;;  %v14655_v27 = vand.u32 4294901760, %v2084_v57 }
 0x1a0   :  { %11866 = vmatpush3.msra.mxu0 %v14377_v9  ;;  %11899 = vmatpush3.msra.mxu1 %v14238_v51  ;;  %v2090_v51 = vsel %vm74_vm0, %v52_v50, 0 }
 0x1a1   :  { %11867 = vmatprep.subr.mxu0 %v14392_v10  ;;  %11900 = vmatprep.subr.mxu1 %v14253_v48  ;;  %v14666_v42 = vand.u32 4294901760, %v2090_v51 }
 0x1a2   :  { %11868 = vmatpush3.msra.mxu0 %v14392_v10  ;;  %11901 = vmatpush3.msra.mxu1 %v14253_v48  ;;  %v54_v48 = vld [vmem:[%s18434_s2 + $0x20] sm:$0xff]  ;;  %v2102_v10 = vsel %vm74_vm0, %v56_v40, 0 }
 0x1a3   :  { %11869 = vmatprep.subr.mxu0 %v14404_v12  ;;  %11902 = vmatprep.subr.mxu1 %v14272_v23  ;;  %v2096_v38 = vsel %vm74_vm0, %v54_v48, 0  ;;  %v2114_v48 = vsel %vm74_vm0, %v60_v62, 0 }
 0x1a4   :  { %11870 = vmatpush3.msra.mxu0 %v14404_v12  ;;  %11903 = vmatpush3.msra.mxu1 %v14272_v23  ;;  %v2093_v23 = vsel %vm74_vm0, %v53_v28, 0  ;;  %v14697_v26 = vand.u32 4294901760, %v2096_v38  ;;  %v57_v12 = vld [vmem:[%s18434_s2 + $0x38] sm:$0xff]  ;;  %v2111_v28 = vsel %vm74_vm0, %v59_v7, 0 }
 0x1a5   :  { %11871 = vmatprep.subr.mxu0 %v14417_v17  ;;  %11904 = vmatprep.subr.mxu1 %v14290_v15  ;;  %v14688_v9 = vand.u32 4294901760, %v2093_v23  ;;  %v2105_v18 = vsel %vm74_vm0, %v57_v12, 0 }
 0x1a6   :  { %11872 = vmatpush3.msra.mxu0 %v14417_v17  ;;  %11905 = vmatpush3.msra.mxu1 %v14290_v15  ;;  %v14681_v15 = vsub.f32 %v2084_v57, %v14655_v27  ;;  %v14725_v1 = vsub.f32 %v2096_v38, %v14697_v26  ;;  %v18471_v38 = vand.u32 4294901760, %v14739_v5 }
 0x1a7   :  { %11873 = vmatprep.subr.mxu0 %v14427_v44  ;;  %11906 = vmatprep.subr.mxu1 %v14306_v8  ;;  %v14718_v11 = vsub.f32 %v2093_v23, %v14688_v9  ;;  %v61_v23 = vld [vmem:[%s18434_s2 + $0x58] sm:$0xff] }
 0x1a8   :  { %11874 = vmatpush3.msra.mxu0 %v14427_v44  ;;  %11907 = vmatpush3.msra.mxu1 %v14306_v8  ;;  %v14695_v8 = vsub.f32 %v2090_v51, %v14666_v42  ;;  %v18469_v17 = vand.u32 4294901760, %v14681_v15  ;;  %v14712_v44 = vand.u32 4294901760, %v2102_v10 }
 0x1a9   :  { %11875 = vmatprep.subr.mxu0 %v14436_v49  ;;  %11908 = vmatprep.subr.mxu1 %v14322_v25  ;;  %v18466_v57 = vand.u32 4294901760, %v14718_v11 }
 0x1aa   :  { %11876 = vmatpush3.msra.mxu0 %v14436_v49  ;;  %11909 = vmatpush3.msra.mxu1 %v14322_v25  ;;  %v18681_v25 = vld [vmem:[#allocation16_spill] sm:$0xff]  ;;  %v18468_v49 = vand.u32 4294901760, %v14686_v45  ;;  %v2201_v0 = vsub.f32 %v14681_v15, %v18469_v17  ;;  %v14742_v16 = vsub.f32 %v2102_v10, %v14712_v44 }
 0x1ab   :  { %11877 = vmatprep.subr.mxu0 %v14443_v29  ;;  %11910 = vmatprep.subr.mxu1 %v14339_v14 }
 0x1ac   :  { %11878 = vmatpush3.msra.mxu0 %v14443_v29  ;;  %11879 = vmatprep.mubr.f32.mxu0 %v18681_v25  ;;  %v18465_v29 = vand.u32 4294901760, %v14695_v8  ;;  %v2211_v50 = vsub.f32 %v14686_v45, %v18468_v49  ;;  %v2202_v40 = vand.u32 4294901760, %v2201_v0  ;;  %v18472_v59 = vand.u32 4294901760, %v14742_v16  ;;  %v18685_v49 = vld [vmem:[#allocation15_spill] sm:$0xff] }
 0x1ad   :  { %11911 = vmatpush3.msra.mxu1 %v14339_v14  ;;  %11880 = vmatmul.mubr.f32.vlgmr.msra.gmra.mxu0 %v14355_v36  ;;  %v2108_v14 = vsel %vm74_vm0, %v58_v33, 0  ;;  %v2231_v33 = vsub.f32 %v14718_v11, %v18466_v57  ;;  %v14788_v0 = vand.u32 4294901760, %v2111_v28  ;;  %v63_v57 = vld [vmem:[%s18434_s2 + $0x68] sm:$0xff] }
 0x1ae   :  { %11912 = vmatprep.subr.mxu1 %v14352_v53  ;;  %11882 = vmatprep.mubr.f32.mxu0 %v14465_v3  ;;  %v14755_v24 = vand.u32 4294901760, %v2108_v14  ;;  %v2221_v51 = vsub.f32 %v14695_v8, %v18465_v29  ;;  %v2212_v12 = vand.u32 4294901760, %v2211_v50  ;;  %v14795_v29 = vand.u32 4294901760, %v2114_v48 }
 0x1af   :  { %11913 = vmatpush3.msra.mxu1 %v14352_v53  ;;  %11929 = vmatprep.subr.mxu0 %v18682_v52  ;;  %v14744_v53 = vand.u32 4294901760, %v2105_v18  ;;  %v2117_v50 = vsel %vm74_vm0, %v61_v23, 0  ;;  %v2261_v23 = vsub.f32 %v14742_v16, %v18472_v59  ;;  %v2232_v17 = vand.u32 4294901760, %v2231_v33  ;;  %v65_v33 = vld [vmem:[%s18434_s2 + $0x78] sm:$0xff] }
 0x1b0   :  { %11914 = vmatprep.subr.mxu1 %v14367_v39  ;;  %11920 = vmatprep.mubr.f32.mxu1 %v18681_v25  ;;  %v14786_v7 = vsub.f32 %v2108_v14, %v14755_v24  ;;  %v2222_v62 = vand.u32 4294901760, %v2221_v51  ;;  %v2251_v51 = vsub.f32 %v14739_v5, %v18471_v38  ;;  %v14820_v38 = vand.u32 4294901760, %v2117_v50 }
 0x1b1   :  { %11915 = vmatpush3.msra.mxu1 %v14367_v39  ;;  %11883 = vmatmul.mubr.f32.gmra.mxu0 %v14468_v43  ;;  %v18467_v39 = vand.u32 4294901760, %v14725_v1  ;;  %v14775_v10 = vsub.f32 %v2105_v18, %v14744_v53  ;;  %v18684_v18 = vld [vmem:[#allocation14_spill] sm:$0xff] }
 0x1b2   :  { %11916 = vmatprep.subr.mxu1 %v14379_v22  ;;  %11885 = vmatprep.mubr.f32.mxu0 %v14488_v60  ;;  %v18688_v19 = vand.u32 4294901760, %v14786_v7  ;;  %v14845_v34 = vsub.f32 %v2117_v50, %v14820_v38  ;;  %v18689_v50 = vld [vmem:[#allocation11_spill] sm:$0xff] }
 0x1b3   :  { %11917 = vmatpush3.msra.mxu1 %v14379_v22  ;;  %11930 = vmatpush3.msra.mxu0 %v18682_v52  ;;  %v62_v22 = vld [vmem:[%s18434_s2 + $0x60] sm:$0xff] }
 0x1b4   :  { %11918 = vmatprep.subr.mxu1 %v14394_v56  ;;  %11931 = vmatprep.subr.mxu0 %v18683_v46  ;;  %v2120_v14 = vsel %vm74_vm0, %v62_v22, 0  ;;  %v64_v22 = vld [vmem:[%s18434_s2 + $0x70] sm:$0xff] }
 0x1b5   :  { %11919 = vmatpush3.msra.mxu1 %v14394_v56  ;;  %11886 = vmatmul.mubr.f32.gmra.mxu0 %v14492_v31  ;;  %v2241_v56 = vsub.f32 %v14725_v1, %v18467_v39  ;;  %v14824_v39 = vsub.f32 %v2114_v48, %v14795_v29  ;;  %v14826_v54 = vand.u32 4294901760, %v2120_v14  ;;  %v2262_v48 = vand.u32 4294901760, %v2261_v23 }
 0x1b6   :  { %11921 = vmatmul.mubr.f32.vlgmr.msra.gmra.mxu1 %v14355_v36  ;;  %11957 = vmatprep.subr.mxu1 %v18684_v18 }
 0x1b7   :  { %11958 = vmatpush3.msra.mxu1 %v18684_v18  ;;  %11923 = vmatprep.mubr.f32.mxu1 %v14465_v3  ;;  %v14818_v18 = vsub.f32 %v2111_v28, %v14788_v0  ;;  %v2242_v59 = vand.u32 4294901760, %v2241_v56  ;;  %v2126_v28 = vsel %vm74_vm0, %v64_v22, 0  ;;  %v18687_v56 = vand.u32 4294901760, %v14775_v10 }
 0x1b8   :  { %11932 = vmatpush3.msra.mxu0 %v18683_v46  ;;  %11933 = vmatprep.mubr.f32.mxu0 %v2202_v40  ;;  %v18686_v40 = vld [vmem:[#allocation10_spill] sm:$0xff]  ;;  %v14852_v23 = vsub.f32 %v2120_v14, %v14826_v54 }
 0x1b9   :  { %11934 = vmatmul.mubr.f32.vlgmr.msra.gmra.mxu0 %v2212_v12  ;;  %11959 = vmatprep.subr.mxu1 %v18685_v49  ;;  %v2123_v12 = vsel %vm74_vm0, %v63_v57, 0  ;;  %v2271_v57 = vsub.f32 %v14775_v10, %v18687_v56  ;;  %v18488_v22 = vand.u32 4294901760, %v14818_v18  ;;  %v2129_v56 = vsel %vm74_vm0, %v65_v33, 0 }
 0x1ba   :  { %11924 = vmatmul.mubr.f32.gmra.mxu1 %v14468_v43  ;;  %11936 = vmatprep.mubr.f32.mxu0 %v2222_v62  ;;  %v2252_v62 = vand.u32 4294901760, %v2251_v51  ;;  %v14847_v13 = vand.u32 4294901760, %v2123_v12  ;;  %v18487_v51 = vand.u32 4294901760, %v14845_v34  ;;  %v14867_v21 = vand.u32 4294901760, %v2129_v56 }
 0x1bb   :  { %11926 = vmatprep.mubr.f32.mxu1 %v14488_v60  ;;  %11960 = vmatpush3.msra.mxu1 %v18685_v49  ;;  %v2281_v49 = vsub.f32 %v14786_v7, %v18688_v19  ;;  %v2272_v19 = vand.u32 4294901760, %v2271_v57  ;;  %v18690_v57 = vand.u32 4294901760, %v14824_v39 }
 0x1bc   :  { %11985 = vmatprep.subr.mxu0 %v18686_v40  ;;  %12013 = vmatprep.subr.mxu1 %v18682_v52  ;;  %v14865_v14 = vsub.f32 %v2123_v12, %v14847_v13 }
 0x1bd   :  { %11937 = vmatmul.mubr.f32.gmra.mxu0 %v2232_v17  ;;  %v14854_v17 = vand.u32 4294901760, %v2126_v28  ;;  %v2282_v33 = vand.u32 4294901760, %v2281_v49  ;;  %v2311_v49 = vsub.f32 %v14845_v34, %v18487_v51  ;;  %v18691_v51 = vld [vmem:[#allocation12_spill] sm:$0xff] }
 0x1be   :  { %11927 = vmatmul.mubr.f32.gmra.mxu1 %v14492_v31  ;;  %11939 = vmatprep.mubr.f32.mxu0 %v2242_v59  ;;  %v2291_v59 = vsub.f32 %v14818_v18, %v18488_v22 }
 0x1bf   :  { %11961 = vmatprep.mubr.f32.mxu1 %v14655_v27  ;;  %11986 = vmatpush3.msra.mxu0 %v18686_v40  ;;  %v2301_v40 = vsub.f32 %v14824_v39, %v18690_v57  ;;  %v14875_v47 = vsub.f32 %v2126_v28, %v14854_v17  ;;  %v14887_v28 = vsub.f32 %v2129_v56, %v14867_v21  ;;  %v2312_v22 = vand.u32 4294901760, %v2311_v49 }
 0x1c0   :  { %11987 = vmatprep.subr.mxu0 %v18689_v50  ;;  %v2292_v12 = vand.u32 4294901760, %v2291_v59 }
 0x1c1   :  { %11940 = vmatmul.mubr.f32.gmra.mxu0 %v2252_v62  ;;  %v18489_v62 = vand.u32 4294901760, %v14852_v23  ;;  %v2302_v57 = vand.u32 4294901760, %v2301_v40  ;;  %v2340_v59 = vand.u32 4294901760, %v14875_v47  ;;  %v2350_v40 = vand.u32 4294901760, %v14887_v28 }
 0x1c2   :  { %11962 = vmatmul.mubr.f32.vlgmr.msra.gmra.mxu1 %v14662_v4  ;;  %11942 = vmatprep.mubr.f32.mxu0 %v2262_v48  ;;  %v2330_v48 = vand.u32 4294901760, %v14865_v14 }
 0x1c3   :  { %12014 = vmatpush3.msra.mxu1 %v18682_v52  ;;  %11964 = vmatprep.mubr.f32.mxu1 %v14666_v42 }
 0x1c4   :  { %11988 = vmatpush3.msra.mxu0 %v18689_v50  ;;  %12015 = vmatprep.subr.mxu1 %v18683_v46  ;;  %v2331_v56 = vsub.f32 %v14865_v14, %v2330_v48 }
 0x1c5   :  { %11943 = vmatmul.mubr.f32.gmra.mxu0 %v2272_v19  ;;  %12016 = vmatpush3.msra.mxu1 %v18683_v46  ;;  %v2321_v19 = vsub.f32 %v14852_v23, %v18489_v62  ;;  %v2341_v62 = vsub.f32 %v14875_v47, %v2340_v59 }
 0x1c6   :  { %11965 = vmatmul.mubr.f32.gmra.mxu1 %v14688_v9  ;;  %11945 = vmatprep.mubr.f32.mxu0 %v2282_v33  ;;  %v2332_v50 = vand.u32 4294901760, %v2331_v56  ;;  %v18698_v56 = vand.u32 4294901760, %v14739_v5 }
 0x1c7   :  { %11967 = vmatprep.mubr.f32.mxu1 %v14697_v26  ;;  %12041 = vmatprep.subr.mxu0 %v18691_v51  ;;  %v2322_v33 = vand.u32 4294901760, %v2321_v19  ;;  %v2342_v49 = vand.u32 4294901760, %v2341_v62  ;;  %v18694_v62 = vand.u32 4294901760, %v14686_v45  ;;  %v18695_v19 = vand.u32 4294901760, %v14695_v8 }
 0x1c8   :  { %12069 = vmatprep.subr.mxu1 %v18682_v52 }
 0x1c9   :  { %11946 = vmatmul.mubr.f32.gmra.mxu0 %v2292_v12  ;;  %v2351_v12 = vsub.f32 %v14887_v28, %v2350_v40 }
 0x1ca   :  { %11968 = vmatmul.mubr.f32.gmra.mxu1 %v14710_v2  ;;  %11948 = vmatprep.mubr.f32.mxu0 %v2302_v57 }
 0x1cb   :  { %11970 = vmatprep.mubr.f32.mxu1 %v14712_v44  ;;  %v2352_v57 = vand.u32 4294901760, %v2351_v12 }
 0x1cd   :  { %11949 = vmatmul.mubr.f32.gmra.mxu0 %v2312_v22  ;;  %v18692_v22 = vld [vmem:[#allocation13_spill] sm:$0xff] }
 0x1ce   :  { %11971 = vmatmul.mubr.f32.gmra.mxu1 %v14744_v53  ;;  %11951 = vmatprep.mubr.f32.mxu0 %v2322_v33 }
 0x1cf   :  { %11973 = vmatprep.mubr.f32.mxu1 %v14755_v24 }
 0x1d1   :  { %11952 = vmatmul.mubr.f32.gmra.mxu0 %v2332_v50  ;;  %v18693_v50 = vand.u32 4294901760, %v14681_v15 }
 0x1d2   :  { %11974 = vmatmul.mubr.f32.gmra.mxu1 %v14788_v0  ;;  %11954 = vmatprep.mubr.f32.mxu0 %v2342_v49 }
 0x1d3   :  { %11976 = vmatprep.mubr.f32.mxu1 %v14795_v29 }
 0x1d5   :  { %11955 = vmatmul.mubr.f32.gmra.mxu0 %v2352_v57 }
 0x1d6   :  { %11977 = vmatmul.mubr.f32.gmra.mxu1 %v14820_v38  ;;  %11989 = vmatprep.mubr.f32.mxu0 %v14681_v15  ;;  %v18696_v15 = vand.u32 4294901760, %v14718_v11 }
 0x1d7   :  { %11979 = vmatprep.mubr.f32.mxu1 %v14826_v54 }
 0x1d9   :  { %11990 = vmatmul.mubr.f32.vlgmr.msra.gmra.mxu0 %v14686_v45  ;;  %v18697_v45 = vand.u32 4294901760, %v14725_v1 }
 0x1da   :  { %11980 = vmatmul.mubr.f32.gmra.mxu1 %v14847_v13  ;;  %11992 = vmatprep.mubr.f32.mxu0 %v14695_v8  ;;  %v18699_v8 = vand.u32 4294901760, %v14742_v16 }
 0x1db   :  { %11982 = vmatprep.mubr.f32.mxu1 %v14854_v17  ;;  %12042 = vmatpush3.msra.mxu0 %v18691_v51 }
 0x1dc   :  { %12043 = vmatprep.subr.mxu0 %v18692_v22 }
 0x1dd   :  { %11993 = vmatmul.mubr.f32.gmra.mxu0 %v14718_v11  ;;  %v18700_v11 = vand.u32 4294901760, %v14775_v10 }
 0x1de   :  { %11983 = vmatmul.mubr.f32.gmra.mxu1 %v14867_v21  ;;  %11995 = vmatprep.mubr.f32.mxu0 %v14725_v1  ;;  %v18701_v1 = vand.u32 4294901760, %v14786_v7 }
 0x1df   :  { %12017 = vmatprep.mubr.f32.mxu1 %v18693_v50  ;;  %12044 = vmatpush3.msra.mxu0 %v18692_v22 }
 0x1e1   :  { %11996 = vmatmul.mubr.f32.gmra.mxu0 %v14739_v5  ;;  %v18702_v5 = vand.u32 4294901760, %v14818_v18 }
 0x1e2   :  { %12018 = vmatmul.mubr.f32.vlgmr.msra.gmra.mxu1 %v18694_v62  ;;  %11998 = vmatprep.mubr.f32.mxu0 %v14742_v16  ;;  %v18703_v16 = vand.u32 4294901760, %v14824_v39 }
 0x1e3   :  { %12070 = vmatpush3.msra.mxu1 %v18682_v52  ;;  %12020 = vmatprep.mubr.f32.mxu1 %v18695_v19 }
 0x1e4   :  { %12071 = vmatprep.subr.mxu1 %v18683_v46 }
 0x1e5   :  { %11999 = vmatmul.mubr.f32.gmra.mxu0 %v14775_v10  ;;  %12072 = vmatpush3.msra.mxu1 %v18683_v46  ;;  %v18704_v10 = vand.u32 4294901760, %v14845_v34 }
 0x1e6   :  { %12021 = vmatmul.mubr.f32.gmra.mxu1 %v18696_v15  ;;  %12001 = vmatprep.mubr.f32.mxu0 %v14786_v7  ;;  %v18705_v7 = vand.u32 4294901760, %v14852_v23 }
 0x1e7   :  { %12023 = vmatprep.mubr.f32.mxu1 %v18697_v45 }
 0x1e9   :  { %12002 = vmatmul.mubr.f32.gmra.mxu0 %v14818_v18 }
 0x1ea   :  { %12024 = vmatmul.mubr.f32.gmra.mxu1 %v18698_v56  ;;  %12004 = vmatprep.mubr.f32.mxu0 %v14824_v39 }
 0x1eb   :  { %12026 = vmatprep.mubr.f32.mxu1 %v18699_v8 }
 0x1ed   :  { %12005 = vmatmul.mubr.f32.gmra.mxu0 %v14845_v34  ;;  %v18706_v34 = vld [vmem:[#allocation19_spill] sm:$0xff] }
 0x1ee   :  { %12027 = vmatmul.mubr.f32.gmra.mxu1 %v18700_v11  ;;  %12007 = vmatprep.mubr.f32.mxu0 %v14852_v23 }
 0x1ef   :  { %12029 = vmatprep.mubr.f32.mxu1 %v18701_v1 }
 0x1f1   :  { %12008 = vmatmul.mubr.f32.gmra.mxu0 %v14865_v14 }
 0x1f2   :  { %12030 = vmatmul.mubr.f32.gmra.mxu1 %v18702_v5  ;;  %12010 = vmatprep.mubr.f32.mxu0 %v14875_v47 }
 0x1f3   :  { %12032 = vmatprep.mubr.f32.mxu1 %v18703_v16 }
 0x1f5   :  { %12011 = vmatmul.mubr.f32.gmra.mxu0 %v14887_v28 }
 0x1f6   :  { %12033 = vmatmul.mubr.f32.gmra.mxu1 %v18704_v10  ;;  %12045 = vmatprep.mubr.f32.mxu0 %v14655_v27 }
 0x1f7   :  { %12035 = vmatprep.mubr.f32.mxu1 %v18705_v7 }
 0x1f9   :  { %12046 = vmatmul.mubr.f32.vlgmr.msra.gmra.mxu0 %v14662_v4 }
 0x1fa   :  { %12036 = vmatmul.mubr.f32.gmra.mxu1 %v2330_v48  ;;  %12048 = vmatprep.mubr.f32.mxu0 %v14666_v42 }
 0x1fb   :  { %12038 = vmatprep.mubr.f32.mxu1 %v2340_v59 }
 0x1fd   :  { %12049 = vmatmul.mubr.f32.gmra.mxu0 %v14688_v9 }
 0x1fe   :  { %12039 = vmatmul.mubr.f32.gmra.mxu1 %v2350_v40  ;;  %12051 = vmatprep.mubr.f32.mxu0 %v14697_v26 }
 0x1ff   :  { %12073 = vmatprep.mubr.f32.mxu1 %v14655_v27 }
 0x201   :  { %12052 = vmatmul.mubr.f32.gmra.mxu0 %v14710_v2 }
 0x202   :  { %12074 = vmatmul.mubr.f32.vlgmr.msra.gmra.mxu1 %v14662_v4  ;;  %12054 = vmatprep.mubr.f32.mxu0 %v14712_v44 }
 0x203   :  { %12076 = vmatprep.mubr.f32.mxu1 %v14666_v42 }
 0x205   :  { %12055 = vmatmul.mubr.f32.gmra.mxu0 %v14744_v53 }
 0x206   :  { %12077 = vmatmul.mubr.f32.gmra.mxu1 %v14688_v9  ;;  %12057 = vmatprep.mubr.f32.mxu0 %v14755_v24 }
 0x207   :  { %12079 = vmatprep.mubr.f32.mxu1 %v14697_v26 }
 0x209   :  { %12058 = vmatmul.mubr.f32.gmra.mxu0 %v14788_v0 }
 0x20a   :  { %12080 = vmatmul.mubr.f32.gmra.mxu1 %v14710_v2  ;;  %12060 = vmatprep.mubr.f32.mxu0 %v14795_v29 }
 0x20b   :  { %12082 = vmatprep.mubr.f32.mxu1 %v14712_v44 }
 0x20d   :  { %12061 = vmatmul.mubr.f32.gmra.mxu0 %v14820_v38 }
 0x20e   :  { %12083 = vmatmul.mubr.f32.gmra.mxu1 %v14744_v53  ;;  %12063 = vmatprep.mubr.f32.mxu0 %v14826_v54 }
 0x20f   :  { %12085 = vmatprep.mubr.f32.mxu1 %v14755_v24 }
 0x211   :  { %12064 = vmatmul.mubr.f32.gmra.mxu0 %v14847_v13 }
 0x212   :  { %12086 = vmatmul.mubr.f32.gmra.mxu1 %v14788_v0  ;;  %12066 = vmatprep.mubr.f32.mxu0 %v14854_v17 }
 0x213   :  { %12088 = vmatprep.mubr.f32.mxu1 %v14795_v29 }
 0x215   :  { %12067 = vmatmul.mubr.f32.gmra.mxu0 %v14867_v21 }
 0x216   :  { %12089 = vmatmul.mubr.f32.gmra.mxu1 %v14820_v38  ;;  %12129 = vmatprep.mubr.f32.mxu0 %v18706_v34 }
 0x217   :  { %12091 = vmatprep.mubr.f32.mxu1 %v14826_v54 }
 0x21a   :  { %12092 = vmatmul.mubr.f32.gmra.mxu1 %v14847_v13 }
 0x21b   :  { %12094 = vmatprep.mubr.f32.mxu1 %v14854_v17 }
 0x21e   :  { %12095 = vmatmul.mubr.f32.gmra.mxu1 %v14867_v21 }
 0x21f   :  { %12170 = vmatprep.mubr.f32.mxu1 %v18681_v25 }
 0x223   :  { %v11717_v47 = vpop.f32.mrf.mxu0 }
 0x225   :  { %v15006_v42 = vpop.f32.mrf.mxu0 }
 0x226   :  { %18707 = vst [vmem:[#allocation40_spill] sm:$0xff] %v15006_v42 }
 0x22a   :  { %v11758_v27 = vpop.f32.mrf.mxu1 }
 0x22b   :  { %v1522_v4 = vadd.f32 %v11758_v27, %v11717_v47 }
 0x22c   :  { %v15010_v2 = vpop.f32.mrf.mxu1 }
 0x22d   :  { %18709 = vst [vmem:[#allocation42_spill] sm:$0xff] %v15010_v2 }
 0x23b   :  { %v11720_v9 = vpop.f32.mrf.mxu0 }
 0x23d   :  { %v15008_v26 = vpop.f32.mrf.mxu0 }
 0x23e   :  { %18708 = vst [vmem:[#allocation41_spill] sm:$0xff] %v15008_v26 }
 0x240   :  { %v11723_v44 = vpop.f32.mrf.mxu0 }
 0x242   :  { %v11761_v54 = vpop.f32.mrf.mxu1  ;;  %v15012_v13 = vpop.f32.mrf.mxu0 }
 0x243   :  { %v1534_v29 = vadd.f32 %v11761_v54, %v11720_v9  ;;  %18710 = vst [vmem:[#allocation43_spill] sm:$0xff] %v15012_v13 }
 0x244   :  { %v15014_v53 = vpop.f32.mrf.mxu1 }
 0x245   :  { %18711 = vst [vmem:[#allocation44_spill] sm:$0xff] %v15014_v53 }
 0x247   :  { %v11799_v21 = vpop.f32.mrf.mxu0 }
 0x248   :  { %v1657_v24 = vadd.f32 %v11799_v21, %v1522_v4  ;;  %v11764_v39 = vpop.f32.mrf.mxu1 }
 0x249   :  { %v1546_v38 = vadd.f32 %v11764_v39, %v11723_v44  ;;  %v15016_v0 = vpop.f32.mrf.mxu0 }
 0x24a   :  { %18712 = vst [vmem:[#allocation45_spill] sm:$0xff] %v15016_v0  ;;  %v15020_v14 = vpop.f32.mrf.mxu1 }
 0x24b   :  { %18714 = vst [vmem:[#allocation47_spill] sm:$0xff] %v15020_v14 }
 0x24d   :  { %v11802_v18 = vpop.f32.mrf.mxu0 }
 0x24e   :  { %v1671_v23 = vadd.f32 %v11802_v18, %v1534_v29 }
 0x24f   :  { %v15018_v17 = vpop.f32.mrf.mxu0 }
 0x250   :  { %18713 = vst [vmem:[#allocation46_spill] sm:$0xff] %v15018_v17 }
 0x252   :  { %v11805_v48 = vpop.f32.mrf.mxu0  ;;  %v11840_v28 = vpop.f32.mrf.mxu1 }
 0x253   :  { %v1685_v59 = vadd.f32 %v11805_v48, %v1546_v38  ;;  %v1782_v40 = vadd.f32 %v11840_v28, %v1657_v24 }
 0x254   :  { %v15022_v33 = vpop.f32.mrf.mxu1  ;;  %v15026_v19 = vpop.f32.mrf.mxu0 }
 0x255   :  { %18715 = vst [vmem:[#allocation48_spill] sm:$0xff] %v15022_v33  ;;  %18717 = vst [vmem:[#allocation50_spill] sm:$0xff] %v15026_v19 }
 0x258   :  { %v11843_v12 = vpop.f32.mrf.mxu1 }
 0x259   :  { %v1798_v49 = vadd.f32 %v11843_v12, %v1671_v23 }
 0x25a   :  { %v15024_v57 = vpop.f32.mrf.mxu1 }
 0x25b   :  { %18716 = vst [vmem:[#allocation49_spill] sm:$0xff] %v15024_v57 }
 0x25d   :  { %v11846_v50 = vpop.f32.mrf.mxu1 }
 0x25e   :  { %v1814_v62 = vadd.f32 %v11846_v50, %v1685_v59 }
 0x25f   :  { %v15032_v5 = vpop.f32.mrf.mxu1 }
 0x260   :  { %18720 = vst [vmem:[#allocation53_spill] sm:$0xff] %v15032_v5 }
 0x26d   :  { %v11881_v15 = vpop.f32.mrf.mxu0 }
 0x26e   :  { %v1939_v45 = vadd.f32 %v11881_v15, %v1782_v40 }
 0x26f   :  { %v15028_v56 = vpop.f32.mrf.mxu0 }
 0x270   :  { %18718 = vst [vmem:[#allocation51_spill] sm:$0xff] %v15028_v56 }
 0x271   :  { %v11884_v8 = vpop.f32.mrf.mxu0 }
 0x272   :  { %v1951_v11 = vadd.f32 %v11884_v8, %v1798_v49 }
 0x273   :  { %v15030_v1 = vpop.f32.mrf.mxu0 }
 0x274   :  { %18719 = vst [vmem:[#allocation52_spill] sm:$0xff] %v15030_v1 }
 0x275   :  { %v11887_v16 = vpop.f32.mrf.mxu0 }
 0x276   :  { %v1963_v10 = vadd.f32 %v11887_v16, %v1814_v62  ;;  %v11922_v7 = vpop.f32.mrf.mxu1 }
 0x277   :  { %v15034_v47 = vadd.f32 %v11922_v7, %v1939_v45  ;;  %v15036_v27 = vpop.f32.mrf.mxu0 }
 0x278   :  { %18722 = vst [vmem:[#allocation55_spill] sm:$0xff] %v15036_v27  ;;  %v15038_v4 = vpop.f32.mrf.mxu1 }
 0x279   :  { %18721 = vst [vmem:[#allocation54_spill] sm:$0xff] %v15034_v47  ;;  %18723 = vst [vmem:[#allocation56_spill] sm:$0xff] %v15038_v4  ;;  %v11935_v9 = vpop.f32.mrf.mxu0 }
 0x27a   :  { %v11925_v44 = vpop.f32.mrf.mxu1 }
 0x27b   :  { %v15040_v54 = vadd.f32 %v11925_v44, %v1951_v11  ;;  %v15042_v29 = vpop.f32.mrf.mxu0 }
 0x27c   :  { %v15044_v21 = vpop.f32.mrf.mxu1 }
 0x27d   :  { %18724 = vst [vmem:[#allocation57_spill] sm:$0xff] %v15040_v54  ;;  %18725 = vst [vmem:[#allocation58_spill] sm:$0xff] %v15044_v21  ;;  %v11938_v24 = vpop.f32.mrf.mxu0 }
 0x27e   :  { %v11928_v39 = vpop.f32.mrf.mxu1 }
 0x27f   :  { %v15046_v38 = vadd.f32 %v11928_v39, %v1963_v10  ;;  %v15048_v18 = vpop.f32.mrf.mxu0 }
 0x280   :  { %v15050_v23 = vpop.f32.mrf.mxu1 }
 0x281   :  { %18726 = vst [vmem:[#allocation59_spill] sm:$0xff] %v15046_v38  ;;  %18727 = vst [vmem:[#allocation60_spill] sm:$0xff] %v15050_v23  ;;  %v11941_v48 = vpop.f32.mrf.mxu0 }
 0x282   :  { %v11963_v28 = vpop.f32.mrf.mxu1 }
 0x283   :  { %v2442_v59 = vadd.f32 %v11963_v28, %v11935_v9  ;;  %v15052_v40 = vpop.f32.mrf.mxu0 }
 0x284   :  { %v15054_v12 = vpop.f32.mrf.mxu1 }
 0x285   :  { %v11944_v49 = vpop.f32.mrf.mxu0 }
 0x286   :  { %v11966_v50 = vpop.f32.mrf.mxu1 }
 0x287   :  { %v2454_v62 = vadd.f32 %v11966_v50, %v11938_v24  ;;  %v15056_v15 = vpop.f32.mrf.mxu0 }
 0x288   :  { %v15058_v45 = vpop.f32.mrf.mxu1 }
 0x289   :  { %v11947_v8 = vpop.f32.mrf.mxu0 }
 0x28a   :  { %v11969_v11 = vpop.f32.mrf.mxu1 }
 0x28b   :  { %v2466_v16 = vadd.f32 %v11969_v11, %v11941_v48  ;;  %v15060_v10 = vpop.f32.mrf.mxu0 }
 0x28c   :  { %v15062_v7 = vpop.f32.mrf.mxu1 }
 0x28d   :  { %v11950_v44 = vpop.f32.mrf.mxu0 }
 0x28e   :  { %v11972_v9 = vpop.f32.mrf.mxu1 }
 0x28f   :  { %v15064_v39 = vadd.f32 %v11972_v9, %v11944_v49  ;;  %v15066_v28 = vpop.f32.mrf.mxu0 }
 0x290   :  { %v15068_v23 = vpop.f32.mrf.mxu1 }
 0x291   :  { %v11953_v24 = vpop.f32.mrf.mxu0 }
 0x292   :  { %v11975_v50 = vpop.f32.mrf.mxu1 }
 0x293   :  { %v15070_v27 = vadd.f32 %v11975_v50, %v11947_v8  ;;  %v15072_v5 = vpop.f32.mrf.mxu0 }
 0x294   :  { %v15074_v21 = vpop.f32.mrf.mxu1 }
 0x295   :  { %v15076_v48 = vpop.f32.mrf.mxu0 }
 0x296   :  { %v11978_v11 = vpop.f32.mrf.mxu1 }
 0x297   :  { %v15078_v19 = vadd.f32 %v11978_v11, %v11950_v44  ;;  %v15080_v1 = vpop.f32.mrf.mxu0 }
 0x298   :  { %v15082_v49 = vpop.f32.mrf.mxu1 }
 0x299   :  { %v11991_v9 = vpop.f32.mrf.mxu0 }
 0x29a   :  { %v11981_v14 = vpop.f32.mrf.mxu1  ;;  %v2609_v13 = vadd.f32 %v11991_v9, %v2442_v59 }
 0x29b   :  { %v15084_v4 = vadd.f32 %v11981_v14, %v11953_v24  ;;  %v15086_v8 = vpop.f32.mrf.mxu0 }
 0x29c   :  { %18728 = vst [vmem:[#allocation61_spill] sm:$0xff] %v15086_v8  ;;  %v2507_v50 = vpop.f32.mrf.mxu1 }
 0x29d   :  { %v11994_v57 = vpop.f32.mrf.mxu0 }
 0x29e   :  { %v15088_v56 = vpop.f32.mrf.mxu1  ;;  %v2623_v17 = vadd.f32 %v11994_v57, %v2454_v62 }
 0x29f   :  { %v15090_v33 = vpop.f32.mrf.mxu0 }
 0x2a0   :  { %v15092_v44 = vpop.f32.mrf.mxu1 }
 0x2a1   :  { %v11997_v11 = vpop.f32.mrf.mxu0 }
 0x2a2   :  { %v2637_v53 = vadd.f32 %v11997_v11, %v2466_v16  ;;  %v12019_v26 = vpop.f32.mrf.mxu1 }
 0x2a3   :  { %v15094_v0 = vadd.f32 %v12019_v26, %v2609_v13  ;;  %v15096_v2 = vpop.f32.mrf.mxu0 }
 0x2a4   :  { %v15098_v14 = vpop.f32.mrf.mxu1 }
 0x2a5   :  { %18729 = vst [vmem:[#allocation62_spill] sm:$0xff] %v15094_v0  ;;  %18730 = vst [vmem:[#allocation63_spill] sm:$0xff] %v15098_v14  ;;  %v15100_v59 = vpop.f32.mrf.mxu0 }
 0x2a6   :  { %v12022_v24 = vpop.f32.mrf.mxu1 }
 0x2a7   :  { %v15102_v9 = vadd.f32 %v12022_v24, %v2623_v17  ;;  %v15104_v42 = vpop.f32.mrf.mxu0 }
 0x2a8   :  { %v15106_v57 = vpop.f32.mrf.mxu1 }
 0x2a9   :  { %18731 = vst [vmem:[#allocation64_spill] sm:$0xff] %v15102_v9  ;;  %18732 = vst [vmem:[#allocation65_spill] sm:$0xff] %v15106_v57  ;;  %v15108_v62 = vpop.f32.mrf.mxu0  ;;  %v2508_v57 = vadd.f32 %v2507_v50, %v15072_v5  ;;  %v2448_v5 = vadd.f32 %v15058_v45, %v15048_v18 }
 0x2aa   :  { %v12025_v38 = vpop.f32.mrf.mxu1 }
 0x2ab   :  { %v15110_v16 = vadd.f32 %v12025_v38, %v2637_v53  ;;  %v15112_v26 = vpop.f32.mrf.mxu0 }
 0x2ac   :  { %v15114_v13 = vpop.f32.mrf.mxu1 }
 0x2ad   :  { %18733 = vst [vmem:[#allocation66_spill] sm:$0xff] %v15110_v16  ;;  %18734 = vst [vmem:[#allocation67_spill] sm:$0xff] %v15114_v13  ;;  %v12006_v11 = vpop.f32.mrf.mxu0 }
 0x2ae   :  { %v15116_v54 = vpop.f32.mrf.mxu1 }
 0x2af   :  { %v2671_v47 = vpop.f32.mrf.mxu0 }
 0x2b0   :  { %v15118_v34 = vpop.f32.mrf.mxu1 }
 0x2b1   :  { %v12009_v17 = vpop.f32.mrf.mxu0 }
 0x2b2   :  { %v15120_v24 = vpop.f32.mrf.mxu1 }
 0x2b3   :  { %v2685_v22 = vpop.f32.mrf.mxu0 }
 0x2b4   :  { %v15122_v51 = vpop.f32.mrf.mxu1  ;;  %v2686_v16 = vadd.f32 %v2685_v22, %v2508_v57  ;;  %v2484_v22 = vadd.f32 %v15074_v21, %v15060_v10 }
 0x2b5   :  { %v12012_v46 = vpop.f32.mrf.mxu0 }
 0x2b6   :  { %v12034_v52 = vpop.f32.mrf.mxu1 }
 0x2b7   :  { %v2699_v53 = vpop.f32.mrf.mxu0 }
 0x2b8   :  { %v2861_v38 = vpop.f32.mrf.mxu1 }
 0x2b9   :  { %v15124_v25 = vpop.f32.mrf.mxu0 }
 0x2ba   :  { %18735 = vst [vmem:[#allocation68_spill] sm:$0xff] %v15124_v25  ;;  %v12037_v37 = vpop.f32.mrf.mxu1 }
 0x2bb   :  { %v15126_v20 = vpop.f32.mrf.mxu0 }
 0x2bc   :  { %18736 = vst [vmem:[#allocation69_spill] sm:$0xff] %v15126_v20  ;;  %v2877_v61 = vpop.f32.mrf.mxu1 }
 0x2bd   :  { %v15128_v30 = vpop.f32.mrf.mxu0 }
 0x2be   :  { %18737 = vst [vmem:[#allocation70_spill] sm:$0xff] %v15128_v30  ;;  %v12040_v31 = vpop.f32.mrf.mxu1 }
 0x2bf   :  { %v15130_v6 = vpop.f32.mrf.mxu0 }
 0x2c0   :  { %18738 = vst [vmem:[#allocation71_spill] sm:$0xff] %v15130_v6  ;;  %v2893_v60 = vpop.f32.mrf.mxu1 }
 0x2c1   :  { %v15132_v32 = vpop.f32.mrf.mxu0 }
 0x2c2   :  { %18739 = vst [vmem:[#allocation72_spill] sm:$0xff] %v15132_v32  ;;  %v15134_v43 = vpop.f32.mrf.mxu1  ;;  %v2526_v32 = vadd.f32 %v15088_v56, %v15076_v48  ;;  %v2472_v48 = vadd.f32 %v15068_v23, %v15056_v15 }
 0x2c3   :  { %18740 = vst [vmem:[#allocation73_spill] sm:$0xff] %v15134_v43  ;;  %v15136_v3 = vpop.f32.mrf.mxu0 }
 0x2c4   :  { %18741 = vst [vmem:[#allocation74_spill] sm:$0xff] %v15136_v3  ;;  %v15138_v63 = vpop.f32.mrf.mxu1 }
 0x2c5   :  { %18742 = vst [vmem:[#allocation75_spill] sm:$0xff] %v15138_v63  ;;  %v15140_v55 = vpop.f32.mrf.mxu0 }
 0x2c6   :  { %v15142_v58 = vpop.f32.mrf.mxu1 }
 0x2c7   :  { %18743 = vst [vmem:[#allocation76_spill] sm:$0xff] %v15142_v58  ;;  %v15144_v41 = vpop.f32.mrf.mxu0 }
 0x2c8   :  { %v15146_v36 = vpop.f32.mrf.mxu1 }
 0x2c9   :  { %18744 = vst [vmem:[#allocation77_spill] sm:$0xff] %v15146_v36  ;;  %v12059_v35 = vpop.f32.mrf.mxu0  ;;  %v2693_v36 = vadd.f32 %v12009_v17, %v15084_v4  ;;  %v2460_v4 = vadd.f32 %v15062_v7, %v15052_v40 }
 0x2ca   :  { %v15148_v20 = vpop.f32.mrf.mxu1 }
 0x2cb   :  { %18745 = vst [vmem:[#allocation78_spill] sm:$0xff] %v15148_v20  ;;  %v3026_v25 = vpop.f32.mrf.mxu0  ;;  %v15160_v20 = vadd.f32 %v15054_v12, %v15042_v29  ;;  %v2886_v13 = vadd.f32 %v12037_v37, %v2693_v36  ;;  %v2520_v29 = vadd.f32 %v15092_v44, %v15080_v1  ;;  %v2665_v36 = vadd.f32 %v15108_v62, %v15070_v27 }
 0x2cc   :  { %v15150_v0 = vpop.f32.mrf.mxu1 }
 0x2cd   :  { %18746 = vst [vmem:[#allocation79_spill] sm:$0xff] %v15150_v0  ;;  %v12062_v14 = vpop.f32.mrf.mxu0  ;;  %18748 = vst [vmem:[#allocation81_spill] sm:$0xff] %v15160_v20  ;;  %v2496_v0 = vadd.f32 %v15082_v49, %v15066_v28  ;;  %v2707_v49 = vadd.f32 %v12012_v46, %v2526_v32  ;;  %v2878_v20 = vadd.f32 %v2877_v61, %v2686_v16 }
 0x2ce   :  { %v15152_v43 = vpop.f32.mrf.mxu1  ;;  %v2700_v37 = vadd.f32 %v2699_v53, %v2520_v29  ;;  %v2854_v32 = vadd.f32 %v15120_v24, %v2665_v36  ;;  %v2630_v24 = vadd.f32 %v15096_v2, %v2460_v4  ;;  %v18751_v4 = vld [vmem:[#allocation72_spill] sm:$0xff]  ;;  %v18753_v36 = vld [vmem:[#allocation74_spill] sm:$0xff] }
 0x2cf   :  { %v3038_v6 = vpop.f32.mrf.mxu0  ;;  %v2672_v12 = vadd.f32 %v2671_v47, %v2496_v0  ;;  %v2902_v40 = vadd.f32 %v12040_v31, %v2707_v49  ;;  %v2658_v0 = vadd.f32 %v15112_v26, %v2484_v22  ;;  %v2651_v31 = vadd.f32 %v15100_v59, %v15064_v39 }
 0x2d0   :  { %v15154_v8 = vpop.f32.mrf.mxu1  ;;  %v2616_v39 = vadd.f32 %v15090_v33, %v2448_v5  ;;  %v18750_v5 = vld [vmem:[#allocation66_spill] sm:$0xff] }
 0x2d1   :  { %18747 = vst [vmem:[#allocation80_spill] sm:$0xff] %v15154_v8  ;;  %v12065_v63 = vpop.f32.mrf.mxu0  ;;  %v2679_v8 = vadd.f32 %v12006_v11, %v15078_v19  ;;  %v2862_v19 = vadd.f32 %v2861_v38, %v2672_v12  ;;  %v2838_v57 = vadd.f32 %v15116_v54, %v2651_v31  ;;  %v3009_v29 = vadd.f32 %v18751_v4, %v18750_v5  ;;  %v18766_v5 = vld [vmem:[#allocation77_spill] sm:$0xff] }
 0x2d2   :  { %v12087_v30 = vpop.f32.mrf.mxu1  ;;  %v3057_v56 = vadd.f32 %v12065_v63, %v2886_v13 }
 0x2d3   :  { %v3050_v9 = vpop.f32.mrf.mxu0  ;;  %v2870_v17 = vadd.f32 %v12034_v52, %v2679_v8  ;;  %v2894_v52 = vadd.f32 %v2893_v60, %v2700_v37  ;;  %v3039_v61 = vadd.f32 %v3038_v6, %v2862_v19  ;;  %v3033_v8 = vadd.f32 %v12059_v35, %v2854_v32  ;;  %v18754_v19 = vld [vmem:[#allocation78_spill] sm:$0xff] }
 0x2d4   :  { %v3189_v58 = vpop.f32.mrf.mxu1  ;;  %v3051_v7 = vadd.f32 %v3050_v9, %v2878_v20  ;;  %v2846_v20 = vadd.f32 %v15122_v51, %v2658_v0  ;;  %v3021_v13 = vadd.f32 %v15140_v55, %v2838_v57 }
 0x2d5   :  { %v12068_v50 = vpop.f32.mrf.mxu0  ;;  %v3045_v45 = vadd.f32 %v12062_v14, %v2870_v17  ;;  %v3196_v16 = vadd.f32 %v12087_v30, %v3033_v8 }
 0x2d6   :  { %v12090_v3 = vpop.f32.mrf.mxu1  ;;  %v3069_v47 = vadd.f32 %v12068_v50, %v2902_v40  ;;  %v3027_v62 = vadd.f32 %v3026_v25, %v2846_v20 }
 0x2d7   :  { %v3062_v63 = vpop.f32.mrf.mxu0  ;;  %v3208_v21 = vadd.f32 %v12090_v3, %v3045_v45  ;;  %v2644_v3 = vadd.f32 %v15104_v42, %v2472_v48  ;;  %v15214_v55 = vand.u32 4294901760, %v3196_v16 }
 0x2d8   :  { %v3201_v28 = vpop.f32.mrf.mxu1  ;;  %v3063_v14 = vadd.f32 %v3062_v63, %v2894_v52  ;;  %v3190_v42 = vadd.f32 %v3189_v58, %v3027_v62  ;;  %v18752_v12 = vld [vmem:[#allocation80_spill] sm:$0xff]  ;;  %v18755_v52 = vld [vmem:[#allocation65_spill] sm:$0xff] }
 0x2d9   :  { %v3202_v60 = vadd.f32 %v3201_v28, %v3039_v61  ;;  %v15190_v23 = vand.u32 4294901760, %v3208_v21  ;;  %v2830_v59 = vadd.f32 %v15118_v34, %v2644_v3  ;;  %v3184_v34 = vadd.f32 %v15152_v43, %v3021_v13  ;;  %v18756_v63 = vld [vmem:[#allocation64_spill] sm:$0xff]  ;;  %v18761_v3 = vld [vmem:[#allocation71_spill] sm:$0xff] }
 0x2da   :  { %v12093_v18 = vpop.f32.mrf.mxu1  ;;  %v15234_v28 = vand.u32 4294901760, %v3190_v42  ;;  %v15254_v45 = vsub.f32 %v3196_v16, %v15214_v55  ;;  %v2798_v61 = vadd.f32 %v18755_v52, %v2616_v39  ;;  %v18762_v62 = vld [vmem:[#allocation76_spill] sm:$0xff] }
 0x2db   :  { %v3220_v1 = vadd.f32 %v12093_v18, %v3057_v56  ;;  %v15200_v11 = vand.u32 4294901760, %v3202_v60  ;;  %v3015_v33 = vadd.f32 %v15144_v41, %v2830_v59  ;;  %v15218_v58 = vsub.f32 %v3208_v21, %v15190_v23  ;;  %v18749_v41 = vld [vmem:[#allocation67_spill] sm:$0xff] }
 0x2dc   :  { %v3213_v46 = vpop.f32.mrf.mxu1  ;;  %v2814_v43 = vadd.f32 %v18749_v41, %v2630_v24  ;;  %v3172_v18 = vadd.f32 %v18754_v19, %v3009_v29  ;;  %v15251_v40 = vand.u32 4294901760, %v3184_v34  ;;  %v18758_v21 = vld [vmem:[#allocation79_spill] sm:$0xff]  ;;  %v15273_v31 = vsub.f32 %v3190_v42, %v15234_v28  ;;  %v18765_v41 = vld [vmem:[#allocation68_spill] sm:$0xff] }
 0x2dd   :  { %v15179_v10 = vand.u32 4294901760, %v3220_v1  ;;  %v3214_v27 = vadd.f32 %v3213_v46, %v3051_v7  ;;  %v3178_v50 = vadd.f32 %v18752_v12, %v3015_v33  ;;  %v15238_v49 = vsub.f32 %v3202_v60, %v15200_v11  ;;  %v18757_v46 = vld [vmem:[#allocation70_spill] sm:$0xff]  ;;  %v18760_v60 = vld [vmem:[#allocation61_spill] sm:$0xff]  ;;  %v18763_v42 = vld [vmem:[#allocation63_spill] sm:$0xff] }
 0x2de   :  { %v12096_v44 = vpop.f32.mrf.mxu1  ;;  %v3003_v37 = vadd.f32 %v18753_v36, %v2814_v43  ;;  %v15263_v32 = vand.u32 4294901760, %v15218_v58  ;;  %v2991_v57 = vadd.f32 %v18761_v3, %v2798_v61  ;;  %v15295_v13 = vand.u32 4294901760, %v15254_v45  ;;  %v18764_v33 = vld [vmem:[#allocation62_spill] sm:$0xff] }
 0x2df   :  { %v15186_v6 = vand.u32 4294901760, %v3214_v27  ;;  %v3232_v9 = vadd.f32 %v12096_v44, %v3069_v47  ;;  %v15193_v15 = vsub.f32 %v3220_v1, %v15179_v10  ;;  %v2997_v47 = vadd.f32 %v18757_v46, %v18756_v63  ;;  %v18769_v46 = vld [vmem:[#allocation75_spill] sm:$0xff] }
 0x2e0   :  { %v3225_v26 = vpop.f32.mrf.mxu1  ;;  %v15269_v48 = vand.u32 4294901760, %v3178_v50  ;;  %v15279_v44 = vand.u32 4294901760, %v15238_v49  ;;  %v3408_v59 = vsub.f32 %v15218_v58, %v15263_v32  ;;  %v2985_v43 = vadd.f32 %v18765_v41, %v18764_v33 }
 0x2e1   :  { %v15195_v51 = vand.u32 4294901760, %v3232_v9  ;;  %v3226_v35 = vadd.f32 %v3225_v26, %v3063_v14  ;;  %v15203_v30 = vsub.f32 %v3214_v27, %v15186_v6  ;;  %v15228_v2 = vand.u32 4294901760, %v15193_v15  ;;  %v18759_v14 = vld [vmem:[#allocation81_spill] sm:$0xff] }
 0x2e2   :  { %v3166_v27 = vadd.f32 %v18758_v21, %v3003_v37  ;;  %v3160_v16 = vadd.f32 %v18762_v62, %v2997_v47  ;;  %v15285_v26 = vand.u32 4294901760, %v3172_v18  ;;  %v3154_v4 = vadd.f32 %v18766_v5, %v2991_v57  ;;  %v18767_v37 = vld [vmem:[#allocation69_spill] sm:$0xff] }
 0x2e3   :  { %v15206_v25 = vsub.f32 %v3232_v9, %v15195_v51  ;;  %v15208_v54 = vand.u32 4294901760, %v3226_v35  ;;  %12097 = vmatprep.subr.mxu0 %v15195_v51  ;;  %v15247_v22 = vand.u32 4294901760, %v15203_v30  ;;  %v3394_v0 = vsub.f32 %v15193_v15, %v15228_v2 }
 0x2e4   :  { %12098 = vmatpush3.msra.mxu0 %v15195_v51  ;;  %v2602_v9 = vadd.f32 %v18760_v60, %v18759_v14  ;;  %v15301_v29 = vand.u32 4294901760, %v3166_v27  ;;  %v15311_v36 = vand.u32 4294901760, %v15273_v31  ;;  %v3409_v52 = vand.u32 4294901760, %v3408_v59 }
 0x2e5   :  { %v15221_v53 = vsub.f32 %v3226_v35, %v15208_v54  ;;  %12099 = vmatprep.subr.mxu0 %v15208_v54  ;;  %v15225_v38 = vand.u32 4294901760, %v15206_v25  ;;  %v3401_v8 = vsub.f32 %v15203_v30, %v15247_v22  ;;  %v15289_v35 = vsub.f32 %v3184_v34, %v15251_v40 }
 0x2e6   :  { %12100 = vmatpush3.msra.mxu0 %v15208_v54  ;;  %v3395_v39 = vand.u32 4294901760, %v3394_v0  ;;  %v2782_v24 = vadd.f32 %v18763_v42, %v2602_v9  ;;  %v15305_v34 = vsub.f32 %v3178_v50, %v15269_v48  ;;  %v15315_v0 = vand.u32 4294901760, %v3160_v16 }
 0x2e7   :  { %12101 = vmatprep.subr.mxu0 %v15179_v10  ;;  %v3380_v17 = vsub.f32 %v15206_v25, %v15225_v38  ;;  %v15244_v56 = vand.u32 4294901760, %v15221_v53  ;;  %v3402_v12 = vand.u32 4294901760, %v3401_v8  ;;  %v15319_v50 = vsub.f32 %v3172_v18, %v15285_v26 }
 0x2e8   :  { %12102 = vmatpush3.msra.mxu0 %v15179_v10  ;;  %v2979_v19 = vadd.f32 %v18767_v37, %v2782_v24  ;;  %v3422_v61 = vsub.f32 %v15254_v45, %v15295_v13  ;;  %v15325_v63 = vand.u32 4294901760, %v15289_v35  ;;  %v15328_v21 = vand.u32 4294901760, %v3154_v4 }
 0x2e9   :  { %12103 = vmatprep.subr.mxu0 %v15186_v6  ;;  %v3381_v7 = vand.u32 4294901760, %v3380_v17  ;;  %v3387_v1 = vsub.f32 %v15221_v53, %v15244_v56  ;;  %v3415_v17 = vsub.f32 %v15238_v49, %v15279_v44  ;;  %v15332_v18 = vsub.f32 %v3166_v27, %v15301_v29 }
 0x2ea   :  { %12104 = vmatpush3.msra.mxu0 %v15186_v6  ;;  %v3142_v47 = vadd.f32 %v18769_v46, %v2979_v19  ;;  %v3429_v8 = vsub.f32 %v15273_v31, %v15311_v36  ;;  %v15338_v14 = vand.u32 4294901760, %v15305_v34  ;;  %v15344_v9 = vsub.f32 %v3160_v16, %v15315_v0 }
 0x2eb   :  { %12105 = vmatprep.subr.mxu0 %v15190_v23  ;;  %12138 = vmatprep.subr.mxu1 %v3381_v7  ;;  %v3388_v20 = vand.u32 4294901760, %v3387_v1  ;;  %v3423_v27 = vand.u32 4294901760, %v3422_v61  ;;  %v3436_v3 = vsub.f32 %v15289_v35, %v15325_v63  ;;  %v15350_v57 = vand.u32 4294901760, %v15319_v50 }
 0x2ec   :  { %12106 = vmatpush3.msra.mxu0 %v15190_v23  ;;  %12139 = vmatpush3.msra.mxu1 %v3381_v7  ;;  %v18768_v7 = vld [vmem:[#allocation73_spill] sm:$0xff]  ;;  %v15352_v62 = vand.u32 4294901760, %v3142_v47  ;;  %v3430_v16 = vand.u32 4294901760, %v3429_v8  ;;  %v3443_v59 = vsub.f32 %v15305_v34, %v15338_v14  ;;  %v15362_v42 = vand.u32 4294901760, %v15332_v18 }
 0x2ed   :  { %12107 = vmatprep.subr.mxu0 %v15200_v11  ;;  %12140 = vmatprep.subr.mxu1 %v3388_v20  ;;  %v3148_v1 = vadd.f32 %v18768_v7, %v2985_v43  ;;  %v3437_v33 = vand.u32 4294901760, %v3436_v3  ;;  %v3450_v41 = vsub.f32 %v15319_v50, %v15350_v57  ;;  %v15372_v43 = vand.u32 4294901760, %v15344_v9 }
 0x2ee   :  { %12108 = vmatpush3.msra.mxu0 %v15200_v11  ;;  %12141 = vmatpush3.msra.mxu1 %v3388_v20  ;;  %v3416_v20 = vand.u32 4294901760, %v3415_v17  ;;  %v15376_v5 = vsub.f32 %v3142_v47, %v15352_v62 }
 0x2ef   :  { %12109 = vmatprep.subr.mxu0 %v15214_v55  ;;  %12142 = vmatprep.subr.mxu1 %v3395_v39  ;;  %v15340_v60 = vand.u32 4294901760, %v3148_v1  ;;  %v3451_v37 = vand.u32 4294901760, %v3450_v41  ;;  %v3464_v19 = vsub.f32 %v15344_v9, %v15372_v43 }
 0x2f0   :  { %12110 = vmatpush3.msra.mxu0 %v15214_v55  ;;  %12143 = vmatpush3.msra.mxu1 %v3395_v39  ;;  %v15356_v39 = vsub.f32 %v3154_v4, %v15328_v21  ;;  %v3444_v4 = vand.u32 4294901760, %v3443_v59  ;;  %v15396_v61 = vand.u32 4294901760, %v15376_v5  ;;  %v18787_v59 = vld [vmem:[#allocation35_spill] sm:$0xff] }
 0x2f1   :  { %12111 = vmatprep.subr.mxu0 %v15234_v28  ;;  %12144 = vmatprep.subr.mxu1 %v3402_v12  ;;  %v15366_v24 = vsub.f32 %v3148_v1, %v15340_v60  ;;  %v3465_v46 = vand.u32 4294901760, %v3464_v19 }
 0x2f2   :  { %12112 = vmatpush3.msra.mxu0 %v15234_v28  ;;  %12145 = vmatpush3.msra.mxu1 %v3402_v12  ;;  %v3457_v12 = vsub.f32 %v15332_v18, %v15362_v42  ;;  %v15382_v17 = vand.u32 4294901760, %v15356_v39  ;;  %v3485_v8 = vsub.f32 %v15376_v5, %v15396_v61 }
 0x2f3   :  { %12113 = vmatprep.subr.mxu0 %v15251_v40  ;;  %12146 = vmatprep.subr.mxu1 %v3409_v52  ;;  %v15389_v7 = vand.u32 4294901760, %v15366_v24 }
 0x2f4   :  { %12114 = vmatpush3.msra.mxu0 %v15251_v40  ;;  %12147 = vmatpush3.msra.mxu1 %v3409_v52  ;;  %v3458_v1 = vand.u32 4294901760, %v3457_v12  ;;  %v3471_v52 = vsub.f32 %v15356_v39, %v15382_v17  ;;  %v13607_v12 = vld [vmem:[%s18433_s1 + $0x30] sm:$0xff] }
 0x2f5   :  { %12115 = vmatprep.subr.mxu0 %v15269_v48  ;;  %12148 = vmatprep.subr.mxu1 %v3416_v20  ;;  %v3478_v47 = vsub.f32 %v15366_v24, %v15389_v7 }
 0x2f6   :  { %12116 = vmatpush3.msra.mxu0 %v15269_v48  ;;  %12149 = vmatpush3.msra.mxu1 %v3416_v20  ;;  %v3472_v20 = vand.u32 4294901760, %v3471_v52 }
 0x2f7   :  { %12117 = vmatprep.subr.mxu0 %v15285_v26  ;;  %12150 = vmatprep.subr.mxu1 %v3423_v27  ;;  %v3479_v3 = vand.u32 4294901760, %v3478_v47 }
 0x2f8   :  { %12118 = vmatpush3.msra.mxu0 %v15285_v26  ;;  %12151 = vmatpush3.msra.mxu1 %v3423_v27  ;;  %v18770_v27 = vld [vmem:[#allocation38_spill] sm:$0xff] }
 0x2f9   :  { %12119 = vmatprep.subr.mxu0 %v15301_v29  ;;  %12152 = vmatprep.subr.mxu1 %v3430_v16 }
 0x2fa   :  { %12120 = vmatpush3.msra.mxu0 %v15301_v29  ;;  %12153 = vmatpush3.msra.mxu1 %v3430_v16  ;;  %v3486_v16 = vand.u32 4294901760, %v3485_v8  ;;  %v13609_v8 = vld [vmem:[%s18433_s1 + $0x40] sm:$0xff] }
 0x2fb   :  { %12121 = vmatprep.subr.mxu0 %v15315_v0  ;;  %12154 = vmatprep.subr.mxu1 %v3437_v33 }
 0x2fc   :  { %12122 = vmatpush3.msra.mxu0 %v15315_v0  ;;  %12155 = vmatpush3.msra.mxu1 %v3437_v33 }
 0x2fd   :  { %12123 = vmatprep.subr.mxu0 %v15328_v21  ;;  %12156 = vmatprep.subr.mxu1 %v3444_v4 }
 0x2fe   :  { %12124 = vmatpush3.msra.mxu0 %v15328_v21  ;;  %12157 = vmatpush3.msra.mxu1 %v3444_v4 }
 0x2ff   :  { %12125 = vmatprep.subr.mxu0 %v15340_v60  ;;  %12158 = vmatprep.subr.mxu1 %v3451_v37 }
 0x300   :  { %12126 = vmatpush3.msra.mxu0 %v15340_v60  ;;  %12159 = vmatpush3.msra.mxu1 %v3451_v37  ;;  %v4097_v37 = vmul.f32 %v13607_v12, %v13607_v12 }
 0x301   :  { %12127 = vmatprep.subr.mxu0 %v15352_v62  ;;  %12160 = vmatprep.subr.mxu1 %v3458_v1 }
 0x302   :  { %12128 = vmatpush3.msra.mxu0 %v15352_v62  ;;  %12161 = vmatpush3.msra.mxu1 %v3458_v1  ;;  %v13608_v1 = vld [vmem:[%s18433_s1 + $0x38] sm:$0xff] }
 0x303   :  { %12162 = vmatprep.subr.mxu1 %v3465_v46  ;;  %12179 = vmatprep.subr.mxu0 %v15206_v25  ;;  %v4098_v52 = vmul.f32 %v13608_v1, %v13608_v1 }
 0x304   :  { %12130 = vmatmul.mubr.f32.vlgmr.msra.gmra.mxu0 %v18770_v27  ;;  %12163 = vmatpush3.msra.mxu1 %v3465_v46 }
 0x305   :  { %12180 = vmatpush3.msra.mxu0 %v15206_v25  ;;  %12164 = vmatprep.subr.mxu1 %v3472_v20  ;;  %v18771_v25 = vld [vmem:[#allocation24_spill] sm:$0xff] }
 0x306   :  { %12181 = vmatprep.subr.mxu0 %v15221_v53  ;;  %12165 = vmatpush3.msra.mxu1 %v3472_v20  ;;  %v4126_v20 = vsel %vm74_vm0, %v4097_v37, 0 }
 0x307   :  { %12182 = vmatpush3.msra.mxu0 %v15221_v53  ;;  %12166 = vmatprep.subr.mxu1 %v3479_v3  ;;  %v18775_v53 = vld [vmem:[#allocation28_spill] sm:$0xff] }
 0x308   :  { %12183 = vmatprep.subr.mxu0 %v15193_v15  ;;  %12167 = vmatpush3.msra.mxu1 %v3479_v3  ;;  %v4099_v3 = vmul.f32 %v13609_v8, %v13609_v8  ;;  %v13614_v8 = vld [vmem:[%s18433_s1 + $0x60] sm:$0xff] }
 0x309   :  { %12184 = vmatpush3.msra.mxu0 %v15193_v15  ;;  %12168 = vmatprep.subr.mxu1 %v3486_v16  ;;  %v18772_v15 = vld [vmem:[#allocation29_spill] sm:$0xff] }
 0x30a   :  { %12185 = vmatprep.subr.mxu0 %v15203_v30  ;;  %12169 = vmatpush3.msra.mxu1 %v3486_v16  ;;  %v18792_v16 = vld [vmem:[#allocation16_spill] sm:$0xff] }
 0x30b   :  { %12186 = vmatpush3.msra.mxu0 %v15203_v30  ;;  %12171 = vmatmul.mubr.f32.vlgmr.msra.gmra.mxu1 %v18771_v25  ;;  %v18773_v30 = vld [vmem:[#allocation32_spill] sm:$0xff] }
 0x30c   :  { %12187 = vmatprep.subr.mxu0 %v15218_v58  ;;  %12220 = vmatprep.subr.mxu1 %v15195_v51 }
 0x30d   :  { %12188 = vmatpush3.msra.mxu0 %v15218_v58  ;;  %12221 = vmatpush3.msra.mxu1 %v15195_v51  ;;  %v18774_v58 = vld [vmem:[#allocation26_spill] sm:$0xff] }
 0x30e   :  { %12189 = vmatprep.subr.mxu0 %v15238_v49  ;;  %12222 = vmatprep.subr.mxu1 %v15208_v54 }
 0x30f   :  { %12190 = vmatpush3.msra.mxu0 %v15238_v49  ;;  %12223 = vmatpush3.msra.mxu1 %v15208_v54  ;;  %v18776_v49 = vld [vmem:[#allocation22_spill] sm:$0xff] }
 0x310   :  { %12191 = vmatprep.subr.mxu0 %v15254_v45  ;;  %12224 = vmatprep.subr.mxu1 %v15179_v10 }
 0x311   :  { %12192 = vmatpush3.msra.mxu0 %v15254_v45  ;;  %12225 = vmatpush3.msra.mxu1 %v15179_v10  ;;  %v18777_v45 = vld [vmem:[#allocation37_spill] sm:$0xff] }
 0x312   :  { %12193 = vmatprep.subr.mxu0 %v15273_v31  ;;  %12226 = vmatprep.subr.mxu1 %v15186_v6 }
 0x313   :  { %12194 = vmatpush3.msra.mxu0 %v15273_v31  ;;  %12227 = vmatpush3.msra.mxu1 %v15186_v6  ;;  %v18778_v31 = vld [vmem:[#allocation17_spill] sm:$0xff] }
 0x314   :  { %12195 = vmatprep.subr.mxu0 %v15289_v35  ;;  %12228 = vmatprep.subr.mxu1 %v15190_v23 }
 0x315   :  { %12196 = vmatpush3.msra.mxu0 %v15289_v35  ;;  %12229 = vmatpush3.msra.mxu1 %v15190_v23  ;;  %v18779_v35 = vld [vmem:[#allocation31_spill] sm:$0xff] }
 0x316   :  { %12197 = vmatprep.subr.mxu0 %v15305_v34  ;;  %12230 = vmatprep.subr.mxu1 %v15200_v11 }
 0x317   :  { %12198 = vmatpush3.msra.mxu0 %v15305_v34  ;;  %12231 = vmatpush3.msra.mxu1 %v15200_v11  ;;  %v18780_v34 = vld [vmem:[#allocation25_spill] sm:$0xff] }
 0x318   :  { %12199 = vmatprep.subr.mxu0 %v15319_v50  ;;  %12232 = vmatprep.subr.mxu1 %v15214_v55 }
 0x319   :  { %12200 = vmatpush3.msra.mxu0 %v15319_v50  ;;  %12233 = vmatpush3.msra.mxu1 %v15214_v55  ;;  %v18781_v50 = vld [vmem:[#allocation34_spill] sm:$0xff] }
 0x31a   :  { %12201 = vmatprep.subr.mxu0 %v15332_v18  ;;  %12234 = vmatprep.subr.mxu1 %v15234_v28 }
 0x31b   :  { %12132 = vmatprep.mubr.f32.mxu0 %v18772_v15  ;;  %12202 = vmatpush3.msra.mxu0 %v15332_v18  ;;  %v18782_v18 = vld [vmem:[#allocation39_spill] sm:$0xff] }
 0x31c   :  { %12235 = vmatpush3.msra.mxu1 %v15234_v28  ;;  %12133 = vmatmul.mubr.f32.gmra.mxu0 %v18773_v30 }
 0x31d   :  { %12203 = vmatprep.subr.mxu0 %v15344_v9  ;;  %12236 = vmatprep.subr.mxu1 %v15251_v40 }
 0x31e   :  { %12204 = vmatpush3.msra.mxu0 %v15344_v9  ;;  %12237 = vmatpush3.msra.mxu1 %v15251_v40  ;;  %v18783_v9 = vld [vmem:[#allocation23_spill] sm:$0xff] }
 0x31f   :  { %12205 = vmatprep.subr.mxu0 %v15356_v39  ;;  %12238 = vmatprep.subr.mxu1 %v15269_v48 }
 0x320   :  { %12135 = vmatprep.mubr.f32.mxu0 %v18774_v58  ;;  %12206 = vmatpush3.msra.mxu0 %v15356_v39  ;;  %v18785_v39 = vld [vmem:[#allocation18_spill] sm:$0xff] }
 0x321   :  { %12239 = vmatpush3.msra.mxu1 %v15269_v48  ;;  %12136 = vmatmul.mubr.f32.gmra.mxu0 %v18775_v53 }
 0x322   :  { %12173 = vmatprep.mubr.f32.mxu1 %v18776_v49  ;;  %12207 = vmatprep.subr.mxu0 %v15366_v24 }
 0x323   :  { %12240 = vmatprep.subr.mxu1 %v15285_v26  ;;  %12174 = vmatmul.mubr.f32.gmra.mxu1 %v18777_v45 }
 0x324   :  { %12208 = vmatpush3.msra.mxu0 %v15366_v24  ;;  %12241 = vmatpush3.msra.mxu1 %v15285_v26  ;;  %v13604_v24 = vld [vmem:[%s18433_s1 + $0x18] sm:$0xff] }
 0x325   :  { %12209 = vmatprep.subr.mxu0 %v15376_v5  ;;  %12242 = vmatprep.subr.mxu1 %v15301_v29  ;;  %v4094_v33 = vmul.f32 %v13604_v24, %v13604_v24  ;;  %v18793_v24 = vld [vmem:[#allocation8_spill] sm:$0xff] }
 0x326   :  { %12210 = vmatpush3.msra.mxu0 %v15376_v5  ;;  %12211 = vmatprep.mubr.f32.mxu0 %v18778_v31 }
 0x327   :  { %12243 = vmatpush3.msra.mxu1 %v15301_v29  ;;  %12176 = vmatprep.mubr.f32.mxu1 %v18779_v35 }
 0x328   :  { %12212 = vmatmul.mubr.f32.vlgmr.msra.gmra.mxu0 %v18780_v34  ;;  %12244 = vmatprep.subr.mxu1 %v15315_v0 }
 0x329   :  { %12261 = vmatprep.subr.mxu0 %v15225_v38  ;;  %12177 = vmatmul.mubr.f32.gmra.mxu1 %v18781_v50 }
 0x32a   :  { %12245 = vmatpush3.msra.mxu1 %v15315_v0  ;;  %12262 = vmatpush3.msra.mxu0 %v15225_v38  ;;  %v18784_v38 = vld [vmem:[#allocation20_spill] sm:$0xff] }
 0x32b   :  { %12246 = vmatprep.subr.mxu1 %v15328_v21  ;;  %12263 = vmatprep.subr.mxu0 %v15244_v56 }
 0x32c   :  { %12214 = vmatprep.mubr.f32.mxu0 %v18782_v18  ;;  %12247 = vmatpush3.msra.mxu1 %v15328_v21 }
 0x32d   :  { %12264 = vmatpush3.msra.mxu0 %v15244_v56  ;;  %12248 = vmatprep.subr.mxu1 %v15340_v60  ;;  %v18786_v56 = vld [vmem:[#allocation21_spill] sm:$0xff] }
 0x32e   :  { %12215 = vmatmul.mubr.f32.gmra.mxu0 %v18783_v9  ;;  %12265 = vmatprep.subr.mxu0 %v15228_v2 }
 0x32f   :  { %12249 = vmatpush3.msra.mxu1 %v15340_v60  ;;  %12266 = vmatpush3.msra.mxu0 %v15228_v2  ;;  %v18788_v2 = vld [vmem:[#allocation33_spill] sm:$0xff] }
 0x330   :  { %12250 = vmatprep.subr.mxu1 %v15352_v62  ;;  %12267 = vmatprep.subr.mxu0 %v15247_v22 }
 0x331   :  { %12217 = vmatprep.mubr.f32.mxu0 %v18784_v38  ;;  %12251 = vmatpush3.msra.mxu1 %v15352_v62 }
 0x332   :  { %12252 = vmatprep.mubr.f32.mxu1 %v18785_v39  ;;  %12268 = vmatpush3.msra.mxu0 %v15247_v22  ;;  %v18789_v22 = vld [vmem:[#allocation36_spill] sm:$0xff] }
 0x333   :  { %12218 = vmatmul.mubr.f32.gmra.mxu0 %v18786_v56  ;;  %12253 = vmatmul.mubr.f32.vlgmr.msra.gmra.mxu1 %v18787_v59 }
 0x334   :  { %12269 = vmatprep.subr.mxu0 %v15263_v32  ;;  %12302 = vmatprep.subr.mxu1 %v15195_v51 }
 0x335   :  { %12270 = vmatpush3.msra.mxu0 %v15263_v32  ;;  %12303 = vmatpush3.msra.mxu1 %v15195_v51  ;;  %v18790_v51 = vld [vmem:[#allocation27_spill] sm:$0xff] }
 0x336   :  { %12271 = vmatprep.subr.mxu0 %v15279_v44  ;;  %12304 = vmatprep.subr.mxu1 %v15208_v54 }
 0x337   :  { %12255 = vmatprep.mubr.f32.mxu1 %v18788_v2  ;;  %12272 = vmatpush3.msra.mxu0 %v15279_v44  ;;  %v18791_v44 = vld [vmem:[#allocation30_spill] sm:$0xff] }
 0x338   :  { %12305 = vmatpush3.msra.mxu1 %v15208_v54  ;;  %12273 = vmatprep.subr.mxu0 %v15295_v13  ;;  %v13601_v54 = vld [vmem:[%s18433_s1] sm:$0xff] }
 0x339   :  { %12256 = vmatmul.mubr.f32.gmra.mxu1 %v18789_v22  ;;  %12306 = vmatprep.subr.mxu1 %v15179_v10  ;;  %v4091_v32 = vmul.f32 %v13601_v54, %v13601_v54 }
 0x33a   :  { %12274 = vmatpush3.msra.mxu0 %v15295_v13  ;;  %12307 = vmatpush3.msra.mxu1 %v15179_v10  ;;  %v13602_v10 = vld [vmem:[%s18433_s1 + $0x8] sm:$0xff] }
 0x33b   :  { %12275 = vmatprep.subr.mxu0 %v15311_v36  ;;  %12308 = vmatprep.subr.mxu1 %v15186_v6  ;;  %v4092_v13 = vmul.f32 %v13602_v10, %v13602_v10 }
 0x33c   :  { %12258 = vmatprep.mubr.f32.mxu1 %v18790_v51  ;;  %12276 = vmatpush3.msra.mxu0 %v15311_v36 }
 0x33d   :  { %12309 = vmatpush3.msra.mxu1 %v15186_v6  ;;  %12277 = vmatprep.subr.mxu0 %v15325_v63  ;;  %v13603_v6 = vld [vmem:[%s18433_s1 + $0x10] sm:$0xff] }
 0x33e   :  { %12259 = vmatmul.mubr.f32.gmra.mxu1 %v18791_v44  ;;  %12310 = vmatprep.subr.mxu1 %v15190_v23  ;;  %v4093_v36 = vmul.f32 %v13603_v6, %v13603_v6  ;;  %v15612_v6 = vand.u32 4294901760, %v4126_v20 }
 0x33f   :  { %12278 = vmatpush3.msra.mxu0 %v15325_v63  ;;  %12311 = vmatpush3.msra.mxu1 %v15190_v23  ;;  %v4108_v63 = vsel %vm74_vm0, %v4091_v32, 0  ;;  %v4111_v23 = vsel %vm74_vm0, %v4092_v13, 0 }
 0x340   :  { %12279 = vmatprep.subr.mxu0 %v15338_v14  ;;  %12312 = vmatprep.subr.mxu1 %v15200_v11  ;;  %v15549_v5 = vand.u32 4294901760, %v4108_v63  ;;  %v15647_v12 = vsub.f32 %v4126_v20, %v15612_v6 }
 0x341   :  { %12280 = vmatpush3.msra.mxu0 %v15338_v14  ;;  %12313 = vmatpush3.msra.mxu1 %v15200_v11  ;;  %v4114_v11 = vsel %vm74_vm0, %v4093_v36, 0  ;;  %v13605_v14 = vld [vmem:[%s18433_s1 + $0x20] sm:$0xff]  ;;  %v4129_v36 = vsel %vm74_vm0, %v4098_v52, 0 }
 0x342   :  { %12281 = vmatprep.subr.mxu0 %v15350_v57  ;;  %12314 = vmatprep.subr.mxu1 %v15214_v55  ;;  %v4095_v41 = vmul.f32 %v13605_v14, %v13605_v14  ;;  %v18797_v44 = vand.u32 4294901760, %v15647_v12 }
 0x343   :  { %12282 = vmatpush3.msra.mxu0 %v15350_v57  ;;  %12315 = vmatpush3.msra.mxu1 %v15214_v55  ;;  %v15551_v57 = vand.u32 4294901760, %v4111_v23  ;;  %v13606_v55 = vld [vmem:[%s18433_s1 + $0x28] sm:$0xff] }
 0x344   :  { %12283 = vmatprep.subr.mxu0 %v15362_v42  ;;  %12316 = vmatprep.subr.mxu1 %v15234_v28  ;;  %v4096_v4 = vmul.f32 %v13606_v55, %v13606_v55  ;;  %v4120_v19 = vsel %vm74_vm0, %v4095_v41, 0 }
 0x345   :  { %12284 = vmatpush3.msra.mxu0 %v15362_v42  ;;  %12317 = vmatpush3.msra.mxu1 %v15234_v28  ;;  %v15560_v42 = vand.u32 4294901760, %v4114_v11  ;;  %v4117_v28 = vsel %vm74_vm0, %v4094_v33, 0  ;;  %v15590_v47 = vand.u32 4294901760, %v4120_v19  ;;  %v4132_v33 = vsel %vm74_vm0, %v4099_v3, 0 }
 0x346   :  { %12285 = vmatprep.subr.mxu0 %v15372_v43  ;;  %12318 = vmatprep.subr.mxu1 %v15251_v40  ;;  %v15582_v46 = vand.u32 4294901760, %v4117_v28  ;;  %v15656_v1 = vand.u32 4294901760, %v4132_v33  ;;  %v4103_v3 = vmul.f32 %v13614_v8, %v13614_v8 }
 0x347   :  { %12286 = vmatpush3.msra.mxu0 %v15372_v43  ;;  %12319 = vmatpush3.msra.mxu1 %v15251_v40  ;;  %v15572_v40 = vsub.f32 %v4108_v63, %v15549_v5  ;;  %v15575_v43 = vsub.f32 %v4111_v23, %v15551_v57  ;;  %v15619_v63 = vsub.f32 %v4120_v19, %v15590_v47 }
 0x348   :  { %12287 = vmatprep.subr.mxu0 %v15382_v17  ;;  %12320 = vmatprep.subr.mxu1 %v15269_v48  ;;  %v15610_v13 = vsub.f32 %v4117_v28, %v15582_v46 }
 0x349   :  { %12288 = vmatpush3.msra.mxu0 %v15382_v17  ;;  %12321 = vmatpush3.msra.mxu1 %v15269_v48  ;;  %v4123_v17 = vsel %vm74_vm0, %v4096_v4, 0  ;;  %v15588_v48 = vsub.f32 %v4114_v11, %v15560_v42  ;;  %v18530_v54 = vand.u32 4294901760, %v15572_v40  ;;  %v18528_v10 = vand.u32 4294901760, %v15575_v43  ;;  %v13612_v11 = vld [vmem:[%s18433_s1 + $0x58] sm:$0xff] }
 0x34a   :  { %12289 = vmatprep.subr.mxu0 %v15389_v7  ;;  %12322 = vmatprep.subr.mxu1 %v15285_v26  ;;  %v15604_v32 = vand.u32 4294901760, %v4123_v17  ;;  %v4102_v14 = vmul.f32 %v13612_v11, %v13612_v11  ;;  %v18529_v28 = vand.u32 4294901760, %v15610_v13  ;;  %v18531_v19 = vand.u32 4294901760, %v15619_v63 }
 0x34b   :  { %12290 = vmatpush3.msra.mxu0 %v15389_v7  ;;  %12323 = vmatpush3.msra.mxu1 %v15285_v26  ;;  %v13610_v26 = vld [vmem:[%s18433_s1 + $0x48] sm:$0xff]  ;;  %v4225_v41 = vsub.f32 %v15572_v40, %v18530_v54  ;;  %v4235_v4 = vsub.f32 %v15575_v43, %v18528_v10  ;;  %v15689_v10 = vsub.f32 %v4132_v33, %v15656_v1  ;;  %v13615_v54 = vld [vmem:[%s18433_s1 + $0x70] sm:$0xff] }
 0x34c   :  { %12291 = vmatprep.subr.mxu0 %v15396_v61  ;;  %12324 = vmatprep.subr.mxu1 %v15301_v29  ;;  %v4100_v7 = vmul.f32 %v13610_v26, %v13610_v26  ;;  %v15636_v55 = vsub.f32 %v4123_v17, %v15604_v32  ;;  %v13613_v17 = vld [vmem:[%s18433_s1 + $0x68] sm:$0xff] }
 0x34d   :  { %12292 = vmatpush3.msra.mxu0 %v15396_v61  ;;  %12293 = vmatprep.mubr.f32.mxu0 %v18792_v16  ;;  %v18527_v61 = vand.u32 4294901760, %v15588_v48  ;;  %v4104_v20 = vmul.f32 %v13613_v17, %v13613_v17  ;;  %v18794_v26 = vld [vmem:[#allocation9_spill] sm:$0xff]  ;;  %v4255_v17 = vsub.f32 %v15610_v13, %v18529_v28  ;;  %v4144_v28 = vsel %vm74_vm0, %v4103_v3, 0 }
 0x34e   :  { %12325 = vmatpush3.msra.mxu1 %v15301_v29  ;;  %12294 = vmatmul.mubr.f32.vlgmr.msra.gmra.mxu0 %v18771_v25  ;;  %v13611_v29 = vld [vmem:[%s18433_s1 + $0x50] sm:$0xff]  ;;  %v4135_v37 = vsel %vm74_vm0, %v4100_v7, 0  ;;  %v4226_v7 = vand.u32 4294901760, %v4225_v41 }
 0x34f   :  { %12326 = vmatprep.subr.mxu1 %v15315_v0  ;;  %12296 = vmatprep.mubr.f32.mxu0 %v18776_v49  ;;  %v4101_v23 = vmul.f32 %v13611_v29, %v13611_v29  ;;  %v18533_v29 = vand.u32 4294901760, %v15636_v55  ;;  %v15673_v11 = vand.u32 4294901760, %v4135_v37  ;;  %v18795_v41 = vld [vmem:[#allocation14_spill] sm:$0xff] }
 0x350   :  { %12327 = vmatpush3.msra.mxu1 %v15315_v0  ;;  %12343 = vmatprep.subr.mxu0 %v18793_v24  ;;  %v15638_v0 = vand.u32 4294901760, %v4129_v36 }
 0x351   :  { %12328 = vmatprep.subr.mxu1 %v15328_v21  ;;  %12334 = vmatprep.mubr.f32.mxu1 %v18792_v16  ;;  %v4138_v52 = vsel %vm74_vm0, %v4101_v23, 0  ;;  %v4275_v33 = vsub.f32 %v15636_v55, %v18533_v29  ;;  %v15707_v3 = vsub.f32 %v4135_v37, %v15673_v11 }
 0x352   :  { %12329 = vmatpush3.msra.mxu1 %v15328_v21  ;;  %12297 = vmatmul.mubr.f32.gmra.mxu0 %v18777_v45  ;;  %v4245_v21 = vsub.f32 %v15588_v48, %v18527_v61  ;;  %v15671_v23 = vsub.f32 %v4129_v36, %v15638_v0  ;;  %v15681_v61 = vand.u32 4294901760, %v4138_v52 }
 0x353   :  { %12330 = vmatprep.subr.mxu1 %v15340_v60  ;;  %12299 = vmatprep.mubr.f32.mxu0 %v18779_v35 }
 0x354   :  { %12331 = vmatpush3.msra.mxu1 %v15340_v60  ;;  %12344 = vmatpush3.msra.mxu0 %v18793_v24  ;;  %v4236_v60 = vand.u32 4294901760, %v4235_v4  ;;  %v4246_v36 = vand.u32 4294901760, %v4245_v21  ;;  %v4141_v4 = vsel %vm74_vm0, %v4102_v14, 0  ;;  %v4105_v21 = vmul.f32 %v13615_v54, %v13615_v54 }
 0x355   :  { %12332 = vmatprep.subr.mxu1 %v15352_v62  ;;  %12345 = vmatprep.subr.mxu0 %v18794_v26  ;;  %v4256_v54 = vand.u32 4294901760, %v4255_v17  ;;  %v15714_v51 = vsub.f32 %v4138_v52, %v15681_v61  ;;  %v15720_v14 = vand.u32 4294901760, %v4144_v28  ;;  %v18798_v52 = vld [vmem:[#allocation10_spill] sm:$0xff]  ;;  %v4276_v17 = vand.u32 4294901760, %v4275_v33 }
 0x356   :  { %12333 = vmatpush3.msra.mxu1 %v15352_v62  ;;  %12300 = vmatmul.mubr.f32.gmra.mxu0 %v18781_v50  ;;  %v4265_v62 = vsub.f32 %v15619_v63, %v18531_v19  ;;  %v13616_v19 = vld [vmem:[%s18433_s1 + $0x78] sm:$0xff] }
 0x357   :  { %12335 = vmatmul.mubr.f32.vlgmr.msra.gmra.mxu1 %v18771_v25  ;;  %12371 = vmatprep.subr.mxu1 %v18795_v41  ;;  %v4106_v8 = vmul.f32 %v13616_v19, %v13616_v19  ;;  %v4285_v19 = vsub.f32 %v15647_v12, %v18797_v44  ;;  %v4150_v44 = vsel %vm74_vm0, %v4105_v21, 0  ;;  %v18800_v21 = vand.u32 4294901760, %v15689_v10 }
 0x358   :  { %12372 = vmatpush3.msra.mxu1 %v18795_v41  ;;  %12337 = vmatprep.mubr.f32.mxu1 %v18776_v49  ;;  %v18796_v41 = vld [vmem:[#allocation15_spill] sm:$0xff]  ;;  %v4266_v29 = vand.u32 4294901760, %v4265_v62  ;;  %v15745_v37 = vand.u32 4294901760, %v4150_v44 }
 0x359   :  { %12346 = vmatpush3.msra.mxu0 %v18794_v26  ;;  %12347 = vmatprep.mubr.f32.mxu0 %v4226_v7  ;;  %v15716_v7 = vand.u32 4294901760, %v4141_v4  ;;  %v4286_v22 = vand.u32 4294901760, %v4285_v19  ;;  %v4305_v33 = vsub.f32 %v15689_v10, %v18800_v21  ;;  %v18801_v19 = vld [vmem:[#allocation11_spill] sm:$0xff] }
 0x35a   :  { %12348 = vmatmul.mubr.f32.vlgmr.msra.gmra.mxu0 %v4236_v60  ;;  %12373 = vmatprep.subr.mxu1 %v18796_v41  ;;  %v4147_v60 = vsel %vm74_vm0, %v4104_v20, 0  ;;  %v15766_v56 = vsub.f32 %v4150_v44, %v15745_v37 }
 0x35b   :  { %12338 = vmatmul.mubr.f32.gmra.mxu1 %v18777_v45  ;;  %12350 = vmatprep.mubr.f32.mxu0 %v4246_v36  ;;  %v18799_v36 = vand.u32 4294901760, %v15671_v23  ;;  %v15734_v2 = vsub.f32 %v4141_v4, %v15716_v7 }
 0x35c   :  { %12340 = vmatprep.mubr.f32.mxu1 %v18779_v35  ;;  %12374 = vmatpush3.msra.mxu1 %v18796_v41  ;;  %v15736_v41 = vand.u32 4294901760, %v4147_v60 }
 0x35d   :  { %12399 = vmatprep.subr.mxu0 %v18798_v52  ;;  %12427 = vmatprep.subr.mxu1 %v18793_v24  ;;  %v4295_v62 = vsub.f32 %v15671_v23, %v18799_v36  ;;  %v15743_v36 = vsub.f32 %v4144_v28, %v15720_v14  ;;  %v18536_v21 = vand.u32 4294901760, %v15734_v2 }
 0x35e   :  { %12351 = vmatmul.mubr.f32.gmra.mxu0 %v4256_v54  ;;  %v4153_v54 = vsel %vm74_vm0, %v4106_v8, 0  ;;  %v15756_v28 = vsub.f32 %v4147_v60, %v15736_v41  ;;  %v4306_v8 = vand.u32 4294901760, %v4305_v33 }
 0x35f   :  { %12341 = vmatmul.mubr.f32.gmra.mxu1 %v18781_v50  ;;  %12353 = vmatprep.mubr.f32.mxu0 %v4266_v29  ;;  %v4296_v4 = vand.u32 4294901760, %v4295_v62  ;;  %v18802_v29 = vand.u32 4294901760, %v15707_v3  ;;  %v15758_v59 = vand.u32 4294901760, %v4153_v54  ;;  %v18803_v62 = vand.u32 4294901760, %v15714_v51 }
 0x360   :  { %12375 = vmatprep.mubr.f32.mxu1 %v15549_v5  ;;  %12400 = vmatpush3.msra.mxu0 %v18798_v52  ;;  %v4335_v60 = vsub.f32 %v15734_v2, %v18536_v21  ;;  %v4354_v33 = vand.u32 4294901760, %v15756_v28 }
 0x361   :  { %12401 = vmatprep.subr.mxu0 %v18801_v19  ;;  %v4315_v20 = vsub.f32 %v15707_v3, %v18802_v29  ;;  %v4325_v52 = vsub.f32 %v15714_v51, %v18803_v62  ;;  %v15778_v44 = vsub.f32 %v4153_v54, %v15758_v59  ;;  %v18804_v62 = vld [vmem:[#allocation12_spill] sm:$0xff] }
 0x362   :  { %12354 = vmatmul.mubr.f32.gmra.mxu0 %v4276_v17  ;;  %v18537_v17 = vand.u32 4294901760, %v15743_v36  ;;  %v4336_v21 = vand.u32 4294901760, %v4335_v60  ;;  %v4355_v54 = vsub.f32 %v15756_v28, %v4354_v33 }
 0x363   :  { %12376 = vmatmul.mubr.f32.vlgmr.msra.gmra.mxu1 %v15551_v57  ;;  %12356 = vmatprep.mubr.f32.mxu0 %v4286_v22  ;;  %v4316_v22 = vand.u32 4294901760, %v4315_v20  ;;  %v4326_v29 = vand.u32 4294901760, %v4325_v52  ;;  %v4364_v20 = vand.u32 4294901760, %v15766_v56  ;;  %v4374_v52 = vand.u32 4294901760, %v15778_v44 }
 0x364   :  { %12428 = vmatpush3.msra.mxu1 %v18793_v24  ;;  %12378 = vmatprep.mubr.f32.mxu1 %v15560_v42 }
 0x365   :  { %12402 = vmatpush3.msra.mxu0 %v18801_v19  ;;  %12429 = vmatprep.subr.mxu1 %v18794_v26  ;;  %v4356_v19 = vand.u32 4294901760, %v4355_v54  ;;  %v18811_v54 = vand.u32 4294901760, %v15636_v55 }
 0x366   :  { %12357 = vmatmul.mubr.f32.gmra.mxu0 %v4296_v4  ;;  %12430 = vmatpush3.msra.mxu1 %v18794_v26  ;;  %v4345_v4 = vsub.f32 %v15743_v36, %v18537_v17  ;;  %v4365_v17 = vsub.f32 %v15766_v56, %v4364_v20 }
 0x367   :  { %12379 = vmatmul.mubr.f32.gmra.mxu1 %v15582_v46  ;;  %12359 = vmatprep.mubr.f32.mxu0 %v4306_v8 }
 0x368   :  { %12381 = vmatprep.mubr.f32.mxu1 %v15590_v47  ;;  %12455 = vmatprep.subr.mxu0 %v18804_v62  ;;  %v4346_v8 = vand.u32 4294901760, %v4345_v4  ;;  %v4366_v60 = vand.u32 4294901760, %v4365_v17  ;;  %v18807_v17 = vand.u32 4294901760, %v15575_v43  ;;  %v18808_v4 = vand.u32 4294901760, %v15588_v48 }
 0x369   :  { %12483 = vmatprep.subr.mxu1 %v18793_v24 }
 0x36a   :  { %12360 = vmatmul.mubr.f32.gmra.mxu0 %v4316_v22  ;;  %v4375_v22 = vsub.f32 %v15778_v44, %v4374_v52 }
 0x36b   :  { %12382 = vmatmul.mubr.f32.gmra.mxu1 %v15604_v32  ;;  %12362 = vmatprep.mubr.f32.mxu0 %v4326_v29 }
 0x36c   :  { %12384 = vmatprep.mubr.f32.mxu1 %v15612_v6  ;;  %v4376_v29 = vand.u32 4294901760, %v4375_v22 }
 0x36e   :  { %12363 = vmatmul.mubr.f32.gmra.mxu0 %v4336_v21  ;;  %v18806_v21 = vand.u32 4294901760, %v15572_v40 }
 0x36f   :  { %12385 = vmatmul.mubr.f32.gmra.mxu1 %v15638_v0  ;;  %12365 = vmatprep.mubr.f32.mxu0 %v4346_v8 }
 0x370   :  { %12387 = vmatprep.mubr.f32.mxu1 %v15656_v1 }
 0x372   :  { %12366 = vmatmul.mubr.f32.gmra.mxu0 %v4356_v19  ;;  %v18805_v19 = vld [vmem:[#allocation13_spill] sm:$0xff] }
 0x373   :  { %12388 = vmatmul.mubr.f32.gmra.mxu1 %v15673_v11  ;;  %12368 = vmatprep.mubr.f32.mxu0 %v4366_v60 }
 0x374   :  { %12390 = vmatprep.mubr.f32.mxu1 %v15681_v61 }
 0x376   :  { %12369 = vmatmul.mubr.f32.gmra.mxu0 %v4376_v29 }
 0x377   :  { %12391 = vmatmul.mubr.f32.gmra.mxu1 %v15716_v7  ;;  %12403 = vmatprep.mubr.f32.mxu0 %v15572_v40  ;;  %v18809_v40 = vand.u32 4294901760, %v15610_v13 }
 0x378   :  { %12393 = vmatprep.mubr.f32.mxu1 %v15720_v14 }
 0x37a   :  { %12404 = vmatmul.mubr.f32.vlgmr.msra.gmra.mxu0 %v15575_v43  ;;  %v18810_v43 = vand.u32 4294901760, %v15619_v63 }
 0x37b   :  { %12394 = vmatmul.mubr.f32.gmra.mxu1 %v15736_v41  ;;  %12406 = vmatprep.mubr.f32.mxu0 %v15588_v48  ;;  %v18812_v48 = vand.u32 4294901760, %v15647_v12 }
 0x37c   :  { %12396 = vmatprep.mubr.f32.mxu1 %v15745_v37  ;;  %12456 = vmatpush3.msra.mxu0 %v18804_v62 }
 0x37d   :  { %12457 = vmatprep.subr.mxu0 %v18805_v19 }
 0x37e   :  { %12407 = vmatmul.mubr.f32.gmra.mxu0 %v15610_v13  ;;  %v18813_v13 = vand.u32 4294901760, %v15671_v23 }
 0x37f   :  { %12397 = vmatmul.mubr.f32.gmra.mxu1 %v15758_v59  ;;  %12409 = vmatprep.mubr.f32.mxu0 %v15619_v63  ;;  %v18814_v63 = vand.u32 4294901760, %v15689_v10 }
 0x380   :  { %12431 = vmatprep.mubr.f32.mxu1 %v18806_v21  ;;  %12458 = vmatpush3.msra.mxu0 %v18805_v19 }
 0x382   :  { %12410 = vmatmul.mubr.f32.gmra.mxu0 %v15636_v55  ;;  %v18815_v55 = vand.u32 4294901760, %v15707_v3 }
 0x383   :  { %12432 = vmatmul.mubr.f32.vlgmr.msra.gmra.mxu1 %v18807_v17  ;;  %12412 = vmatprep.mubr.f32.mxu0 %v15647_v12  ;;  %v18816_v12 = vand.u32 4294901760, %v15714_v51 }
 0x384   :  { %12484 = vmatpush3.msra.mxu1 %v18793_v24  ;;  %12434 = vmatprep.mubr.f32.mxu1 %v18808_v4 }
 0x385   :  { %12485 = vmatprep.subr.mxu1 %v18794_v26 }
 0x386   :  { %12413 = vmatmul.mubr.f32.gmra.mxu0 %v15671_v23  ;;  %12486 = vmatpush3.msra.mxu1 %v18794_v26  ;;  %v18817_v23 = vand.u32 4294901760, %v15734_v2 }
 0x387   :  { %12435 = vmatmul.mubr.f32.gmra.mxu1 %v18809_v40  ;;  %12415 = vmatprep.mubr.f32.mxu0 %v15689_v10  ;;  %v18818_v10 = vand.u32 4294901760, %v15743_v36 }
 0x388   :  { %12437 = vmatprep.mubr.f32.mxu1 %v18810_v43 }
 0x38a   :  { %12416 = vmatmul.mubr.f32.gmra.mxu0 %v15707_v3 }
 0x38b   :  { %12438 = vmatmul.mubr.f32.gmra.mxu1 %v18811_v54  ;;  %12418 = vmatprep.mubr.f32.mxu0 %v15714_v51 }
 0x38c   :  { %12440 = vmatprep.mubr.f32.mxu1 %v18812_v48 }
 0x38e   :  { %12419 = vmatmul.mubr.f32.gmra.mxu0 %v15734_v2 }
 0x38f   :  { %12441 = vmatmul.mubr.f32.gmra.mxu1 %v18813_v13  ;;  %12421 = vmatprep.mubr.f32.mxu0 %v15743_v36 }
 0x390   :  { %12443 = vmatprep.mubr.f32.mxu1 %v18814_v63 }
 0x392   :  { %12422 = vmatmul.mubr.f32.gmra.mxu0 %v15756_v28 }
 0x393   :  { %12444 = vmatmul.mubr.f32.gmra.mxu1 %v18815_v55  ;;  %12424 = vmatprep.mubr.f32.mxu0 %v15766_v56  ;;  %v18819_v56 = vld [vmem:[#allocation19_spill] sm:$0xff] }
 0x394   :  { %12446 = vmatprep.mubr.f32.mxu1 %v18816_v12 }
 0x396   :  { %12425 = vmatmul.mubr.f32.gmra.mxu0 %v15778_v44 }
 0x397   :  { %12447 = vmatmul.mubr.f32.gmra.mxu1 %v18817_v23  ;;  %12459 = vmatprep.mubr.f32.mxu0 %v15549_v5 }
 0x398   :  { %12449 = vmatprep.mubr.f32.mxu1 %v18818_v10 }
 0x39a   :  { %12460 = vmatmul.mubr.f32.vlgmr.msra.gmra.mxu0 %v15551_v57 }
 0x39b   :  { %12450 = vmatmul.mubr.f32.gmra.mxu1 %v4354_v33  ;;  %12462 = vmatprep.mubr.f32.mxu0 %v15560_v42 }
 0x39c   :  { %12452 = vmatprep.mubr.f32.mxu1 %v4364_v20 }
 0x39e   :  { %12463 = vmatmul.mubr.f32.gmra.mxu0 %v15582_v46 }
 0x39f   :  { %12453 = vmatmul.mubr.f32.gmra.mxu1 %v4374_v52  ;;  %12465 = vmatprep.mubr.f32.mxu0 %v15590_v47 }
 0x3a0   :  { %12487 = vmatprep.mubr.f32.mxu1 %v15549_v5 }
 0x3a2   :  { %12466 = vmatmul.mubr.f32.gmra.mxu0 %v15604_v32 }
 0x3a3   :  { %12488 = vmatmul.mubr.f32.vlgmr.msra.gmra.mxu1 %v15551_v57  ;;  %12468 = vmatprep.mubr.f32.mxu0 %v15612_v6 }
 0x3a4   :  { %12490 = vmatprep.mubr.f32.mxu1 %v15560_v42 }
 0x3a6   :  { %12469 = vmatmul.mubr.f32.gmra.mxu0 %v15638_v0 }
 0x3a7   :  { %12491 = vmatmul.mubr.f32.gmra.mxu1 %v15582_v46  ;;  %12471 = vmatprep.mubr.f32.mxu0 %v15656_v1 }
 0x3a8   :  { %12493 = vmatprep.mubr.f32.mxu1 %v15590_v47 }
 0x3aa   :  { %12472 = vmatmul.mubr.f32.gmra.mxu0 %v15673_v11 }
 0x3ab   :  { %12494 = vmatmul.mubr.f32.gmra.mxu1 %v15604_v32  ;;  %12474 = vmatprep.mubr.f32.mxu0 %v15681_v61 }
 0x3ac   :  { %12496 = vmatprep.mubr.f32.mxu1 %v15612_v6 }
 0x3ae   :  { %12475 = vmatmul.mubr.f32.gmra.mxu0 %v15716_v7 }
 0x3af   :  { %12497 = vmatmul.mubr.f32.gmra.mxu1 %v15638_v0  ;;  %12477 = vmatprep.mubr.f32.mxu0 %v15720_v14 }
 0x3b0   :  { %12499 = vmatprep.mubr.f32.mxu1 %v15656_v1 }
 0x3b2   :  { %12478 = vmatmul.mubr.f32.gmra.mxu0 %v15736_v41 }
 0x3b3   :  { %12500 = vmatmul.mubr.f32.gmra.mxu1 %v15673_v11  ;;  %12480 = vmatprep.mubr.f32.mxu0 %v15745_v37 }
 0x3b4   :  { %12502 = vmatprep.mubr.f32.mxu1 %v15681_v61 }
 0x3b6   :  { %12481 = vmatmul.mubr.f32.gmra.mxu0 %v15758_v59 }
 0x3b7   :  { %12503 = vmatmul.mubr.f32.gmra.mxu1 %v15716_v7  ;;  %12543 = vmatprep.mubr.f32.mxu0 %v18819_v56 }
 0x3b8   :  { %12505 = vmatprep.mubr.f32.mxu1 %v15720_v14 }
 0x3bb   :  { %12506 = vmatmul.mubr.f32.gmra.mxu1 %v15736_v41 }
 0x3bc   :  { %12508 = vmatprep.mubr.f32.mxu1 %v15745_v37 }
 0x3bf   :  { %12509 = vmatmul.mubr.f32.gmra.mxu1 %v15758_v59 }
 0x3c0   :  { %12584 = vmatprep.mubr.f32.mxu1 %v18792_v16 }
 0x3c4   :  { %v12131_v2 = vpop.f32.mrf.mxu0 }
 0x3c6   :  { %v15897_v57 = vpop.f32.mrf.mxu0 }
 0x3c7   :  { %18820 = vst [vmem:[#allocation67_spill] sm:$0xff] %v15897_v57 }
 0x3cb   :  { %v12172_v51 = vpop.f32.mrf.mxu1 }
 0x3cc   :  { %v3530_v5 = vadd.f32 %v12172_v51, %v12131_v2 }
 0x3cd   :  { %v15901_v47 = vpop.f32.mrf.mxu1 }
 0x3ce   :  { %18822 = vst [vmem:[#allocation72_spill] sm:$0xff] %v15901_v47 }
 0x3dc   :  { %v12134_v42 = vpop.f32.mrf.mxu0 }
 0x3de   :  { %v15899_v46 = vpop.f32.mrf.mxu0 }
 0x3df   :  { %18821 = vst [vmem:[#allocation66_spill] sm:$0xff] %v15899_v46 }
 0x3e1   :  { %v12137_v32 = vpop.f32.mrf.mxu0 }
 0x3e3   :  { %v12175_v6 = vpop.f32.mrf.mxu1  ;;  %v15903_v0 = vpop.f32.mrf.mxu0 }
 0x3e4   :  { %v3542_v61 = vadd.f32 %v12175_v6, %v12134_v42  ;;  %18823 = vst [vmem:[#allocation80_spill] sm:$0xff] %v15903_v0  ;;  %v18836_v42 = vld [vmem:[#allocation54_spill] sm:$0xff] }
 0x3e5   :  { %v15905_v1 = vpop.f32.mrf.mxu1 }
 0x3e6   :  { %18824 = vst [vmem:[#allocation74_spill] sm:$0xff] %v15905_v1 }
 0x3e8   :  { %v12213_v59 = vpop.f32.mrf.mxu0 }
 0x3e9   :  { %v3665_v11 = vadd.f32 %v12213_v59, %v3530_v5  ;;  %v12178_v41 = vpop.f32.mrf.mxu1 }
 0x3ea   :  { %v3554_v14 = vadd.f32 %v12178_v41, %v12137_v32  ;;  %v15907_v3 = vpop.f32.mrf.mxu0  ;;  %v15931_v32 = vmul.f32 %v18836_v42, %v18836_v42 }
 0x3eb   :  { %18825 = vst [vmem:[#allocation78_spill] sm:$0xff] %v15907_v3  ;;  %v15911_v28 = vpop.f32.mrf.mxu1 }
 0x3ec   :  { %18827 = vst [vmem:[#allocation64_spill] sm:$0xff] %v15911_v28  ;;  %18837 = vst [vmem:[#allocation68_spill] sm:$0xff] %v15931_v32 }
 0x3ee   :  { %v12216_v7 = vpop.f32.mrf.mxu0 }
 0x3ef   :  { %v3679_v37 = vadd.f32 %v12216_v7, %v3542_v61 }
 0x3f0   :  { %v15909_v36 = vpop.f32.mrf.mxu0 }
 0x3f1   :  { %18826 = vst [vmem:[#allocation65_spill] sm:$0xff] %v15909_v36 }
 0x3f3   :  { %v12219_v33 = vpop.f32.mrf.mxu0  ;;  %v12254_v44 = vpop.f32.mrf.mxu1 }
 0x3f4   :  { %v3693_v20 = vadd.f32 %v12219_v33, %v3554_v14  ;;  %v3790_v52 = vadd.f32 %v12254_v44, %v3665_v11  ;;  %v18842_v44 = vld [vmem:[#allocation57_spill] sm:$0xff] }
 0x3f5   :  { %v15913_v8 = vpop.f32.mrf.mxu1  ;;  %v15917_v4 = vpop.f32.mrf.mxu0 }
 0x3f6   :  { %18828 = vst [vmem:[#allocation70_spill] sm:$0xff] %v15913_v8  ;;  %18830 = vst [vmem:[#allocation81_spill] sm:$0xff] %v15917_v4 }
 0x3f9   :  { %v12257_v22 = vpop.f32.mrf.mxu1 }
 0x3fa   :  { %v3806_v60 = vadd.f32 %v12257_v22, %v3679_v37 }
 0x3fb   :  { %v15915_v29 = vpop.f32.mrf.mxu1 }
 0x3fc   :  { %18829 = vst [vmem:[#allocation79_spill] sm:$0xff] %v15915_v29 }
 0x3fe   :  { %v12260_v21 = vpop.f32.mrf.mxu1 }
 0x3ff   :  { %v3822_v17 = vadd.f32 %v12260_v21, %v3693_v20  ;;  %v15948_v20 = vmul.f32 %v18842_v44, %v18842_v44 }
 0x400   :  { %v15923_v55 = vpop.f32.mrf.mxu1 }
 0x401   :  { %18833 = vst [vmem:[#allocation76_spill] sm:$0xff] %v15923_v55  ;;  %18843 = vst [vmem:[#allocation54_spill] sm:$0xff] %v15948_v20 }
 0x40e   :  { %v12295_v40 = vpop.f32.mrf.mxu0 }
 0x40f   :  { %v3947_v43 = vadd.f32 %v12295_v40, %v3790_v52 }
 0x410   :  { %v15919_v54 = vpop.f32.mrf.mxu0 }
 0x411   :  { %18831 = vst [vmem:[#allocation61_spill] sm:$0xff] %v15919_v54 }
 0x412   :  { %v12298_v48 = vpop.f32.mrf.mxu0 }
 0x413   :  { %v3959_v13 = vadd.f32 %v12298_v48, %v3806_v60  ;;  %v18848_v48 = vld [vmem:[#allocation59_spill] sm:$0xff] }
 0x414   :  { %v15921_v63 = vpop.f32.mrf.mxu0 }
 0x415   :  { %18832 = vst [vmem:[#allocation71_spill] sm:$0xff] %v15921_v63 }
 0x416   :  { %v12301_v12 = vpop.f32.mrf.mxu0 }
 0x417   :  { %v3971_v23 = vadd.f32 %v12301_v12, %v3822_v17  ;;  %v12336_v10 = vpop.f32.mrf.mxu1 }
 0x418   :  { %v4064_v2 = vadd.f32 %v12336_v10, %v3947_v43  ;;  %v15925_v51 = vpop.f32.mrf.mxu0 }
 0x419   :  { %18834 = vst [vmem:[#allocation63_spill] sm:$0xff] %v15925_v51  ;;  %v15927_v5 = vpop.f32.mrf.mxu1 }
 0x41a   :  { %18835 = vst [vmem:[#allocation62_spill] sm:$0xff] %v15927_v5  ;;  %v15933_v6 = vmul.f32 %v4064_v2, %v4064_v2  ;;  %v15936_v61 = vmul.f32 %v4064_v2, %v18836_v42  ;;  %v12349_v59 = vpop.f32.mrf.mxu0 }
 0x41b   :  { %v12339_v11 = vpop.f32.mrf.mxu1 }
 0x41c   :  { %18838 = vst [vmem:[#allocation77_spill] sm:$0xff] %v15933_v6  ;;  %18839 = vst [vmem:[#allocation69_spill] sm:$0xff] %v15936_v61  ;;  %v15940_v41 = vadd.f32 %v15933_v6, %v15931_v32  ;;  %v15942_v14 = vpop.f32.mrf.mxu0  ;;  %v4076_v7 = vadd.f32 %v12339_v11, %v3959_v13  ;;  %v15965_v13 = vmul.f32 %v18848_v48, %v18848_v48 }
 0x41d   :  { %v15944_v37 = vpop.f32.mrf.mxu1 }
 0x41e   :  { %18840 = vst [vmem:[#allocation73_spill] sm:$0xff] %v15940_v41  ;;  %18841 = vst [vmem:[#allocation75_spill] sm:$0xff] %v15944_v37  ;;  %v12352_v33 = vpop.f32.mrf.mxu0  ;;  %v15950_v52 = vmul.f32 %v4076_v7, %v4076_v7  ;;  %v15953_v22 = vmul.f32 %v4076_v7, %v18842_v44 }
 0x41f   :  { %v12342_v60 = vpop.f32.mrf.mxu1  ;;  %18849 = vst [vmem:[#allocation59_spill] sm:$0xff] %v15965_v13 }
 0x420   :  { %18844 = vst [vmem:[#allocation57_spill] sm:$0xff] %v15950_v52  ;;  %18845 = vst [vmem:[#allocation82_spill] sm:$0xff] %v15953_v22  ;;  %v4088_v21 = vadd.f32 %v12342_v60, %v3971_v23  ;;  %v15955_v17 = vpop.f32.mrf.mxu0  ;;  %v15959_v40 = vadd.f32 %v15950_v52, %v15948_v20 }
 0x421   :  { %v15961_v43 = vpop.f32.mrf.mxu1 }
 0x422   :  { %18846 = vst [vmem:[#allocation83_spill] sm:$0xff] %v15959_v40  ;;  %18847 = vst [vmem:[#allocation84_spill] sm:$0xff] %v15961_v43  ;;  %v15967_v12 = vmul.f32 %v4088_v21, %v4088_v21  ;;  %v15970_v10 = vmul.f32 %v4088_v21, %v18848_v48  ;;  %v12355_v2 = vpop.f32.mrf.mxu0 }
 0x423   :  { %v12377_v42 = vpop.f32.mrf.mxu1 }
 0x424   :  { %18850 = vst [vmem:[#allocation85_spill] sm:$0xff] %v15967_v12  ;;  %18851 = vst [vmem:[#allocation86_spill] sm:$0xff] %v15970_v10  ;;  %v15974_v23 = vadd.f32 %v15967_v12, %v15965_v13  ;;  %v15976_v11 = vpop.f32.mrf.mxu0  ;;  %v4466_v7 = vadd.f32 %v12377_v42, %v12349_v59 }
 0x425   :  { %v15978_v44 = vpop.f32.mrf.mxu1 }
 0x426   :  { %18852 = vst [vmem:[#allocation87_spill] sm:$0xff] %v15974_v23  ;;  %v12358_v60 = vpop.f32.mrf.mxu0 }
 0x427   :  { %v12380_v22 = vpop.f32.mrf.mxu1 }
 0x428   :  { %v4478_v61 = vadd.f32 %v12380_v22, %v12352_v33  ;;  %v15980_v43 = vpop.f32.mrf.mxu0 }
 0x429   :  { %v15982_v51 = vpop.f32.mrf.mxu1 }
 0x42a   :  { %v12361_v21 = vpop.f32.mrf.mxu0 }
 0x42b   :  { %v12383_v48 = vpop.f32.mrf.mxu1 }
 0x42c   :  { %v4490_v10 = vadd.f32 %v12383_v48, %v12355_v2  ;;  %v15984_v55 = vpop.f32.mrf.mxu0 }
 0x42d   :  { %v15986_v37 = vpop.f32.mrf.mxu1 }
 0x42e   :  { %v12364_v4 = vpop.f32.mrf.mxu0 }
 0x42f   :  { %v12386_v63 = vpop.f32.mrf.mxu1 }
 0x430   :  { %v15988_v28 = vadd.f32 %v12386_v63, %v12358_v60  ;;  %v15990_v59 = vpop.f32.mrf.mxu0 }
 0x431   :  { %v15992_v42 = vpop.f32.mrf.mxu1 }
 0x432   :  { %v12367_v33 = vpop.f32.mrf.mxu0 }
 0x433   :  { %v12389_v22 = vpop.f32.mrf.mxu1 }
 0x434   :  { %v15994_v0 = vadd.f32 %v12389_v22, %v12361_v21  ;;  %v15996_v5 = vpop.f32.mrf.mxu0 }
 0x435   :  { %v15998_v29 = vpop.f32.mrf.mxu1 }
 0x436   :  { %v16000_v2 = vpop.f32.mrf.mxu0 }
 0x437   :  { %v12392_v48 = vpop.f32.mrf.mxu1 }
 0x438   :  { %v16002_v54 = vadd.f32 %v12392_v48, %v12364_v4  ;;  %v16004_v36 = vpop.f32.mrf.mxu0 }
 0x439   :  { %v16006_v63 = vpop.f32.mrf.mxu1 }
 0x43a   :  { %v12405_v60 = vpop.f32.mrf.mxu0 }
 0x43b   :  { %v12395_v8 = vpop.f32.mrf.mxu1  ;;  %v4633_v1 = vadd.f32 %v12405_v60, %v4466_v7 }
 0x43c   :  { %v16008_v46 = vadd.f32 %v12395_v8, %v12367_v33  ;;  %v16010_v21 = vpop.f32.mrf.mxu0 }
 0x43d   :  { %18853 = vst [vmem:[#allocation88_spill] sm:$0xff] %v16010_v21  ;;  %v4531_v22 = vpop.f32.mrf.mxu1 }
 0x43e   :  { %v12408_v3 = vpop.f32.mrf.mxu0 }
 0x43f   :  { %v16012_v47 = vpop.f32.mrf.mxu1  ;;  %v4647_v57 = vadd.f32 %v12408_v3, %v4478_v61 }
 0x440   :  { %v16014_v23 = vpop.f32.mrf.mxu0 }
 0x441   :  { %v16016_v4 = vpop.f32.mrf.mxu1 }
 0x442   :  { %v12411_v48 = vpop.f32.mrf.mxu0 }
 0x443   :  { %v4661_v12 = vadd.f32 %v12411_v48, %v4490_v10  ;;  %v12433_v40 = vpop.f32.mrf.mxu1 }
 0x444   :  { %v16018_v52 = vadd.f32 %v12433_v40, %v4633_v1  ;;  %v16020_v41 = vpop.f32.mrf.mxu0 }
 0x445   :  { %v16022_v8 = vpop.f32.mrf.mxu1 }
 0x446   :  { %18854 = vst [vmem:[#allocation89_spill] sm:$0xff] %v16018_v52  ;;  %18855 = vst [vmem:[#allocation90_spill] sm:$0xff] %v16022_v8  ;;  %v16024_v7 = vpop.f32.mrf.mxu0 }
 0x447   :  { %v12436_v33 = vpop.f32.mrf.mxu1 }
 0x448   :  { %v16026_v60 = vadd.f32 %v12436_v33, %v4647_v57  ;;  %v16028_v6 = vpop.f32.mrf.mxu0 }
 0x449   :  { %v16030_v3 = vpop.f32.mrf.mxu1 }
 0x44a   :  { %18856 = vst [vmem:[#allocation91_spill] sm:$0xff] %v16026_v60  ;;  %18857 = vst [vmem:[#allocation92_spill] sm:$0xff] %v16030_v3  ;;  %v16032_v61 = vpop.f32.mrf.mxu0  ;;  %v4532_v3 = vadd.f32 %v4531_v22, %v15996_v5  ;;  %v4472_v5 = vadd.f32 %v15982_v51, %v15955_v17 }
 0x44b   :  { %v12439_v13 = vpop.f32.mrf.mxu1 }
 0x44c   :  { %v16034_v10 = vadd.f32 %v12439_v13, %v4661_v12  ;;  %v16036_v1 = vpop.f32.mrf.mxu0 }
 0x44d   :  { %v16038_v40 = vpop.f32.mrf.mxu1 }
 0x44e   :  { %18858 = vst [vmem:[#allocation93_spill] sm:$0xff] %v16034_v10  ;;  %18859 = vst [vmem:[#allocation94_spill] sm:$0xff] %v16038_v40  ;;  %v12420_v48 = vpop.f32.mrf.mxu0 }
 0x44f   :  { %v16040_v20 = vpop.f32.mrf.mxu1 }
 0x450   :  { %v4695_v32 = vpop.f32.mrf.mxu0 }
 0x451   :  { %v16042_v56 = vpop.f32.mrf.mxu1 }
 0x452   :  { %v12423_v57 = vpop.f32.mrf.mxu0 }
 0x453   :  { %v16044_v33 = vpop.f32.mrf.mxu1 }
 0x454   :  { %v4709_v19 = vpop.f32.mrf.mxu0 }
 0x455   :  { %v16046_v62 = vpop.f32.mrf.mxu1  ;;  %v4710_v10 = vadd.f32 %v4709_v19, %v4532_v3  ;;  %v4508_v19 = vadd.f32 %v15998_v29, %v15984_v55 }
 0x456   :  { %v12426_v26 = vpop.f32.mrf.mxu0 }
 0x457   :  { %v12448_v24 = vpop.f32.mrf.mxu1 }
 0x458   :  { %v4723_v13 = vpop.f32.mrf.mxu0 }
 0x459   :  { %v4885_v12 = vpop.f32.mrf.mxu1 }
 0x45a   :  { %v16048_v16 = vpop.f32.mrf.mxu0 }
 0x45b   :  { %18860 = vst [vmem:[#allocation95_spill] sm:$0xff] %v16048_v16  ;;  %v12451_v39 = vpop.f32.mrf.mxu1 }
 0x45c   :  { %v16050_v38 = vpop.f32.mrf.mxu0 }
 0x45d   :  { %18861 = vst [vmem:[#allocation96_spill] sm:$0xff] %v16050_v38  ;;  %v4901_v9 = vpop.f32.mrf.mxu1 }
 0x45e   :  { %v16052_v18 = vpop.f32.mrf.mxu0 }
 0x45f   :  { %18862 = vst [vmem:[#allocation97_spill] sm:$0xff] %v16052_v18  ;;  %v12454_v50 = vpop.f32.mrf.mxu1 }
 0x460   :  { %v16054_v34 = vpop.f32.mrf.mxu0 }
 0x461   :  { %18863 = vst [vmem:[#allocation98_spill] sm:$0xff] %v16054_v34  ;;  %v4917_v35 = vpop.f32.mrf.mxu1 }
 0x462   :  { %v16056_v31 = vpop.f32.mrf.mxu0 }
 0x463   :  { %18864 = vst [vmem:[#allocation99_spill] sm:$0xff] %v16056_v31  ;;  %v16058_v45 = vpop.f32.mrf.mxu1  ;;  %v4550_v31 = vadd.f32 %v16012_v47, %v16000_v2  ;;  %v4496_v2 = vadd.f32 %v15992_v42, %v15980_v43  ;;  %v4640_v42 = vadd.f32 %v16014_v23, %v4472_v5  ;;  %v18875_v5 = vld [vmem:[#allocation93_spill] sm:$0xff] }
 0x464   :  { %18865 = vst [vmem:[#allocation100_spill] sm:$0xff] %v16058_v45  ;;  %v16060_v49 = vpop.f32.mrf.mxu0 }
 0x465   :  { %18866 = vst [vmem:[#allocation101_spill] sm:$0xff] %v16060_v49  ;;  %v16062_v53 = vpop.f32.mrf.mxu1 }
 0x466   :  { %18867 = vst [vmem:[#allocation102_spill] sm:$0xff] %v16062_v53  ;;  %v16064_v58 = vpop.f32.mrf.mxu0 }
 0x467   :  { %v16066_v30 = vpop.f32.mrf.mxu1 }
 0x468   :  { %18868 = vst [vmem:[#allocation103_spill] sm:$0xff] %v16066_v30  ;;  %v16068_v15 = vpop.f32.mrf.mxu0 }
 0x469   :  { %v16070_v25 = vpop.f32.mrf.mxu1 }
 0x46a   :  { %18869 = vst [vmem:[#allocation104_spill] sm:$0xff] %v16070_v25  ;;  %v12473_v27 = vpop.f32.mrf.mxu0  ;;  %v4717_v25 = vadd.f32 %v12423_v57, %v16008_v46  ;;  %v4484_v46 = vadd.f32 %v15986_v37, %v15976_v11 }
 0x46b   :  { %v16072_v38 = vpop.f32.mrf.mxu1 }
 0x46c   :  { %18870 = vst [vmem:[#allocation105_spill] sm:$0xff] %v16072_v38  ;;  %v5050_v16 = vpop.f32.mrf.mxu0  ;;  %v16084_v38 = vadd.f32 %v15978_v44, %v15942_v14  ;;  %v4910_v40 = vadd.f32 %v12451_v39, %v4717_v25  ;;  %v4544_v14 = vadd.f32 %v16016_v4, %v16004_v36  ;;  %v4689_v25 = vadd.f32 %v16032_v61, %v15994_v0 }
 0x46d   :  { %v16074_v52 = vpop.f32.mrf.mxu1 }
 0x46e   :  { %18871 = vst [vmem:[#allocation106_spill] sm:$0xff] %v16074_v52  ;;  %v12476_v8 = vpop.f32.mrf.mxu0  ;;  %18873 = vst [vmem:[#allocation108_spill] sm:$0xff] %v16084_v38  ;;  %v4520_v52 = vadd.f32 %v16006_v63, %v15990_v59  ;;  %v4731_v63 = vadd.f32 %v12426_v26, %v4550_v31  ;;  %v4902_v38 = vadd.f32 %v4901_v9, %v4710_v10 }
 0x46f   :  { %v16076_v45 = vpop.f32.mrf.mxu1  ;;  %v4724_v39 = vadd.f32 %v4723_v13, %v4544_v14  ;;  %v4878_v31 = vadd.f32 %v16044_v33, %v4689_v25  ;;  %v4654_v33 = vadd.f32 %v16020_v41, %v4484_v46  ;;  %v18876_v46 = vld [vmem:[#allocation99_spill] sm:$0xff]  ;;  %v18878_v25 = vld [vmem:[#allocation101_spill] sm:$0xff] }
 0x470   :  { %v5062_v34 = vpop.f32.mrf.mxu0  ;;  %v4696_v44 = vadd.f32 %v4695_v32, %v4520_v52  ;;  %v4926_v37 = vadd.f32 %v12454_v50, %v4731_v63  ;;  %v4682_v32 = vadd.f32 %v16036_v1, %v4508_v19  ;;  %v4675_v50 = vadd.f32 %v16024_v7, %v15988_v28 }
 0x471   :  { %v16078_v21 = vpop.f32.mrf.mxu1  ;;  %v5033_v14 = vadd.f32 %v18876_v46, %v18875_v5  ;;  %v18891_v5 = vld [vmem:[#allocation104_spill] sm:$0xff] }
 0x472   :  { %18872 = vst [vmem:[#allocation107_spill] sm:$0xff] %v16078_v21  ;;  %v12479_v53 = vpop.f32.mrf.mxu0  ;;  %v4703_v21 = vadd.f32 %v12420_v48, %v16002_v54  ;;  %v4886_v54 = vadd.f32 %v4885_v12, %v4696_v44  ;;  %v4862_v3 = vadd.f32 %v16040_v20, %v4675_v50 }
 0x473   :  { %v12501_v18 = vpop.f32.mrf.mxu1  ;;  %v5081_v47 = vadd.f32 %v12479_v53, %v4910_v40 }
 0x474   :  { %v5074_v60 = vpop.f32.mrf.mxu0  ;;  %v4894_v57 = vadd.f32 %v12448_v24, %v4703_v21  ;;  %v4918_v24 = vadd.f32 %v4917_v35, %v4724_v39  ;;  %v5063_v9 = vadd.f32 %v5062_v34, %v4886_v54  ;;  %v5057_v21 = vadd.f32 %v12473_v27, %v4878_v31  ;;  %v18879_v54 = vld [vmem:[#allocation105_spill] sm:$0xff] }
 0x475   :  { %v5213_v30 = vpop.f32.mrf.mxu1  ;;  %v5075_v11 = vadd.f32 %v5074_v60, %v4902_v38  ;;  %v4870_v38 = vadd.f32 %v16046_v62, %v4682_v32  ;;  %v5045_v40 = vadd.f32 %v16064_v58, %v4862_v3 }
 0x476   :  { %v12482_v22 = vpop.f32.mrf.mxu0  ;;  %v5069_v17 = vadd.f32 %v12476_v8, %v4894_v57  ;;  %v5220_v10 = vadd.f32 %v12501_v18, %v5057_v21 }
 0x477   :  { %v12504_v49 = vpop.f32.mrf.mxu1  ;;  %v5093_v52 = vadd.f32 %v12482_v22, %v4926_v37  ;;  %v5051_v61 = vadd.f32 %v5050_v16, %v4870_v38 }
 0x478   :  { %v5086_v53 = vpop.f32.mrf.mxu0  ;;  %v5232_v29 = vadd.f32 %v12504_v49, %v5069_v17  ;;  %v4668_v49 = vadd.f32 %v16028_v6, %v4496_v2  ;;  %v16138_v58 = vand.u32 4294901760, %v5220_v10 }
 0x479   :  { %v5225_v59 = vpop.f32.mrf.mxu1  ;;  %v5087_v8 = vadd.f32 %v5086_v53, %v4918_v24  ;;  %v5214_v6 = vadd.f32 %v5213_v30, %v5051_v61  ;;  %v18877_v44 = vld [vmem:[#allocation107_spill] sm:$0xff]  ;;  %v18880_v24 = vld [vmem:[#allocation92_spill] sm:$0xff] }
 0x47a   :  { %v5226_v35 = vadd.f32 %v5225_v59, %v5063_v9  ;;  %v16114_v43 = vand.u32 4294901760, %v5232_v29  ;;  %v4854_v7 = vadd.f32 %v16042_v56, %v4668_v49  ;;  %v5208_v56 = vadd.f32 %v16076_v45, %v5045_v40  ;;  %v18881_v53 = vld [vmem:[#allocation91_spill] sm:$0xff]  ;;  %v18886_v49 = vld [vmem:[#allocation98_spill] sm:$0xff] }
 0x47b   :  { %v12507_v51 = vpop.f32.mrf.mxu1  ;;  %v16158_v59 = vand.u32 4294901760, %v5214_v6  ;;  %v16178_v17 = vsub.f32 %v5220_v10, %v16138_v58  ;;  %v4822_v9 = vadd.f32 %v18880_v24, %v4640_v42  ;;  %v18887_v61 = vld [vmem:[#allocation103_spill] sm:$0xff] }
 0x47c   :  { %v5244_v36 = vadd.f32 %v12507_v51, %v5081_v47  ;;  %v16124_v48 = vand.u32 4294901760, %v5226_v35  ;;  %v5039_v23 = vadd.f32 %v16068_v15, %v4854_v7  ;;  %v16142_v30 = vsub.f32 %v5232_v29, %v16114_v43  ;;  %v18874_v15 = vld [vmem:[#allocation94_spill] sm:$0xff] }
 0x47d   :  { %v5237_v26 = vpop.f32.mrf.mxu1  ;;  %v4838_v45 = vadd.f32 %v18874_v15, %v4654_v33  ;;  %v5196_v51 = vadd.f32 %v18879_v54, %v5033_v14  ;;  %v16175_v37 = vand.u32 4294901760, %v5208_v56  ;;  %v18883_v29 = vld [vmem:[#allocation106_spill] sm:$0xff]  ;;  %v16197_v50 = vsub.f32 %v5214_v6, %v16158_v59  ;;  %v18890_v15 = vld [vmem:[#allocation95_spill] sm:$0xff] }
 0x47e   :  { %v16103_v55 = vand.u32 4294901760, %v5244_v36  ;;  %v5238_v0 = vadd.f32 %v5237_v26, %v5075_v11  ;;  %v5202_v22 = vadd.f32 %v18877_v44, %v5039_v23  ;;  %v16162_v63 = vsub.f32 %v5226_v35, %v16124_v48  ;;  %v18882_v26 = vld [vmem:[#allocation97_spill] sm:$0xff]  ;;  %v18885_v35 = vld [vmem:[#allocation88_spill] sm:$0xff]  ;;  %v18888_v6 = vld [vmem:[#allocation90_spill] sm:$0xff] }
 0x47f   :  { %v12510_v4 = vpop.f32.mrf.mxu1  ;;  %v5027_v39 = vadd.f32 %v18878_v25, %v4838_v45  ;;  %v16187_v31 = vand.u32 4294901760, %v16142_v30  ;;  %v5015_v3 = vadd.f32 %v18886_v49, %v4822_v9  ;;  %v16219_v40 = vand.u32 4294901760, %v16178_v17  ;;  %v18889_v23 = vld [vmem:[#allocation89_spill] sm:$0xff] }
 0x480   :  { %v16110_v34 = vand.u32 4294901760, %v5238_v0  ;;  %v5256_v60 = vadd.f32 %v12510_v4, %v5093_v52  ;;  %v16117_v28 = vsub.f32 %v5244_v36, %v16103_v55  ;;  %v5021_v52 = vadd.f32 %v18882_v26, %v18881_v53  ;;  %v18894_v26 = vld [vmem:[#allocation102_spill] sm:$0xff] }
 0x481   :  { %v5249_v1 = vpop.f32.mrf.mxu1  ;;  %v16193_v2 = vand.u32 4294901760, %v5202_v22  ;;  %v16203_v4 = vand.u32 4294901760, %v16162_v63  ;;  %v5432_v7 = vsub.f32 %v16142_v30, %v16187_v31  ;;  %v5009_v45 = vadd.f32 %v18890_v15, %v18889_v23 }
 0x482   :  { %v16119_v62 = vand.u32 4294901760, %v5256_v60  ;;  %v5250_v27 = vadd.f32 %v5249_v1, %v5087_v8  ;;  %v16127_v18 = vsub.f32 %v5238_v0, %v16110_v34  ;;  %v16152_v41 = vand.u32 4294901760, %v16117_v28  ;;  %v18884_v8 = vld [vmem:[#allocation108_spill] sm:$0xff] }
 0x483   :  { %v5190_v0 = vadd.f32 %v18883_v29, %v5027_v39  ;;  %v5184_v10 = vadd.f32 %v18887_v61, %v5021_v52  ;;  %v16209_v1 = vand.u32 4294901760, %v5196_v51  ;;  %v5178_v46 = vadd.f32 %v18891_v5, %v5015_v3  ;;  %v18892_v39 = vld [vmem:[#allocation96_spill] sm:$0xff] }
 0x484   :  { %v16130_v16 = vsub.f32 %v5256_v60, %v16119_v62  ;;  %v16132_v20 = vand.u32 4294901760, %v5250_v27  ;;  %12511 = vmatprep.subr.mxu0 %v16119_v62  ;;  %v16171_v19 = vand.u32 4294901760, %v16127_v18  ;;  %v5418_v32 = vsub.f32 %v16117_v28, %v16152_v41 }
 0x485   :  { %12512 = vmatpush3.msra.mxu0 %v16119_v62  ;;  %v4626_v60 = vadd.f32 %v18885_v35, %v18884_v8  ;;  %v16225_v14 = vand.u32 4294901760, %v5190_v0  ;;  %v16235_v25 = vand.u32 4294901760, %v16197_v50  ;;  %v5433_v24 = vand.u32 4294901760, %v5432_v7 }
 0x486   :  { %v16145_v13 = vsub.f32 %v5250_v27, %v16132_v20  ;;  %12513 = vmatprep.subr.mxu0 %v16132_v20  ;;  %v16149_v12 = vand.u32 4294901760, %v16130_v16  ;;  %v5425_v21 = vsub.f32 %v16127_v18, %v16171_v19  ;;  %v16213_v27 = vsub.f32 %v5208_v56, %v16175_v37 }
 0x487   :  { %12514 = vmatpush3.msra.mxu0 %v16132_v20  ;;  %v5419_v42 = vand.u32 4294901760, %v5418_v32  ;;  %v4806_v33 = vadd.f32 %v18888_v6, %v4626_v60  ;;  %v16229_v56 = vsub.f32 %v5202_v22, %v16193_v2  ;;  %v16239_v32 = vand.u32 4294901760, %v5184_v10 }
 0x488   :  { %12515 = vmatprep.subr.mxu0 %v16103_v55  ;;  %v5404_v57 = vsub.f32 %v16130_v16, %v16149_v12  ;;  %v16168_v47 = vand.u32 4294901760, %v16145_v13  ;;  %v5426_v44 = vand.u32 4294901760, %v5425_v21  ;;  %v16243_v22 = vsub.f32 %v5196_v51, %v16209_v1 }
 0x489   :  { %12516 = vmatpush3.msra.mxu0 %v16103_v55  ;;  %v5003_v54 = vadd.f32 %v18892_v39, %v4806_v33  ;;  %v5446_v9 = vsub.f32 %v16178_v17, %v16219_v40  ;;  %v16249_v53 = vand.u32 4294901760, %v16213_v27  ;;  %v16252_v29 = vand.u32 4294901760, %v5178_v46 }
 0x48a   :  { %12517 = vmatprep.subr.mxu0 %v16110_v34  ;;  %v5405_v11 = vand.u32 4294901760, %v5404_v57  ;;  %v5411_v36 = vsub.f32 %v16145_v13, %v16168_v47  ;;  %v5439_v57 = vsub.f32 %v16162_v63, %v16203_v4  ;;  %v16256_v51 = vsub.f32 %v5190_v0, %v16225_v14 }
 0x48b   :  { %12518 = vmatpush3.msra.mxu0 %v16110_v34  ;;  %v5166_v52 = vadd.f32 %v18894_v26, %v5003_v54  ;;  %v5453_v21 = vsub.f32 %v16197_v50, %v16235_v25  ;;  %v16262_v8 = vand.u32 4294901760, %v16229_v56  ;;  %v16268_v60 = vsub.f32 %v5184_v10, %v16239_v32 }
 0x48c   :  { %12519 = vmatprep.subr.mxu0 %v16114_v43  ;;  %12552 = vmatprep.subr.mxu1 %v5405_v11  ;;  %v5412_v38 = vand.u32 4294901760, %v5411_v36  ;;  %v5447_v0 = vand.u32 4294901760, %v5446_v9  ;;  %v5460_v49 = vsub.f32 %v16213_v27, %v16249_v53  ;;  %v16274_v3 = vand.u32 4294901760, %v16243_v22 }
 0x48d   :  { %12520 = vmatpush3.msra.mxu0 %v16114_v43  ;;  %12553 = vmatpush3.msra.mxu1 %v5405_v11  ;;  %v18893_v11 = vld [vmem:[#allocation100_spill] sm:$0xff]  ;;  %v16276_v61 = vand.u32 4294901760, %v5166_v52  ;;  %v5454_v10 = vand.u32 4294901760, %v5453_v21  ;;  %v5467_v7 = vsub.f32 %v16229_v56, %v16262_v8  ;;  %v16286_v6 = vand.u32 4294901760, %v16256_v51 }
 0x48e   :  { %12521 = vmatprep.subr.mxu0 %v16124_v48  ;;  %12554 = vmatprep.subr.mxu1 %v5412_v38  ;;  %v5172_v36 = vadd.f32 %v18893_v11, %v5009_v45  ;;  %v5461_v23 = vand.u32 4294901760, %v5460_v49  ;;  %v5474_v15 = vsub.f32 %v16243_v22, %v16274_v3  ;;  %v16296_v45 = vand.u32 4294901760, %v16268_v60 }
 0x48f   :  { %12522 = vmatpush3.msra.mxu0 %v16124_v48  ;;  %12555 = vmatpush3.msra.mxu1 %v5412_v38  ;;  %v5440_v38 = vand.u32 4294901760, %v5439_v57  ;;  %v16300_v5 = vsub.f32 %v5166_v52, %v16276_v61 }
 0x490   :  { %12523 = vmatprep.subr.mxu0 %v16138_v58  ;;  %12556 = vmatprep.subr.mxu1 %v5419_v42  ;;  %v16264_v35 = vand.u32 4294901760, %v5172_v36  ;;  %v5475_v39 = vand.u32 4294901760, %v5474_v15  ;;  %v5488_v54 = vsub.f32 %v16268_v60, %v16296_v45 }
 0x491   :  { %12524 = vmatpush3.msra.mxu0 %v16138_v58  ;;  %12557 = vmatpush3.msra.mxu1 %v5419_v42  ;;  %v16280_v42 = vsub.f32 %v5178_v46, %v16252_v29  ;;  %v5468_v46 = vand.u32 4294901760, %v5467_v7  ;;  %v16320_v9 = vand.u32 4294901760, %v16300_v5  ;;  %v18912_v7 = vld [vmem:[#allocation35_spill] sm:$0xff] }
 0x492   :  { %12525 = vmatprep.subr.mxu0 %v16158_v59  ;;  %12558 = vmatprep.subr.mxu1 %v5426_v44  ;;  %v16290_v33 = vsub.f32 %v5172_v36, %v16264_v35  ;;  %v5489_v26 = vand.u32 4294901760, %v5488_v54 }
 0x493   :  { %12526 = vmatpush3.msra.mxu0 %v16158_v59  ;;  %12559 = vmatpush3.msra.mxu1 %v5426_v44  ;;  %v5481_v44 = vsub.f32 %v16256_v51, %v16286_v6  ;;  %v16306_v57 = vand.u32 4294901760, %v16280_v42  ;;  %v5509_v21 = vsub.f32 %v16300_v5, %v16320_v9 }
 0x494   :  { %12527 = vmatprep.subr.mxu0 %v16175_v37  ;;  %12560 = vmatprep.subr.mxu1 %v5433_v24  ;;  %v16313_v11 = vand.u32 4294901760, %v16290_v33 }
 0x495   :  { %12528 = vmatpush3.msra.mxu0 %v16175_v37  ;;  %12561 = vmatpush3.msra.mxu1 %v5433_v24  ;;  %v5482_v36 = vand.u32 4294901760, %v5481_v44  ;;  %v5495_v24 = vsub.f32 %v16280_v42, %v16306_v57  ;;  %v13623_v44 = vld [vmem:[%s18434_s2 + $0x30] sm:$0xff] }
 0x496   :  { %12529 = vmatprep.subr.mxu0 %v16193_v2  ;;  %12562 = vmatprep.subr.mxu1 %v5440_v38  ;;  %v5502_v52 = vsub.f32 %v16290_v33, %v16313_v11 }
 0x497   :  { %12530 = vmatpush3.msra.mxu0 %v16193_v2  ;;  %12563 = vmatpush3.msra.mxu1 %v5440_v38  ;;  %v5496_v38 = vand.u32 4294901760, %v5495_v24 }
 0x498   :  { %12531 = vmatprep.subr.mxu0 %v16209_v1  ;;  %12564 = vmatprep.subr.mxu1 %v5447_v0  ;;  %v5503_v49 = vand.u32 4294901760, %v5502_v52 }
 0x499   :  { %12532 = vmatpush3.msra.mxu0 %v16209_v1  ;;  %12565 = vmatpush3.msra.mxu1 %v5447_v0  ;;  %v18895_v0 = vld [vmem:[#allocation38_spill] sm:$0xff] }
 0x49a   :  { %12533 = vmatprep.subr.mxu0 %v16225_v14  ;;  %12566 = vmatprep.subr.mxu1 %v5454_v10 }
 0x49b   :  { %12534 = vmatpush3.msra.mxu0 %v16225_v14  ;;  %12567 = vmatpush3.msra.mxu1 %v5454_v10  ;;  %v5510_v10 = vand.u32 4294901760, %v5509_v21  ;;  %v13625_v21 = vld [vmem:[%s18434_s2 + $0x40] sm:$0xff] }
 0x49c   :  { %12535 = vmatprep.subr.mxu0 %v16239_v32  ;;  %12568 = vmatprep.subr.mxu1 %v5461_v23 }
 0x49d   :  { %12536 = vmatpush3.msra.mxu0 %v16239_v32  ;;  %12569 = vmatpush3.msra.mxu1 %v5461_v23 }
 0x49e   :  { %12537 = vmatprep.subr.mxu0 %v16252_v29  ;;  %12570 = vmatprep.subr.mxu1 %v5468_v46 }
 0x49f   :  { %12538 = vmatpush3.msra.mxu0 %v16252_v29  ;;  %12571 = vmatpush3.msra.mxu1 %v5468_v46 }
 0x4a0   :  { %12539 = vmatprep.subr.mxu0 %v16264_v35  ;;  %12572 = vmatprep.subr.mxu1 %v5475_v39 }
 0x4a1   :  { %12540 = vmatpush3.msra.mxu0 %v16264_v35  ;;  %12573 = vmatpush3.msra.mxu1 %v5475_v39  ;;  %v6121_v39 = vmul.f32 %v13623_v44, %v13623_v44 }
 0x4a2   :  { %12541 = vmatprep.subr.mxu0 %v16276_v61  ;;  %12574 = vmatprep.subr.mxu1 %v5482_v36 }
 0x4a3   :  { %12542 = vmatpush3.msra.mxu0 %v16276_v61  ;;  %12575 = vmatpush3.msra.mxu1 %v5482_v36  ;;  %v13624_v36 = vld [vmem:[%s18434_s2 + $0x38] sm:$0xff] }
 0x4a4   :  { %12576 = vmatprep.subr.mxu1 %v5489_v26  ;;  %12593 = vmatprep.subr.mxu0 %v16130_v16  ;;  %v6122_v24 = vmul.f32 %v13624_v36, %v13624_v36 }
 0x4a5   :  { %12544 = vmatmul.mubr.f32.vlgmr.msra.gmra.mxu0 %v18895_v0  ;;  %12577 = vmatpush3.msra.mxu1 %v5489_v26 }
 0x4a6   :  { %12594 = vmatpush3.msra.mxu0 %v16130_v16  ;;  %12578 = vmatprep.subr.mxu1 %v5496_v38  ;;  %v18896_v16 = vld [vmem:[#allocation24_spill] sm:$0xff] }
 0x4a7   :  { %12595 = vmatprep.subr.mxu0 %v16145_v13  ;;  %12579 = vmatpush3.msra.mxu1 %v5496_v38  ;;  %v6150_v38 = vsel %vm74_vm0, %v6121_v39, 0 }
 0x4a8   :  { %12596 = vmatpush3.msra.mxu0 %v16145_v13  ;;  %12580 = vmatprep.subr.mxu1 %v5503_v49  ;;  %v18900_v13 = vld [vmem:[#allocation28_spill] sm:$0xff] }
 0x4a9   :  { %12597 = vmatprep.subr.mxu0 %v16117_v28  ;;  %12581 = vmatpush3.msra.mxu1 %v5503_v49  ;;  %v6123_v49 = vmul.f32 %v13625_v21, %v13625_v21  ;;  %v13630_v21 = vld [vmem:[%s18434_s2 + $0x60] sm:$0xff] }
 0x4aa   :  { %12598 = vmatpush3.msra.mxu0 %v16117_v28  ;;  %12582 = vmatprep.subr.mxu1 %v5510_v10  ;;  %v18897_v28 = vld [vmem:[#allocation29_spill] sm:$0xff] }
 0x4ab   :  { %12599 = vmatprep.subr.mxu0 %v16127_v18  ;;  %12583 = vmatpush3.msra.mxu1 %v5510_v10  ;;  %v18917_v10 = vld [vmem:[#allocation16_spill] sm:$0xff] }
 0x4ac   :  { %12600 = vmatpush3.msra.mxu0 %v16127_v18  ;;  %12585 = vmatmul.mubr.f32.vlgmr.msra.gmra.mxu1 %v18896_v16  ;;  %v18898_v18 = vld [vmem:[#allocation32_spill] sm:$0xff] }
 0x4ad   :  { %12601 = vmatprep.subr.mxu0 %v16142_v30  ;;  %12634 = vmatprep.subr.mxu1 %v16119_v62 }
 0x4ae   :  { %12602 = vmatpush3.msra.mxu0 %v16142_v30  ;;  %12635 = vmatpush3.msra.mxu1 %v16119_v62  ;;  %v18899_v30 = vld [vmem:[#allocation26_spill] sm:$0xff] }
 0x4af   :  { %12603 = vmatprep.subr.mxu0 %v16162_v63  ;;  %12636 = vmatprep.subr.mxu1 %v16132_v20 }
 0x4b0   :  { %12604 = vmatpush3.msra.mxu0 %v16162_v63  ;;  %12637 = vmatpush3.msra.mxu1 %v16132_v20  ;;  %v18901_v63 = vld [vmem:[#allocation22_spill] sm:$0xff] }
 0x4b1   :  { %12605 = vmatprep.subr.mxu0 %v16178_v17  ;;  %12638 = vmatprep.subr.mxu1 %v16103_v55 }
 0x4b2   :  { %12606 = vmatpush3.msra.mxu0 %v16178_v17  ;;  %12639 = vmatpush3.msra.mxu1 %v16103_v55  ;;  %v18902_v17 = vld [vmem:[#allocation37_spill] sm:$0xff] }
 0x4b3   :  { %12607 = vmatprep.subr.mxu0 %v16197_v50  ;;  %12640 = vmatprep.subr.mxu1 %v16110_v34 }
 0x4b4   :  { %12608 = vmatpush3.msra.mxu0 %v16197_v50  ;;  %12641 = vmatpush3.msra.mxu1 %v16110_v34  ;;  %v18903_v50 = vld [vmem:[#allocation17_spill] sm:$0xff] }
 0x4b5   :  { %12609 = vmatprep.subr.mxu0 %v16213_v27  ;;  %12642 = vmatprep.subr.mxu1 %v16114_v43 }
 0x4b6   :  { %12610 = vmatpush3.msra.mxu0 %v16213_v27  ;;  %12643 = vmatpush3.msra.mxu1 %v16114_v43  ;;  %v18904_v27 = vld [vmem:[#allocation31_spill] sm:$0xff] }
 0x4b7   :  { %12611 = vmatprep.subr.mxu0 %v16229_v56  ;;  %12644 = vmatprep.subr.mxu1 %v16124_v48 }
 0x4b8   :  { %12612 = vmatpush3.msra.mxu0 %v16229_v56  ;;  %12645 = vmatpush3.msra.mxu1 %v16124_v48  ;;  %v18905_v56 = vld [vmem:[#allocation25_spill] sm:$0xff] }
 0x4b9   :  { %12613 = vmatprep.subr.mxu0 %v16243_v22  ;;  %12646 = vmatprep.subr.mxu1 %v16138_v58 }
 0x4ba   :  { %12614 = vmatpush3.msra.mxu0 %v16243_v22  ;;  %12647 = vmatpush3.msra.mxu1 %v16138_v58  ;;  %v18906_v22 = vld [vmem:[#allocation34_spill] sm:$0xff] }
 0x4bb   :  { %12615 = vmatprep.subr.mxu0 %v16256_v51  ;;  %12648 = vmatprep.subr.mxu1 %v16158_v59 }
 0x4bc   :  { %12546 = vmatprep.mubr.f32.mxu0 %v18897_v28  ;;  %12616 = vmatpush3.msra.mxu0 %v16256_v51  ;;  %v18907_v51 = vld [vmem:[#allocation39_spill] sm:$0xff] }
 0x4bd   :  { %12649 = vmatpush3.msra.mxu1 %v16158_v59  ;;  %12547 = vmatmul.mubr.f32.gmra.mxu0 %v18898_v18 }
 0x4be   :  { %12617 = vmatprep.subr.mxu0 %v16268_v60  ;;  %12650 = vmatprep.subr.mxu1 %v16175_v37 }
 0x4bf   :  { %12618 = vmatpush3.msra.mxu0 %v16268_v60  ;;  %12651 = vmatpush3.msra.mxu1 %v16175_v37  ;;  %v18908_v60 = vld [vmem:[#allocation23_spill] sm:$0xff] }
 0x4c0   :  { %12619 = vmatprep.subr.mxu0 %v16280_v42  ;;  %12652 = vmatprep.subr.mxu1 %v16193_v2 }
 0x4c1   :  { %12549 = vmatprep.mubr.f32.mxu0 %v18899_v30  ;;  %12620 = vmatpush3.msra.mxu0 %v16280_v42  ;;  %v18910_v42 = vld [vmem:[#allocation18_spill] sm:$0xff] }
 0x4c2   :  { %12653 = vmatpush3.msra.mxu1 %v16193_v2  ;;  %12550 = vmatmul.mubr.f32.gmra.mxu0 %v18900_v13 }
 0x4c3   :  { %12587 = vmatprep.mubr.f32.mxu1 %v18901_v63  ;;  %12621 = vmatprep.subr.mxu0 %v16290_v33 }
 0x4c4   :  { %12654 = vmatprep.subr.mxu1 %v16209_v1  ;;  %12588 = vmatmul.mubr.f32.gmra.mxu1 %v18902_v17 }
 0x4c5   :  { %12622 = vmatpush3.msra.mxu0 %v16290_v33  ;;  %12655 = vmatpush3.msra.mxu1 %v16209_v1  ;;  %v13620_v33 = vld [vmem:[%s18434_s2 + $0x18] sm:$0xff] }
 0x4c6   :  { %12623 = vmatprep.subr.mxu0 %v16300_v5  ;;  %12656 = vmatprep.subr.mxu1 %v16225_v14  ;;  %v6118_v23 = vmul.f32 %v13620_v33, %v13620_v33  ;;  %v18918_v33 = vld [vmem:[#allocation8_spill] sm:$0xff] }
 0x4c7   :  { %12624 = vmatpush3.msra.mxu0 %v16300_v5  ;;  %12625 = vmatprep.mubr.f32.mxu0 %v18903_v50 }
 0x4c8   :  { %12657 = vmatpush3.msra.mxu1 %v16225_v14  ;;  %12590 = vmatprep.mubr.f32.mxu1 %v18904_v27 }
 0x4c9   :  { %12626 = vmatmul.mubr.f32.vlgmr.msra.gmra.mxu0 %v18905_v56  ;;  %12658 = vmatprep.subr.mxu1 %v16239_v32 }
 0x4ca   :  { %12675 = vmatprep.subr.mxu0 %v16149_v12  ;;  %12591 = vmatmul.mubr.f32.gmra.mxu1 %v18906_v22 }
 0x4cb   :  { %12659 = vmatpush3.msra.mxu1 %v16239_v32  ;;  %12676 = vmatpush3.msra.mxu0 %v16149_v12  ;;  %v18909_v12 = vld [vmem:[#allocation20_spill] sm:$0xff] }
 0x4cc   :  { %12660 = vmatprep.subr.mxu1 %v16252_v29  ;;  %12677 = vmatprep.subr.mxu0 %v16168_v47 }
 0x4cd   :  { %12628 = vmatprep.mubr.f32.mxu0 %v18907_v51  ;;  %12661 = vmatpush3.msra.mxu1 %v16252_v29 }
 0x4ce   :  { %12678 = vmatpush3.msra.mxu0 %v16168_v47  ;;  %12662 = vmatprep.subr.mxu1 %v16264_v35  ;;  %v18911_v47 = vld [vmem:[#allocation21_spill] sm:$0xff] }
 0x4cf   :  { %12629 = vmatmul.mubr.f32.gmra.mxu0 %v18908_v60  ;;  %12679 = vmatprep.subr.mxu0 %v16152_v41 }
 0x4d0   :  { %12663 = vmatpush3.msra.mxu1 %v16264_v35  ;;  %12680 = vmatpush3.msra.mxu0 %v16152_v41  ;;  %v18913_v41 = vld [vmem:[#allocation33_spill] sm:$0xff] }
 0x4d1   :  { %12664 = vmatprep.subr.mxu1 %v16276_v61  ;;  %12681 = vmatprep.subr.mxu0 %v16171_v19 }
 0x4d2   :  { %12631 = vmatprep.mubr.f32.mxu0 %v18909_v12  ;;  %12665 = vmatpush3.msra.mxu1 %v16276_v61 }
 0x4d3   :  { %12666 = vmatprep.mubr.f32.mxu1 %v18910_v42  ;;  %12682 = vmatpush3.msra.mxu0 %v16171_v19  ;;  %v18914_v19 = vld [vmem:[#allocation36_spill] sm:$0xff] }
 0x4d4   :  { %12632 = vmatmul.mubr.f32.gmra.mxu0 %v18911_v47  ;;  %12667 = vmatmul.mubr.f32.vlgmr.msra.gmra.mxu1 %v18912_v7 }
 0x4d5   :  { %12683 = vmatprep.subr.mxu0 %v16187_v31  ;;  %12716 = vmatprep.subr.mxu1 %v16119_v62 }
 0x4d6   :  { %12684 = vmatpush3.msra.mxu0 %v16187_v31  ;;  %12717 = vmatpush3.msra.mxu1 %v16119_v62  ;;  %v18915_v62 = vld [vmem:[#allocation27_spill] sm:$0xff] }
 0x4d7   :  { %12685 = vmatprep.subr.mxu0 %v16203_v4  ;;  %12718 = vmatprep.subr.mxu1 %v16132_v20 }
 0x4d8   :  { %12669 = vmatprep.mubr.f32.mxu1 %v18913_v41  ;;  %12686 = vmatpush3.msra.mxu0 %v16203_v4  ;;  %v13618_v4 = vld [vmem:[%s18434_s2 + $0x8] sm:$0xff] }
 0x4d9   :  { %12719 = vmatpush3.msra.mxu1 %v16132_v20  ;;  %12687 = vmatprep.subr.mxu0 %v16219_v40  ;;  %v18916_v20 = vld [vmem:[#allocation30_spill] sm:$0xff] }
 0x4da   :  { %12670 = vmatmul.mubr.f32.gmra.mxu1 %v18914_v19  ;;  %12720 = vmatprep.subr.mxu1 %v16103_v55 }
 0x4db   :  { %12688 = vmatpush3.msra.mxu0 %v16219_v40  ;;  %12721 = vmatpush3.msra.mxu1 %v16103_v55  ;;  %v13617_v55 = vld [vmem:[%s18434_s2] sm:$0xff]  ;;  %v6116_v40 = vmul.f32 %v13618_v4, %v13618_v4 }
 0x4dc   :  { %12689 = vmatprep.subr.mxu0 %v16235_v25  ;;  %12722 = vmatprep.subr.mxu1 %v16110_v34  ;;  %v6115_v31 = vmul.f32 %v13617_v55, %v13617_v55 }
 0x4dd   :  { %12672 = vmatprep.mubr.f32.mxu1 %v18915_v62  ;;  %12690 = vmatpush3.msra.mxu0 %v16235_v25 }
 0x4de   :  { %12723 = vmatpush3.msra.mxu1 %v16110_v34  ;;  %12691 = vmatprep.subr.mxu0 %v16249_v53  ;;  %v13619_v34 = vld [vmem:[%s18434_s2 + $0x10] sm:$0xff] }
 0x4df   :  { %12673 = vmatmul.mubr.f32.gmra.mxu1 %v18916_v20  ;;  %12724 = vmatprep.subr.mxu1 %v16114_v43  ;;  %v6117_v25 = vmul.f32 %v13619_v34, %v13619_v34  ;;  %v16536_v34 = vand.u32 4294901760, %v6150_v38 }
 0x4e0   :  { %12692 = vmatpush3.msra.mxu0 %v16249_v53  ;;  %12725 = vmatpush3.msra.mxu1 %v16114_v43  ;;  %v6132_v53 = vsel %vm74_vm0, %v6115_v31, 0  ;;  %v6135_v43 = vsel %vm74_vm0, %v6116_v40, 0 }
 0x4e1   :  { %12693 = vmatprep.subr.mxu0 %v16262_v8  ;;  %12726 = vmatprep.subr.mxu1 %v16124_v48  ;;  %v16473_v5 = vand.u32 4294901760, %v6132_v53  ;;  %v16571_v44 = vsub.f32 %v6150_v38, %v16536_v34 }
 0x4e2   :  { %12694 = vmatpush3.msra.mxu0 %v16262_v8  ;;  %12727 = vmatpush3.msra.mxu1 %v16124_v48  ;;  %v6138_v48 = vsel %vm74_vm0, %v6117_v25, 0  ;;  %v13621_v8 = vld [vmem:[%s18434_s2 + $0x20] sm:$0xff]  ;;  %v6153_v25 = vsel %vm74_vm0, %v6122_v24, 0 }
 0x4e3   :  { %12695 = vmatprep.subr.mxu0 %v16274_v3  ;;  %12728 = vmatprep.subr.mxu1 %v16138_v58  ;;  %v6119_v15 = vmul.f32 %v13621_v8, %v13621_v8  ;;  %v18922_v20 = vand.u32 4294901760, %v16571_v44 }
 0x4e4   :  { %12696 = vmatpush3.msra.mxu0 %v16274_v3  ;;  %12729 = vmatpush3.msra.mxu1 %v16138_v58  ;;  %v16475_v3 = vand.u32 4294901760, %v6135_v43  ;;  %v13622_v58 = vld [vmem:[%s18434_s2 + $0x28] sm:$0xff] }
 0x4e5   :  { %12697 = vmatprep.subr.mxu0 %v16286_v6  ;;  %12730 = vmatprep.subr.mxu1 %v16158_v59  ;;  %v6120_v46 = vmul.f32 %v13622_v58, %v13622_v58  ;;  %v6144_v54 = vsel %vm74_vm0, %v6119_v15, 0 }
 0x4e6   :  { %12698 = vmatpush3.msra.mxu0 %v16286_v6  ;;  %12731 = vmatpush3.msra.mxu1 %v16158_v59  ;;  %v16484_v6 = vand.u32 4294901760, %v6138_v48  ;;  %v6141_v59 = vsel %vm74_vm0, %v6118_v23, 0  ;;  %v16514_v52 = vand.u32 4294901760, %v6144_v54  ;;  %v6156_v23 = vsel %vm74_vm0, %v6123_v49, 0 }
 0x4e7   :  { %12699 = vmatprep.subr.mxu0 %v16296_v45  ;;  %12732 = vmatprep.subr.mxu1 %v16175_v37  ;;  %v16506_v26 = vand.u32 4294901760, %v6141_v59  ;;  %v16580_v36 = vand.u32 4294901760, %v6156_v23  ;;  %v6127_v49 = vmul.f32 %v13630_v21, %v13630_v21 }
 0x4e8   :  { %12700 = vmatpush3.msra.mxu0 %v16296_v45  ;;  %12733 = vmatpush3.msra.mxu1 %v16175_v37  ;;  %v16496_v37 = vsub.f32 %v6132_v53, %v16473_v5  ;;  %v16499_v45 = vsub.f32 %v6135_v43, %v16475_v3  ;;  %v16543_v53 = vsub.f32 %v6144_v54, %v16514_v52 }
 0x4e9   :  { %12701 = vmatprep.subr.mxu0 %v16306_v57  ;;  %12734 = vmatprep.subr.mxu1 %v16193_v2  ;;  %v16534_v40 = vsub.f32 %v6141_v59, %v16506_v26 }
 0x4ea   :  { %12702 = vmatpush3.msra.mxu0 %v16306_v57  ;;  %12735 = vmatpush3.msra.mxu1 %v16193_v2  ;;  %v6147_v57 = vsel %vm74_vm0, %v6120_v46, 0  ;;  %v16512_v2 = vsub.f32 %v6138_v48, %v16484_v6  ;;  %v18564_v55 = vand.u32 4294901760, %v16496_v37  ;;  %v18562_v4 = vand.u32 4294901760, %v16499_v45  ;;  %v13628_v48 = vld [vmem:[%s18434_s2 + $0x58] sm:$0xff] }
 0x4eb   :  { %12703 = vmatprep.subr.mxu0 %v16313_v11  ;;  %12736 = vmatprep.subr.mxu1 %v16209_v1  ;;  %v16528_v31 = vand.u32 4294901760, %v6147_v57  ;;  %v6126_v8 = vmul.f32 %v13628_v48, %v13628_v48  ;;  %v18563_v59 = vand.u32 4294901760, %v16534_v40  ;;  %v18565_v54 = vand.u32 4294901760, %v16543_v53 }
 0x4ec   :  { %12704 = vmatpush3.msra.mxu0 %v16313_v11  ;;  %12737 = vmatpush3.msra.mxu1 %v16209_v1  ;;  %v13626_v1 = vld [vmem:[%s18434_s2 + $0x48] sm:$0xff]  ;;  %v6249_v15 = vsub.f32 %v16496_v37, %v18564_v55  ;;  %v6259_v46 = vsub.f32 %v16499_v45, %v18562_v4  ;;  %v16613_v4 = vsub.f32 %v6156_v23, %v16580_v36  ;;  %v13631_v55 = vld [vmem:[%s18434_s2 + $0x70] sm:$0xff] }
 0x4ed   :  { %12705 = vmatprep.subr.mxu0 %v16320_v9  ;;  %12738 = vmatprep.subr.mxu1 %v16225_v14  ;;  %v6124_v11 = vmul.f32 %v13626_v1, %v13626_v1  ;;  %v16560_v58 = vsub.f32 %v6147_v57, %v16528_v31  ;;  %v13629_v57 = vld [vmem:[%s18434_s2 + $0x68] sm:$0xff] }
 0x4ee   :  { %12706 = vmatpush3.msra.mxu0 %v16320_v9  ;;  %12707 = vmatprep.mubr.f32.mxu0 %v18917_v10  ;;  %v18561_v9 = vand.u32 4294901760, %v16512_v2  ;;  %v6128_v38 = vmul.f32 %v13629_v57, %v13629_v57  ;;  %v18919_v1 = vld [vmem:[#allocation9_spill] sm:$0xff]  ;;  %v6279_v57 = vsub.f32 %v16534_v40, %v18563_v59  ;;  %v6168_v59 = vsel %vm74_vm0, %v6127_v49, 0 }
 0x4ef   :  { %12739 = vmatpush3.msra.mxu1 %v16225_v14  ;;  %12708 = vmatmul.mubr.f32.vlgmr.msra.gmra.mxu0 %v18896_v16  ;;  %v13627_v14 = vld [vmem:[%s18434_s2 + $0x50] sm:$0xff]  ;;  %v6159_v39 = vsel %vm74_vm0, %v6124_v11, 0  ;;  %v6250_v11 = vand.u32 4294901760, %v6249_v15 }
 0x4f0   :  { %12740 = vmatprep.subr.mxu1 %v16239_v32  ;;  %12710 = vmatprep.mubr.f32.mxu0 %v18901_v63  ;;  %v6125_v43 = vmul.f32 %v13627_v14, %v13627_v14  ;;  %v18567_v14 = vand.u32 4294901760, %v16560_v58  ;;  %v16597_v48 = vand.u32 4294901760, %v6159_v39  ;;  %v18920_v15 = vld [vmem:[#allocation14_spill] sm:$0xff] }
 0x4f1   :  { %12741 = vmatpush3.msra.mxu1 %v16239_v32  ;;  %12757 = vmatprep.subr.mxu0 %v18918_v33  ;;  %v16562_v32 = vand.u32 4294901760, %v6153_v25 }
 0x4f2   :  { %12742 = vmatprep.subr.mxu1 %v16252_v29  ;;  %12748 = vmatprep.mubr.f32.mxu1 %v18917_v10  ;;  %v6162_v24 = vsel %vm74_vm0, %v6125_v43, 0  ;;  %v6299_v23 = vsub.f32 %v16560_v58, %v18567_v14  ;;  %v16631_v49 = vsub.f32 %v6159_v39, %v16597_v48 }
 0x4f3   :  { %12743 = vmatpush3.msra.mxu1 %v16252_v29  ;;  %12711 = vmatmul.mubr.f32.gmra.mxu0 %v18902_v17  ;;  %v6269_v29 = vsub.f32 %v16512_v2, %v18561_v9  ;;  %v16595_v43 = vsub.f32 %v6153_v25, %v16562_v32  ;;  %v16605_v9 = vand.u32 4294901760, %v6162_v24 }
 0x4f4   :  { %12744 = vmatprep.subr.mxu1 %v16264_v35  ;;  %12713 = vmatprep.mubr.f32.mxu0 %v18904_v27 }
 0x4f5   :  { %12745 = vmatpush3.msra.mxu1 %v16264_v35  ;;  %12758 = vmatpush3.msra.mxu0 %v18918_v33  ;;  %v6260_v35 = vand.u32 4294901760, %v6259_v46  ;;  %v6270_v25 = vand.u32 4294901760, %v6269_v29  ;;  %v6165_v46 = vsel %vm74_vm0, %v6126_v8, 0  ;;  %v6129_v29 = vmul.f32 %v13631_v55, %v13631_v55 }
 0x4f6   :  { %12746 = vmatprep.subr.mxu1 %v16276_v61  ;;  %12759 = vmatprep.subr.mxu0 %v18919_v1  ;;  %v6280_v55 = vand.u32 4294901760, %v6279_v57  ;;  %v16638_v62 = vsub.f32 %v6162_v24, %v16605_v9  ;;  %v16644_v8 = vand.u32 4294901760, %v6168_v59  ;;  %v18923_v24 = vld [vmem:[#allocation10_spill] sm:$0xff]  ;;  %v6300_v57 = vand.u32 4294901760, %v6299_v23 }
 0x4f7   :  { %12747 = vmatpush3.msra.mxu1 %v16276_v61  ;;  %12714 = vmatmul.mubr.f32.gmra.mxu0 %v18906_v22  ;;  %v6289_v61 = vsub.f32 %v16543_v53, %v18565_v54  ;;  %v13632_v54 = vld [vmem:[%s18434_s2 + $0x78] sm:$0xff] }
 0x4f8   :  { %12749 = vmatmul.mubr.f32.vlgmr.msra.gmra.mxu1 %v18896_v16  ;;  %12785 = vmatprep.subr.mxu1 %v18920_v15  ;;  %v6130_v21 = vmul.f32 %v13632_v54, %v13632_v54  ;;  %v6309_v54 = vsub.f32 %v16571_v44, %v18922_v20  ;;  %v6174_v20 = vsel %vm74_vm0, %v6129_v29, 0  ;;  %v18925_v29 = vand.u32 4294901760, %v16613_v4 }
 0x4f9   :  { %12786 = vmatpush3.msra.mxu1 %v18920_v15  ;;  %12751 = vmatprep.mubr.f32.mxu1 %v18901_v63  ;;  %v18921_v15 = vld [vmem:[#allocation15_spill] sm:$0xff]  ;;  %v6290_v14 = vand.u32 4294901760, %v6289_v61  ;;  %v16669_v39 = vand.u32 4294901760, %v6174_v20 }
 0x4fa   :  { %12760 = vmatpush3.msra.mxu0 %v18919_v1  ;;  %12761 = vmatprep.mubr.f32.mxu0 %v6250_v11  ;;  %v16640_v11 = vand.u32 4294901760, %v6165_v46  ;;  %v6310_v19 = vand.u32 4294901760, %v6309_v54  ;;  %v6329_v23 = vsub.f32 %v16613_v4, %v18925_v29  ;;  %v18926_v54 = vld [vmem:[#allocation11_spill] sm:$0xff] }
 0x4fb   :  { %12762 = vmatmul.mubr.f32.vlgmr.msra.gmra.mxu0 %v6260_v35  ;;  %12787 = vmatprep.subr.mxu1 %v18921_v15  ;;  %v6171_v35 = vsel %vm74_vm0, %v6128_v38, 0  ;;  %v16690_v47 = vsub.f32 %v6174_v20, %v16669_v39 }
 0x4fc   :  { %12752 = vmatmul.mubr.f32.gmra.mxu1 %v18902_v17  ;;  %12764 = vmatprep.mubr.f32.mxu0 %v6270_v25  ;;  %v18924_v25 = vand.u32 4294901760, %v16595_v43  ;;  %v16658_v41 = vsub.f32 %v6165_v46, %v16640_v11 }
 0x4fd   :  { %12754 = vmatprep.mubr.f32.mxu1 %v18904_v27  ;;  %12788 = vmatpush3.msra.mxu1 %v18921_v15  ;;  %v16660_v15 = vand.u32 4294901760, %v6171_v35 }
 0x4fe   :  { %12813 = vmatprep.subr.mxu0 %v18923_v24  ;;  %12841 = vmatprep.subr.mxu1 %v18918_v33  ;;  %v6319_v61 = vsub.f32 %v16595_v43, %v18924_v25  ;;  %v16667_v25 = vsub.f32 %v6168_v59, %v16644_v8  ;;  %v18570_v29 = vand.u32 4294901760, %v16658_v41 }
 0x4ff   :  { %12765 = vmatmul.mubr.f32.gmra.mxu0 %v6280_v55  ;;  %v6177_v55 = vsel %vm74_vm0, %v6130_v21, 0  ;;  %v16680_v59 = vsub.f32 %v6171_v35, %v16660_v15  ;;  %v6330_v21 = vand.u32 4294901760, %v6329_v23 }
 0x500   :  { %12755 = vmatmul.mubr.f32.gmra.mxu1 %v18906_v22  ;;  %12767 = vmatprep.mubr.f32.mxu0 %v6290_v14  ;;  %v6320_v46 = vand.u32 4294901760, %v6319_v61  ;;  %v18927_v14 = vand.u32 4294901760, %v16631_v49  ;;  %v16682_v7 = vand.u32 4294901760, %v6177_v55  ;;  %v18928_v61 = vand.u32 4294901760, %v16638_v62 }
 0x501   :  { %12789 = vmatprep.mubr.f32.mxu1 %v16473_v5  ;;  %12814 = vmatpush3.msra.mxu0 %v18923_v24  ;;  %v6359_v35 = vsub.f32 %v16658_v41, %v18570_v29  ;;  %v6378_v23 = vand.u32 4294901760, %v16680_v59 }
 0x502   :  { %12815 = vmatprep.subr.mxu0 %v18926_v54  ;;  %v6339_v38 = vsub.f32 %v16631_v49, %v18927_v14  ;;  %v6349_v24 = vsub.f32 %v16638_v62, %v18928_v61  ;;  %v16702_v20 = vsub.f32 %v6177_v55, %v16682_v7  ;;  %v18929_v61 = vld [vmem:[#allocation12_spill] sm:$0xff] }
 0x503   :  { %12768 = vmatmul.mubr.f32.gmra.mxu0 %v6300_v57  ;;  %v18571_v57 = vand.u32 4294901760, %v16667_v25  ;;  %v6360_v29 = vand.u32 4294901760, %v6359_v35  ;;  %v6379_v55 = vsub.f32 %v16680_v59, %v6378_v23 }
 0x504   :  { %12790 = vmatmul.mubr.f32.vlgmr.msra.gmra.mxu1 %v16475_v3  ;;  %12770 = vmatprep.mubr.f32.mxu0 %v6310_v19  ;;  %v6340_v19 = vand.u32 4294901760, %v6339_v38  ;;  %v6350_v14 = vand.u32 4294901760, %v6349_v24  ;;  %v6388_v38 = vand.u32 4294901760, %v16690_v47  ;;  %v6398_v24 = vand.u32 4294901760, %v16702_v20 }
 0x505   :  { %12842 = vmatpush3.msra.mxu1 %v18918_v33  ;;  %12792 = vmatprep.mubr.f32.mxu1 %v16484_v6 }
 0x506   :  { %12816 = vmatpush3.msra.mxu0 %v18926_v54  ;;  %12843 = vmatprep.subr.mxu1 %v18919_v1  ;;  %v6380_v54 = vand.u32 4294901760, %v6379_v55  ;;  %v18936_v55 = vand.u32 4294901760, %v16560_v58 }
 0x507   :  { %12771 = vmatmul.mubr.f32.gmra.mxu0 %v6320_v46  ;;  %12844 = vmatpush3.msra.mxu1 %v18919_v1  ;;  %v6369_v46 = vsub.f32 %v16667_v25, %v18571_v57  ;;  %v6389_v57 = vsub.f32 %v16690_v47, %v6388_v38 }
 0x508   :  { %12793 = vmatmul.mubr.f32.gmra.mxu1 %v16506_v26  ;;  %12773 = vmatprep.mubr.f32.mxu0 %v6330_v21 }
 0x509   :  { %12795 = vmatprep.mubr.f32.mxu1 %v16514_v52  ;;  %12869 = vmatprep.subr.mxu0 %v18929_v61  ;;  %v6370_v21 = vand.u32 4294901760, %v6369_v46  ;;  %v6390_v35 = vand.u32 4294901760, %v6389_v57  ;;  %v18932_v57 = vand.u32 4294901760, %v16499_v45  ;;  %v18933_v46 = vand.u32 4294901760, %v16512_v2 }
 0x50a   :  { %12897 = vmatprep.subr.mxu1 %v18918_v33 }
 0x50b   :  { %12774 = vmatmul.mubr.f32.gmra.mxu0 %v6340_v19  ;;  %v6399_v19 = vsub.f32 %v16702_v20, %v6398_v24 }
 0x50c   :  { %12796 = vmatmul.mubr.f32.gmra.mxu1 %v16528_v31  ;;  %12776 = vmatprep.mubr.f32.mxu0 %v6350_v14 }
 0x50d   :  { %12798 = vmatprep.mubr.f32.mxu1 %v16536_v34  ;;  %v6400_v14 = vand.u32 4294901760, %v6399_v19 }
 0x50f   :  { %12777 = vmatmul.mubr.f32.gmra.mxu0 %v6360_v29  ;;  %v18931_v29 = vand.u32 4294901760, %v16496_v37 }
 0x510   :  { %12799 = vmatmul.mubr.f32.gmra.mxu1 %v16562_v32  ;;  %12779 = vmatprep.mubr.f32.mxu0 %v6370_v21 }
 0x511   :  { %12801 = vmatprep.mubr.f32.mxu1 %v16580_v36 }
 0x513   :  { %12780 = vmatmul.mubr.f32.gmra.mxu0 %v6380_v54  ;;  %v18930_v54 = vld [vmem:[#allocation13_spill] sm:$0xff] }
 0x514   :  { %12802 = vmatmul.mubr.f32.gmra.mxu1 %v16597_v48  ;;  %12782 = vmatprep.mubr.f32.mxu0 %v6390_v35 }
 0x515   :  { %12804 = vmatprep.mubr.f32.mxu1 %v16605_v9 }
 0x517   :  { %12783 = vmatmul.mubr.f32.gmra.mxu0 %v6400_v14 }
 0x518   :  { %12805 = vmatmul.mubr.f32.gmra.mxu1 %v16640_v11  ;;  %12817 = vmatprep.mubr.f32.mxu0 %v16496_v37  ;;  %v18934_v37 = vand.u32 4294901760, %v16534_v40 }
 0x519   :  { %12807 = vmatprep.mubr.f32.mxu1 %v16644_v8 }
 0x51b   :  { %12818 = vmatmul.mubr.f32.vlgmr.msra.gmra.mxu0 %v16499_v45  ;;  %v18935_v45 = vand.u32 4294901760, %v16543_v53 }
 0x51c   :  { %12808 = vmatmul.mubr.f32.gmra.mxu1 %v16660_v15  ;;  %12820 = vmatprep.mubr.f32.mxu0 %v16512_v2  ;;  %v18937_v2 = vand.u32 4294901760, %v16571_v44 }
 0x51d   :  { %12810 = vmatprep.mubr.f32.mxu1 %v16669_v39  ;;  %12870 = vmatpush3.msra.mxu0 %v18929_v61 }
 0x51e   :  { %12871 = vmatprep.subr.mxu0 %v18930_v54 }
 0x51f   :  { %12821 = vmatmul.mubr.f32.gmra.mxu0 %v16534_v40  ;;  %v18938_v40 = vand.u32 4294901760, %v16595_v43 }
 0x520   :  { %12811 = vmatmul.mubr.f32.gmra.mxu1 %v16682_v7  ;;  %12823 = vmatprep.mubr.f32.mxu0 %v16543_v53  ;;  %v18939_v53 = vand.u32 4294901760, %v16613_v4 }
 0x521   :  { %12845 = vmatprep.mubr.f32.mxu1 %v18931_v29  ;;  %12872 = vmatpush3.msra.mxu0 %v18930_v54 }
 0x523   :  { %12824 = vmatmul.mubr.f32.gmra.mxu0 %v16560_v58  ;;  %v18940_v58 = vand.u32 4294901760, %v16631_v49 }
 0x524   :  { %12846 = vmatmul.mubr.f32.vlgmr.msra.gmra.mxu1 %v18932_v57  ;;  %12826 = vmatprep.mubr.f32.mxu0 %v16571_v44  ;;  %v18941_v44 = vand.u32 4294901760, %v16638_v62 }
 0x525   :  { %12898 = vmatpush3.msra.mxu1 %v18918_v33  ;;  %12848 = vmatprep.mubr.f32.mxu1 %v18933_v46 }
 0x526   :  { %12899 = vmatprep.subr.mxu1 %v18919_v1 }
 0x527   :  { %12827 = vmatmul.mubr.f32.gmra.mxu0 %v16595_v43  ;;  %12900 = vmatpush3.msra.mxu1 %v18919_v1  ;;  %v18942_v43 = vand.u32 4294901760, %v16658_v41 }
 0x528   :  { %12849 = vmatmul.mubr.f32.gmra.mxu1 %v18934_v37  ;;  %12829 = vmatprep.mubr.f32.mxu0 %v16613_v4  ;;  %v18943_v4 = vand.u32 4294901760, %v16667_v25 }
 0x529   :  { %12851 = vmatprep.mubr.f32.mxu1 %v18935_v45 }
 0x52b   :  { %12830 = vmatmul.mubr.f32.gmra.mxu0 %v16631_v49 }
 0x52c   :  { %12852 = vmatmul.mubr.f32.gmra.mxu1 %v18936_v55  ;;  %12832 = vmatprep.mubr.f32.mxu0 %v16638_v62 }
 0x52d   :  { %12854 = vmatprep.mubr.f32.mxu1 %v18937_v2 }
 0x52f   :  { %12833 = vmatmul.mubr.f32.gmra.mxu0 %v16658_v41 }
 0x530   :  { %12855 = vmatmul.mubr.f32.gmra.mxu1 %v18938_v40  ;;  %12835 = vmatprep.mubr.f32.mxu0 %v16667_v25 }
 0x531   :  { %12857 = vmatprep.mubr.f32.mxu1 %v18939_v53 }
 0x533   :  { %12836 = vmatmul.mubr.f32.gmra.mxu0 %v16680_v59 }
 0x534   :  { %12858 = vmatmul.mubr.f32.gmra.mxu1 %v18940_v58  ;;  %12838 = vmatprep.mubr.f32.mxu0 %v16690_v47  ;;  %v18944_v47 = vld [vmem:[#allocation19_spill] sm:$0xff] }
 0x535   :  { %12860 = vmatprep.mubr.f32.mxu1 %v18941_v44 }
 0x537   :  { %12839 = vmatmul.mubr.f32.gmra.mxu0 %v16702_v20 }
 0x538   :  { %12861 = vmatmul.mubr.f32.gmra.mxu1 %v18942_v43  ;;  %12873 = vmatprep.mubr.f32.mxu0 %v16473_v5 }
 0x539   :  { %12863 = vmatprep.mubr.f32.mxu1 %v18943_v4 }
 0x53b   :  { %12874 = vmatmul.mubr.f32.vlgmr.msra.gmra.mxu0 %v16475_v3 }
 0x53c   :  { %12864 = vmatmul.mubr.f32.gmra.mxu1 %v6378_v23  ;;  %12876 = vmatprep.mubr.f32.mxu0 %v16484_v6 }
 0x53d   :  { %12866 = vmatprep.mubr.f32.mxu1 %v6388_v38 }
 0x53f   :  { %12877 = vmatmul.mubr.f32.gmra.mxu0 %v16506_v26 }
 0x540   :  { %12867 = vmatmul.mubr.f32.gmra.mxu1 %v6398_v24  ;;  %12879 = vmatprep.mubr.f32.mxu0 %v16514_v52 }
 0x541   :  { %12901 = vmatprep.mubr.f32.mxu1 %v16473_v5 }
 0x543   :  { %12880 = vmatmul.mubr.f32.gmra.mxu0 %v16528_v31 }
 0x544   :  { %12902 = vmatmul.mubr.f32.vlgmr.msra.gmra.mxu1 %v16475_v3  ;;  %12882 = vmatprep.mubr.f32.mxu0 %v16536_v34 }
 0x545   :  { %12904 = vmatprep.mubr.f32.mxu1 %v16484_v6 }
 0x547   :  { %12883 = vmatmul.mubr.f32.gmra.mxu0 %v16562_v32 }
 0x548   :  { %12905 = vmatmul.mubr.f32.gmra.mxu1 %v16506_v26  ;;  %12885 = vmatprep.mubr.f32.mxu0 %v16580_v36 }
 0x549   :  { %12907 = vmatprep.mubr.f32.mxu1 %v16514_v52 }
 0x54b   :  { %12886 = vmatmul.mubr.f32.gmra.mxu0 %v16597_v48 }
 0x54c   :  { %12908 = vmatmul.mubr.f32.gmra.mxu1 %v16528_v31  ;;  %12888 = vmatprep.mubr.f32.mxu0 %v16605_v9 }
 0x54d   :  { %12910 = vmatprep.mubr.f32.mxu1 %v16536_v34 }
 0x54f   :  { %12889 = vmatmul.mubr.f32.gmra.mxu0 %v16640_v11 }
 0x550   :  { %12911 = vmatmul.mubr.f32.gmra.mxu1 %v16562_v32  ;;  %12891 = vmatprep.mubr.f32.mxu0 %v16644_v8 }
 0x551   :  { %12913 = vmatprep.mubr.f32.mxu1 %v16580_v36 }
 0x553   :  { %12892 = vmatmul.mubr.f32.gmra.mxu0 %v16660_v15 }
 0x554   :  { %12914 = vmatmul.mubr.f32.gmra.mxu1 %v16597_v48  ;;  %12894 = vmatprep.mubr.f32.mxu0 %v16669_v39 }
 0x555   :  { %12916 = vmatprep.mubr.f32.mxu1 %v16605_v9 }
 0x557   :  { %12895 = vmatmul.mubr.f32.gmra.mxu0 %v16682_v7 }
 0x558   :  { %12917 = vmatmul.mubr.f32.gmra.mxu1 %v16640_v11  ;;  %12957 = vmatprep.mubr.f32.mxu0 %v18944_v47 }
 0x559   :  { %12919 = vmatprep.mubr.f32.mxu1 %v16644_v8 }
 0x55c   :  { %12920 = vmatmul.mubr.f32.gmra.mxu1 %v16660_v15 }
 0x55d   :  { %12922 = vmatprep.mubr.f32.mxu1 %v16669_v39 }
 0x560   :  { %12923 = vmatmul.mubr.f32.gmra.mxu1 %v16682_v7 }
 0x561   :  { %12998 = vmatprep.mubr.f32.mxu1 %v18917_v10 }
 0x565   :  { %v12545_v41 = vpop.f32.mrf.mxu0 }
 0x567   :  { %v16821_v3 = vpop.f32.mrf.mxu0 }
 0x568   :  { %18945 = vst [vmem:[#allocation94_spill] sm:$0xff] %v16821_v3 }
 0x56c   :  { %v12586_v62 = vpop.f32.mrf.mxu1 }
 0x56d   :  { %v5554_v5 = vadd.f32 %v12586_v62, %v12545_v41 }
 0x56e   :  { %v16825_v52 = vpop.f32.mrf.mxu1 }
 0x56f   :  { %18947 = vst [vmem:[#allocation99_spill] sm:$0xff] %v16825_v52 }
 0x57d   :  { %v12548_v6 = vpop.f32.mrf.mxu0 }
 0x57f   :  { %v16823_v26 = vpop.f32.mrf.mxu0 }
 0x580   :  { %18946 = vst [vmem:[#allocation93_spill] sm:$0xff] %v16823_v26 }
 0x582   :  { %v12551_v31 = vpop.f32.mrf.mxu0 }
 0x584   :  { %v12589_v34 = vpop.f32.mrf.mxu1  ;;  %v16827_v32 = vpop.f32.mrf.mxu0 }
 0x585   :  { %v5566_v9 = vadd.f32 %v12589_v34, %v12548_v6  ;;  %18948 = vst [vmem:[#allocation107_spill] sm:$0xff] %v16827_v32 }
 0x586   :  { %v16829_v36 = vpop.f32.mrf.mxu1 }
 0x587   :  { %18949 = vst [vmem:[#allocation101_spill] sm:$0xff] %v16829_v36 }
 0x589   :  { %v12627_v7 = vpop.f32.mrf.mxu0 }
 0x58a   :  { %v5689_v48 = vadd.f32 %v12627_v7, %v5554_v5  ;;  %v12592_v15 = vpop.f32.mrf.mxu1 }
 0x58b   :  { %v5578_v8 = vadd.f32 %v12592_v15, %v12551_v31  ;;  %v16831_v49 = vpop.f32.mrf.mxu0 }
 0x58c   :  { %18950 = vst [vmem:[#allocation105_spill] sm:$0xff] %v16831_v49  ;;  %v16835_v59 = vpop.f32.mrf.mxu1 }
 0x58d   :  { %18952 = vst [vmem:[#allocation91_spill] sm:$0xff] %v16835_v59 }
 0x58f   :  { %v12630_v11 = vpop.f32.mrf.mxu0 }
 0x590   :  { %v5703_v39 = vadd.f32 %v12630_v11, %v5566_v9 }
 0x591   :  { %v16833_v25 = vpop.f32.mrf.mxu0 }
 0x592   :  { %18951 = vst [vmem:[#allocation92_spill] sm:$0xff] %v16833_v25 }
 0x594   :  { %v12633_v23 = vpop.f32.mrf.mxu0  ;;  %v12668_v20 = vpop.f32.mrf.mxu1 }
 0x595   :  { %v5717_v38 = vadd.f32 %v12633_v23, %v5578_v8  ;;  %v5814_v24 = vadd.f32 %v12668_v20, %v5689_v48 }
 0x596   :  { %v16837_v21 = vpop.f32.mrf.mxu1  ;;  %v16841_v46 = vpop.f32.mrf.mxu0 }
 0x597   :  { %18953 = vst [vmem:[#allocation97_spill] sm:$0xff] %v16837_v21  ;;  %18955 = vst [vmem:[#allocation108_spill] sm:$0xff] %v16841_v46 }
 0x59a   :  { %v12671_v19 = vpop.f32.mrf.mxu1 }
 0x59b   :  { %v5830_v35 = vadd.f32 %v12671_v19, %v5703_v39 }
 0x59c   :  { %v16839_v14 = vpop.f32.mrf.mxu1 }
 0x59d   :  { %18954 = vst [vmem:[#allocation106_spill] sm:$0xff] %v16839_v14 }
 0x59f   :  { %v12674_v29 = vpop.f32.mrf.mxu1 }
 0x5a0   :  { %v5846_v57 = vadd.f32 %v12674_v29, %v5717_v38 }
 0x5a1   :  { %v16847_v58 = vpop.f32.mrf.mxu1 }
 0x5a2   :  { %18958 = vst [vmem:[#allocation103_spill] sm:$0xff] %v16847_v58 }
 0x5af   :  { %v12709_v37 = vpop.f32.mrf.mxu0 }
 0x5b0   :  { %v5971_v45 = vadd.f32 %v12709_v37, %v5814_v24 }
 0x5b1   :  { %v16843_v55 = vpop.f32.mrf.mxu0 }
 0x5b2   :  { %18956 = vst [vmem:[#allocation88_spill] sm:$0xff] %v16843_v55 }
 0x5b3   :  { %v12712_v2 = vpop.f32.mrf.mxu0 }
 0x5b4   :  { %v5983_v40 = vadd.f32 %v12712_v2, %v5830_v35 }
 0x5b5   :  { %v16845_v53 = vpop.f32.mrf.mxu0 }
 0x5b6   :  { %18957 = vst [vmem:[#allocation98_spill] sm:$0xff] %v16845_v53 }
 0x5b7   :  { %v12715_v44 = vpop.f32.mrf.mxu0 }
 0x5b8   :  { %v5995_v43 = vadd.f32 %v12715_v44, %v5846_v57  ;;  %v12750_v4 = vpop.f32.mrf.mxu1 }
 0x5b9   :  { %v16849_v41 = vadd.f32 %v12750_v4, %v5971_v45  ;;  %v16851_v62 = vpop.f32.mrf.mxu0 }
 0x5ba   :  { %18960 = vst [vmem:[#allocation89_spill] sm:$0xff] %v16851_v62  ;;  %v16853_v5 = vpop.f32.mrf.mxu1 }
 0x5bb   :  { %18959 = vst [vmem:[#allocation90_spill] sm:$0xff] %v16849_v41  ;;  %18961 = vst [vmem:[#allocation95_spill] sm:$0xff] %v16853_v5  ;;  %v12763_v34 = vpop.f32.mrf.mxu0 }
 0x5bc   :  { %v12753_v9 = vpop.f32.mrf.mxu1 }
 0x5bd   :  { %v16857_v7 = vadd.f32 %v12753_v9, %v5983_v40  ;;  %v16859_v48 = vpop.f32.mrf.mxu0 }
 0x5be   :  { %v16861_v15 = vpop.f32.mrf.mxu1 }
 0x5bf   :  { %18963 = vst [vmem:[#allocation104_spill] sm:$0xff] %v16857_v7  ;;  %18964 = vst [vmem:[#allocation96_spill] sm:$0xff] %v16861_v15  ;;  %v12766_v39 = vpop.f32.mrf.mxu0 }
 0x5c0   :  { %v12756_v23 = vpop.f32.mrf.mxu1 }
 0x5c1   :  { %v16865_v20 = vadd.f32 %v12756_v23, %v5995_v43  ;;  %v16867_v38 = vpop.f32.mrf.mxu0 }
 0x5c2   :  { %v16869_v24 = vpop.f32.mrf.mxu1 }
 0x5c3   :  { %18966 = vst [vmem:[#allocation100_spill] sm:$0xff] %v16865_v20  ;;  %18967 = vst [vmem:[#allocation102_spill] sm:$0xff] %v16869_v24  ;;  %v12769_v29 = vpop.f32.mrf.mxu0 }
 0x5c4   :  { %v12791_v57 = vpop.f32.mrf.mxu1 }
 0x5c5   :  { %v6490_v37 = vadd.f32 %v12791_v57, %v12763_v34  ;;  %v6292_v45 = vpop.f32.mrf.mxu0 }
 0x5c6   :  { %v16873_v2 = vpop.f32.mrf.mxu1 }
 0x5c7   :  { %v12772_v40 = vpop.f32.mrf.mxu0 }
 0x5c8   :  { %v12794_v44 = vpop.f32.mrf.mxu1 }
 0x5c9   :  { %v6502_v4 = vadd.f32 %v12794_v44, %v12766_v39  ;;  %v16875_v9 = vpop.f32.mrf.mxu0 }
 0x5ca   :  { %v16877_v43 = vpop.f32.mrf.mxu1 }
 0x5cb   :  { %v12775_v23 = vpop.f32.mrf.mxu0 }
 0x5cc   :  { %v12797_v11 = vpop.f32.mrf.mxu1 }
 0x5cd   :  { %v6514_v31 = vadd.f32 %v12797_v11, %v12769_v29  ;;  %v16879_v24 = vpop.f32.mrf.mxu0 }
 0x5ce   :  { %v6507_v62 = vpop.f32.mrf.mxu1 }
 0x5cf   :  { %v12778_v35 = vpop.f32.mrf.mxu0 }
 0x5d0   :  { %v12800_v58 = vpop.f32.mrf.mxu1 }
 0x5d1   :  { %v16881_v15 = vadd.f32 %v12800_v58, %v12772_v40  ;;  %v16883_v34 = vpop.f32.mrf.mxu0 }
 0x5d2   :  { %v16885_v57 = vpop.f32.mrf.mxu1 }
 0x5d3   :  { %v12781_v46 = vpop.f32.mrf.mxu0 }
 0x5d4   :  { %v12803_v39 = vpop.f32.mrf.mxu1 }
 0x5d5   :  { %v16887_v44 = vadd.f32 %v12803_v39, %v12775_v23  ;;  %v16889_v53 = vpop.f32.mrf.mxu0 }
 0x5d6   :  { %v16891_v59 = vpop.f32.mrf.mxu1 }
 0x5d7   :  { %v16893_v11 = vpop.f32.mrf.mxu0 }
 0x5d8   :  { %v12806_v29 = vpop.f32.mrf.mxu1 }
 0x5d9   :  { %v16895_v32 = vadd.f32 %v12806_v29, %v12778_v35  ;;  %v16897_v5 = vpop.f32.mrf.mxu0 }
 0x5da   :  { %v16899_v58 = vpop.f32.mrf.mxu1 }
 0x5db   :  { %v12819_v40 = vpop.f32.mrf.mxu0 }
 0x5dc   :  { %v12809_v14 = vpop.f32.mrf.mxu1  ;;  %v6657_v55 = vadd.f32 %v12819_v40, %v6490_v37 }
 0x5dd   :  { %v16901_v25 = vadd.f32 %v12809_v14, %v12781_v46  ;;  %v16903_v23 = vpop.f32.mrf.mxu0 }
 0x5de   :  { %18969 = vst [vmem:[#allocation109_spill] sm:$0xff] %v16903_v23  ;;  %v16905_v39 = vpop.f32.mrf.mxu1 }
 0x5df   :  { %v12822_v21 = vpop.f32.mrf.mxu0  ;;  %v6556_v23 = vadd.f32 %v16905_v39, %v16889_v53 }
 0x5e0   :  { %v16907_v36 = vpop.f32.mrf.mxu1  ;;  %v6671_v26 = vadd.f32 %v12822_v21, %v6502_v4  ;;  %v6508_v4 = vadd.f32 %v6507_v62, %v6292_v45 }
 0x5e1   :  { %v16909_v49 = vpop.f32.mrf.mxu0 }
 0x5e2   :  { %v16911_v35 = vpop.f32.mrf.mxu1 }
 0x5e3   :  { %v12825_v29 = vpop.f32.mrf.mxu0 }
 0x5e4   :  { %v6685_v52 = vadd.f32 %v12825_v29, %v6514_v31  ;;  %v12847_v3 = vpop.f32.mrf.mxu1 }
 0x5e5   :  { %v16913_v19 = vadd.f32 %v12847_v3, %v6657_v55  ;;  %v6677_v37 = vpop.f32.mrf.mxu0 }
 0x5e6   :  { %v16915_v14 = vpop.f32.mrf.mxu1  ;;  %v6678_v31 = vadd.f32 %v6677_v37, %v6508_v4 }
 0x5e7   :  { %18970 = vst [vmem:[#allocation110_spill] sm:$0xff] %v16913_v19  ;;  %18971 = vst [vmem:[#allocation111_spill] sm:$0xff] %v16915_v14  ;;  %v16917_v46 = vpop.f32.mrf.mxu0 }
 0x5e8   :  { %v12850_v40 = vpop.f32.mrf.mxu1 }
 0x5e9   :  { %v16919_v20 = vadd.f32 %v12850_v40, %v6671_v26  ;;  %v16921_v8 = vpop.f32.mrf.mxu0 }
 0x5ea   :  { %v16923_v21 = vpop.f32.mrf.mxu1 }
 0x5eb   :  { %18972 = vst [vmem:[#allocation112_spill] sm:$0xff] %v16919_v20  ;;  %18973 = vst [vmem:[#allocation113_spill] sm:$0xff] %v16923_v21  ;;  %v16925_v7 = vpop.f32.mrf.mxu0 }
 0x5ec   :  { %v12853_v6 = vpop.f32.mrf.mxu1 }
 0x5ed   :  { %v16927_v29 = vadd.f32 %v12853_v6, %v6685_v52  ;;  %v16929_v3 = vpop.f32.mrf.mxu0 }
 0x5ee   :  { %v6861_v55 = vpop.f32.mrf.mxu1 }
 0x5ef   :  { %18974 = vst [vmem:[#allocation114_spill] sm:$0xff] %v16927_v29  ;;  %v16931_v41 = vadd.f32 %v6861_v55, %v6678_v31  ;;  %v12834_v47 = vpop.f32.mrf.mxu0 }
 0x5f0   :  { %v16933_v54 = vpop.f32.mrf.mxu1  ;;  %v6727_v21 = vadd.f32 %v12834_v47, %v16895_v32 }
 0x5f1   :  { %18975 = vst [vmem:[#allocation115_spill] sm:$0xff] %v16931_v41  ;;  %v6719_v26 = vpop.f32.mrf.mxu0  ;;  %v6568_v41 = vadd.f32 %v16911_v35, %v16897_v5 }
 0x5f2   :  { %v16935_v40 = vpop.f32.mrf.mxu1 }
 0x5f3   :  { %v12837_v61 = vpop.f32.mrf.mxu0 }
 0x5f4   :  { %v12859_v1 = vpop.f32.mrf.mxu1 }
 0x5f5   :  { %v6733_v62 = vpop.f32.mrf.mxu0 }
 0x5f6   :  { %v16937_v45 = vpop.f32.mrf.mxu1 }
 0x5f7   :  { %v12840_v33 = vpop.f32.mrf.mxu0 }
 0x5f8   :  { %v12862_v37 = vpop.f32.mrf.mxu1 }
 0x5f9   :  { %v6747_v52 = vpop.f32.mrf.mxu0  ;;  %v6918_v39 = vadd.f32 %v12862_v37, %v6727_v21 }
 0x5fa   :  { %v6909_v6 = vpop.f32.mrf.mxu1 }
 0x5fb   :  { %v16939_v4 = vpop.f32.mrf.mxu0 }
 0x5fc   :  { %18976 = vst [vmem:[#allocation116_spill] sm:$0xff] %v16939_v4  ;;  %v12865_v10 = vpop.f32.mrf.mxu1 }
 0x5fd   :  { %v16941_v31 = vpop.f32.mrf.mxu0 }
 0x5fe   :  { %18977 = vst [vmem:[#allocation117_spill] sm:$0xff] %v16941_v31  ;;  %v6925_v55 = vpop.f32.mrf.mxu1 }
 0x5ff   :  { %v16943_v42 = vpop.f32.mrf.mxu0 }
 0x600   :  { %18978 = vst [vmem:[#allocation118_spill] sm:$0xff] %v16943_v42  ;;  %v12868_v12 = vpop.f32.mrf.mxu1  ;;  %v6544_v42 = vadd.f32 %v16899_v58, %v16883_v34  ;;  %v6532_v34 = vadd.f32 %v16891_v59, %v16879_v24 }
 0x601   :  { %v16945_v60 = vpop.f32.mrf.mxu0 }
 0x602   :  { %18979 = vst [vmem:[#allocation119_spill] sm:$0xff] %v16945_v60  ;;  %v6941_v51 = vpop.f32.mrf.mxu1 }
 0x603   :  { %v16947_v22 = vpop.f32.mrf.mxu0 }
 0x604   :  { %18980 = vst [vmem:[#allocation120_spill] sm:$0xff] %v16947_v22  ;;  %v16949_v56 = vpop.f32.mrf.mxu1 }
 0x605   :  { %18981 = vst [vmem:[#allocation121_spill] sm:$0xff] %v16949_v56  ;;  %v16951_v27 = vpop.f32.mrf.mxu0 }
 0x606   :  { %18982 = vst [vmem:[#allocation122_spill] sm:$0xff] %v16951_v27  ;;  %v16953_v50 = vpop.f32.mrf.mxu1 }
 0x607   :  { %18983 = vst [vmem:[#allocation123_spill] sm:$0xff] %v16953_v50  ;;  %v16955_v17 = vpop.f32.mrf.mxu0 }
 0x608   :  { %v16957_v63 = vpop.f32.mrf.mxu1 }
 0x609   :  { %18984 = vst [vmem:[#allocation124_spill] sm:$0xff] %v16957_v63  ;;  %v16959_v13 = vpop.f32.mrf.mxu0 }
 0x60a   :  { %v16961_v30 = vpop.f32.mrf.mxu1 }
 0x60b   :  { %18985 = vst [vmem:[#allocation125_spill] sm:$0xff] %v16961_v30  ;;  %v12887_v18 = vpop.f32.mrf.mxu0  ;;  %v6741_v30 = vadd.f32 %v12837_v61, %v16901_v25 }
 0x60c   :  { %v16963_v28 = vpop.f32.mrf.mxu1 }
 0x60d   :  { %18986 = vst [vmem:[#allocation126_spill] sm:$0xff] %v16963_v28  ;;  %v7074_v16 = vpop.f32.mrf.mxu0  ;;  %v6734_v28 = vadd.f32 %v6733_v62, %v6556_v23  ;;  %v6934_v27 = vadd.f32 %v12865_v10, %v6741_v30 }
 0x60e   :  { %v16965_v0 = vpop.f32.mrf.mxu1 }
 0x60f   :  { %18987 = vst [vmem:[#allocation127_spill] sm:$0xff] %v16965_v0  ;;  %v12890_v31 = vpop.f32.mrf.mxu0  ;;  %v6574_v0 = vadd.f32 %v16907_v36, %v16893_v11  ;;  %v6926_v61 = vadd.f32 %v6925_v55, %v6734_v28  ;;  %v6713_v36 = vadd.f32 %v16925_v7, %v16887_v44  ;;  %v6748_v11 = vadd.f32 %v6747_v52, %v6568_v41 }
 0x610   :  { %v16967_v56 = vpop.f32.mrf.mxu1  ;;  %v7093_v10 = vadd.f32 %v12890_v31, %v6918_v39  ;;  %v6520_v41 = vadd.f32 %v16885_v57, %v16875_v9 }
 0x611   :  { %v7086_v4 = vpop.f32.mrf.mxu0  ;;  %v6755_v53 = vadd.f32 %v12840_v33, %v6574_v0  ;;  %v6902_v23 = vadd.f32 %v12859_v1, %v6713_v36  ;;  %v6942_v0 = vadd.f32 %v6941_v51, %v6748_v11  ;;  %v18993_v36 = vld [vmem:[#allocation122_spill] sm:$0xff] }
 0x612   :  { %v16969_v19 = vpop.f32.mrf.mxu1 }
 0x613   :  { %18988 = vst [vmem:[#allocation128_spill] sm:$0xff] %v16969_v19  ;;  %v12893_v50 = vpop.f32.mrf.mxu0  ;;  %v6720_v19 = vadd.f32 %v6719_v26, %v6544_v42  ;;  %v6950_v30 = vadd.f32 %v12868_v12, %v6755_v53  ;;  %v6706_v42 = vadd.f32 %v16929_v3, %v6532_v34  ;;  %v6699_v12 = vadd.f32 %v16917_v46, %v16881_v15  ;;  %v18992_v34 = vld [vmem:[#allocation115_spill] sm:$0xff] }
 0x614   :  { %v12915_v14 = vpop.f32.mrf.mxu1  ;;  %v7105_v25 = vadd.f32 %v12893_v50, %v6934_v27  ;;  %v7081_v7 = vadd.f32 %v12887_v18, %v6902_v23  ;;  %v6484_v46 = vadd.f32 %v16873_v2, %v16859_v48  ;;  %v6496_v48 = vadd.f32 %v16877_v43, %v16867_v38  ;;  %v18990_v43 = vld [vmem:[#allocation120_spill] sm:$0xff] }
 0x615   :  { %v7098_v60 = vpop.f32.mrf.mxu0  ;;  %v6910_v47 = vadd.f32 %v6909_v6, %v6720_v19  ;;  %v7051_v11 = vadd.f32 %v18993_v36, %v18992_v34  ;;  %v19006_v36 = vld [vmem:[#allocation117_spill] sm:$0xff] }
 0x616   :  { %v7237_v63 = vpop.f32.mrf.mxu1  ;;  %v7099_v58 = vadd.f32 %v7098_v60, %v6926_v61  ;;  %v6894_v60 = vadd.f32 %v16937_v45, %v6706_v42  ;;  %v7244_v26 = vadd.f32 %v12915_v14, %v7081_v7 }
 0x617   :  { %v12896_v22 = vpop.f32.mrf.mxu0  ;;  %v7087_v33 = vadd.f32 %v7086_v4, %v6910_v47  ;;  %v18994_v47 = vld [vmem:[#allocation126_spill] sm:$0xff] }
 0x618   :  { %v12918_v20 = vpop.f32.mrf.mxu1  ;;  %v7117_v27 = vadd.f32 %v12896_v22, %v6950_v30  ;;  %v6692_v22 = vadd.f32 %v16921_v8, %v6520_v41  ;;  %v7075_v3 = vadd.f32 %v7074_v16, %v6894_v60 }
 0x619   :  { %v7110_v28 = vpop.f32.mrf.mxu0  ;;  %v7256_v35 = vadd.f32 %v12918_v20, %v7093_v10  ;;  %v6886_v20 = vadd.f32 %v16933_v54, %v6699_v12 }
 0x61a   :  { %v7249_v29 = vpop.f32.mrf.mxu1  ;;  %v7111_v1 = vadd.f32 %v7110_v28, %v6942_v0  ;;  %v7238_v45 = vadd.f32 %v7237_v63, %v7075_v3  ;;  %v17023_v63 = vand.u32 4294901760, %v7244_v26  ;;  %v18991_v31 = vld [vmem:[#allocation128_spill] sm:$0xff]  ;;  %v18995_v0 = vld [vmem:[#allocation113_spill] sm:$0xff] }
 0x61b   :  { %v7250_v51 = vadd.f32 %v7249_v29, %v7087_v33  ;;  %v16997_v9 = vand.u32 4294901760, %v7256_v35  ;;  %v6878_v29 = vadd.f32 %v16935_v40, %v6692_v22  ;;  %v7069_v8 = vadd.f32 %v16955_v17, %v6886_v20  ;;  %v18996_v28 = vld [vmem:[#allocation112_spill] sm:$0xff] }
 0x61c   :  { %v12921_v32 = vpop.f32.mrf.mxu1  ;;  %v17043_v53 = vand.u32 4294901760, %v7238_v45  ;;  %v17064_v10 = vsub.f32 %v7244_v26, %v17023_v63  ;;  %v19001_v20 = vld [vmem:[#allocation124_spill] sm:$0xff] }
 0x61d   :  { %v7268_v5 = vadd.f32 %v12921_v32, %v7105_v25  ;;  %v17008_v54 = vand.u32 4294901760, %v7250_v51  ;;  %v7063_v2 = vadd.f32 %v16959_v13, %v6878_v29  ;;  %v7232_v17 = vadd.f32 %v16967_v56, %v7069_v8  ;;  %v18989_v56 = vld [vmem:[#allocation114_spill] sm:$0xff]  ;;  %v19002_v8 = vld [vmem:[#allocation111_spill] sm:$0xff] }
 0x61e   :  { %v7261_v50 = vpop.f32.mrf.mxu1  ;;  %v17027_v40 = vsub.f32 %v7256_v35, %v16997_v9  ;;  %v6664_v13 = vadd.f32 %v16909_v49, %v6496_v48  ;;  %v7057_v4 = vadd.f32 %v18990_v43, %v18989_v56  ;;  %v18998_v35 = vld [vmem:[#allocation127_spill] sm:$0xff]  ;;  %v17083_v12 = vsub.f32 %v7238_v45, %v17043_v53  ;;  %v19003_v48 = vld [vmem:[#allocation110_spill] sm:$0xff]  ;;  %v19005_v56 = vld [vmem:[#allocation125_spill] sm:$0xff] }
 0x61f   :  { %v16986_v59 = vand.u32 4294901760, %v7268_v5  ;;  %v7262_v24 = vadd.f32 %v7261_v50, %v7099_v58  ;;  %v7226_v55 = vadd.f32 %v18991_v31, %v7063_v2  ;;  %v17047_v39 = vsub.f32 %v7250_v51, %v17008_v54  ;;  %v18997_v50 = vld [vmem:[#allocation118_spill] sm:$0xff]  ;;  %v19004_v2 = vld [vmem:[#allocation116_spill] sm:$0xff] }
 0x620   :  { %v12924_v19 = vpop.f32.mrf.mxu1  ;;  %v7220_v32 = vadd.f32 %v18994_v47, %v7057_v4  ;;  %v17061_v30 = vand.u32 4294901760, %v7232_v17  ;;  %v17073_v23 = vand.u32 4294901760, %v17027_v40  ;;  %v6846_v33 = vadd.f32 %v18995_v0, %v6664_v13  ;;  %v19007_v47 = vld [vmem:[#allocation121_spill] sm:$0xff] }
 0x621   :  { %v16993_v44 = vand.u32 4294901760, %v7262_v24  ;;  %v7280_v21 = vadd.f32 %v12924_v19, %v7117_v27  ;;  %v17000_v15 = vsub.f32 %v7268_v5, %v16986_v59  ;;  %v7045_v27 = vadd.f32 %v18997_v50, %v18996_v28  ;;  %v19008_v28 = vld [vmem:[#allocation123_spill] sm:$0xff] }
 0x622   :  { %v7273_v62 = vpop.f32.mrf.mxu1  ;;  %v17079_v41 = vand.u32 4294901760, %v7226_v55  ;;  %v17089_v19 = vand.u32 4294901760, %v17047_v39  ;;  %v17094_v26 = vand.u32 4294901760, %v7220_v32  ;;  %v7456_v29 = vsub.f32 %v17027_v40, %v17073_v23 }
 0x623   :  { %v17002_v57 = vand.u32 4294901760, %v7280_v21  ;;  %v7274_v18 = vadd.f32 %v7273_v62, %v7111_v1  ;;  %v17011_v16 = vsub.f32 %v7262_v24, %v16993_v44  ;;  %v17037_v38 = vand.u32 4294901760, %v17000_v15  ;;  %v18999_v1 = vld [vmem:[#allocation109_spill] sm:$0xff] }
 0x624   :  { %v7214_v24 = vadd.f32 %v18998_v35, %v7051_v11  ;;  %v6650_v51 = vadd.f32 %v18999_v1, %v6484_v46  ;;  %v7208_v3 = vadd.f32 %v19001_v20, %v7045_v27  ;;  %v17098_v62 = vsub.f32 %v7232_v17, %v17061_v30 }
 0x625   :  { %v17014_v14 = vsub.f32 %v7280_v21, %v17002_v57  ;;  %v17016_v37 = vand.u32 4294901760, %v7274_v18  ;;  %12925 = vmatprep.subr.mxu0 %v17002_v57  ;;  %v17056_v49 = vand.u32 4294901760, %v17011_v16  ;;  %v7442_v42 = vsub.f32 %v17000_v15, %v17037_v38  ;;  %v19000_v21 = vld [vmem:[#allocation119_spill] sm:$0xff] }
 0x626   :  { %12926 = vmatpush3.msra.mxu0 %v17002_v57  ;;  %v7039_v22 = vadd.f32 %v19000_v21, %v6846_v33  ;;  %v17104_v46 = vand.u32 4294901760, %v17064_v10  ;;  %v6830_v45 = vadd.f32 %v19002_v8, %v6650_v51  ;;  %v7033_v13 = vadd.f32 %v19004_v2, %v19003_v48 }
 0x627   :  { %v17030_v52 = vsub.f32 %v7274_v18, %v17016_v37  ;;  %12927 = vmatprep.subr.mxu0 %v17016_v37  ;;  %v17034_v6 = vand.u32 4294901760, %v17014_v14  ;;  %v7449_v7 = vsub.f32 %v17011_v16, %v17056_v49  ;;  %v7443_v18 = vand.u32 4294901760, %v7442_v42 }
 0x628   :  { %12928 = vmatpush3.msra.mxu0 %v17016_v37  ;;  %v7202_v43 = vadd.f32 %v19005_v56, %v7039_v22  ;;  %v17110_v4 = vand.u32 4294901760, %v7214_v24  ;;  %v17114_v17 = vsub.f32 %v7226_v55, %v17079_v41  ;;  %v17120_v34 = vand.u32 4294901760, %v17083_v12 }
 0x629   :  { %12929 = vmatprep.subr.mxu0 %v16986_v59  ;;  %v7428_v61 = vsub.f32 %v17014_v14, %v17034_v6  ;;  %v17053_v25 = vand.u32 4294901760, %v17030_v52  ;;  %v7450_v31 = vand.u32 4294901760, %v7449_v7  ;;  %v7027_v11 = vadd.f32 %v19006_v36, %v6830_v45 }
 0x62a   :  { %12930 = vmatpush3.msra.mxu0 %v16986_v59  ;;  %v17128_v55 = vsub.f32 %v7220_v32, %v17094_v26  ;;  %v7457_v42 = vand.u32 4294901760, %v7456_v29  ;;  %v7470_v0 = vsub.f32 %v17064_v10, %v17104_v46  ;;  %v17134_v33 = vand.u32 4294901760, %v17098_v62 }
 0x62b   :  { %12931 = vmatprep.subr.mxu0 %v16993_v44  ;;  %v7429_v58 = vand.u32 4294901760, %v7428_v61  ;;  %v7435_v5 = vsub.f32 %v17030_v52, %v17053_v25  ;;  %v7463_v61 = vsub.f32 %v17047_v39, %v17089_v19  ;;  %v7190_v50 = vadd.f32 %v19008_v28, %v7027_v11 }
 0x62c   :  { %12932 = vmatpush3.msra.mxu0 %v16993_v44  ;;  %v17137_v27 = vand.u32 4294901760, %v7202_v43  ;;  %v17141_v32 = vsub.f32 %v7214_v24, %v17110_v4  ;;  %v17147_v7 = vand.u32 4294901760, %v17114_v17  ;;  %v7471_v24 = vand.u32 4294901760, %v7470_v0 }
 0x62d   :  { %12933 = vmatprep.subr.mxu0 %v16997_v9  ;;  %12966 = vmatprep.subr.mxu1 %v7429_v58  ;;  %v7436_v60 = vand.u32 4294901760, %v7435_v5  ;;  %v17124_v5 = vand.u32 4294901760, %v7208_v3  ;;  %v7464_v35 = vand.u32 4294901760, %v7463_v61  ;;  %v7484_v21 = vsub.f32 %v17098_v62, %v17134_v33 }
 0x62e   :  { %12934 = vmatpush3.msra.mxu0 %v16997_v9  ;;  %12967 = vmatpush3.msra.mxu1 %v7429_v58  ;;  %v7196_v58 = vadd.f32 %v19007_v47, %v7033_v13  ;;  %v17159_v22 = vand.u32 4294901760, %v17128_v55  ;;  %v17161_v20 = vand.u32 4294901760, %v7190_v50  ;;  %v7491_v29 = vsub.f32 %v17114_v17, %v17147_v7 }
 0x62f   :  { %12935 = vmatprep.subr.mxu0 %v17008_v54  ;;  %12968 = vmatprep.subr.mxu1 %v7436_v60  ;;  %v17153_v51 = vsub.f32 %v7208_v3, %v17124_v5  ;;  %v17171_v8 = vand.u32 4294901760, %v17141_v32  ;;  %v7485_v48 = vand.u32 4294901760, %v7484_v21 }
 0x630   :  { %12936 = vmatpush3.msra.mxu0 %v17008_v54  ;;  %12969 = vmatpush3.msra.mxu1 %v7436_v60  ;;  %v7477_v60 = vsub.f32 %v17083_v12, %v17120_v34  ;;  %v17149_v1 = vand.u32 4294901760, %v7196_v58  ;;  %v7498_v2 = vsub.f32 %v17128_v55, %v17159_v22  ;;  %v17185_v56 = vsub.f32 %v7190_v50, %v17161_v20 }
 0x631   :  { %12937 = vmatprep.subr.mxu0 %v17023_v63  ;;  %12970 = vmatprep.subr.mxu1 %v7443_v18  ;;  %v17181_v13 = vand.u32 4294901760, %v17153_v51 }
 0x632   :  { %12938 = vmatpush3.msra.mxu0 %v17023_v63  ;;  %12971 = vmatpush3.msra.mxu1 %v7443_v18  ;;  %v17165_v18 = vsub.f32 %v7202_v43, %v17137_v27  ;;  %v7478_v3 = vand.u32 4294901760, %v7477_v60  ;;  %v17175_v45 = vsub.f32 %v7196_v58, %v17149_v1  ;;  %v7492_v43 = vand.u32 4294901760, %v7491_v29  ;;  %v19026_v29 = vld [vmem:[#allocation35_spill] sm:$0xff] }
 0x633   :  { %12939 = vmatprep.subr.mxu0 %v17043_v53  ;;  %12972 = vmatprep.subr.mxu1 %v7450_v31  ;;  %v7499_v36 = vand.u32 4294901760, %v7498_v2  ;;  %v7512_v11 = vsub.f32 %v17153_v51, %v17181_v13  ;;  %v17205_v0 = vand.u32 4294901760, %v17185_v56 }
 0x634   :  { %12940 = vmatpush3.msra.mxu0 %v17043_v53  ;;  %12973 = vmatpush3.msra.mxu1 %v7450_v31  ;;  %v7505_v31 = vsub.f32 %v17141_v32, %v17171_v8  ;;  %v17191_v61 = vand.u32 4294901760, %v17165_v18  ;;  %v17198_v47 = vand.u32 4294901760, %v17175_v45 }
 0x635   :  { %12941 = vmatprep.subr.mxu0 %v17061_v30  ;;  %12974 = vmatprep.subr.mxu1 %v7457_v42  ;;  %v7513_v28 = vand.u32 4294901760, %v7512_v11  ;;  %v7533_v60 = vsub.f32 %v17185_v56, %v17205_v0 }
 0x636   :  { %12942 = vmatpush3.msra.mxu0 %v17061_v30  ;;  %12975 = vmatpush3.msra.mxu1 %v7457_v42  ;;  %v7506_v58 = vand.u32 4294901760, %v7505_v31  ;;  %v7519_v42 = vsub.f32 %v17165_v18, %v17191_v61  ;;  %v7526_v50 = vsub.f32 %v17175_v45, %v17198_v47 }
 0x637   :  { %12943 = vmatprep.subr.mxu0 %v17079_v41  ;;  %12976 = vmatprep.subr.mxu1 %v7464_v35 }
 0x638   :  { %12944 = vmatpush3.msra.mxu0 %v17079_v41  ;;  %12977 = vmatpush3.msra.mxu1 %v7464_v35  ;;  %v7520_v35 = vand.u32 4294901760, %v7519_v42  ;;  %v7527_v21 = vand.u32 4294901760, %v7526_v50  ;;  %v13644_v42 = vld [vmem:[%s18434_s2 + $0x28] sm:$0xff]  ;;  %v13645_v50 = vld [vmem:[%s18433_s1 + $0x30] sm:$0xff] }
 0x639   :  { %12945 = vmatprep.subr.mxu0 %v17094_v26  ;;  %12978 = vmatprep.subr.mxu1 %v7471_v24 }
 0x63a   :  { %12946 = vmatpush3.msra.mxu0 %v17094_v26  ;;  %12979 = vmatpush3.msra.mxu1 %v7471_v24  ;;  %v19009_v24 = vld [vmem:[#allocation38_spill] sm:$0xff] }
 0x63b   :  { %12947 = vmatprep.subr.mxu0 %v17110_v4  ;;  %12980 = vmatprep.subr.mxu1 %v7478_v3 }
 0x63c   :  { %12948 = vmatpush3.msra.mxu0 %v17110_v4  ;;  %12981 = vmatpush3.msra.mxu1 %v7478_v3  ;;  %v7534_v3 = vand.u32 4294901760, %v7533_v60 }
 0x63d   :  { %12949 = vmatprep.subr.mxu0 %v17124_v5  ;;  %12982 = vmatprep.subr.mxu1 %v7485_v48 }
 0x63e   :  { %12950 = vmatpush3.msra.mxu0 %v17124_v5  ;;  %12983 = vmatpush3.msra.mxu1 %v7485_v48  ;;  %v13638_v48 = vld [vmem:[%s18434_s2 + $0x10] sm:$0xff] }
 0x63f   :  { %12951 = vmatprep.subr.mxu0 %v17137_v27  ;;  %12984 = vmatprep.subr.mxu1 %v7492_v43 }
 0x640   :  { %12952 = vmatpush3.msra.mxu0 %v17137_v27  ;;  %12985 = vmatpush3.msra.mxu1 %v7492_v43  ;;  %v13640_v43 = vld [vmem:[%s18434_s2 + $0x18] sm:$0xff] }
 0x641   :  { %12953 = vmatprep.subr.mxu0 %v17149_v1  ;;  %12986 = vmatprep.subr.mxu1 %v7499_v36 }
 0x642   :  { %12954 = vmatpush3.msra.mxu0 %v17149_v1  ;;  %12987 = vmatpush3.msra.mxu1 %v7499_v36  ;;  %v13642_v36 = vld [vmem:[%s18434_s2 + $0x20] sm:$0xff] }
 0x643   :  { %12955 = vmatprep.subr.mxu0 %v17161_v20  ;;  %12988 = vmatprep.subr.mxu1 %v7506_v58 }
 0x644   :  { %12956 = vmatpush3.msra.mxu0 %v17161_v20  ;;  %12989 = vmatpush3.msra.mxu1 %v7506_v58  ;;  %v13643_v58 = vld [vmem:[%s18433_s1 + $0x28] sm:$0xff] }
 0x645   :  { %12990 = vmatprep.subr.mxu1 %v7513_v28  ;;  %13007 = vmatprep.subr.mxu0 %v17014_v14 }
 0x646   :  { %12958 = vmatmul.mubr.f32.vlgmr.msra.gmra.mxu0 %v19009_v24  ;;  %12991 = vmatpush3.msra.mxu1 %v7513_v28  ;;  %v8144_v28 = vmul.f32 %v13644_v42, %v13643_v58  ;;  %v19032_v42 = vld [vmem:[#allocation8_spill] sm:$0xff] }
 0x647   :  { %13008 = vmatpush3.msra.mxu0 %v17014_v14  ;;  %12992 = vmatprep.subr.mxu1 %v7520_v35  ;;  %v19010_v14 = vld [vmem:[#allocation24_spill] sm:$0xff] }
 0x648   :  { %13009 = vmatprep.subr.mxu0 %v17030_v52  ;;  %12993 = vmatpush3.msra.mxu1 %v7520_v35  ;;  %v13646_v35 = vld [vmem:[%s18434_s2 + $0x30] sm:$0xff] }
 0x649   :  { %13010 = vmatpush3.msra.mxu0 %v17030_v52  ;;  %12994 = vmatprep.subr.mxu1 %v7527_v21  ;;  %v19014_v52 = vld [vmem:[#allocation28_spill] sm:$0xff]  ;;  %v8145_v60 = vmul.f32 %v13646_v35, %v13645_v50  ;;  %v13656_v50 = vld [vmem:[%s18434_s2 + $0x58] sm:$0xff] }
 0x64a   :  { %13011 = vmatprep.subr.mxu0 %v17000_v15  ;;  %12995 = vmatpush3.msra.mxu1 %v7527_v21 }
 0x64b   :  { %13012 = vmatpush3.msra.mxu0 %v17000_v15  ;;  %12996 = vmatprep.subr.mxu1 %v7534_v3  ;;  %v19011_v15 = vld [vmem:[#allocation29_spill] sm:$0xff] }
 0x64c   :  { %13013 = vmatprep.subr.mxu0 %v17011_v16  ;;  %12997 = vmatpush3.msra.mxu1 %v7534_v3  ;;  %v13647_v3 = vld [vmem:[%s18433_s1 + $0x38] sm:$0xff] }
 0x64d   :  { %13014 = vmatpush3.msra.mxu0 %v17011_v16  ;;  %12999 = vmatmul.mubr.f32.vlgmr.msra.gmra.mxu1 %v19010_v14  ;;  %v19012_v16 = vld [vmem:[#allocation32_spill] sm:$0xff] }
 0x64e   :  { %13015 = vmatprep.subr.mxu0 %v17027_v40  ;;  %13048 = vmatprep.subr.mxu1 %v17002_v57 }
 0x64f   :  { %13016 = vmatpush3.msra.mxu0 %v17027_v40  ;;  %13049 = vmatpush3.msra.mxu1 %v17002_v57  ;;  %v19013_v40 = vld [vmem:[#allocation26_spill] sm:$0xff] }
 0x650   :  { %13017 = vmatprep.subr.mxu0 %v17047_v39  ;;  %13050 = vmatprep.subr.mxu1 %v17016_v37 }
 0x651   :  { %13018 = vmatpush3.msra.mxu0 %v17047_v39  ;;  %13051 = vmatpush3.msra.mxu1 %v17016_v37  ;;  %v19015_v39 = vld [vmem:[#allocation22_spill] sm:$0xff] }
 0x652   :  { %13019 = vmatprep.subr.mxu0 %v17064_v10  ;;  %13052 = vmatprep.subr.mxu1 %v16986_v59 }
 0x653   :  { %13020 = vmatpush3.msra.mxu0 %v17064_v10  ;;  %13053 = vmatpush3.msra.mxu1 %v16986_v59  ;;  %v19016_v10 = vld [vmem:[#allocation37_spill] sm:$0xff] }
 0x654   :  { %13021 = vmatprep.subr.mxu0 %v17083_v12  ;;  %13054 = vmatprep.subr.mxu1 %v16993_v44 }
 0x655   :  { %13022 = vmatpush3.msra.mxu0 %v17083_v12  ;;  %13055 = vmatpush3.msra.mxu1 %v16993_v44  ;;  %v19017_v12 = vld [vmem:[#allocation17_spill] sm:$0xff] }
 0x656   :  { %13023 = vmatprep.subr.mxu0 %v17098_v62  ;;  %13056 = vmatprep.subr.mxu1 %v16997_v9 }
 0x657   :  { %13024 = vmatpush3.msra.mxu0 %v17098_v62  ;;  %13057 = vmatpush3.msra.mxu1 %v16997_v9  ;;  %v19018_v62 = vld [vmem:[#allocation31_spill] sm:$0xff] }
 0x658   :  { %13025 = vmatprep.subr.mxu0 %v17114_v17  ;;  %13058 = vmatprep.subr.mxu1 %v17008_v54 }
 0x659   :  { %13026 = vmatpush3.msra.mxu0 %v17114_v17  ;;  %13059 = vmatpush3.msra.mxu1 %v17008_v54  ;;  %v19019_v17 = vld [vmem:[#allocation25_spill] sm:$0xff] }
 0x65a   :  { %13027 = vmatprep.subr.mxu0 %v17128_v55  ;;  %13060 = vmatprep.subr.mxu1 %v17023_v63 }
 0x65b   :  { %13028 = vmatpush3.msra.mxu0 %v17128_v55  ;;  %13061 = vmatpush3.msra.mxu1 %v17023_v63  ;;  %v19020_v55 = vld [vmem:[#allocation34_spill] sm:$0xff] }
 0x65c   :  { %13029 = vmatprep.subr.mxu0 %v17141_v32  ;;  %13062 = vmatprep.subr.mxu1 %v17043_v53 }
 0x65d   :  { %12960 = vmatprep.mubr.f32.mxu0 %v19011_v15  ;;  %13030 = vmatpush3.msra.mxu0 %v17141_v32  ;;  %v19021_v32 = vld [vmem:[#allocation39_spill] sm:$0xff] }
 0x65e   :  { %13063 = vmatpush3.msra.mxu1 %v17043_v53  ;;  %12961 = vmatmul.mubr.f32.gmra.mxu0 %v19012_v16 }
 0x65f   :  { %13031 = vmatprep.subr.mxu0 %v17153_v51  ;;  %13064 = vmatprep.subr.mxu1 %v17061_v30 }
 0x660   :  { %13032 = vmatpush3.msra.mxu0 %v17153_v51  ;;  %13065 = vmatpush3.msra.mxu1 %v17061_v30  ;;  %v19022_v51 = vld [vmem:[#allocation23_spill] sm:$0xff] }
 0x661   :  { %13033 = vmatprep.subr.mxu0 %v17165_v18  ;;  %13066 = vmatprep.subr.mxu1 %v17079_v41 }
 0x662   :  { %12963 = vmatprep.mubr.f32.mxu0 %v19013_v40  ;;  %13034 = vmatpush3.msra.mxu0 %v17165_v18  ;;  %v19024_v18 = vld [vmem:[#allocation18_spill] sm:$0xff] }
 0x663   :  { %13067 = vmatpush3.msra.mxu1 %v17079_v41  ;;  %12964 = vmatmul.mubr.f32.gmra.mxu0 %v19014_v52 }
 0x664   :  { %13001 = vmatprep.mubr.f32.mxu1 %v19015_v39  ;;  %13035 = vmatprep.subr.mxu0 %v17175_v45 }
 0x665   :  { %13068 = vmatprep.subr.mxu1 %v17094_v26  ;;  %13002 = vmatmul.mubr.f32.gmra.mxu1 %v19016_v10 }
 0x666   :  { %13036 = vmatpush3.msra.mxu0 %v17175_v45  ;;  %13069 = vmatpush3.msra.mxu1 %v17094_v26  ;;  %v13637_v45 = vld [vmem:[%s18433_s1 + $0x10] sm:$0xff] }
 0x667   :  { %13037 = vmatprep.subr.mxu0 %v17185_v56  ;;  %13070 = vmatprep.subr.mxu1 %v17110_v4  ;;  %v8141_v2 = vmul.f32 %v13638_v48, %v13637_v45  ;;  %v13651_v45 = vld [vmem:[%s18433_s1 + $0x48] sm:$0xff] }
 0x668   :  { %13038 = vmatpush3.msra.mxu0 %v17185_v56  ;;  %13039 = vmatprep.mubr.f32.mxu0 %v19017_v12  ;;  %v13639_v56 = vld [vmem:[%s18433_s1 + $0x18] sm:$0xff]  ;;  %v13652_v48 = vld [vmem:[%s18434_s2 + $0x48] sm:$0xff] }
 0x669   :  { %13071 = vmatpush3.msra.mxu1 %v17110_v4  ;;  %13004 = vmatprep.mubr.f32.mxu1 %v19018_v62  ;;  %v8142_v31 = vmul.f32 %v13640_v43, %v13639_v56 }
 0x66a   :  { %13040 = vmatmul.mubr.f32.vlgmr.msra.gmra.mxu0 %v19019_v17  ;;  %13072 = vmatprep.subr.mxu1 %v17124_v5 }
 0x66b   :  { %13089 = vmatprep.subr.mxu0 %v17034_v6  ;;  %13005 = vmatmul.mubr.f32.gmra.mxu1 %v19020_v55 }
 0x66c   :  { %13073 = vmatpush3.msra.mxu1 %v17124_v5  ;;  %13090 = vmatpush3.msra.mxu0 %v17034_v6  ;;  %v19023_v6 = vld [vmem:[#allocation20_spill] sm:$0xff] }
 0x66d   :  { %13074 = vmatprep.subr.mxu1 %v17137_v27  ;;  %13091 = vmatprep.subr.mxu0 %v17053_v25 }
 0x66e   :  { %13042 = vmatprep.mubr.f32.mxu0 %v19021_v32  ;;  %13075 = vmatpush3.msra.mxu1 %v17137_v27 }
 0x66f   :  { %13092 = vmatpush3.msra.mxu0 %v17053_v25  ;;  %13076 = vmatprep.subr.mxu1 %v17149_v1  ;;  %v19025_v25 = vld [vmem:[#allocation21_spill] sm:$0xff] }
 0x670   :  { %13043 = vmatmul.mubr.f32.gmra.mxu0 %v19022_v51  ;;  %13093 = vmatprep.subr.mxu0 %v17037_v38 }
 0x671   :  { %13077 = vmatpush3.msra.mxu1 %v17149_v1  ;;  %13094 = vmatpush3.msra.mxu0 %v17037_v38  ;;  %v19027_v38 = vld [vmem:[#allocation33_spill] sm:$0xff] }
 0x672   :  { %13078 = vmatprep.subr.mxu1 %v17161_v20  ;;  %13095 = vmatprep.subr.mxu0 %v17056_v49 }
 0x673   :  { %13045 = vmatprep.mubr.f32.mxu0 %v19023_v6  ;;  %13079 = vmatpush3.msra.mxu1 %v17161_v20 }
 0x674   :  { %13080 = vmatprep.mubr.f32.mxu1 %v19024_v18  ;;  %13096 = vmatpush3.msra.mxu0 %v17056_v49  ;;  %v19028_v49 = vld [vmem:[#allocation36_spill] sm:$0xff] }
 0x675   :  { %13046 = vmatmul.mubr.f32.gmra.mxu0 %v19025_v25  ;;  %13081 = vmatmul.mubr.f32.vlgmr.msra.gmra.mxu1 %v19026_v29 }
 0x676   :  { %13097 = vmatprep.subr.mxu0 %v17073_v23  ;;  %13130 = vmatprep.subr.mxu1 %v17002_v57 }
 0x677   :  { %13098 = vmatpush3.msra.mxu0 %v17073_v23  ;;  %13131 = vmatpush3.msra.mxu1 %v17002_v57  ;;  %v19029_v57 = vld [vmem:[#allocation27_spill] sm:$0xff] }
 0x678   :  { %13099 = vmatprep.subr.mxu0 %v17089_v19  ;;  %13132 = vmatprep.subr.mxu1 %v17016_v37 }
 0x679   :  { %13083 = vmatprep.mubr.f32.mxu1 %v19027_v38  ;;  %13100 = vmatpush3.msra.mxu0 %v17089_v19  ;;  %v19030_v19 = vld [vmem:[#allocation30_spill] sm:$0xff] }
 0x67a   :  { %13133 = vmatpush3.msra.mxu1 %v17016_v37  ;;  %13101 = vmatprep.subr.mxu0 %v17104_v46  ;;  %v13633_v37 = vld [vmem:[%s18433_s1] sm:$0xff] }
 0x67b   :  { %13084 = vmatmul.mubr.f32.gmra.mxu1 %v19028_v49  ;;  %13134 = vmatprep.subr.mxu1 %v16986_v59 }
 0x67c   :  { %13102 = vmatpush3.msra.mxu0 %v17104_v46  ;;  %13135 = vmatpush3.msra.mxu1 %v16986_v59  ;;  %v13634_v59 = vld [vmem:[%s18434_s2] sm:$0xff]  ;;  %v13635_v46 = vld [vmem:[%s18433_s1 + $0x8] sm:$0xff] }
 0x67d   :  { %13103 = vmatprep.subr.mxu0 %v17120_v34  ;;  %13136 = vmatprep.subr.mxu1 %v16993_v44  ;;  %v8139_v23 = vmul.f32 %v13634_v59, %v13633_v37  ;;  %v13648_v37 = vld [vmem:[%s18434_s2 + $0x38] sm:$0xff] }
 0x67e   :  { %13086 = vmatprep.mubr.f32.mxu1 %v19029_v57  ;;  %13104 = vmatpush3.msra.mxu0 %v17120_v34  ;;  %v8146_v59 = vmul.f32 %v13648_v37, %v13647_v3 }
 0x67f   :  { %13137 = vmatpush3.msra.mxu1 %v16993_v44  ;;  %13105 = vmatprep.subr.mxu0 %v17134_v33  ;;  %v13636_v44 = vld [vmem:[%s18434_s2 + $0x8] sm:$0xff] }
 0x680   :  { %13087 = vmatmul.mubr.f32.gmra.mxu1 %v19030_v19  ;;  %13138 = vmatprep.subr.mxu1 %v16997_v9  ;;  %v8140_v34 = vmul.f32 %v13636_v44, %v13635_v46  ;;  %v8174_v44 = vsel %vm74_vm0, %v8145_v60, 0 }
 0x681   :  { %13106 = vmatpush3.msra.mxu0 %v17134_v33  ;;  %13139 = vmatpush3.msra.mxu1 %v16997_v9  ;;  %v8156_v9 = vsel %vm74_vm0, %v8139_v23, 0 }
 0x682   :  { %13107 = vmatprep.subr.mxu0 %v17147_v7  ;;  %13140 = vmatprep.subr.mxu1 %v17008_v54  ;;  %v8159_v33 = vsel %vm74_vm0, %v8140_v34, 0  ;;  %v13649_v34 = vld [vmem:[%s18433_s1 + $0x40] sm:$0xff] }
 0x683   :  { %13108 = vmatpush3.msra.mxu0 %v17147_v7  ;;  %13141 = vmatpush3.msra.mxu1 %v17008_v54  ;;  %v8162_v54 = vsel %vm74_vm0, %v8141_v2, 0  ;;  %v13641_v7 = vld [vmem:[%s18433_s1 + $0x20] sm:$0xff]  ;;  %v8148_v2 = vmul.f32 %v13652_v48, %v13651_v45  ;;  %v13658_v45 = vld [vmem:[%s18434_s2 + $0x68] sm:$0xff] }
 0x684   :  { %13109 = vmatprep.subr.mxu0 %v17159_v22  ;;  %13142 = vmatprep.subr.mxu1 %v17023_v63  ;;  %v8143_v11 = vmul.f32 %v13642_v36, %v13641_v7  ;;  %v8177_v7 = vsel %vm74_vm0, %v8146_v59, 0 }
 0x685   :  { %13110 = vmatpush3.msra.mxu0 %v17159_v22  ;;  %13143 = vmatpush3.msra.mxu1 %v17023_v63  ;;  %v17373_v63 = vand.u32 4294901760, %v8156_v9  ;;  %v17375_v22 = vand.u32 4294901760, %v8159_v33 }
 0x686   :  { %13111 = vmatprep.subr.mxu0 %v17171_v8  ;;  %13144 = vmatprep.subr.mxu1 %v17043_v53 }
 0x687   :  { %13112 = vmatpush3.msra.mxu0 %v17171_v8  ;;  %13145 = vmatpush3.msra.mxu1 %v17043_v53  ;;  %v17387_v53 = vand.u32 4294901760, %v8162_v54  ;;  %v8165_v8 = vsel %vm74_vm0, %v8142_v31, 0  ;;  %v17405_v21 = vsub.f32 %v8159_v33, %v17375_v22 }
 0x688   :  { %13113 = vmatprep.subr.mxu0 %v17181_v13  ;;  %13146 = vmatprep.subr.mxu1 %v17061_v30 }
 0x689   :  { %13114 = vmatpush3.msra.mxu0 %v17181_v13  ;;  %13147 = vmatpush3.msra.mxu1 %v17061_v30  ;;  %v8168_v13 = vsel %vm74_vm0, %v8143_v11, 0  ;;  %v17402_v30 = vsub.f32 %v8156_v9, %v17373_v63  ;;  %v17421_v23 = vsub.f32 %v8162_v54, %v17387_v53  ;;  %v19031_v9 = vld [vmem:[#allocation16_spill] sm:$0xff]  ;;  %v18587_v43 = vand.u32 4294901760, %v17405_v21  ;;  %v13654_v11 = vld [vmem:[%s18434_s2 + $0x50] sm:$0xff] }
 0x68a   :  { %13115 = vmatprep.subr.mxu0 %v17191_v61  ;;  %13148 = vmatprep.subr.mxu1 %v17079_v41  ;;  %v17423_v46 = vand.u32 4294901760, %v8168_v13  ;;  %v17451_v54 = vand.u32 4294901760, %v8174_v44 }
 0x68b   :  { %13116 = vmatpush3.msra.mxu0 %v17191_v61  ;;  %13149 = vmatpush3.msra.mxu1 %v17079_v41  ;;  %v17415_v41 = vand.u32 4294901760, %v8165_v8  ;;  %v8171_v61 = vsel %vm74_vm0, %v8144_v28, 0  ;;  %v18589_v33 = vand.u32 4294901760, %v17402_v30  ;;  %v8283_v3 = vsub.f32 %v17405_v21, %v18587_v43 }
 0x68c   :  { %13117 = vmatprep.subr.mxu0 %v17198_v47  ;;  %13150 = vmatprep.subr.mxu1 %v17094_v26  ;;  %v17443_v56 = vand.u32 4294901760, %v8171_v61  ;;  %v17458_v36 = vsub.f32 %v8168_v13, %v17423_v46  ;;  %v17483_v13 = vand.u32 4294901760, %v8177_v7  ;;  %v17492_v59 = vsub.f32 %v8174_v44, %v17451_v54  ;;  %v13657_v44 = vld [vmem:[%s18433_s1 + $0x68] sm:$0xff] }
 0x68d   :  { %13118 = vmatpush3.msra.mxu0 %v17198_v47  ;;  %13151 = vmatpush3.msra.mxu1 %v17094_v26  ;;  %v13650_v47 = vld [vmem:[%s18434_s2 + $0x40] sm:$0xff]  ;;  %v17449_v31 = vsub.f32 %v8165_v8, %v17415_v41  ;;  %v13655_v8 = vld [vmem:[%s18433_s1 + $0x58] sm:$0xff]  ;;  %v8152_v48 = vmul.f32 %v13658_v45, %v13657_v44  ;;  %v8284_v45 = vand.u32 4294901760, %v8283_v3 }
 0x68e   :  { %13119 = vmatprep.subr.mxu0 %v17205_v0  ;;  %13152 = vmatprep.subr.mxu1 %v17110_v4  ;;  %v8147_v26 = vmul.f32 %v13650_v47, %v13649_v34  ;;  %v8150_v35 = vmul.f32 %v13656_v50, %v13655_v8  ;;  %v17481_v60 = vsub.f32 %v8171_v61, %v17443_v56  ;;  %v8183_v34 = vsel %vm74_vm0, %v8148_v2, 0  ;;  %v13659_v2 = vld [vmem:[%s18433_s1 + $0x60] sm:$0xff] }
 0x68f   :  { %13120 = vmatpush3.msra.mxu0 %v17205_v0  ;;  %13121 = vmatprep.mubr.f32.mxu0 %v19031_v9  ;;  %v18586_v0 = vand.u32 4294901760, %v17421_v23  ;;  %v18588_v37 = vand.u32 4294901760, %v17449_v31  ;;  %v18590_v61 = vand.u32 4294901760, %v17458_v36  ;;  %v17524_v44 = vand.u32 4294901760, %v8183_v34 }
 0x690   :  { %13153 = vmatpush3.msra.mxu1 %v17110_v4  ;;  %13122 = vmatmul.mubr.f32.vlgmr.msra.gmra.mxu0 %v19010_v14  ;;  %v13653_v4 = vld [vmem:[%s18433_s1 + $0x50] sm:$0xff]  ;;  %v8180_v28 = vsel %vm74_vm0, %v8147_v26, 0  ;;  %v18591_v50 = vand.u32 4294901760, %v17481_v60  ;;  %v8189_v3 = vsel %vm74_vm0, %v8150_v35, 0  ;;  %v13664_v35 = vld [vmem:[%s18434_s2 + $0x78] sm:$0xff]  ;;  %v19036_v57 = vand.u32 4294901760, %v17492_v59 }
 0x691   :  { %13154 = vmatprep.subr.mxu1 %v17124_v5  ;;  %13124 = vmatprep.mubr.f32.mxu0 %v19015_v39  ;;  %v8149_v58 = vmul.f32 %v13654_v11, %v13653_v4  ;;  %v17501_v47 = vand.u32 4294901760, %v8180_v28  ;;  %v13660_v4 = vld [vmem:[%s18434_s2 + $0x60] sm:$0xff] }
 0x692   :  { %13155 = vmatpush3.msra.mxu1 %v17124_v5  ;;  %13171 = vmatprep.subr.mxu0 %v19032_v42  ;;  %v8273_v5 = vsub.f32 %v17402_v30, %v18589_v33  ;;  %v8151_v11 = vmul.f32 %v13660_v4, %v13659_v2  ;;  %v8303_v2 = vsub.f32 %v17449_v31, %v18588_v37  ;;  %v13661_v33 = vld [vmem:[%s18433_s1 + $0x70] sm:$0xff] }
 0x693   :  { %13156 = vmatprep.subr.mxu1 %v17137_v27  ;;  %13162 = vmatprep.mubr.f32.mxu1 %v19031_v9  ;;  %v8186_v26 = vsel %vm74_vm0, %v8149_v58, 0  ;;  %v19033_v58 = vld [vmem:[#allocation9_spill] sm:$0xff]  ;;  %v17540_v43 = vsub.f32 %v8180_v28, %v17501_v47  ;;  %v13663_v28 = vld [vmem:[%s18433_s1 + $0x78] sm:$0xff]  ;;  %s10163_s1 = sld [smem:[#allocation2]] }
 0x694   :  { %13157 = vmatpush3.msra.mxu1 %v17137_v27  ;;  %13125 = vmatmul.mubr.f32.gmra.mxu0 %v19016_v10  ;;  %v8293_v27 = vsub.f32 %v17421_v23, %v18586_v0  ;;  %v8274_v8 = vand.u32 4294901760, %v8273_v5  ;;  %v17532_v0 = vand.u32 4294901760, %v8186_v26  ;;  %v19034_v5 = vld [vmem:[#allocation14_spill] sm:$0xff]  ;;  %v8192_v37 = vsel %vm74_vm0, %v8151_v11, 0 }
 0x695   :  { %13158 = vmatprep.subr.mxu1 %v17149_v1  ;;  %13127 = vmatprep.mubr.f32.mxu0 %v19018_v62  ;;  %v8323_v11 = vsub.f32 %v17481_v60, %v18591_v50  ;;  %v8304_v19 = vand.u32 4294901760, %v8303_v2  ;;  %v17577_v4 = vand.u32 4294901760, %v8192_v37 }
 0x696   :  { %13159 = vmatpush3.msra.mxu1 %v17149_v1  ;;  %13172 = vmatpush3.msra.mxu0 %v19032_v42  ;;  %v17522_v1 = vsub.f32 %v8177_v7, %v17483_v13  ;;  %v8294_v7 = vand.u32 4294901760, %v8293_v27  ;;  %v13662_v27 = vld [vmem:[%s18434_s2 + $0x70] sm:$0xff]  ;;  %s10314_s2 = sld [smem:[#allocation2 + $0x1]] }
 0x697   :  { %13160 = vmatprep.subr.mxu1 %v17161_v20  ;;  %13173 = vmatprep.subr.mxu0 %v19033_v58  ;;  %v8324_v2 = vand.u32 4294901760, %v8323_v11 }
 0x698   :  { %13161 = vmatpush3.msra.mxu1 %v17161_v20  ;;  %13128 = vmatmul.mubr.f32.gmra.mxu0 %v19020_v55  ;;  %v8313_v20 = vsub.f32 %v17458_v36, %v18590_v61  ;;  %v8153_v61 = vmul.f32 %v13662_v27, %v13661_v33  ;;  %v17564_v33 = vsub.f32 %v8183_v34, %v17524_v44  ;;  %v19035_v27 = vld [vmem:[#allocation15_spill] sm:$0xff] }
 0x699   :  { %13163 = vmatmul.mubr.f32.vlgmr.msra.gmra.mxu1 %v19010_v14  ;;  %13199 = vmatprep.subr.mxu1 %v19034_v5 }
 0x69a   :  { %13200 = vmatpush3.msra.mxu1 %v19034_v5  ;;  %13165 = vmatprep.mubr.f32.mxu1 %v19015_v39  ;;  %v8154_v5 = vmul.f32 %v13664_v35, %v13663_v28  ;;  %v8333_v28 = vsub.f32 %v17492_v59, %v19036_v57  ;;  %v17571_v35 = vsub.f32 %v8186_v26, %v17532_v0  ;;  %v8314_v50 = vand.u32 4294901760, %v8313_v20  ;;  %v19037_v26 = vld [vmem:[#allocation10_spill] sm:$0xff] }
 0x69b   :  { %13174 = vmatpush3.msra.mxu0 %v19033_v58  ;;  %13175 = vmatprep.mubr.f32.mxu0 %v8274_v8  ;;  %v17573_v8 = vand.u32 4294901760, %v8189_v3  ;;  %v8198_v57 = vsel %vm74_vm0, %v8153_v61, 0  ;;  %v19039_v61 = vand.u32 4294901760, %v17540_v43 }
 0x69c   :  { %13176 = vmatmul.mubr.f32.vlgmr.msra.gmra.mxu0 %v8284_v45  ;;  %13201 = vmatprep.subr.mxu1 %v19035_v27  ;;  %v8195_v45 = vsel %vm74_vm0, %v8152_v48, 0  ;;  %v8334_v49 = vand.u32 4294901760, %v8333_v28  ;;  %v17602_v34 = vand.u32 4294901760, %v8198_v57  ;;  %v19040_v28 = vld [vmem:[#allocation11_spill] sm:$0xff] }
 0x69d   :  { %13166 = vmatmul.mubr.f32.gmra.mxu1 %v19016_v10  ;;  %13178 = vmatprep.mubr.f32.mxu0 %v8294_v7  ;;  %v19038_v7 = vand.u32 4294901760, %v17522_v1  ;;  %v17591_v38 = vsub.f32 %v8189_v3, %v17573_v8  ;;  %v8353_v11 = vsub.f32 %v17540_v43, %v19039_v61 }
 0x69e   :  { %13168 = vmatprep.mubr.f32.mxu1 %v19018_v62  ;;  %13202 = vmatpush3.msra.mxu1 %v19035_v27  ;;  %v17593_v27 = vand.u32 4294901760, %v8195_v45  ;;  %v17623_v25 = vsub.f32 %v8198_v57, %v17602_v34 }
 0x69f   :  { %13227 = vmatprep.subr.mxu0 %v19037_v26  ;;  %13255 = vmatprep.subr.mxu1 %v19032_v42  ;;  %v8343_v20 = vsub.f32 %v17522_v1, %v19038_v7  ;;  %v17600_v7 = vsub.f32 %v8192_v37, %v17577_v4  ;;  %v18593_v61 = vand.u32 4294901760, %v17591_v38 }
 0x6a0   :  { %13179 = vmatmul.mubr.f32.gmra.mxu0 %v8304_v19  ;;  %v8201_v19 = vsel %vm74_vm0, %v8154_v5, 0  ;;  %v17613_v37 = vsub.f32 %v8195_v45, %v17593_v27  ;;  %v8354_v5 = vand.u32 4294901760, %v8353_v11 }
 0x6a1   :  { %13169 = vmatmul.mubr.f32.gmra.mxu1 %v19020_v55  ;;  %13181 = vmatprep.mubr.f32.mxu0 %v8314_v50  ;;  %v8344_v3 = vand.u32 4294901760, %v8343_v20  ;;  %v19041_v50 = vand.u32 4294901760, %v17564_v33  ;;  %v17615_v29 = vand.u32 4294901760, %v8201_v19  ;;  %v8383_v45 = vsub.f32 %v17591_v38, %v18593_v61 }
 0x6a2   :  { %13203 = vmatprep.mubr.f32.mxu1 %v17373_v63  ;;  %13228 = vmatpush3.msra.mxu0 %v19037_v26  ;;  %v19042_v26 = vand.u32 4294901760, %v17571_v35  ;;  %v8402_v11 = vand.u32 4294901760, %v17613_v37 }
 0x6a3   :  { %13229 = vmatprep.subr.mxu0 %v19040_v28  ;;  %v8363_v48 = vsub.f32 %v17564_v33, %v19041_v50  ;;  %v17635_v57 = vsub.f32 %v8201_v19, %v17615_v29 }
 0x6a4   :  { %13182 = vmatmul.mubr.f32.gmra.mxu0 %v8324_v2  ;;  %v8373_v20 = vsub.f32 %v17571_v35, %v19042_v26  ;;  %v18592_v2 = vand.u32 4294901760, %v17600_v7  ;;  %v8384_v26 = vand.u32 4294901760, %v8383_v45  ;;  %v8403_v19 = vsub.f32 %v17613_v37, %v8402_v11 }
 0x6a5   :  { %13204 = vmatmul.mubr.f32.vlgmr.msra.gmra.mxu1 %v17375_v22  ;;  %13184 = vmatprep.mubr.f32.mxu0 %v8334_v49  ;;  %v8364_v49 = vand.u32 4294901760, %v8363_v48  ;;  %v8412_v48 = vand.u32 4294901760, %v17623_v25 }
 0x6a6   :  { %13256 = vmatpush3.msra.mxu1 %v19032_v42  ;;  %13206 = vmatprep.mubr.f32.mxu1 %v17387_v53  ;;  %v8374_v50 = vand.u32 4294901760, %v8373_v20  ;;  %v8404_v61 = vand.u32 4294901760, %v8403_v19 }
 0x6a7   :  { %13230 = vmatpush3.msra.mxu0 %v19040_v28  ;;  %13257 = vmatprep.subr.mxu1 %v19033_v58  ;;  %v19043_v28 = vld [vmem:[#allocation12_spill] sm:$0xff] }
 0x6a8   :  { %13185 = vmatmul.mubr.f32.gmra.mxu0 %v8344_v3  ;;  %13258 = vmatpush3.msra.mxu1 %v19033_v58  ;;  %v8393_v3 = vsub.f32 %v17600_v7, %v18592_v2  ;;  %v8413_v2 = vsub.f32 %v17623_v25, %v8412_v48 }
 0x6a9   :  { %13207 = vmatmul.mubr.f32.gmra.mxu1 %v17415_v41  ;;  %13187 = vmatprep.mubr.f32.mxu0 %v8354_v5  ;;  %v8422_v5 = vand.u32 4294901760, %v17635_v57 }
 0x6aa   :  { %13209 = vmatprep.mubr.f32.mxu1 %v17423_v46  ;;  %13283 = vmatprep.subr.mxu0 %v19043_v28  ;;  %v8394_v20 = vand.u32 4294901760, %v8393_v3  ;;  %v8414_v45 = vand.u32 4294901760, %v8413_v2  ;;  %v19045_v2 = vand.u32 4294901760, %v17402_v30  ;;  %v19046_v3 = vand.u32 4294901760, %v17405_v21 }
 0x6ab   :  { %13311 = vmatprep.subr.mxu1 %v19032_v42 }
 0x6ac   :  { %13188 = vmatmul.mubr.f32.gmra.mxu0 %v8364_v49  ;;  %v8423_v49 = vsub.f32 %v17635_v57, %v8422_v5 }
 0x6ad   :  { %13210 = vmatmul.mubr.f32.gmra.mxu1 %v17443_v56  ;;  %13190 = vmatprep.mubr.f32.mxu0 %v8374_v50 }
 0x6ae   :  { %13212 = vmatprep.mubr.f32.mxu1 %v17451_v54  ;;  %v8424_v50 = vand.u32 4294901760, %v8423_v49 }
 0x6b0   :  { %13191 = vmatmul.mubr.f32.gmra.mxu0 %v8384_v26 }
 0x6b1   :  { %13213 = vmatmul.mubr.f32.gmra.mxu1 %v17483_v13  ;;  %13193 = vmatprep.mubr.f32.mxu0 %v8394_v20 }
 0x6b2   :  { %13215 = vmatprep.mubr.f32.mxu1 %v17501_v47 }
 0x6b4   :  { %13194 = vmatmul.mubr.f32.gmra.mxu0 %v8404_v61  ;;  %v19044_v61 = vld [vmem:[#allocation13_spill] sm:$0xff] }
 0x6b5   :  { %13216 = vmatmul.mubr.f32.gmra.mxu1 %v17524_v44  ;;  %13196 = vmatprep.mubr.f32.mxu0 %v8414_v45 }
 0x6b6   :  { %13218 = vmatprep.mubr.f32.mxu1 %v17532_v0 }
 0x6b8   :  { %13197 = vmatmul.mubr.f32.gmra.mxu0 %v8424_v50 }
 0x6b9   :  { %13219 = vmatmul.mubr.f32.gmra.mxu1 %v17573_v8  ;;  %13231 = vmatprep.mubr.f32.mxu0 %v17402_v30  ;;  %v19048_v30 = vand.u32 4294901760, %v17449_v31 }
 0x6ba   :  { %13221 = vmatprep.mubr.f32.mxu1 %v17577_v4 }
 0x6bc   :  { %13232 = vmatmul.mubr.f32.vlgmr.msra.gmra.mxu0 %v17405_v21  ;;  %v19049_v21 = vand.u32 4294901760, %v17458_v36 }
 0x6bd   :  { %13222 = vmatmul.mubr.f32.gmra.mxu1 %v17593_v27  ;;  %13234 = vmatprep.mubr.f32.mxu0 %v17421_v23 }
 0x6be   :  { %13224 = vmatprep.mubr.f32.mxu1 %v17602_v34  ;;  %13284 = vmatpush3.msra.mxu0 %v19043_v28  ;;  %v19047_v28 = vand.u32 4294901760, %v17421_v23  ;;  %v19051_v23 = vand.u32 4294901760, %v17492_v59 }
 0x6bf   :  { %13285 = vmatprep.subr.mxu0 %v19044_v61 }
 0x6c0   :  { %13235 = vmatmul.mubr.f32.gmra.mxu0 %v17449_v31  ;;  %v19052_v31 = vand.u32 4294901760, %v17522_v1 }
 0x6c1   :  { %13225 = vmatmul.mubr.f32.gmra.mxu1 %v17615_v29  ;;  %13237 = vmatprep.mubr.f32.mxu0 %v17458_v36  ;;  %v19053_v36 = vand.u32 4294901760, %v17540_v43 }
 0x6c2   :  { %13259 = vmatprep.mubr.f32.mxu1 %v19045_v2  ;;  %13286 = vmatpush3.msra.mxu0 %v19044_v61 }
 0x6c4   :  { %13238 = vmatmul.mubr.f32.gmra.mxu0 %v17481_v60 }
 0x6c5   :  { %13260 = vmatmul.mubr.f32.vlgmr.msra.gmra.mxu1 %v19046_v3  ;;  %13240 = vmatprep.mubr.f32.mxu0 %v17492_v59  ;;  %v19055_v59 = vand.u32 4294901760, %v17571_v35 }
 0x6c6   :  { %13312 = vmatpush3.msra.mxu1 %v19032_v42  ;;  %13262 = vmatprep.mubr.f32.mxu1 %v19047_v28  ;;  %v19050_v42 = vand.u32 4294901760, %v17481_v60  ;;  %v19054_v60 = vand.u32 4294901760, %v17564_v33 }
 0x6c7   :  { %13313 = vmatprep.subr.mxu1 %v19033_v58 }
 0x6c8   :  { %13241 = vmatmul.mubr.f32.gmra.mxu0 %v17522_v1  ;;  %13314 = vmatpush3.msra.mxu1 %v19033_v58  ;;  %v19056_v58 = vand.u32 4294901760, %v17591_v38 }
 0x6c9   :  { %13263 = vmatmul.mubr.f32.gmra.mxu1 %v19048_v30  ;;  %13243 = vmatprep.mubr.f32.mxu0 %v17540_v43  ;;  %v19057_v43 = vand.u32 4294901760, %v17600_v7 }
 0x6ca   :  { %13265 = vmatprep.mubr.f32.mxu1 %v19049_v21 }
 0x6cc   :  { %13244 = vmatmul.mubr.f32.gmra.mxu0 %v17564_v33 }
 0x6cd   :  { %13266 = vmatmul.mubr.f32.gmra.mxu1 %v19050_v42  ;;  %13246 = vmatprep.mubr.f32.mxu0 %v17571_v35 }
 0x6ce   :  { %13268 = vmatprep.mubr.f32.mxu1 %v19051_v23 }
 0x6d0   :  { %13247 = vmatmul.mubr.f32.gmra.mxu0 %v17591_v38 }
 0x6d1   :  { %13269 = vmatmul.mubr.f32.gmra.mxu1 %v19052_v31  ;;  %13249 = vmatprep.mubr.f32.mxu0 %v17600_v7 }
 0x6d2   :  { %13271 = vmatprep.mubr.f32.mxu1 %v19053_v36 }
 0x6d4   :  { %13250 = vmatmul.mubr.f32.gmra.mxu0 %v17613_v37 }
 0x6d5   :  { %13272 = vmatmul.mubr.f32.gmra.mxu1 %v19054_v60  ;;  %13252 = vmatprep.mubr.f32.mxu0 %v17623_v25  ;;  %v19058_v25 = vld [vmem:[#allocation19_spill] sm:$0xff] }
 0x6d6   :  { %13274 = vmatprep.mubr.f32.mxu1 %v19055_v59 }
 0x6d8   :  { %13253 = vmatmul.mubr.f32.gmra.mxu0 %v17635_v57 }
 0x6d9   :  { %13275 = vmatmul.mubr.f32.gmra.mxu1 %v19056_v58  ;;  %13287 = vmatprep.mubr.f32.mxu0 %v17373_v63 }
 0x6da   :  { %13277 = vmatprep.mubr.f32.mxu1 %v19057_v43 }
 0x6dc   :  { %13288 = vmatmul.mubr.f32.vlgmr.msra.gmra.mxu0 %v17375_v22 }
 0x6dd   :  { %13278 = vmatmul.mubr.f32.gmra.mxu1 %v8402_v11  ;;  %13290 = vmatprep.mubr.f32.mxu0 %v17387_v53 }
 0x6de   :  { %13280 = vmatprep.mubr.f32.mxu1 %v8412_v48 }
 0x6e0   :  { %13291 = vmatmul.mubr.f32.gmra.mxu0 %v17415_v41 }
 0x6e1   :  { %13281 = vmatmul.mubr.f32.gmra.mxu1 %v8422_v5  ;;  %13293 = vmatprep.mubr.f32.mxu0 %v17423_v46 }
 0x6e2   :  { %13315 = vmatprep.mubr.f32.mxu1 %v17373_v63 }
 0x6e4   :  { %13294 = vmatmul.mubr.f32.gmra.mxu0 %v17443_v56 }
 0x6e5   :  { %13316 = vmatmul.mubr.f32.vlgmr.msra.gmra.mxu1 %v17375_v22  ;;  %13296 = vmatprep.mubr.f32.mxu0 %v17451_v54 }
 0x6e6   :  { %13318 = vmatprep.mubr.f32.mxu1 %v17387_v53 }
 0x6e8   :  { %13297 = vmatmul.mubr.f32.gmra.mxu0 %v17483_v13 }
 0x6e9   :  { %13319 = vmatmul.mubr.f32.gmra.mxu1 %v17415_v41  ;;  %13299 = vmatprep.mubr.f32.mxu0 %v17501_v47 }
 0x6ea   :  { %13321 = vmatprep.mubr.f32.mxu1 %v17423_v46 }
 0x6ec   :  { %13300 = vmatmul.mubr.f32.gmra.mxu0 %v17524_v44 }
 0x6ed   :  { %13322 = vmatmul.mubr.f32.gmra.mxu1 %v17443_v56  ;;  %13302 = vmatprep.mubr.f32.mxu0 %v17532_v0 }
 0x6ee   :  { %13324 = vmatprep.mubr.f32.mxu1 %v17451_v54 }
 0x6f0   :  { %13303 = vmatmul.mubr.f32.gmra.mxu0 %v17573_v8 }
 0x6f1   :  { %13325 = vmatmul.mubr.f32.gmra.mxu1 %v17483_v13  ;;  %13305 = vmatprep.mubr.f32.mxu0 %v17577_v4 }
 0x6f2   :  { %13327 = vmatprep.mubr.f32.mxu1 %v17501_v47 }
 0x6f4   :  { %13306 = vmatmul.mubr.f32.gmra.mxu0 %v17593_v27 }
 0x6f5   :  { %13328 = vmatmul.mubr.f32.gmra.mxu1 %v17524_v44  ;;  %13308 = vmatprep.mubr.f32.mxu0 %v17602_v34 }
 0x6f6   :  { %13330 = vmatprep.mubr.f32.mxu1 %v17532_v0 }
 0x6f8   :  { %13309 = vmatmul.mubr.f32.gmra.mxu0 %v17615_v29 }
 0x6f9   :  { %13331 = vmatmul.mubr.f32.gmra.mxu1 %v17573_v8  ;;  %13371 = vmatprep.mubr.f32.mxu0 %v19058_v25 }
 0x6fa   :  { %13333 = vmatprep.mubr.f32.mxu1 %v17577_v4 }
 0x6fd   :  { %13334 = vmatmul.mubr.f32.gmra.mxu1 %v17593_v27 }
 0x6fe   :  { %13336 = vmatprep.mubr.f32.mxu1 %v17602_v34 }
 0x701   :  { %13337 = vmatmul.mubr.f32.gmra.mxu1 %v17615_v29 }
 0x702   :  { %13412 = vmatprep.mubr.f32.mxu1 %v19031_v9 }
 0x706   :  { %v12959_v38 = vpop.f32.mrf.mxu0 }
 0x708   :  { %v7370_v53 = vpop.f32.mrf.mxu0 }
 0x70d   :  { %v13000_v63 = vpop.f32.mrf.mxu1 }
 0x70e   :  { %v7578_v22 = vadd.f32 %v13000_v63, %v12959_v38 }
 0x70f   :  { %v7571_v41 = vpop.f32.mrf.mxu1 }
 0x710   :  { %v7572_v46 = vadd.f32 %v7571_v41, %v7370_v53 }
 0x71e   :  { %v12962_v56 = vpop.f32.mrf.mxu0 }
 0x720   :  { %v7390_v54 = vpop.f32.mrf.mxu0 }
 0x723   :  { %v12965_v0 = vpop.f32.mrf.mxu0 }
 0x725   :  { %v13003_v13 = vpop.f32.mrf.mxu1  ;;  %v7410_v1 = vpop.f32.mrf.mxu0 }
 0x726   :  { %v7590_v47 = vadd.f32 %v13003_v13, %v12962_v56 }
 0x727   :  { %v7583_v44 = vpop.f32.mrf.mxu1 }
 0x728   :  { %v7584_v4 = vadd.f32 %v7583_v44, %v7390_v54 }
 0x72a   :  { %v13041_v33 = vpop.f32.mrf.mxu0 }
 0x72b   :  { %v7713_v35 = vadd.f32 %v13041_v33, %v7578_v22  ;;  %v13006_v8 = vpop.f32.mrf.mxu1  ;;  %v17757_v33 = vstv %s10163_s1 }
 0x72c   :  { %v7602_v29 = vadd.f32 %v13006_v8, %v12965_v0  ;;  %v7705_v34 = vpop.f32.mrf.mxu0  ;;  %19061 = vst [vmem:[#allocation120_spill] sm:$0xff] %v17757_v33 }
 0x72d   :  { %v7706_v27 = vadd.f32 %v7705_v34, %v7572_v46  ;;  %v7595_v7 = vpop.f32.mrf.mxu1  ;;  %v19064_v34 = vld [vmem:[#allocation68_spill] sm:$0xff] }
 0x72e   :  { %v7596_v37 = vadd.f32 %v7595_v7, %v7410_v1 }
 0x730   :  { %v13044_v11 = vpop.f32.mrf.mxu0 }
 0x731   :  { %v7727_v57 = vadd.f32 %v13044_v11, %v7590_v47  ;;  %v19059_v47 = vld [vmem:[#allocation77_spill] sm:$0xff] }
 0x732   :  { %v7719_v48 = vpop.f32.mrf.mxu0 }
 0x733   :  { %v7720_v26 = vadd.f32 %v7719_v48, %v7584_v4  ;;  %v19066_v48 = vld [vmem:[#allocation73_spill] sm:$0xff] }
 0x735   :  { %v13047_v19 = vpop.f32.mrf.mxu0  ;;  %v13082_v5 = vpop.f32.mrf.mxu1 }
 0x736   :  { %v7741_v20 = vadd.f32 %v13047_v19, %v7602_v29  ;;  %v7838_v49 = vadd.f32 %v13082_v5, %v7713_v35  ;;  %v17759_v35 = vstv %s10314_s2  ;;  %v19063_v29 = vld [vmem:[#allocation90_spill] sm:$0xff]  ;;  %v19067_v5 = vld [vmem:[#allocation57_spill] sm:$0xff] }
 0x737   :  { %v7733_v45 = vpop.f32.mrf.mxu0  ;;  %v7829_v50 = vpop.f32.mrf.mxu1  ;;  %19062 = vst [vmem:[#allocation128_spill] sm:$0xff] %v17759_v35 }
 0x738   :  { %v7734_v61 = vadd.f32 %v7733_v45, %v7596_v37  ;;  %v7830_v2 = vadd.f32 %v7829_v50, %v7706_v27  ;;  %v19065_v27 = vsub.f32 %v19063_v29, %v19064_v34 }
 0x73b   :  { %v13085_v3 = vpop.f32.mrf.mxu1 }
 0x73c   :  { %v7854_v28 = vadd.f32 %v13085_v3, %v7727_v57  ;;  %v19071_v3 = vld [vmem:[#allocation54_spill] sm:$0xff] }
 0x73d   :  { %v7845_v30 = vpop.f32.mrf.mxu1 }
 0x73e   :  { %v7846_v21 = vadd.f32 %v7845_v30, %v7720_v26  ;;  %v10252_v26 = vadd.f32 %v19066_v48, %v17757_v33 }
 0x740   :  { %v13088_v42 = vpop.f32.mrf.mxu1 }
 0x741   :  { %v7870_v23 = vadd.f32 %v13088_v42, %v7741_v20 }
 0x742   :  { %v7861_v31 = vpop.f32.mrf.mxu1 }
 0x743   :  { %v7862_v36 = vadd.f32 %v7861_v31, %v7734_v61  ;;  %v19073_v31 = vld [vmem:[#allocation83_spill] sm:$0xff] }
 0x750   :  { %v13123_v60 = vpop.f32.mrf.mxu0 }
 0x751   :  { %v7995_v59 = vadd.f32 %v13123_v60, %v7838_v49 }
 0x752   :  { %v7988_v58 = vpop.f32.mrf.mxu0 }
 0x753   :  { %v7989_v43 = vadd.f32 %v7988_v58, %v7830_v2  ;;  %v19070_v2 = vld [vmem:[#allocation104_spill] sm:$0xff]  ;;  %v19074_v58 = vld [vmem:[#allocation85_spill] sm:$0xff] }
 0x754   :  { %v13126_v25 = vpop.f32.mrf.mxu0 }
 0x755   :  { %v8007_v38 = vadd.f32 %v13126_v25, %v7854_v28  ;;  %v19072_v28 = vsub.f32 %v19070_v2, %v19071_v3 }
 0x756   :  { %v8000_v63 = vpop.f32.mrf.mxu0 }
 0x757   :  { %v8001_v22 = vadd.f32 %v8000_v63, %v7846_v21 }
 0x758   :  { %v13129_v53 = vpop.f32.mrf.mxu0 }
 0x759   :  { %v8019_v41 = vadd.f32 %v13129_v53, %v7870_v23  ;;  %v13164_v46 = vpop.f32.mrf.mxu1 }
 0x75a   :  { %v8112_v56 = vadd.f32 %v13164_v46, %v7995_v59  ;;  %v8012_v54 = vpop.f32.mrf.mxu0  ;;  %v19077_v46 = vld [vmem:[#allocation100_spill] sm:$0xff] }
 0x75b   :  { %v8013_v0 = vadd.f32 %v8012_v54, %v7862_v36  ;;  %v8105_v13 = vpop.f32.mrf.mxu1  ;;  %v10254_v36 = vadd.f32 %v19073_v31, %v17757_v33 }
 0x75c   :  { %v10190_v1 = vsub.f32 %v8112_v56, %v19059_v47  ;;  %v17755_v44 = vadd.f32 %v8105_v13, %v7989_v43  ;;  %v13177_v4 = vpop.f32.mrf.mxu0  ;;  %v19078_v56 = vld [vmem:[#allocation59_spill] sm:$0xff] }
 0x75d   :  { %v13167_v8 = vpop.f32.mrf.mxu1  ;;  %v19079_v54 = vsub.f32 %v19077_v46, %v19078_v56 }
 0x75e   :  { %19060 = vst [vmem:[#allocation114_spill] sm:$0xff] %v17755_v44  ;;  %v10215_v7 = vadd.f32 %v10190_v1, %v19065_v27  ;;  %v8124_v37 = vadd.f32 %v13167_v8, %v8007_v38  ;;  %v8276_v11 = vpop.f32.mrf.mxu0  ;;  %v19080_v8 = vld [vmem:[#allocation87_spill] sm:$0xff] }
 0x75f   :  { %v8117_v57 = vpop.f32.mrf.mxu1  ;;  %v10256_v29 = vadd.f32 %v19080_v8, %v17757_v33 }
 0x760   :  { %v10221_v19 = vadd.f32 %v10215_v7, %v17759_v35  ;;  %v10192_v20 = vsub.f32 %v8124_v37, %v19067_v5  ;;  %v17768_v49 = vadd.f32 %v8117_v57, %v8001_v22  ;;  %v13180_v45 = vpop.f32.mrf.mxu0 }
 0x761   :  { %v13170_v50 = vpop.f32.mrf.mxu1 }
 0x762   :  { %19068 = vst [vmem:[#allocation115_spill] sm:$0xff] %v17768_v49  ;;  %v17770_v61 = vmul.f32 %v10252_v26, %v10221_v19  ;;  %v10217_v30 = vadd.f32 %v10192_v20, %v19072_v28  ;;  %v8296_v21 = vpop.f32.mrf.mxu0  ;;  %v8136_v42 = vadd.f32 %v13170_v50, %v8019_v41 }
 0x763   :  { %v8129_v23 = vpop.f32.mrf.mxu1 }
 0x764   :  { %19069 = vst [vmem:[#allocation122_spill] sm:$0xff] %v17770_v61  ;;  %v10223_v60 = vadd.f32 %v10217_v30, %v17759_v35  ;;  %v13183_v59 = vpop.f32.mrf.mxu0  ;;  %v10194_v43 = vsub.f32 %v8136_v42, %v19074_v58  ;;  %v17779_v25 = vadd.f32 %v8129_v23, %v8013_v0 }
 0x765   :  { %v13205_v38 = vpop.f32.mrf.mxu1 }
 0x766   :  { %19075 = vst [vmem:[#allocation126_spill] sm:$0xff] %v17779_v25  ;;  %v17781_v63 = vmul.f32 %v10254_v36, %v10223_v60  ;;  %v8514_v22 = vadd.f32 %v13205_v38, %v13177_v4  ;;  %v8316_v53 = vpop.f32.mrf.mxu0  ;;  %v10219_v41 = vadd.f32 %v10194_v43, %v19079_v54 }
 0x767   :  { %v8507_v13 = vpop.f32.mrf.mxu1 }
 0x768   :  { %19076 = vst [vmem:[#allocation113_spill] sm:$0xff] %v17781_v63  ;;  %v8508_v47 = vadd.f32 %v8507_v13, %v8276_v11  ;;  %v13186_v1 = vpop.f32.mrf.mxu0  ;;  %v10225_v34 = vadd.f32 %v10219_v41, %v17759_v35 }
 0x769   :  { %v13208_v27 = vpop.f32.mrf.mxu1 }
 0x76a   :  { %v8526_v0 = vadd.f32 %v13208_v27, %v13180_v45  ;;  %v8336_v7 = vpop.f32.mrf.mxu0  ;;  %v17789_v37 = vmul.f32 %v10256_v29, %v10225_v34 }
 0x76b   :  { %v8519_v57 = vpop.f32.mrf.mxu1 }
 0x76c   :  { %19081 = vst [vmem:[#allocation112_spill] sm:$0xff] %v17789_v37  ;;  %v8520_v4 = vadd.f32 %v8519_v57, %v8296_v21  ;;  %v13189_v48 = vpop.f32.mrf.mxu0 }
 0x76d   :  { %v13211_v26 = vpop.f32.mrf.mxu1 }
 0x76e   :  { %v8538_v19 = vadd.f32 %v13211_v26, %v13183_v59  ;;  %v8356_v5 = vpop.f32.mrf.mxu0 }
 0x76f   :  { %v8531_v20 = vpop.f32.mrf.mxu1 }
 0x770   :  { %v8532_v50 = vadd.f32 %v8531_v20, %v8316_v53  ;;  %v13192_v11 = vpop.f32.mrf.mxu0 }
 0x771   :  { %v13214_v2 = vpop.f32.mrf.mxu1 }
 0x772   :  { %v17791_v3 = vadd.f32 %v13214_v2, %v13186_v1  ;;  %v8376_v28 = vpop.f32.mrf.mxu0 }
 0x773   :  { %v8543_v30 = vpop.f32.mrf.mxu1 }
 0x774   :  { %v17793_v42 = vadd.f32 %v8543_v30, %v8336_v7  ;;  %v13195_v45 = vpop.f32.mrf.mxu0 }
 0x775   :  { %v13217_v23 = vpop.f32.mrf.mxu1 }
 0x776   :  { %v17795_v31 = vadd.f32 %v13217_v23, %v13189_v48  ;;  %v8396_v36 = vpop.f32.mrf.mxu0 }
 0x777   :  { %v8555_v21 = vpop.f32.mrf.mxu1 }
 0x778   :  { %v17797_v60 = vadd.f32 %v8555_v21, %v8356_v5  ;;  %v17799_v59 = vpop.f32.mrf.mxu0 }
 0x779   :  { %v13220_v58 = vpop.f32.mrf.mxu1 }
 0x77a   :  { %v17801_v43 = vadd.f32 %v13220_v58, %v13192_v11  ;;  %v17803_v38 = vpop.f32.mrf.mxu0 }
 0x77b   :  { %v8567_v53 = vpop.f32.mrf.mxu1 }
 0x77c   :  { %v17805_v46 = vadd.f32 %v8567_v53, %v8376_v28  ;;  %v13233_v56 = vpop.f32.mrf.mxu0 }
 0x77d   :  { %v13223_v54 = vpop.f32.mrf.mxu1  ;;  %v8681_v41 = vadd.f32 %v13233_v56, %v8514_v22 }
 0x77e   :  { %v17807_v13 = vadd.f32 %v13223_v54, %v13195_v45  ;;  %v8673_v1 = vpop.f32.mrf.mxu0 }
 0x77f   :  { %v8579_v8 = vpop.f32.mrf.mxu1  ;;  %v8674_v29 = vadd.f32 %v8673_v1, %v8508_v47 }
 0x780   :  { %v17809_v34 = vadd.f32 %v8579_v8, %v8396_v36  ;;  %v13236_v27 = vpop.f32.mrf.mxu0 }
 0x781   :  { %v17811_v7 = vpop.f32.mrf.mxu1  ;;  %v8695_v57 = vadd.f32 %v13236_v27, %v8526_v0 }
 0x782   :  { %v8687_v48 = vpop.f32.mrf.mxu0 }
 0x783   :  { %v17813_v26 = vpop.f32.mrf.mxu1  ;;  %v8688_v5 = vadd.f32 %v8687_v48, %v8520_v4 }
 0x784   :  { %v13239_v20 = vpop.f32.mrf.mxu0 }
 0x785   :  { %v8709_v11 = vadd.f32 %v13239_v20, %v8538_v19  ;;  %v13261_v2 = vpop.f32.mrf.mxu1 }
 0x786   :  { %v17815_v28 = vadd.f32 %v13261_v2, %v8681_v41  ;;  %v8701_v22 = vpop.f32.mrf.mxu0 }
 0x787   :  { %v8702_v30 = vadd.f32 %v8701_v22, %v8532_v50  ;;  %v8853_v45 = vpop.f32.mrf.mxu1 }
 0x788   :  { %19082 = vst [vmem:[#allocation118_spill] sm:$0xff] %v17815_v28  ;;  %v17817_v23 = vadd.f32 %v8853_v45, %v8674_v29  ;;  %v17819_v47 = vpop.f32.mrf.mxu0 }
 0x789   :  { %v13264_v36 = vpop.f32.mrf.mxu1 }
 0x78a   :  { %19083 = vst [vmem:[#allocation127_spill] sm:$0xff] %v17817_v23  ;;  %v17821_v21 = vadd.f32 %v13264_v36, %v8695_v57  ;;  %v17823_v0 = vpop.f32.mrf.mxu0 }
 0x78b   :  { %v8869_v58 = vpop.f32.mrf.mxu1 }
 0x78c   :  { %v17825_v53 = vadd.f32 %v8869_v58, %v8688_v5  ;;  %v13245_v4 = vpop.f32.mrf.mxu0 }
 0x78d   :  { %v13267_v19 = vpop.f32.mrf.mxu1 }
 0x78e   :  { %19084 = vst [vmem:[#allocation109_spill] sm:$0xff] %v17825_v53  ;;  %v17827_v56 = vadd.f32 %v13267_v19, %v8709_v11  ;;  %v17829_v54 = vpop.f32.mrf.mxu0 }
 0x78f   :  { %v8885_v50 = vpop.f32.mrf.mxu1 }
 0x790   :  { %v17831_v41 = vadd.f32 %v8885_v50, %v8702_v30  ;;  %v13248_v1 = vpop.f32.mrf.mxu0 }
 0x791   :  { %v17833_v8 = vpop.f32.mrf.mxu1 }
 0x792   :  { %v8743_v29 = vpop.f32.mrf.mxu0 }
 0x793   :  { %v17835_v27 = vpop.f32.mrf.mxu1 }
 0x794   :  { %v13251_v57 = vpop.f32.mrf.mxu0 }
 0x795   :  { %v13273_v48 = vpop.f32.mrf.mxu1  ;;  %v8765_v14 = vadd.f32 %v13251_v57, %v17807_v13  ;;  %v8737_v57 = vadd.f32 %v13245_v4, %v17795_v31 }
 0x796   :  { %v8757_v20 = vpop.f32.mrf.mxu0 }
 0x797   :  { %v17837_v5 = vpop.f32.mrf.mxu1 }
 0x798   :  { %v13254_v2 = vpop.f32.mrf.mxu0 }
 0x799   :  { %v13276_v22 = vpop.f32.mrf.mxu1 }
 0x79a   :  { %v8771_v11 = vpop.f32.mrf.mxu0 }
 0x79b   :  { %v8933_v45 = vpop.f32.mrf.mxu1 }
 0x79c   :  { %v17839_v36 = vpop.f32.mrf.mxu0 }
 0x79d   :  { %19085 = vst [vmem:[#allocation119_spill] sm:$0xff] %v17839_v36  ;;  %v13279_v58 = vpop.f32.mrf.mxu1  ;;  %v8744_v36 = vadd.f32 %v8743_v29, %v17805_v46 }
 0x79e   :  { %v17841_v30 = vpop.f32.mrf.mxu0  ;;  %v8958_v23 = vadd.f32 %v13279_v58, %v8765_v14 }
 0x79f   :  { %19086 = vst [vmem:[#allocation124_spill] sm:$0xff] %v17841_v30  ;;  %v8949_v19 = vpop.f32.mrf.mxu1  ;;  %v8758_v30 = vadd.f32 %v8757_v20, %v17809_v34 }
 0x7a0   :  { %v17843_v50 = vpop.f32.mrf.mxu0 }
 0x7a1   :  { %19087 = vst [vmem:[#allocation111_spill] sm:$0xff] %v17843_v50  ;;  %v13282_v37 = vpop.f32.mrf.mxu1 }
 0x7a2   :  { %v17845_v63 = vpop.f32.mrf.mxu0 }
 0x7a3   :  { %19088 = vst [vmem:[#allocation110_spill] sm:$0xff] %v17845_v63  ;;  %v8965_v61 = vpop.f32.mrf.mxu1 }
 0x7a4   :  { %v17847_v25 = vpop.f32.mrf.mxu0 }
 0x7a5   :  { %v17849_v33 = vpop.f32.mrf.mxu1 }
 0x7a6   :  { %19089 = vst [vmem:[#allocation116_spill] sm:$0xff] %v17849_v33  ;;  %v17851_v35 = vpop.f32.mrf.mxu0  ;;  %v8751_v33 = vadd.f32 %v13248_v1, %v17801_v43 }
 0x7a7   :  { %v17853_v49 = vpop.f32.mrf.mxu1 }
 0x7a8   :  { %19090 = vst [vmem:[#allocation125_spill] sm:$0xff] %v17853_v49  ;;  %v17855_v44 = vpop.f32.mrf.mxu0  ;;  %v8598_v49 = vadd.f32 %v17811_v7, %v17799_v59  ;;  %v8942_v53 = vadd.f32 %v13276_v22, %v8751_v33  ;;  %v8934_v59 = vadd.f32 %v8933_v45, %v8744_v36 }
 0x7a9   :  { %v17857_v9 = vpop.f32.mrf.mxu1 }
 0x7aa   :  { %19091 = vst [vmem:[#allocation117_spill] sm:$0xff] %v17857_v9  ;;  %v17859_v18 = vpop.f32.mrf.mxu0  ;;  %v8779_v63 = vadd.f32 %v13254_v2, %v8598_v49 }
 0x7ab   :  { %v17861_v6 = vpop.f32.mrf.mxu1 }
 0x7ac   :  { %19092 = vst [vmem:[#allocation121_spill] sm:$0xff] %v17861_v6  ;;  %v13301_v51 = vpop.f32.mrf.mxu0  ;;  %v8592_v6 = vadd.f32 %v17813_v26, %v17803_v38  ;;  %v8974_v43 = vadd.f32 %v13282_v37, %v8779_v63  ;;  %v8730_v38 = vadd.f32 %v17829_v54, %v17797_v60  ;;  %v8926_v26 = vadd.f32 %v13273_v48, %v8737_v57 }
 0x7ad   :  { %v17863_v32 = vpop.f32.mrf.mxu1 }
 0x7ae   :  { %v9098_v55 = vpop.f32.mrf.mxu0  ;;  %v8772_v50 = vadd.f32 %v8771_v11, %v8592_v6  ;;  %v8723_v6 = vadd.f32 %v17819_v47, %v17791_v3 }
 0x7af   :  { %v17865_v62 = vpop.f32.mrf.mxu1 }
 0x7b0   :  { %19093 = vst [vmem:[#allocation123_spill] sm:$0xff] %v17865_v62  ;;  %v13304_v17 = vpop.f32.mrf.mxu0  ;;  %v8950_v62 = vadd.f32 %v8949_v19, %v8758_v30  ;;  %v8966_v46 = vadd.f32 %v8965_v61, %v8772_v50 }
 0x7b1   :  { %v17867_v12 = vpop.f32.mrf.mxu1  ;;  %v9117_v1 = vadd.f32 %v13304_v17, %v8942_v53  ;;  %v8918_v17 = vadd.f32 %v17837_v5, %v8730_v38 }
 0x7b2   :  { %v9110_v10 = vpop.f32.mrf.mxu0 }
 0x7b3   :  { %v17869_v39 = vpop.f32.mrf.mxu1  ;;  %v9111_v29 = vadd.f32 %v9110_v10, %v8934_v59  ;;  %v8716_v10 = vadd.f32 %v17823_v0, %v17793_v42 }
 0x7b4   :  { %v13307_v52 = vpop.f32.mrf.mxu0 }
 0x7b5   :  { %v13329_v40 = vpop.f32.mrf.mxu1  ;;  %v9129_v13 = vadd.f32 %v13307_v52, %v8958_v23 }
 0x7b6   :  { %v9122_v16 = vpop.f32.mrf.mxu0 }
 0x7b7   :  { %v9261_v15 = vpop.f32.mrf.mxu1  ;;  %v9123_v34 = vadd.f32 %v9122_v16, %v8950_v62  ;;  %v9105_v16 = vadd.f32 %v13301_v51, %v8926_v26 }
 0x7b8   :  { %v13310_v28 = vpop.f32.mrf.mxu0 }
 0x7b9   :  { %v13332_v24 = vpop.f32.mrf.mxu1  ;;  %v9141_v33 = vadd.f32 %v13310_v28, %v8974_v43  ;;  %v9099_v28 = vadd.f32 %v9098_v55, %v8918_v17  ;;  %v9268_v23 = vadd.f32 %v13329_v40, %v9105_v16  ;;  %v19099_v16 = vld [vmem:[#allocation118_spill] sm:$0xff] }
 0x7ba   :  { %v9134_v20 = vpop.f32.mrf.mxu0  ;;  %v9280_v2 = vadd.f32 %v13332_v24, %v9117_v1  ;;  %v8910_v24 = vadd.f32 %v17833_v8, %v8723_v6 }
 0x7bb   :  { %v9273_v9 = vpop.f32.mrf.mxu1  ;;  %v9135_v63 = vadd.f32 %v9134_v20, %v8966_v46  ;;  %v9262_v48 = vadd.f32 %v9261_v15, %v9099_v28  ;;  %v19097_v46 = vld [vmem:[#allocation110_spill] sm:$0xff]  ;;  %v19098_v20 = vld [vmem:[#allocation117_spill] sm:$0xff] }
 0x7bc   :  { %v9274_v37 = vadd.f32 %v9273_v9, %v9111_v29  ;;  %v17892_v4 = vand.u32 4294901760, %v9280_v2  ;;  %v8902_v9 = vadd.f32 %v17835_v27, %v8716_v10  ;;  %v9093_v54 = vadd.f32 %v17855_v44, %v8910_v24 }
 0x7bd   :  { %v13335_v7 = vpop.f32.mrf.mxu1  ;;  %v17914_v27 = vand.u32 4294901760, %v9268_v23  ;;  %v17933_v45 = vand.u32 4294901760, %v9262_v48 }
 0x7be   :  { %v9292_v14 = vadd.f32 %v13335_v7, %v9129_v13  ;;  %v17901_v5 = vand.u32 4294901760, %v9274_v37  ;;  %v9087_v0 = vadd.f32 %v17859_v18, %v8902_v9  ;;  %v9256_v8 = vadd.f32 %v17867_v12, %v9093_v54  ;;  %v19095_v7 = vld [vmem:[#allocation123_spill] sm:$0xff]  ;;  %v19103_v9 = vld [vmem:[#allocation124_spill] sm:$0xff] }
 0x7bf   :  { %v9285_v49 = vpop.f32.mrf.mxu1  ;;  %v17918_v15 = vsub.f32 %v9280_v2, %v17892_v4  ;;  %v9081_v12 = vadd.f32 %v17847_v25, %v17827_v56  ;;  %v17954_v50 = vsub.f32 %v9268_v23, %v17914_v27 }
 0x7c0   :  { %v17882_v52 = vand.u32 4294901760, %v9292_v14  ;;  %v9286_v31 = vadd.f32 %v9285_v49, %v9123_v34  ;;  %v9250_v18 = vadd.f32 %v17869_v39, %v9087_v0  ;;  %v17937_v36 = vsub.f32 %v9274_v37, %v17901_v5  ;;  %v19101_v37 = vld [vmem:[#allocation121_spill] sm:$0xff] }
 0x7c1   :  { %v13338_v62 = vpop.f32.mrf.mxu1  ;;  %v9075_v39 = vadd.f32 %v17851_v35, %v17831_v41  ;;  %v9244_v25 = vadd.f32 %v17863_v32, %v9081_v12  ;;  %v17951_v56 = vand.u32 4294901760, %v9256_v8  ;;  %v17963_v35 = vand.u32 4294901760, %v17918_v15  ;;  %v19094_v32 = vld [vmem:[#allocation111_spill] sm:$0xff] }
 0x7c2   :  { %v17887_v60 = vand.u32 4294901760, %v9286_v31  ;;  %v9304_v61 = vadd.f32 %v13338_v62, %v9141_v33  ;;  %v17895_v3 = vsub.f32 %v9292_v14, %v17882_v52  ;;  %v9069_v41 = vadd.f32 %v19094_v32, %v17821_v21  ;;  %v19096_v21 = vld [vmem:[#allocation109_spill] sm:$0xff]  ;;  %v19100_v62 = vld [vmem:[#allocation119_spill] sm:$0xff] }
 0x7c3   :  { %v9297_v53 = vpop.f32.mrf.mxu1  ;;  %v9238_v43 = vadd.f32 %v19095_v7, %v9075_v39  ;;  %v17968_v1 = vand.u32 4294901760, %v9250_v18  ;;  %v17972_v34 = vsub.f32 %v9262_v48, %v17933_v45  ;;  %v17978_v26 = vand.u32 4294901760, %v17937_v36  ;;  %v19104_v48 = vld [vmem:[#allocation116_spill] sm:$0xff] }
 0x7c4   :  { %v17897_v51 = vand.u32 4294901760, %v9304_v61  ;;  %v9298_v47 = vadd.f32 %v9297_v53, %v9135_v63  ;;  %v17904_v42 = vsub.f32 %v9286_v31, %v17887_v60  ;;  %v17928_v11 = vand.u32 4294901760, %v17895_v3 }
 0x7c5   :  { %v9063_v29 = vadd.f32 %v19097_v46, %v19096_v21  ;;  %v9232_v49 = vadd.f32 %v19098_v20, %v9069_v41  ;;  %v17983_v33 = vand.u32 4294901760, %v9244_v25  ;;  %v17987_v2 = vsub.f32 %v9256_v8, %v17951_v56 }
 0x7c6   :  { %v17907_v40 = vsub.f32 %v9304_v61, %v17897_v51  ;;  %v17909_v55 = vand.u32 4294901760, %v9298_v47  ;;  %13339 = vmatprep.subr.mxu0 %v17897_v51  ;;  %v17946_v19 = vand.u32 4294901760, %v17904_v42  ;;  %v9466_v59 = vsub.f32 %v17895_v3, %v17928_v11 }
 0x7c7   :  { %13340 = vmatpush3.msra.mxu0 %v17897_v51  ;;  %v9480_v6 = vsub.f32 %v17918_v15, %v17963_v35  ;;  %v17993_v17 = vand.u32 4294901760, %v17954_v50  ;;  %v9057_v63 = vadd.f32 %v19100_v62, %v19099_v16  ;;  %v9226_v61 = vadd.f32 %v19101_v37, %v9063_v29 }
 0x7c8   :  { %v17921_v44 = vsub.f32 %v9298_v47, %v17909_v55  ;;  %13341 = vmatprep.subr.mxu0 %v17909_v55  ;;  %v17925_v22 = vand.u32 4294901760, %v17907_v40  ;;  %v9473_v38 = vsub.f32 %v17904_v42, %v17946_v19  ;;  %v9467_v31 = vand.u32 4294901760, %v9466_v59  ;;  %v19102_v47 = vld [vmem:[#allocation127_spill] sm:$0xff] }
 0x7c9   :  { %13342 = vmatpush3.msra.mxu0 %v17909_v55  ;;  %v17998_v10 = vand.u32 4294901760, %v9238_v43  ;;  %v18002_v24 = vsub.f32 %v9250_v18, %v17968_v1  ;;  %v9487_v23 = vsub.f32 %v17937_v36, %v17978_v26  ;;  %v18008_v53 = vand.u32 4294901760, %v17972_v34 }
 0x7ca   :  { %13343 = vmatprep.subr.mxu0 %v17882_v52  ;;  %v9452_v58 = vsub.f32 %v17907_v40, %v17925_v22  ;;  %v17943_v30 = vand.u32 4294901760, %v17921_v44  ;;  %v9474_v28 = vand.u32 4294901760, %v9473_v38  ;;  %v9051_v54 = vadd.f32 %v19103_v9, %v19102_v47 }
 0x7cb   :  { %13344 = vmatpush3.msra.mxu0 %v17882_v52  ;;  %v9220_v0 = vadd.f32 %v19104_v48, %v9057_v63  ;;  %v18013_v8 = vand.u32 4294901760, %v9232_v49  ;;  %v18017_v12 = vsub.f32 %v9244_v25, %v17983_v33  ;;  %v9481_v18 = vand.u32 4294901760, %v9480_v6 }
 0x7cc   :  { %13345 = vmatprep.subr.mxu0 %v17887_v60  ;;  %v9453_v13 = vand.u32 4294901760, %v9452_v58  ;;  %v9459_v57 = vsub.f32 %v17921_v44, %v17943_v30  ;;  %v9494_v58 = vsub.f32 %v17954_v50, %v17993_v17  ;;  %v18023_v39 = vand.u32 4294901760, %v17987_v2 }
 0x7cd   :  { %13346 = vmatpush3.msra.mxu0 %v17887_v60  ;;  %v18026_v59 = vand.u32 4294901760, %v9226_v61  ;;  %v18030_v25 = vsub.f32 %v9238_v43, %v17998_v10  ;;  %v9488_v32 = vand.u32 4294901760, %v9487_v23  ;;  %v9501_v41 = vsub.f32 %v17972_v34, %v18008_v53 }
 0x7ce   :  { %13347 = vmatprep.subr.mxu0 %v17892_v4  ;;  %13380 = vmatprep.subr.mxu1 %v9453_v13  ;;  %v9460_v14 = vand.u32 4294901760, %v9459_v57  ;;  %v18036_v7 = vand.u32 4294901760, %v18002_v24  ;;  %v18042_v38 = vsub.f32 %v9232_v49, %v18013_v8  ;;  %v9495_v43 = vand.u32 4294901760, %v9494_v58 }
 0x7cf   :  { %13348 = vmatpush3.msra.mxu0 %v17892_v4  ;;  %13381 = vmatpush3.msra.mxu1 %v9453_v13  ;;  %v19105_v13 = vld [vmem:[#allocation125_spill] sm:$0xff]  ;;  %v9508_v21 = vsub.f32 %v17987_v2, %v18023_v39  ;;  %v18048_v46 = vand.u32 4294901760, %v18017_v12  ;;  %v18054_v20 = vsub.f32 %v9226_v61, %v18026_v59  ;;  %v9502_v49 = vand.u32 4294901760, %v9501_v41 }
 0x7d0   :  { %13349 = vmatprep.subr.mxu0 %v17901_v5  ;;  %13382 = vmatprep.subr.mxu1 %v9460_v14  ;;  %v9214_v57 = vadd.f32 %v19105_v13, %v9051_v54  ;;  %v18060_v6 = vand.u32 4294901760, %v18030_v25  ;;  %v18070_v37 = vand.u32 4294901760, %v18042_v38 }
 0x7d1   :  { %13350 = vmatpush3.msra.mxu0 %v17901_v5  ;;  %13383 = vmatpush3.msra.mxu1 %v9460_v14  ;;  %v18038_v14 = vand.u32 4294901760, %v9220_v0  ;;  %v9509_v62 = vand.u32 4294901760, %v9508_v21  ;;  %v9522_v63 = vsub.f32 %v18017_v12, %v18048_v46  ;;  %v18080_v47 = vand.u32 4294901760, %v18054_v20 }
 0x7d2   :  { %13351 = vmatprep.subr.mxu0 %v17914_v27  ;;  %13384 = vmatprep.subr.mxu1 %v9467_v31  ;;  %v18050_v29 = vand.u32 4294901760, %v9214_v57  ;;  %v9529_v23 = vsub.f32 %v18030_v25, %v18060_v6  ;;  %v9536_v54 = vsub.f32 %v18042_v38, %v18070_v37 }
 0x7d3   :  { %13352 = vmatpush3.msra.mxu0 %v17914_v27  ;;  %13385 = vmatpush3.msra.mxu1 %v9467_v31  ;;  %v9515_v31 = vsub.f32 %v18002_v24, %v18036_v7  ;;  %v18064_v16 = vsub.f32 %v9220_v0, %v18038_v14  ;;  %v9523_v9 = vand.u32 4294901760, %v9522_v63 }
 0x7d4   :  { %13353 = vmatprep.subr.mxu0 %v17933_v45  ;;  %13386 = vmatprep.subr.mxu1 %v9474_v28  ;;  %v18074_v61 = vsub.f32 %v9214_v57, %v18050_v29  ;;  %v9530_v0 = vand.u32 4294901760, %v9529_v23  ;;  %v9537_v13 = vand.u32 4294901760, %v9536_v54  ;;  %v19139_v23 = vld [vmem:[#allocation99_spill] sm:$0xff]  ;;  %v19140_v54 = vld [vmem:[#allocation41_spill] sm:$0xff] }
 0x7d5   :  { %13354 = vmatpush3.msra.mxu0 %v17933_v45  ;;  %13387 = vmatpush3.msra.mxu1 %v9474_v28  ;;  %v9516_v28 = vand.u32 4294901760, %v9515_v31  ;;  %v18087_v48 = vand.u32 4294901760, %v18064_v16  ;;  %v19123_v31 = vld [vmem:[#allocation35_spill] sm:$0xff] }
 0x7d6   :  { %13355 = vmatprep.subr.mxu0 %v17951_v56  ;;  %13388 = vmatprep.subr.mxu1 %v9481_v18  ;;  %v18094_v58 = vand.u32 4294901760, %v18074_v61 }
 0x7d7   :  { %13356 = vmatpush3.msra.mxu0 %v17951_v56  ;;  %13389 = vmatpush3.msra.mxu1 %v9481_v18  ;;  %v9543_v18 = vsub.f32 %v18054_v20, %v18080_v47  ;;  %v9550_v57 = vsub.f32 %v18064_v16, %v18087_v48 }
 0x7d8   :  { %13357 = vmatprep.subr.mxu0 %v17968_v1  ;;  %13390 = vmatprep.subr.mxu1 %v9488_v32  ;;  %v9557_v41 = vsub.f32 %v18074_v61, %v18094_v58 }
 0x7d9   :  { %13358 = vmatpush3.msra.mxu0 %v17968_v1  ;;  %13391 = vmatpush3.msra.mxu1 %v9488_v32  ;;  %v9544_v32 = vand.u32 4294901760, %v9543_v18  ;;  %v9551_v21 = vand.u32 4294901760, %v9550_v57  ;;  %v19142_v18 = vld [vmem:[#allocation48_spill] sm:$0xff]  ;;  %v19143_v57 = vld [vmem:[#allocation65_spill] sm:$0xff] }
 0x7da   :  { %13359 = vmatprep.subr.mxu0 %v17983_v33  ;;  %13392 = vmatprep.subr.mxu1 %v9495_v43 }
 0x7db   :  { %13360 = vmatpush3.msra.mxu0 %v17983_v33  ;;  %13393 = vmatpush3.msra.mxu1 %v9495_v43  ;;  %v19106_v43 = vld [vmem:[#allocation38_spill] sm:$0xff] }
 0x7dc   :  { %13361 = vmatprep.subr.mxu0 %v17998_v10  ;;  %13394 = vmatprep.subr.mxu1 %v9502_v49 }
 0x7dd   :  { %13362 = vmatpush3.msra.mxu0 %v17998_v10  ;;  %13395 = vmatpush3.msra.mxu1 %v9502_v49  ;;  %v9558_v49 = vand.u32 4294901760, %v9557_v41  ;;  %v19144_v41 = vld [vmem:[#allocation61_spill] sm:$0xff] }
 0x7de   :  { %13363 = vmatprep.subr.mxu0 %v18013_v8  ;;  %13396 = vmatprep.subr.mxu1 %v9509_v62 }
 0x7df   :  { %13364 = vmatpush3.msra.mxu0 %v18013_v8  ;;  %13397 = vmatpush3.msra.mxu1 %v9509_v62  ;;  %v19136_v62 = vld [vmem:[#allocation74_spill] sm:$0xff] }
 0x7e0   :  { %13365 = vmatprep.subr.mxu0 %v18026_v59  ;;  %13398 = vmatprep.subr.mxu1 %v9516_v28 }
 0x7e1   :  { %13366 = vmatpush3.msra.mxu0 %v18026_v59  ;;  %13399 = vmatpush3.msra.mxu1 %v9516_v28  ;;  %v19138_v28 = vld [vmem:[#allocation94_spill] sm:$0xff] }
 0x7e2   :  { %13367 = vmatprep.subr.mxu0 %v18038_v14  ;;  %13400 = vmatprep.subr.mxu1 %v9523_v9 }
 0x7e3   :  { %13368 = vmatpush3.msra.mxu0 %v18038_v14  ;;  %13401 = vmatpush3.msra.mxu1 %v9523_v9 }
 0x7e4   :  { %13369 = vmatprep.subr.mxu0 %v18050_v29  ;;  %13402 = vmatprep.subr.mxu1 %v9530_v0 }
 0x7e5   :  { %13370 = vmatpush3.msra.mxu0 %v18050_v29  ;;  %13403 = vmatpush3.msra.mxu1 %v9530_v0 }
 0x7e6   :  { %13404 = vmatprep.subr.mxu1 %v9537_v13  ;;  %13421 = vmatprep.subr.mxu0 %v17907_v40 }
 0x7e7   :  { %13372 = vmatmul.mubr.f32.vlgmr.msra.gmra.mxu0 %v19106_v43  ;;  %13405 = vmatpush3.msra.mxu1 %v9537_v13 }
 0x7e8   :  { %13422 = vmatpush3.msra.mxu0 %v17907_v40  ;;  %13406 = vmatprep.subr.mxu1 %v9544_v32  ;;  %v19107_v40 = vld [vmem:[#allocation24_spill] sm:$0xff] }
 0x7e9   :  { %13423 = vmatprep.subr.mxu0 %v17921_v44  ;;  %13407 = vmatpush3.msra.mxu1 %v9544_v32 }
 0x7ea   :  { %13424 = vmatpush3.msra.mxu0 %v17921_v44  ;;  %13408 = vmatprep.subr.mxu1 %v9551_v21  ;;  %v19111_v44 = vld [vmem:[#allocation28_spill] sm:$0xff] }
 0x7eb   :  { %13425 = vmatprep.subr.mxu0 %v17895_v3  ;;  %13409 = vmatpush3.msra.mxu1 %v9551_v21  ;;  %v19145_v21 = vld [vmem:[#allocation105_spill] sm:$0xff] }
 0x7ec   :  { %13426 = vmatpush3.msra.mxu0 %v17895_v3  ;;  %13410 = vmatprep.subr.mxu1 %v9558_v49  ;;  %v19108_v3 = vld [vmem:[#allocation29_spill] sm:$0xff] }
 0x7ed   :  { %13427 = vmatprep.subr.mxu0 %v17904_v42  ;;  %13411 = vmatpush3.msra.mxu1 %v9558_v49 }
 0x7ee   :  { %13428 = vmatpush3.msra.mxu0 %v17904_v42  ;;  %13413 = vmatmul.mubr.f32.vlgmr.msra.gmra.mxu1 %v19107_v40  ;;  %v19109_v42 = vld [vmem:[#allocation32_spill] sm:$0xff] }
 0x7ef   :  { %13429 = vmatprep.subr.mxu0 %v17918_v15  ;;  %13462 = vmatprep.subr.mxu1 %v17897_v51 }
 0x7f0   :  { %13430 = vmatpush3.msra.mxu0 %v17918_v15  ;;  %13463 = vmatpush3.msra.mxu1 %v17897_v51  ;;  %v19110_v15 = vld [vmem:[#allocation26_spill] sm:$0xff] }
 0x7f1   :  { %13431 = vmatprep.subr.mxu0 %v17937_v36  ;;  %13464 = vmatprep.subr.mxu1 %v17909_v55 }
 0x7f2   :  { %13432 = vmatpush3.msra.mxu0 %v17937_v36  ;;  %13465 = vmatpush3.msra.mxu1 %v17909_v55  ;;  %v19112_v36 = vld [vmem:[#allocation22_spill] sm:$0xff] }
 0x7f3   :  { %13433 = vmatprep.subr.mxu0 %v17954_v50  ;;  %13466 = vmatprep.subr.mxu1 %v17882_v52 }
 0x7f4   :  { %13434 = vmatpush3.msra.mxu0 %v17954_v50  ;;  %13467 = vmatpush3.msra.mxu1 %v17882_v52  ;;  %v19113_v50 = vld [vmem:[#allocation37_spill] sm:$0xff] }
 0x7f5   :  { %13435 = vmatprep.subr.mxu0 %v17972_v34  ;;  %13468 = vmatprep.subr.mxu1 %v17887_v60 }
 0x7f6   :  { %13436 = vmatpush3.msra.mxu0 %v17972_v34  ;;  %13469 = vmatpush3.msra.mxu1 %v17887_v60  ;;  %v19114_v34 = vld [vmem:[#allocation17_spill] sm:$0xff] }
 0x7f7   :  { %13437 = vmatprep.subr.mxu0 %v17987_v2  ;;  %13470 = vmatprep.subr.mxu1 %v17892_v4 }
 0x7f8   :  { %13438 = vmatpush3.msra.mxu0 %v17987_v2  ;;  %13471 = vmatpush3.msra.mxu1 %v17892_v4  ;;  %v19115_v2 = vld [vmem:[#allocation25_spill] sm:$0xff] }
 0x7f9   :  { %13439 = vmatprep.subr.mxu0 %v18002_v24  ;;  %13472 = vmatprep.subr.mxu1 %v17901_v5 }
 0x7fa   :  { %13440 = vmatpush3.msra.mxu0 %v18002_v24  ;;  %13473 = vmatpush3.msra.mxu1 %v17901_v5  ;;  %v19116_v24 = vld [vmem:[#allocation31_spill] sm:$0xff] }
 0x7fb   :  { %13441 = vmatprep.subr.mxu0 %v18017_v12  ;;  %13474 = vmatprep.subr.mxu1 %v17914_v27 }
 0x7fc   :  { %13442 = vmatpush3.msra.mxu0 %v18017_v12  ;;  %13475 = vmatpush3.msra.mxu1 %v17914_v27  ;;  %v19117_v12 = vld [vmem:[#allocation34_spill] sm:$0xff] }
 0x7fd   :  { %13443 = vmatprep.subr.mxu0 %v18030_v25  ;;  %13476 = vmatprep.subr.mxu1 %v17933_v45 }
 0x7fe   :  { %13374 = vmatprep.mubr.f32.mxu0 %v19108_v3  ;;  %13444 = vmatpush3.msra.mxu0 %v18030_v25  ;;  %v19118_v25 = vld [vmem:[#allocation39_spill] sm:$0xff] }
 0x7ff   :  { %13477 = vmatpush3.msra.mxu1 %v17933_v45  ;;  %13375 = vmatmul.mubr.f32.gmra.mxu0 %v19109_v42  ;;  %v19147_v42 = vld [vmem:[#allocation51_spill] sm:$0xff] }
 0x800   :  { %13445 = vmatprep.subr.mxu0 %v18042_v38  ;;  %13478 = vmatprep.subr.mxu1 %v17951_v56 }
 0x801   :  { %13446 = vmatpush3.msra.mxu0 %v18042_v38  ;;  %13479 = vmatpush3.msra.mxu1 %v17951_v56  ;;  %v19119_v38 = vld [vmem:[#allocation23_spill] sm:$0xff] }
 0x802   :  { %13447 = vmatprep.subr.mxu0 %v18054_v20  ;;  %13480 = vmatprep.subr.mxu1 %v17968_v1 }
 0x803   :  { %13377 = vmatprep.mubr.f32.mxu0 %v19110_v15  ;;  %13448 = vmatpush3.msra.mxu0 %v18054_v20  ;;  %v19121_v20 = vld [vmem:[#allocation18_spill] sm:$0xff] }
 0x804   :  { %13481 = vmatpush3.msra.mxu1 %v17968_v1  ;;  %13378 = vmatmul.mubr.f32.gmra.mxu0 %v19111_v44  ;;  %v19148_v44 = vld [vmem:[#allocation79_spill] sm:$0xff] }
 0x805   :  { %13449 = vmatprep.subr.mxu0 %v18064_v16  ;;  %13482 = vmatprep.subr.mxu1 %v17983_v33 }
 0x806   :  { %13415 = vmatprep.mubr.f32.mxu1 %v19112_v36  ;;  %13450 = vmatpush3.msra.mxu0 %v18064_v16  ;;  %v19135_v16 = vld [vmem:[#allocation66_spill] sm:$0xff] }
 0x807   :  { %13483 = vmatpush3.msra.mxu1 %v17983_v33  ;;  %13451 = vmatprep.subr.mxu0 %v18074_v61  ;;  %v3536_v63 = vadd.f32 %v19136_v62, %v19135_v16  ;;  %v19162_v16 = vld [vmem:[#allocation52_spill] sm:$0xff] }
 0x808   :  { %13416 = vmatmul.mubr.f32.gmra.mxu1 %v19113_v50  ;;  %13484 = vmatprep.subr.mxu1 %v17998_v10 }
 0x809   :  { %13452 = vmatpush3.msra.mxu0 %v18074_v61  ;;  %13453 = vmatprep.mubr.f32.mxu0 %v19114_v34  ;;  %v3672_v32 = vadd.f32 %v19143_v57, %v3536_v63  ;;  %v19163_v63 = vld [vmem:[#allocation81_spill] sm:$0xff]  ;;  %v19168_v57 = vld [vmem:[#allocation58_spill] sm:$0xff] }
 0x80a   :  { %13485 = vmatpush3.msra.mxu1 %v17998_v10  ;;  %13454 = vmatmul.mubr.f32.vlgmr.msra.gmra.mxu0 %v19115_v2  ;;  %v19150_v2 = vld [vmem:[#allocation93_spill] sm:$0xff] }
 0x80b   :  { %13486 = vmatprep.subr.mxu1 %v18013_v8  ;;  %13503 = vmatprep.subr.mxu0 %v17925_v22 }
 0x80c   :  { %13418 = vmatprep.mubr.f32.mxu1 %v19116_v24  ;;  %13487 = vmatpush3.msra.mxu1 %v18013_v8 }
 0x80d   :  { %13504 = vmatpush3.msra.mxu0 %v17925_v22  ;;  %13419 = vmatmul.mubr.f32.gmra.mxu1 %v19117_v12  ;;  %v19120_v22 = vld [vmem:[#allocation20_spill] sm:$0xff] }
 0x80e   :  { %13488 = vmatprep.subr.mxu1 %v18026_v59  ;;  %13505 = vmatprep.subr.mxu0 %v17943_v30 }
 0x80f   :  { %13456 = vmatprep.mubr.f32.mxu0 %v19118_v25  ;;  %13489 = vmatpush3.msra.mxu1 %v18026_v59  ;;  %v19152_v25 = vld [vmem:[#allocation97_spill] sm:$0xff] }
 0x810   :  { %13506 = vmatpush3.msra.mxu0 %v17943_v30  ;;  %13490 = vmatprep.subr.mxu1 %v18038_v14  ;;  %v19122_v30 = vld [vmem:[#allocation21_spill] sm:$0xff] }
 0x811   :  { %13457 = vmatmul.mubr.f32.gmra.mxu0 %v19119_v38  ;;  %13507 = vmatprep.subr.mxu0 %v17928_v11 }
 0x812   :  { %13491 = vmatpush3.msra.mxu1 %v18038_v14  ;;  %13508 = vmatpush3.msra.mxu0 %v17928_v11  ;;  %v19124_v11 = vld [vmem:[#allocation33_spill] sm:$0xff] }
 0x813   :  { %13492 = vmatprep.subr.mxu1 %v18050_v29  ;;  %13509 = vmatprep.subr.mxu0 %v17946_v19 }
 0x814   :  { %13459 = vmatprep.mubr.f32.mxu0 %v19120_v22  ;;  %13493 = vmatpush3.msra.mxu1 %v18050_v29 }
 0x815   :  { %13494 = vmatprep.mubr.f32.mxu1 %v19121_v20  ;;  %13510 = vmatpush3.msra.mxu0 %v17946_v19  ;;  %v19125_v19 = vld [vmem:[#allocation36_spill] sm:$0xff]  ;;  %v19153_v20 = vld [vmem:[#allocation49_spill] sm:$0xff] }
 0x816   :  { %13460 = vmatmul.mubr.f32.gmra.mxu0 %v19122_v30  ;;  %13495 = vmatmul.mubr.f32.vlgmr.msra.gmra.mxu1 %v19123_v31  ;;  %v19154_v31 = vld [vmem:[#allocation80_spill] sm:$0xff] }
 0x817   :  { %13511 = vmatprep.subr.mxu0 %v17963_v35  ;;  %13544 = vmatprep.subr.mxu1 %v17897_v51 }
 0x818   :  { %13512 = vmatpush3.msra.mxu0 %v17963_v35  ;;  %13545 = vmatpush3.msra.mxu1 %v17897_v51  ;;  %v19126_v51 = vld [vmem:[#allocation27_spill] sm:$0xff] }
 0x819   :  { %13513 = vmatprep.subr.mxu0 %v17978_v26  ;;  %13546 = vmatprep.subr.mxu1 %v17909_v55 }
 0x81a   :  { %13497 = vmatprep.mubr.f32.mxu1 %v19124_v11  ;;  %13514 = vmatpush3.msra.mxu0 %v17978_v26  ;;  %v19155_v11 = vld [vmem:[#allocation64_spill] sm:$0xff] }
 0x81b   :  { %13547 = vmatpush3.msra.mxu1 %v17909_v55  ;;  %13515 = vmatprep.subr.mxu0 %v17993_v17  ;;  %v19127_v55 = vld [vmem:[#allocation30_spill] sm:$0xff] }
 0x81c   :  { %13498 = vmatmul.mubr.f32.gmra.mxu1 %v19125_v19  ;;  %13548 = vmatprep.subr.mxu1 %v17882_v52  ;;  %v3548_v19 = vadd.f32 %v19155_v11, %v19154_v31 }
 0x81d   :  { %13516 = vmatpush3.msra.mxu0 %v17993_v17  ;;  %13549 = vmatpush3.msra.mxu1 %v17882_v52  ;;  %v19128_v52 = vld [vmem:[#allocation16_spill] sm:$0xff] }
 0x81e   :  { %13517 = vmatprep.subr.mxu0 %v18008_v53  ;;  %13550 = vmatprep.subr.mxu1 %v17887_v60  ;;  %v19130_v17 = vld [vmem:[#allocation72_spill] sm:$0xff] }
 0x81f   :  { %13500 = vmatprep.mubr.f32.mxu1 %v19126_v51  ;;  %13518 = vmatpush3.msra.mxu0 %v18008_v53 }
 0x820   :  { %13551 = vmatpush3.msra.mxu1 %v17887_v60  ;;  %13519 = vmatprep.subr.mxu0 %v18023_v39 }
 0x821   :  { %13501 = vmatmul.mubr.f32.gmra.mxu1 %v19127_v55  ;;  %13552 = vmatprep.subr.mxu1 %v17892_v4  ;;  %v19156_v55 = vld [vmem:[#allocation56_spill] sm:$0xff] }
 0x822   :  { %13520 = vmatpush3.msra.mxu0 %v18023_v39  ;;  %13553 = vmatpush3.msra.mxu1 %v17892_v4  ;;  %v19132_v39 = vld [vmem:[#allocation42_spill] sm:$0xff] }
 0x823   :  { %13521 = vmatprep.subr.mxu0 %v18036_v7  ;;  %13554 = vmatprep.subr.mxu1 %v17901_v5 }
 0x824   :  { %13522 = vmatpush3.msra.mxu0 %v18036_v7  ;;  %13555 = vmatpush3.msra.mxu1 %v17901_v5 }
 0x825   :  { %13523 = vmatprep.subr.mxu0 %v18048_v46  ;;  %13556 = vmatprep.subr.mxu1 %v17914_v27 }
 0x826   :  { %13524 = vmatpush3.msra.mxu0 %v18048_v46  ;;  %13557 = vmatpush3.msra.mxu1 %v17914_v27 }
 0x827   :  { %13525 = vmatprep.subr.mxu0 %v18060_v6  ;;  %13558 = vmatprep.subr.mxu1 %v17933_v45 }
 0x828   :  { %13526 = vmatpush3.msra.mxu0 %v18060_v6  ;;  %13559 = vmatpush3.msra.mxu1 %v17933_v45 }
 0x829   :  { %13527 = vmatprep.subr.mxu0 %v18070_v37  ;;  %13560 = vmatprep.subr.mxu1 %v17951_v56 }
 0x82a   :  { %13528 = vmatpush3.msra.mxu0 %v18070_v37  ;;  %13561 = vmatpush3.msra.mxu1 %v17951_v56  ;;  %v19137_v37 = vld [vmem:[#allocation70_spill] sm:$0xff] }
 0x82b   :  { %13529 = vmatprep.subr.mxu0 %v18080_v47  ;;  %13562 = vmatprep.subr.mxu1 %v17968_v1 }
 0x82c   :  { %13530 = vmatpush3.msra.mxu0 %v18080_v47  ;;  %13563 = vmatpush3.msra.mxu1 %v17968_v1  ;;  %v5548_v47 = vadd.f32 %v19139_v23, %v19138_v28  ;;  %v19164_v28 = vld [vmem:[#allocation75_spill] sm:$0xff] }
 0x82d   :  { %13531 = vmatprep.subr.mxu0 %v18087_v48  ;;  %13564 = vmatprep.subr.mxu1 %v17983_v33 }
 0x82e   :  { %13532 = vmatpush3.msra.mxu0 %v18087_v48  ;;  %13565 = vmatpush3.msra.mxu1 %v17983_v33  ;;  %v19129_v33 = vld [vmem:[#allocation67_spill] sm:$0xff]  ;;  %v19141_v48 = vld [vmem:[#allocation44_spill] sm:$0xff]  ;;  %v5682_v49 = vadd.f32 %v19145_v21, %v5548_v47  ;;  %v19165_v47 = vld [vmem:[#allocation106_spill] sm:$0xff] }
 0x82f   :  { %13533 = vmatprep.subr.mxu0 %v18094_v58  ;;  %13566 = vmatprep.subr.mxu1 %v17998_v10  ;;  %v1528_v0 = vadd.f32 %v19141_v48, %v19140_v54  ;;  %v19166_v48 = vld [vmem:[#allocation95_spill] sm:$0xff] }
 0x830   :  { %13534 = vmatpush3.msra.mxu0 %v18094_v58  ;;  %13535 = vmatprep.mubr.f32.mxu0 %v19128_v52  ;;  %v5806_v38 = vadd.f32 %v19152_v25, %v5682_v49  ;;  %v19175_v25 = vld [vmem:[#allocation63_spill] sm:$0xff] }
 0x831   :  { %13567 = vmatpush3.msra.mxu1 %v17998_v10  ;;  %13536 = vmatmul.mubr.f32.vlgmr.msra.gmra.mxu0 %v19107_v40  ;;  %v3524_v10 = vadd.f32 %v19130_v17, %v19129_v33  ;;  %v19157_v33 = vld [vmem:[#allocation71_spill] sm:$0xff] }
 0x832   :  { %13568 = vmatprep.subr.mxu1 %v18013_v8  ;;  %13538 = vmatprep.mubr.f32.mxu0 %v19112_v36 }
 0x833   :  { %13569 = vmatpush3.msra.mxu1 %v18013_v8  ;;  %13576 = vmatprep.mubr.f32.mxu1 %v19128_v52  ;;  %v19131_v8 = vld [vmem:[#allocation40_spill] sm:$0xff] }
 0x834   :  { %13570 = vmatprep.subr.mxu1 %v18026_v59 }
 0x835   :  { %13571 = vmatpush3.msra.mxu1 %v18026_v59  ;;  %13539 = vmatmul.mubr.f32.gmra.mxu0 %v19113_v50  ;;  %v1516_v59 = vadd.f32 %v19132_v39, %v19131_v8  ;;  %v19159_v39 = vld [vmem:[#allocation88_spill] sm:$0xff] }
 0x836   :  { %13572 = vmatprep.subr.mxu1 %v18038_v14  ;;  %13541 = vmatprep.mubr.f32.mxu0 %v19116_v24 }
 0x837   :  { %13573 = vmatpush3.msra.mxu1 %v18038_v14  ;;  %v19133_v14 = vld [vmem:[#allocation78_spill] sm:$0xff] }
 0x838   :  { %13574 = vmatprep.subr.mxu1 %v18050_v29  ;;  %v3658_v46 = vadd.f32 %v19133_v14, %v3524_v10  ;;  %v19158_v10 = vld [vmem:[#allocation92_spill] sm:$0xff] }
 0x839   :  { %13575 = vmatpush3.msra.mxu1 %v18050_v29  ;;  %13542 = vmatmul.mubr.f32.gmra.mxu0 %v19117_v12  ;;  %v19134_v29 = vld [vmem:[#allocation45_spill] sm:$0xff] }
 0x83a   :  { %13577 = vmatmul.mubr.f32.vlgmr.msra.gmra.mxu1 %v19107_v40  ;;  %v1650_v6 = vadd.f32 %v19134_v29, %v1516_v59  ;;  %v3782_v61 = vadd.f32 %v19137_v37, %v3658_v46  ;;  %v19146_v40 = vld [vmem:[#allocation46_spill] sm:$0xff]  ;;  %v5965_v59 = vadd.f32 %v19159_v39, %v5806_v38  ;;  %v19160_v46 = vld [vmem:[#allocation43_spill] sm:$0xff]  ;;  %v3686_v37 = vadd.f32 %v19163_v63, %v3548_v19  ;;  %v19177_v19 = vld [vmem:[#allocation96_spill] sm:$0xff] }
 0x83b   :  { %13579 = vmatprep.mubr.f32.mxu1 %v19112_v36  ;;  %v1664_v3 = vadd.f32 %v19146_v40, %v1528_v0  ;;  %v3798_v36 = vadd.f32 %v19148_v44, %v3672_v32  ;;  %v19161_v29 = vld [vmem:[#allocation47_spill] sm:$0xff]  ;;  %v19179_v39 = vld [vmem:[#allocation84_spill] sm:$0xff] }
 0x83c   :  { %v1774_v58 = vadd.f32 %v19142_v18, %v1650_v6  ;;  %v3941_v43 = vadd.f32 %v19144_v41, %v3782_v61  ;;  %v1540_v6 = vadd.f32 %v19161_v29, %v19160_v46  ;;  %v6082_v0 = vadd.f32 %v19166_v48, %v5965_v59  ;;  %v19167_v18 = vld [vmem:[#allocation50_spill] sm:$0xff]  ;;  %v19169_v41 = vld [vmem:[#allocation76_spill] sm:$0xff]  ;;  %v19170_v40 = vld [vmem:[#allocation107_spill] sm:$0xff] }
 0x83d   :  { %v1790_v30 = vadd.f32 %v19153_v20, %v1664_v3  ;;  %v3953_v17 = vadd.f32 %v19157_v33, %v3798_v36  ;;  %v19171_v3 = vld [vmem:[#allocation91_spill] sm:$0xff]  ;;  %v19173_v36 = vld [vmem:[#allocation114_spill] sm:$0xff] }
 0x83e   :  { %13580 = vmatmul.mubr.f32.gmra.mxu1 %v19113_v50  ;;  %v1933_v15 = vadd.f32 %v19147_v42, %v1774_v58  ;;  %v19149_v50 = vld [vmem:[#allocation62_spill] sm:$0xff]  ;;  %v1678_v58 = vadd.f32 %v19167_v18, %v1540_v6  ;;  %v5572_v42 = vadd.f32 %v19171_v3, %v19170_v40  ;;  %v19178_v33 = vld [vmem:[#allocation55_spill] sm:$0xff] }
 0x83f   :  { %13582 = vmatprep.mubr.f32.mxu1 %v19116_v24  ;;  %v4058_v34 = vadd.f32 %v19149_v50, %v3941_v43  ;;  %v19151_v24 = vld [vmem:[#allocation101_spill] sm:$0xff]  ;;  %v1945_v62 = vadd.f32 %v19162_v16, %v1790_v30  ;;  %v18331_v23 = vadd.f32 %v19164_v28, %v3953_v17  ;;  %v3814_v43 = vadd.f32 %v19169_v41, %v3686_v37  ;;  %v19176_v30 = vld [vmem:[#allocation108_spill] sm:$0xff]  ;;  %v19180_v46 = vld [vmem:[#allocation103_spill] sm:$0xff] }
 0x840   :  { %v2050_v52 = vadd.f32 %v19156_v55, %v1933_v15  ;;  %v19172_v15 = vld [vmem:[#allocation98_spill] sm:$0xff]  ;;  %v5710_v31 = vadd.f32 %v19176_v30, %v5572_v42  ;;  %v19181_v16 = vld [vmem:[#allocation115_spill] sm:$0xff]  ;;  %v19182_v37 = vld [vmem:[#allocation60_spill] sm:$0xff] }
 0x841   :  { %v10171_v61 = vmul.f32 %v4058_v34, %v4058_v34  ;;  %v18337_v32 = vadd.f32 %v19168_v57, %v1945_v62  ;;  %v3965_v38 = vadd.f32 %v19175_v25, %v3814_v43  ;;  %v10173_v20 = vmul.f32 %v18331_v23, %v18331_v23  ;;  %v19184_v57 = vld [vmem:[#allocation102_spill] sm:$0xff]  ;;  %v19185_v43 = vld [vmem:[#allocation128_spill] sm:$0xff] }
 0x842   :  { %13583 = vmatmul.mubr.f32.gmra.mxu1 %v19117_v12  ;;  %v5560_v12 = vadd.f32 %v19151_v24, %v19150_v2  ;;  %v10165_v49 = vmul.f32 %v2050_v52, %v2050_v52  ;;  %v19174_v24 = vld [vmem:[#allocation53_spill] sm:$0xff]  ;;  %v5838_v29 = vadd.f32 %v19180_v46, %v5710_v31 }
 0x843   :  { %v10189_v50 = vsub.f32 %v19173_v36, %v10171_v61  ;;  %v18358_v59 = vadd.f32 %v19179_v39, %v3965_v38  ;;  %v10191_v62 = vsub.f32 %v19181_v16, %v10173_v20  ;;  %v19186_v36 = vld [vmem:[#allocation120_spill] sm:$0xff]  ;;  %v10177_v38 = vmul.f32 %v4058_v34, %v2050_v52  ;;  %v19188_v39 = vld [vmem:[#allocation69_spill] sm:$0xff] }
 0x844   :  { %v5696_v8 = vadd.f32 %v19158_v10, %v5560_v12  ;;  %v1806_v12 = vadd.f32 %v19174_v24, %v1678_v58  ;;  %v10183_v11 = vsub.f32 %v6082_v0, %v10165_v49  ;;  %v10167_v10 = vmul.f32 %v18337_v32, %v18337_v32 }
 0x845   :  { %v10175_v58 = vmul.f32 %v18358_v59, %v18358_v59  ;;  %v10226_v52 = vmul.f32 2.0, %v10177_v38 }
 0x846   :  { %v5822_v54 = vadd.f32 %v19165_v47, %v5696_v8  ;;  %v1957_v17 = vadd.f32 %v19178_v33, %v1806_v12  ;;  %v10214_v6 = vadd.f32 %v10189_v50, %v10183_v11  ;;  %v10245_v47 = vadd.f32 %v10171_v61, %v10165_v49  ;;  %v19187_v50 = vld [vmem:[#allocation126_spill] sm:$0xff] }
 0x847   :  { %v10247_v49 = vadd.f32 %v10173_v20, %v10167_v10  ;;  %v10193_v24 = vsub.f32 %v19187_v50, %v10175_v58  ;;  %v10227_v20 = vmul.f32 2.0, %v19188_v39 }
 0x848   :  { %v5977_v44 = vadd.f32 %v19172_v15, %v5822_v54  ;;  %v18363_v28 = vadd.f32 %v19182_v37, %v1957_v17  ;;  %v19183_v54 = vld [vmem:[#allocation89_spill] sm:$0xff]  ;;  %v10220_v40 = vadd.f32 %v10214_v6, %v19185_v43  ;;  %v10251_v61 = vadd.f32 %v10245_v47, %v19186_v36 }
 0x849   :  { %v5989_v48 = vadd.f32 %v19183_v54, %v5838_v29  ;;  %v19189_v29 = vld [vmem:[#allocation122_spill] sm:$0xff]  ;;  %v10234_v54 = vadd.f32 %v19186_v36, %v10227_v20 }
 0x84a   :  { %v6094_v55 = vadd.f32 %v19177_v19, %v5977_v44  ;;  %v10169_v44 = vmul.f32 %v18363_v28, %v18363_v28  ;;  %v10257_v31 = vmul.f32 %v10251_v61, %v10220_v40  ;;  %13589 = vrcp.f32 %v19189_v29 }
 0x84b   :  { %v6106_v41 = vadd.f32 %v19184_v57, %v5989_v48  ;;  %v19190_v48 = vld [vmem:[#allocation113_spill] sm:$0xff]  ;;  %v10233_v57 = vadd.f32 %v19186_v36, %v10226_v52  ;;  %v10181_v29 = vmul.f32 %v18358_v59, %v18363_v28 }
 0x84c   :  { %v10185_v0 = vsub.f32 %v6094_v55, %v10167_v10  ;;  %v10253_v10 = vadd.f32 %v10247_v49, %v19186_v36  ;;  %v10249_v6 = vadd.f32 %v10175_v58, %v10169_v44  ;;  %13591 = vrcp.f32 %v10257_v31 }
 0x84d   :  { %v10187_v30 = vsub.f32 %v6106_v41, %v10169_v44  ;;  %13593 = vrcp.f32 %v19190_v48 }
 0x84e   :  { %v10216_v3 = vadd.f32 %v10191_v62, %v10185_v0 }
 0x84f   :  { %v10218_v46 = vadd.f32 %v10193_v24, %v10187_v30 }
 0x850   :  { %v10222_v11 = vadd.f32 %v10216_v3, %v19185_v43 }
 0x8a7   :  { %v18265_v60 = vpop.f32.mrf.mxu0 }
 0x8a9   :  { %v18267_v4 = vpop.f32.mrf.mxu0 }
 0x8ae   :  { %v18273_v45 = vpop.f32.mrf.mxu1 }
 0x8af   :  { %v9602_v12 = vadd.f32 %v18273_v45, %v18265_v60 }
 0x8b0   :  { %v18277_v35 = vpop.f32.mrf.mxu1 }
 0x8b1   :  { %v9596_v55 = vadd.f32 %v18277_v35, %v18267_v4  ;;  %v10259_v4 = vmul.f32 %v10253_v10, %v10222_v11 }
 0x8b3   :  { %13595 = vrcp.f32 %v10259_v4 }
 0x8bf   :  { %v18269_v5 = vpop.f32.mrf.mxu0 }
 0x8c1   :  { %v18271_v27 = vpop.f32.mrf.mxu0 }
 0x8c4   :  { %v18275_v56 = vpop.f32.mrf.mxu0 }
 0x8c6   :  { %v18281_v26 = vpop.f32.mrf.mxu0 }
 0x8c8   :  { %v18279_v1 = vpop.f32.mrf.mxu1 }
 0x8c9   :  { %v9614_v60 = vadd.f32 %v18279_v1, %v18269_v5  ;;  %v10224_v5 = vadd.f32 %v10218_v46, %v19185_v43 }
 0x8ca   :  { %v18285_v53 = vpop.f32.mrf.mxu1  ;;  %v18289_v7 = vpop.f32.mrf.mxu0 }
 0x8cb   :  { %v9737_v33 = vadd.f32 %v18289_v7, %v9602_v12  ;;  %v9608_v7 = vadd.f32 %v18285_v53, %v18271_v27  ;;  %v10255_v27 = vadd.f32 %v10249_v6, %v19186_v36 }
 0x8cc   :  { %v18303_v13 = vpop.f32.mrf.mxu0 }
 0x8cd   :  { %v18298_v9 = vpop.f32.mrf.mxu1  ;;  %v9730_v45 = vadd.f32 %v18303_v13, %v9596_v55 }
 0x8ce   :  { %v9626_v53 = vadd.f32 %v18298_v9, %v18275_v56 }
 0x8cf   :  { %v18315_v22 = vpop.f32.mrf.mxu1 }
 0x8d0   :  { %v9620_v44 = vadd.f32 %v18315_v22, %v18281_v26 }
 0x8d1   :  { %v18320_v51 = vpop.f32.mrf.mxu0 }
 0x8d2   :  { %v9751_v16 = vadd.f32 %v18320_v51, %v9614_v60 }
 0x8d3   :  { %v18340_v21 = vpop.f32.mrf.mxu0 }
 0x8d4   :  { %v9744_v13 = vadd.f32 %v18340_v21, %v9608_v7  ;;  %v10179_v21 = vmul.f32 %v18331_v23, %v18337_v32 }
 0x8d6   :  { %v13496_v14 = vpop.f32.mrf.mxu1  ;;  %v18355_v8 = vpop.f32.mrf.mxu0 }
 0x8d7   :  { %v9862_v34 = vadd.f32 %v13496_v14, %v9737_v33  ;;  %v9765_v61 = vadd.f32 %v18355_v8, %v9626_v53  ;;  %v10228_v8 = vmul.f32 2.0, %v10179_v21 }
 0x8d8   :  { %v9853_v2 = vpop.f32.mrf.mxu1  ;;  %v18366_v18 = vpop.f32.mrf.mxu0 }
 0x8d9   :  { %v9854_v62 = vadd.f32 %v9853_v2, %v9730_v45  ;;  %v9758_v30 = vadd.f32 %v18366_v18, %v9620_v44  ;;  %v13590_v18 = vpop.eup %13589  ;;  %v10235_v48 = vadd.f32 %v19186_v36, %v10228_v8 }
 0x8da   :  { %v13592_v52 = vpop.eup %13591 }
 0x8dc   :  { %v13499_v63 = vpop.f32.mrf.mxu1 }
 0x8dd   :  { %v9878_v14 = vadd.f32 %v13499_v63, %v9751_v16  ;;  %v10261_v63 = vmul.f32 %v10255_v27, %v10224_v5  ;;  %v19193_v16 = vld [vmem:[#allocation86_spill] sm:$0xff] }
 0x8de   :  { %v9869_v42 = vpop.f32.mrf.mxu1 }
 0x8df   :  { %v9870_v2 = vadd.f32 %v9869_v42, %v9744_v13  ;;  %v19191_v42 = vld [vmem:[#allocation82_spill] sm:$0xff] }
 0x8e0   :  { %v10229_v12 = vmul.f32 2.0, %v19191_v42 }
 0x8e1   :  { %v13502_v19 = vpop.f32.mrf.mxu1 }
 0x8e2   :  { %v9894_v31 = vadd.f32 %v13502_v19, %v9765_v61  ;;  %v10236_v19 = vadd.f32 %v19186_v36, %v10229_v12 }
 0x8e3   :  { %v9885_v35 = vpop.f32.mrf.mxu1 }
 0x8e4   :  { %v9886_v33 = vadd.f32 %v9885_v35, %v9758_v30 }
 0x8f1   :  { %v13537_v15 = vpop.f32.mrf.mxu0 }
 0x8f2   :  { %v10019_v37 = vadd.f32 %v13537_v15, %v9862_v34 }
 0x8f3   :  { %v10012_v25 = vpop.f32.mrf.mxu0 }
 0x8f4   :  { %v10013_v0 = vadd.f32 %v10012_v25, %v9854_v62  ;;  %v19192_v25 = vld [vmem:[#allocation112_spill] sm:$0xff]  ;;  %v10231_v62 = vmul.f32 2.0, %v19193_v16 }
 0x8f5   :  { %v13540_v17 = vpop.f32.mrf.mxu0  ;;  %13597 = vrcp.f32 %v19192_v25 }
 0x8f6   :  { %v10031_v41 = vadd.f32 %v13540_v17, %v9878_v14  ;;  %13599 = vrcp.f32 %v10261_v63 }
 0x8f7   :  { %v10024_v47 = vpop.f32.mrf.mxu0 }
 0x8f8   :  { %v10025_v50 = vadd.f32 %v10024_v47, %v9870_v2 }
 0x8f9   :  { %v13543_v40 = vpop.f32.mrf.mxu0 }
 0x8fa   :  { %v13578_v1 = vpop.f32.mrf.mxu1 }
 0x8fb   :  { %v10136_v58 = vadd.f32 %v13578_v1, %v10019_v37  ;;  %v10036_v32 = vpop.f32.mrf.mxu0  ;;  %v10230_v1 = vmul.f32 2.0, %v10181_v29 }
 0x8fc   :  { %v10129_v51 = vpop.f32.mrf.mxu1  ;;  %v10037_v60 = vadd.f32 %v10036_v32, %v9886_v33 }
 0x8fd   :  { %v10196_v3 = vsub.f32 %v10136_v58, %v19188_v39  ;;  %v10130_v15 = vadd.f32 %v10129_v51, %v10013_v0  ;;  %v10238_v51 = vadd.f32 %v19186_v36, %v10231_v62 }
 0x8fe   :  { %v13581_v49 = vpop.f32.mrf.mxu1 }
 0x8ff   :  { %v10202_v24 = vmul.f32 2.0, %v10196_v3  ;;  %v10195_v56 = vsub.f32 %v10130_v15, %v10177_v38  ;;  %v10148_v9 = vadd.f32 %v13581_v49, %v10031_v41  ;;  %v10043_v38 = vadd.f32 %v13543_v40, %v9894_v31 }
 0x900   :  { %v10141_v11 = vpop.f32.mrf.mxu1  ;;  %v10237_v15 = vadd.f32 %v19186_v36, %v10230_v1 }
 0x901   :  { %v10209_v23 = vadd.f32 %v19185_v43, %v10202_v24  ;;  %v10201_v55 = vmul.f32 2.0, %v10195_v56  ;;  %v10198_v26 = vsub.f32 %v10148_v9, %v19191_v42  ;;  %v10142_v22 = vadd.f32 %v10141_v11, %v10025_v50 }
 0x902   :  { %v13584_v17 = vpop.f32.mrf.mxu1 }
 0x903   :  { %v10240_v39 = vmul.f32 %v10234_v54, %v10209_v23  ;;  %v10208_v20 = vadd.f32 %v19185_v43, %v10201_v55  ;;  %v10204_v10 = vmul.f32 2.0, %v10198_v26  ;;  %v10197_v46 = vsub.f32 %v10142_v22, %v10179_v21  ;;  %v13594_v54 = vpop.eup %13593 }
 0x904   :  { %v10160_v45 = vadd.f32 %v13584_v17, %v10043_v38  ;;  %v10153_v34 = vpop.f32.mrf.mxu1  ;;  %v13596_v0 = vpop.eup %13595 }
 0x905   :  { %v10266_v6 = vmul.f32 %v13590_v18, %v10240_v39  ;;  %v10239_v4 = vmul.f32 %v10233_v57, %v10208_v20  ;;  %v10211_v35 = vadd.f32 %v19185_v43, %v10204_v10  ;;  %v10203_v7 = vmul.f32 2.0, %v10197_v46  ;;  %v13598_v44 = vpop.eup %13597 }
 0x906   :  { %v10200_v37 = vsub.f32 %v10160_v45, %v19193_v16  ;;  %v10154_v47 = vadd.f32 %v10153_v34, %v10037_v60  ;;  %v13600_v56 = vpop.eup %13599 }
 0x907   :  { %v10264_v5 = vmul.f32 %v13592_v52, %v10239_v4  ;;  %v10242_v59 = vmul.f32 %v10236_v19, %v10211_v35  ;;  %v10210_v28 = vadd.f32 %v19185_v43, %v10203_v7  ;;  %v10277_v53 = vsel %vm10275_vm1, %v10266_v6, 0.0 }
 0x908   :  { %v10206_v13 = vmul.f32 2.0, %v10200_v37  ;;  %v10199_v14 = vsub.f32 %v10154_v47, %v10181_v29 }
 0x909   :  { %v10241_v58 = vmul.f32 %v10235_v48, %v10210_v28  ;;  %v10270_v57 = vmul.f32 %v13594_v54, %v10242_v59  ;;  %v10276_v27 = vsel %vm10275_vm1, %v10264_v5, 0.0 }
 0x90a   :  { %v10213_v2 = vadd.f32 %v19185_v43, %v10206_v13  ;;  %v10205_v41 = vmul.f32 2.0, %v10199_v14  ;;  %v10278_v40 = vadd.f32 %v10277_v53, %v10276_v27 }
 0x90b   :  { %v10268_v3 = vmul.f32 %v13596_v0, %v10241_v58  ;;  %v10281_v9 = vsel %vm10275_vm1, %v10270_v57, 0.0 }
 0x90c   :  { %v10212_v21 = vadd.f32 %v19185_v43, %v10205_v41  ;;  %v10244_v63 = vmul.f32 %v10238_v51, %v10213_v2 }
 0x90d   :  { %v10279_v61 = vsel %vm10275_vm1, %v10268_v3, 0.0 }
 0x90e   :  { %v10243_v49 = vmul.f32 %v10237_v15, %v10212_v21  ;;  %v10274_v50 = vmul.f32 %v13598_v44, %v10244_v63  ;;  %v10280_v24 = vadd.f32 %v10279_v61, %v10278_v40 }
 0x910   :  { %v10272_v42 = vmul.f32 %v13600_v56, %v10243_v49  ;;  %v10282_v12 = vadd.f32 %v10281_v9, %v10280_v24  ;;  %v10285_v31 = vsel %vm10275_vm1, %v10274_v50, 0.0 }
 0x912   :  { %v10283_v25 = vsel %vm10275_vm1, %v10272_v42, 0.0 }
 0x913   :  { %v10284_v30 = vadd.f32 %v10283_v25, %v10282_v12 }
 0x915   :  { %v10286_v36 = vadd.f32 %v10285_v31, %v10284_v30 }
 0x917   :  { %10287 = vadd.xlane.f32.xlu0 %v10286_v36 }
 0x9a0   :  { %v10288_v43 = vpop.xlane.xlu0 %10287 }
 0x9a1   :  { %v10289_v11 = vrot.slane %v10288_v43, 4 }
 0x9a3   :  { %v10290_v23 = vadd.f32 %v10289_v11, %v10288_v43 }
 0x9a5   :  { %v10291_v32 = vrot.slane %v10290_v23, 2 }
 0x9a7   :  { %v10292_v55 = vadd.f32 %v10291_v32, %v10290_v23 }
 0x9a9   :  { %v10293_v26 = vrot.slane %v10292_v55, 1 }
 0x9ab   :  { %v10294_v22 = vadd.f32 %v10293_v26, %v10292_v55 }
 0x9ad   :  { %13585 = vpush %v10294_v22 }
 0x9de   :  { %s13586_s11 = spop %13585 }
 0x9df   :  { %v10296_v8 = vstv %s13586_s11 }
 0x9e0   :  { %10298 = vst.msk [vmem:[#allocation5] sm:$0x1] %vm10297_vm2, %v10296_v8 }
 0x9e1   :  { %13688 = shalt.err (!%p13685_p9)
}
 0x9e2   :  { %10308 = dma.vmem_to_hbm [thread:$0]  %s10306_s10, 16, %s18437_s5, [#allocation3]  }
 0x9e3   :  { %13699 = dma.done.wait [#allocation3], 16  }
 0x9e4   :  { %13700 = vsyncadd [#allocation3], 4294967280 }
 0x9e5   :  { %10312 = vsyncpa [#allocation3], 1 }
 0x9e6   :  { %10313 = vsyncpa [#allocation4], 1 }

</bundles_post_ra>
